<compile_context>
chip_gen: v6e
topology: v6e:2x2x1
jax: 0.10.0
libtpu: 0.0.40
codegen_flags: <defaults>
</compile_context>

<pallas_src>
import math

import jax
import jax.numpy as jnp
from jax.experimental import pallas as pl
from jax.experimental.pallas import tpu as pltpu

# ---- geometry / layout constants -------------------------------------------
H = W = 16                    # toy spatial size
D2 = 2                        # dilation of the bottleneck 3x3
PADW = 2                      # horizontal pad columns baked into the row layout
WL = W + 2 * PADW             # padded row width (20)
M = H * WL                    # rows per per-image slab (320)
VPAD = 48                     # vertical zero slack rows (>= D2*WL + D2, mult of 16)
MP = M + 2 * VPAD             # conv2 input scratch rows (416)
LANE = 128                    # channel padding target (lane / MXU friendly)
K1 = 128                      # stem im2col contraction (9 taps x 3 ch = 27 real)
CHUNK = 80                    # conv2 row chunk: keeps the f32 accumulator in vregs
NTAP = 9
N_CLS = 7
BN_EPS = 1e-5
BN_SCALE = 1.0 / math.sqrt(1.0 + BN_EPS)   # eval BN identity init (reference only)

_CompilerParams = getattr(pltpu, "CompilerParams", None) or getattr(
    pltpu, "TPUCompilerParams")


def _mosaic_params():
    return _CompilerParams(
        dimension_semantics=("parallel",),      # batch axis -> both TCs on v7x
        vmem_limit_bytes=32 * 1024 * 1024,      # explicit; ~3.5 MiB actually used
    )


def _full_spec(shape):
    zeros = (0,) * len(shape)
    return pl.BlockSpec(shape, lambda *_: zeros)


# -----------------------------------------------------------------------------
# Single fused per-image kernel
# -----------------------------------------------------------------------------
def _ck_fused_kernel(xcol_ref, mask_ref,
                     ws_ref, bs_ref, wbr_ref, bbr_ref,
                     w2_ref, b2_ref, w3_ref, b3_ref,
                     wse1_ref, bse1_ref, wse2_ref, bse2_ref,
                     wfc_ref, bfc_ref,
                     out_ref,
                     ypad_ref, res_ref, y3_ref):
    """One program per image.  Whole stage stays in VMEM.

    Row layout everywhere: flat index j = h*WL + wcol, real pixels at
    wcol in [PADW, PADW+W); `mask` is 1.0 on real pixels, 0.0 on pad columns.
    """
    mask = mask_ref[...]                                     # (M, 1) f32

    # ---- stem 3x3 conv: taps pre-packed into K (wrapper im2col), folded BN,
    #      ReLU.  Pad columns forced to zero (robust to non-zero folded bias).
    s = jnp.dot(xcol_ref[0], ws_ref[...], preferred_element_type=jnp.float32)
    s = jnp.maximum(s + bs_ref[...], 0.0) * mask             # (M, 128) f32
    s_bf = s.astype(jnp.bfloat16)

    # ---- fused residual 1x1 projection + bottleneck 1x1 squeeze
    #      (weights concatenated along N -> one 256-wide MXU pass).
    br = jnp.dot(s_bf, wbr_ref[...],
                 preferred_element_type=jnp.float32) + bbr_ref[...]
    res_ref[...] = br[:, :LANE]                              # residual, stays f32 in VMEM
    y1 = jnp.maximum(br[:, LANE:], 0.0) * mask               # (M, 128) f32

    # ---- stage y1 into the vertically zero-padded conv2 input slab (bf16).
    zslack = jnp.zeros((VPAD, LANE), jnp.bfloat16)
    ypad_ref[pl.ds(0, VPAD), :] = zslack
    ypad_ref[pl.ds(VPAD + M, VPAD), :] = zslack
    ypad_ref[pl.ds(VPAD, M), :] = y1.astype(jnp.bfloat16)

    # ---- dilated (d=2) 3x3 conv + 1x1 expand + SE global-average-pool,
    #      chunked over rows so the f32 accumulator stays in registers.
    #      Each tap is a CONTIGUOUS row window of ypad (no strided slices).
    pool = jnp.zeros((1, LANE), jnp.float32)
    for c in range(M // CHUNK):
        base = c * CHUNK
        acc = jnp.zeros((CHUNK, LANE), jnp.float32)
        for kh in range(3):
            for kw in range(3):
                off = VPAD + base + (kh - 1) * D2 * WL + (kw - 1) * D2
                win = ypad_ref[pl.ds(off, CHUNK), :]          # (CHUNK, 128) bf16
                acc = acc + jnp.dot(win, w2_ref[kh * 3 + kw],
                                    preferred_element_type=jnp.float32)
        y2c = jnp.maximum(acc + b2_ref[...], 0.0).astype(jnp.bfloat16)
        y3c = jnp.dot(y2c, w3_ref[...],
                      preferred_element_type=jnp.float32) + b3_ref[...]
        y3_ref[pl.ds(base, CHUNK), :] = y3c                   # f32, stays in VMEM
        pool = pool + jnp.sum(y3c * mask[base:base + CHUNK, :],
                              axis=0, keepdims=True)

    # ---- SE excitation MLP (tiny: (1,128)x(128,128) twice)
    p = (pool * (1.0 / (H * W))).astype(jnp.bfloat16)         # (1, 128)
    z = jnp.dot(p, wse1_ref[...],
                preferred_element_type=jnp.float32) + bse1_ref[...]
    z = jnp.maximum(z, 0.0).astype(jnp.bfloat16)
    e = jnp.dot(z, wse2_ref[...],
                preferred_element_type=jnp.float32) + bse2_ref[...]
    se = jax.nn.sigmoid(e)                                    # (1, 128) f32

    # ---- SE scale + residual add + ReLU + GAP + classifier FC
    out = jnp.maximum(y3_ref[...] * se + res_ref[...], 0.0) * mask
    gap = (jnp.sum(out, axis=0, keepdims=True) * (1.0 / (H * W)))
    logits = jnp.dot(gap.astype(jnp.bfloat16), wfc_ref[...],
                     preferred_element_type=jnp.float32) + bfc_ref[...]
    out_ref[0] = logits


def _ck_fused_call(fused, xcol, mask):
    n = xcol.shape[0]
    out = pl.pallas_call(
        _ck_fused_kernel,
        grid=(n,),
        in_specs=[
            pl.BlockSpec((1, M, K1), lambda b: (b, 0, 0)),    # per-image im2col slab
            _full_spec((M, 1)),                               # row validity mask
            _full_spec((K1, LANE)),                           # stem (taps packed in K)
            _full_spec((1, LANE)),
            _full_spec((LANE, 2 * LANE)),                     # [residual 1x1 | squeeze 1x1]
            _full_spec((1, 2 * LANE)),
            _full_spec((NTAP, LANE, LANE)),                   # dilated 3x3 taps
            _full_spec((1, LANE)),
            _full_spec((LANE, LANE)),                         # 1x1 expand
            _full_spec((1, LANE)),
            _full_spec((LANE, LANE)),                         # SE fc1
            _full_spec((1, LANE)),
            _full_spec((LANE, LANE)),                         # SE fc2
            _full_spec((1, LANE)),
            _full_spec((LANE, LANE)),                         # classifier FC
            _full_spec((1, LANE)),
        ],
        out_specs=pl.BlockSpec((1, 1, LANE), lambda b: (b, 0, 0)),
        out_shape=jax.ShapeDtypeStruct((n, 1, LANE), jnp.float32),  # padded logits
        scratch_shapes=[
            pltpu.VMEM((MP, LANE), jnp.bfloat16),             # padded conv2 input slab
            pltpu.VMEM((M, LANE), jnp.float32),               # residual branch
            pltpu.VMEM((M, LANE), jnp.float32),               # expanded bottleneck out
        ],
        compiler_params=_mosaic_params(),
    )(xcol, mask,
      fused["stem_w"], fused["stem_b"], fused["br_w"], fused["br_b"],
      fused["c2_w"], fused["c2_b"], fused["c3_w"], fused["c3_b"],
      fused["se1_w"], fused["se1_b"], fused["se2_w"], fused["se2_b"],
      fused["fc_w"], fused["fc_b"])
    return out[:, 0, :N_CLS]


# -----------------------------------------------------------------------------
# Deterministic parameter init (mirrors module.initialize()) + fusion prep
# -----------------------------------------------------------------------------
def kaiming_conv(key, kh, kw, cin, cout):
    fan_out = cout * kh * kw
    std = math.sqrt(2.0 / fan_out)
    return std * jax.random.normal(key, (kh, kw, cin, cout), dtype=jnp.float32)


def kaiming_linear(key, cin, cout):
    std = math.sqrt(2.0 / cout)
    return std * jax.random.normal(key, (cin, cout), dtype=jnp.float32)


def init_params(key, in_ch=3, stem_ch=16, mid_ch=8, out_ch=32, se_ch=8, n_cls=N_CLS):
    ks = jax.random.split(key, 8)
    return {
        "stem_w": kaiming_conv(ks[0], 3, 3, in_ch, stem_ch),
        "down_w": kaiming_conv(ks[1], 1, 1, stem_ch, out_ch),
        "c1_w": kaiming_conv(ks[2], 1, 1, stem_ch, mid_ch),
        "c2_w": kaiming_conv(ks[3], 3, 3, mid_ch, mid_ch),      # dilated 3x3
        "c3_w": kaiming_conv(ks[4], 1, 1, mid_ch, out_ch),
        "se_fc1_w": kaiming_linear(ks[5], out_ch, se_ch),
        "se_fc1_b": jnp.zeros((se_ch,), jnp.float32),
        "se_fc2_w": kaiming_linear(ks[6], se_ch, out_ch),
        "se_fc2_b": jnp.zeros((out_ch,), jnp.float32),
        "fc_w": kaiming_linear(ks[7], out_ch, n_cls),
        "fc_b": jnp.zeros((n_cls,), jnp.float32),
    }


def _fold_bn(w, gamma=None, beta=None, mean=None, var=None):
    """Fold eval-mode BN (per-channel) into conv weight + bias."""
    cout = w.shape[-1]
    gamma = jnp.ones((cout,), jnp.float32) if gamma is None else gamma
    beta = jnp.zeros((cout,), jnp.float32) if beta is None else beta
    mean = jnp.zeros((cout,), jnp.float32) if mean is None else mean
    var = jnp.ones((cout,), jnp.float32) if var is None else var
    scale = gamma / jnp.sqrt(var + BN_EPS)
    return w * scale, beta - mean * scale


def _pad2d(w, rows, cols):
    r, c = w.shape
    return jnp.pad(w, ((0, rows - r), (0, cols - c)))


def _pad_bias(b, cols):
    return jnp.pad(b, (0, cols - b.shape[0])).reshape(1, cols).astype(jnp.float32)


def prepare_fused_params(params):
    """Fold BN, pack conv taps (stem -> K dim, dilated -> tap-major), pad to
    LANE=128, concatenate the two 1x1 epilogue weights along N, cast matmul
    operands to bf16 (biases stay f32)."""
    sw, sb = _fold_bn(params["stem_w"])
    dw, db = _fold_bn(params["down_w"])
    c1w, c1b = _fold_bn(params["c1_w"])
    c2w, c2b = _fold_bn(params["c2_w"])
    c3w, c3b = _fold_bn(params["c3_w"])

    cin, cs = sw.shape[2], sw.shape[3]
    stem_w = _pad2d(sw.reshape(9 * cin, cs), K1, LANE).astype(jnp.bfloat16)

    br_w = jnp.concatenate(
        [_pad2d(dw.reshape(dw.shape[2], dw.shape[3]), LANE, LANE),
         _pad2d(c1w.reshape(c1w.shape[2], c1w.shape[3]), LANE, LANE)],
        axis=1).astype(jnp.bfloat16)
    br_b = jnp.concatenate([_pad_bias(db, LANE), _pad_bias(c1b, LANE)], axis=1)

    c2 = c2w.reshape(9, c2w.shape[2], c2w.shape[3])
    c2 = jnp.pad(c2, ((0, 0), (0, LANE - c2.shape[1]),
                      (0, LANE - c2.shape[2]))).astype(jnp.bfloat16)

    return {
        "stem_w": stem_w, "stem_b": _pad_bias(sb, LANE),
        "br_w": br_w, "br_b": br_b,
        "c2_w": c2, "c2_b": _pad_bias(c2b, LANE),
        "c3_w": _pad2d(c3w.reshape(c3w.shape[2], c3w.shape[3]),
                       LANE, LANE).astype(jnp.bfloat16),
        "c3_b": _pad_bias(c3b, LANE),
        "se1_w": _pad2d(params["se_fc1_w"], LANE, LANE).astype(jnp.bfloat16),
        "se1_b": _pad_bias(params["se_fc1_b"], LANE),
        "se2_w": _pad2d(params["se_fc2_w"], LANE, LANE).astype(jnp.bfloat16),
        "se2_b": _pad_bias(params["se_fc2_b"], LANE),
        "fc_w": _pad2d(params["fc_w"], LANE, LANE).astype(jnp.bfloat16),
        "fc_b": _pad_bias(params["fc_b"], LANE),
    }


# -----------------------------------------------------------------------------
# Input preparation (NCHW -> width-padded flat layout + stem im2col)
# -----------------------------------------------------------------------------
def preprocess_input(x_nchw):
    x = jnp.transpose(x_nchw, (0, 2, 3, 1)).astype(jnp.float32)   # NCHW -> NHWC
    n, h, w, cin = x.shape
    assert (h, w) == (H, W)
    xp = jnp.pad(x, ((0, 0), (1, 1), (1, 1), (0, 0)))             # 'same' pad for 3x3
    taps = [xp[:, kh:kh + H, kw:kw + W, :] for kh in range(3) for kw in range(3)]
    col = jnp.concatenate(taps, axis=-1)                          # (N,H,W,9*Cin)
    col = jnp.pad(col, ((0, 0), (0, 0), (PADW, PADW), (0, 0)))    # width-20 layout
    col = col.reshape(n, M, 9 * cin)
    col = jnp.pad(col, ((0, 0), (0, 0), (0, K1 - 9 * cin)))
    return col.astype(jnp.bfloat16)


def make_row_mask():
    wcol = jnp.arange(WL)
    valid = ((wcol >= PADW) & (wcol < PADW + W)).astype(jnp.float32)
    return jnp.tile(valid, (H,)).reshape(M, 1)


# -----------------------------------------------------------------------------
# Forward pass (equivalent of train_CK_net.forward: logits = self.model(x))
# -----------------------------------------------------------------------------
def train_ck_net_forward(fused, x_nchw):
    xcol = preprocess_input(x_nchw)
    mask = make_row_mask()
    return _ck_fused_call(fused, xcol, mask)


# -----------------------------------------------------------------------------
# Pure-JAX f32 reference of the same forward graph (validation only)
# -----------------------------------------------------------------------------
def reference_forward(params, x_nchw):
    x = jnp.transpose(x_nchw, (0, 2, 3, 1)).astype(jnp.float32)

    def conv(v, w, d):
        return BN_SCALE * jax.lax.conv_general_dilated(
            v, w, window_strides=(1, 1), padding="SAME", rhs_dilation=(d, d),
            dimension_numbers=("NHWC", "HWIO", "NHWC"))

    s = jax.nn.relu(conv(x, params["stem_w"], 1))
    res = conv(s, params["down_w"], 1)
    y = jax.nn.relu(conv(s, params["c1_w"], 1))
    y = jax.nn.relu(conv(y, params["c2_w"], 2))
    y = conv(y, params["c3_w"], 1)
    p = jnp.mean(y, axis=(1, 2))
    z = jax.nn.relu(p @ params["se_fc1_w"] + params["se_fc1_b"])
    se = jax.nn.sigmoid(z @ params["se_fc2_w"] + params["se_fc2_b"])
    out = jax.nn.relu(y * se[:, None, None, :] + res)
    return jnp.mean(out, axis=(1, 2)) @ params["fc_w"] + params["fc_b"]


# -----------------------------------------------------------------------------
if __name__ == "__main__":
    key = jax.random.PRNGKey(0)
    kp, kx = jax.random.split(key)

    # small CK+-like input: batch=2, 3 channels, 16x16 (NCHW, PyTorch layout)
    x = jax.random.normal(kx, (2, 3, 16, 16), dtype=jnp.float32)
    params = init_params(kp)
    fused = prepare_fused_params(params)

    logits = jax.jit(train_ck_net_forward)(fused, x)
    logits = jax.block_until_ready(logits)

    assert logits.shape == (2, N_CLS), logits.shape
    assert bool(jnp.all(jnp.isfinite(logits)))

    # validate against the pure-JAX f32 reference (bf16 operands => loose tol)
    ref = reference_forward(params, x)
    err = float(jnp.max(jnp.abs(logits - ref)))
    assert err < 1e-1, f"max |pallas - reference| = {err}"

    print("KERNEL_OK")
</pallas_src>

<mosaic_0001>
module attributes {stable_mosaic.version = 11 : i64} {
  func.func @_ck_fused_kernel(%arg0: i32, %arg1: memref<1x320x128xbf16, #tpu.memory_space<vmem>>, %arg2: memref<320x1xf32, #tpu.memory_space<vmem>>, %arg3: memref<128x128xbf16, #tpu.memory_space<vmem>>, %arg4: memref<1x128xf32, #tpu.memory_space<vmem>>, %arg5: memref<128x256xbf16, #tpu.memory_space<vmem>>, %arg6: memref<1x256xf32, #tpu.memory_space<vmem>>, %arg7: memref<9x128x128xbf16, #tpu.memory_space<vmem>>, %arg8: memref<1x128xf32, #tpu.memory_space<vmem>>, %arg9: memref<128x128xbf16, #tpu.memory_space<vmem>>, %arg10: memref<1x128xf32, #tpu.memory_space<vmem>>, %arg11: memref<128x128xbf16, #tpu.memory_space<vmem>>, %arg12: memref<1x128xf32, #tpu.memory_space<vmem>>, %arg13: memref<128x128xbf16, #tpu.memory_space<vmem>>, %arg14: memref<1x128xf32, #tpu.memory_space<vmem>>, %arg15: memref<128x128xbf16, #tpu.memory_space<vmem>>, %arg16: memref<1x128xf32, #tpu.memory_space<vmem>>, %arg17: memref<1x1x128xf32, #tpu.memory_space<vmem>>, %arg18: memref<416x128xbf16, #tpu.memory_space<vmem>>, %arg19: memref<320x128xf32, #tpu.memory_space<vmem>>, %arg20: memref<320x128xf32, #tpu.memory_space<vmem>>) attributes {dimension_semantics = [#tpu.dimension_semantics<parallel>], iteration_bounds = array<i64: 2>, scalar_prefetch = 0 : i64, scratch_operands = 3 : i64, tpu.core_type = #tpu.core_type<tc>, window_params = [{transform_indices = @transform_0, window_bounds = array<i64: 1, 320, 128>}, {pipeline_mode = #tpu.pipeline_mode<synchronous>, transform_indices = @transform_1, window_bounds = array<i64: 320, 1>}, {pipeline_mode = #tpu.pipeline_mode<synchronous>, transform_indices = @transform_2, window_bounds = array<i64: 128, 128>}, {pipeline_mode = #tpu.pipeline_mode<synchronous>, transform_indices = @transform_3, window_bounds = array<i64: 1, 128>}, {pipeline_mode = #tpu.pipeline_mode<synchronous>, transform_indices = @transform_4, window_bounds = array<i64: 128, 256>}, {pipeline_mode = #tpu.pipeline_mode<synchronous>, transform_indices = @transform_5, window_bounds = array<i64: 1, 256>}, {pipeline_mode = #tpu.pipeline_mode<synchronous>, transform_indices = @transform_6, window_bounds = array<i64: 9, 128, 128>}, {pipeline_mode = #tpu.pipeline_mode<synchronous>, transform_indices = @transform_7, window_bounds = array<i64: 1, 128>}, {pipeline_mode = #tpu.pipeline_mode<synchronous>, transform_indices = @transform_8, window_bounds = array<i64: 128, 128>}, {pipeline_mode = #tpu.pipeline_mode<synchronous>, transform_indices = @transform_9, window_bounds = array<i64: 1, 128>}, {pipeline_mode = #tpu.pipeline_mode<synchronous>, transform_indices = @transform_10, window_bounds = array<i64: 128, 128>}, {pipeline_mode = #tpu.pipeline_mode<synchronous>, transform_indices = @transform_11, window_bounds = array<i64: 1, 128>}, {pipeline_mode = #tpu.pipeline_mode<synchronous>, transform_indices = @transform_12, window_bounds = array<i64: 128, 128>}, {pipeline_mode = #tpu.pipeline_mode<synchronous>, transform_indices = @transform_13, window_bounds = array<i64: 1, 128>}, {pipeline_mode = #tpu.pipeline_mode<synchronous>, transform_indices = @transform_14, window_bounds = array<i64: 128, 128>}, {pipeline_mode = #tpu.pipeline_mode<synchronous>, transform_indices = @transform_15, window_bounds = array<i64: 1, 128>}, {transform_indices = @transform_16, window_bounds = array<i64: 1, 1, 128>}]} {
    %c0 = arith.constant 0 : index
    %c0_0 = arith.constant 0 : index
    %0 = vector.load %arg2[%c0, %c0_0] : memref<320x1xf32, #tpu.memory_space<vmem>>, vector<320x1xf32>
    %c0_1 = arith.constant 0 : index
    %c0_2 = arith.constant 0 : index
    %c0_3 = arith.constant 0 : index
    %1 = vector.load %arg1[%c0_1, %c0_2, %c0_3] : memref<1x320x128xbf16, #tpu.memory_space<vmem>>, vector<1x320x128xbf16>
    %2 = vector.shape_cast %1 : vector<1x320x128xbf16> to vector<320x128xbf16>
    %c0_4 = arith.constant 0 : index
    %c0_5 = arith.constant 0 : index
    %3 = vector.load %arg3[%c0_4, %c0_5] : memref<128x128xbf16, #tpu.memory_space<vmem>>, vector<128x128xbf16>
    %cst = arith.constant dense<0.000000e+00> : vector<320x128xf32>
    %4 = tpu.matmul %2, %3, %cst {dimension_numbers = #tpu.dot_dimension_numbers<[1], [0], [0], [1], [0, 0, 1, 1], [], []>} : vector<320x128xbf16>, vector<128x128xbf16>, vector<320x128xf32> -> vector<320x128xf32>
    %c0_6 = arith.constant 0 : index
    %c0_7 = arith.constant 0 : index
    %5 = vector.load %arg4[%c0_6, %c0_7] : memref<1x128xf32, #tpu.memory_space<vmem>>, vector<1x128xf32>
    %6 = vector.broadcast %5 : vector<1x128xf32> to vector<320x128xf32>
    %7 = arith.addf %4, %6 : vector<320x128xf32>
    %cst_8 = arith.constant 0.000000e+00 : f32
    %8 = vector.broadcast %cst_8 : f32 to vector<320x128xf32>
    %9 = arith.maximumf %7, %8 : vector<320x128xf32>
    %10 = vector.broadcast %0 : vector<320x1xf32> to vector<320x128xf32>
    %11 = arith.mulf %9, %10 : vector<320x128xf32>
    %12 = arith.truncf %11 : vector<320x128xf32> to vector<320x128xbf16>
    %c0_9 = arith.constant 0 : index
    %c0_10 = arith.constant 0 : index
    %13 = vector.load %arg5[%c0_9, %c0_10] : memref<128x256xbf16, #tpu.memory_space<vmem>>, vector<128x256xbf16>
    %cst_11 = arith.constant dense<0.000000e+00> : vector<320x256xf32>
    %14 = tpu.matmul %12, %13, %cst_11 {dimension_numbers = #tpu.dot_dimension_numbers<[1], [0], [0], [1], [0, 0, 1, 1], [], []>} : vector<320x128xbf16>, vector<128x256xbf16>, vector<320x256xf32> -> vector<320x256xf32>
    %c0_12 = arith.constant 0 : index
    %c0_13 = arith.constant 0 : index
    %15 = vector.load %arg6[%c0_12, %c0_13] : memref<1x256xf32, #tpu.memory_space<vmem>>, vector<1x256xf32>
    %16 = vector.broadcast %15 : vector<1x256xf32> to vector<320x256xf32>
    %17 = arith.addf %14, %16 : vector<320x256xf32>
    %18 = vector.extract_strided_slice %17 {offsets = [0, 0], sizes = [320, 128], strides = [1, 1]} : vector<320x256xf32> to vector<320x128xf32>
    %c0_14 = arith.constant 0 : index
    %c0_15 = arith.constant 0 : index
    %19 = vector.load %arg19[%c0_14, %c0_15] : memref<320x128xf32, #tpu.memory_space<vmem>>, vector<320x128xf32>
    tpu.vector_store %arg19[%c0_14, %c0_15], %18 {strides = array<i32>} : memref<320x128xf32, #tpu.memory_space<vmem>>, vector<320x128xf32>,
    %20 = vector.extract_strided_slice %17 {offsets = [0, 128], sizes = [320, 128], strides = [1, 1]} : vector<320x256xf32> to vector<320x128xf32>
    %cst_16 = arith.constant 0.000000e+00 : f32
    %21 = vector.broadcast %cst_16 : f32 to vector<320x128xf32>
    %22 = arith.maximumf %20, %21 : vector<320x128xf32>
    %23 = vector.broadcast %0 : vector<320x1xf32> to vector<320x128xf32>
    %24 = arith.mulf %22, %23 : vector<320x128xf32>
    %cst_17 = arith.constant 0.000000e+00 : bf16
    %25 = vector.broadcast %cst_17 : bf16 to vector<48x128xbf16>
    %c0_18 = arith.constant 0 : index
    %c0_19 = arith.constant 0 : index
    %26 = vector.load %arg18[%c0_18, %c0_19] : memref<416x128xbf16, #tpu.memory_space<vmem>>, vector<48x128xbf16>
    tpu.vector_store %arg18[%c0_18, %c0_19], %25 {strides = array<i32>} : memref<416x128xbf16, #tpu.memory_space<vmem>>, vector<48x128xbf16>,
    %c368 = arith.constant 368 : index
    %c0_20 = arith.constant 0 : index
    %27 = vector.load %arg18[%c368, %c0_20] : memref<416x128xbf16, #tpu.memory_space<vmem>>, vector<48x128xbf16>
    tpu.vector_store %arg18[%c368, %c0_20], %25 {strides = array<i32>} : memref<416x128xbf16, #tpu.memory_space<vmem>>, vector<48x128xbf16>,
    %28 = arith.truncf %24 : vector<320x128xf32> to vector<320x128xbf16>
    %c48 = arith.constant 48 : index
    %c0_21 = arith.constant 0 : index
    %29 = vector.load %arg18[%c48, %c0_21] : memref<416x128xbf16, #tpu.memory_space<vmem>>, vector<320x128xbf16>
    tpu.vector_store %arg18[%c48, %c0_21], %28 {strides = array<i32>} : memref<416x128xbf16, #tpu.memory_space<vmem>>, vector<320x128xbf16>,
    %cst_22 = arith.constant 0.000000e+00 : f32
    %30 = vector.broadcast %cst_22 : f32 to vector<1x128xf32>
    %cst_23 = arith.constant 0.000000e+00 : f32
    %31 = vector.broadcast %cst_23 : f32 to vector<80x128xf32>
    %c6 = arith.constant 6 : index
    %c0_24 = arith.constant 0 : index
    %32 = vector.load %arg18[%c6, %c0_24] : memref<416x128xbf16, #tpu.memory_space<vmem>>, vector<80x128xbf16>
    %c0_25 = arith.constant 0 : index
    %c0_26 = arith.constant 0 : index
    %c0_27 = arith.constant 0 : index
    %33 = vector.load %arg7[%c0_25, %c0_26, %c0_27] : memref<9x128x128xbf16, #tpu.memory_space<vmem>>, vector<1x128x128xbf16>
    %34 = vector.shape_cast %33 : vector<1x128x128xbf16> to vector<128x128xbf16>
    %cst_28 = arith.constant dense<0.000000e+00> : vector<80x128xf32>
    %35 = tpu.matmul %32, %34, %cst_28 {dimension_numbers = #tpu.dot_dimension_numbers<[1], [0], [0], [1], [0, 0, 1, 1], [], []>} : vector<80x128xbf16>, vector<128x128xbf16>, vector<80x128xf32> -> vector<80x128xf32>
    %36 = arith.addf %31, %35 : vector<80x128xf32>
    %c8 = arith.constant 8 : index
    %c0_29 = arith.constant 0 : index
    %37 = vector.load %arg18[%c8, %c0_29] : memref<416x128xbf16, #tpu.memory_space<vmem>>, vector<80x128xbf16>
    %c1 = arith.constant 1 : index
    %c0_30 = arith.constant 0 : index
    %c0_31 = arith.constant 0 : index
    %38 = vector.load %arg7[%c1, %c0_30, %c0_31] : memref<9x128x128xbf16, #tpu.memory_space<vmem>>, vector<1x128x128xbf16>
    %39 = vector.shape_cast %38 : vector<1x128x128xbf16> to vector<128x128xbf16>
    %cst_32 = arith.constant dense<0.000000e+00> : vector<80x128xf32>
    %40 = tpu.matmul %37, %39, %cst_32 {dimension_numbers = #tpu.dot_dimension_numbers<[1], [0], [0], [1], [0, 0, 1, 1], [], []>} : vector<80x128xbf16>, vector<128x128xbf16>, vector<80x128xf32> -> vector<80x128xf32>
    %41 = arith.addf %36, %40 : vector<80x128xf32>
    %c10 = arith.constant 10 : index
    %c0_33 = arith.constant 0 : index
    %42 = vector.load %arg18[%c10, %c0_33] : memref<416x128xbf16, #tpu.memory_space<vmem>>, vector<80x128xbf16>
    %c2 = arith.constant 2 : index
    %c0_34 = arith.constant 0 : index
    %c0_35 = arith.constant 0 : index
    %43 = vector.load %arg7[%c2, %c0_34, %c0_35] : memref<9x128x128xbf16, #tpu.memory_space<vmem>>, vector<1x128x128xbf16>
    %44 = vector.shape_cast %43 : vector<1x128x128xbf16> to vector<128x128xbf16>
    %cst_36 = arith.constant dense<0.000000e+00> : vector<80x128xf32>
    %45 = tpu.matmul %42, %44, %cst_36 {dimension_numbers = #tpu.dot_dimension_numbers<[1], [0], [0], [1], [0, 0, 1, 1], [], []>} : vector<80x128xbf16>, vector<128x128xbf16>, vector<80x128xf32> -> vector<80x128xf32>
    %46 = arith.addf %41, %45 : vector<80x128xf32>
    %c46 = arith.constant 46 : index
    %c0_37 = arith.constant 0 : index
    %47 = vector.load %arg18[%c46, %c0_37] : memref<416x128xbf16, #tpu.memory_space<vmem>>, vector<80x128xbf16>
    %c3 = arith.constant 3 : index
    %c0_38 = arith.constant 0 : index
    %c0_39 = arith.constant 0 : index
    %48 = vector.load %arg7[%c3, %c0_38, %c0_39] : memref<9x128x128xbf16, #tpu.memory_space<vmem>>, vector<1x128x128xbf16>
    %49 = vector.shape_cast %48 : vector<1x128x128xbf16> to vector<128x128xbf16>
    %cst_40 = arith.constant dense<0.000000e+00> : vector<80x128xf32>
    %50 = tpu.matmul %47, %49, %cst_40 {dimension_numbers = #tpu.dot_dimension_numbers<[1], [0], [0], [1], [0, 0, 1, 1], [], []>} : vector<80x128xbf16>, vector<128x128xbf16>, vector<80x128xf32> -> vector<80x128xf32>
    %51 = arith.addf %46, %50 : vector<80x128xf32>
    %c48_41 = arith.constant 48 : index
    %c0_42 = arith.constant 0 : index
    %52 = vector.load %arg18[%c48_41, %c0_42] : memref<416x128xbf16, #tpu.memory_space<vmem>>, vector<80x128xbf16>
    %c4 = arith.constant 4 : index
    %c0_43 = arith.constant 0 : index
    %c0_44 = arith.constant 0 : index
    %53 = vector.load %arg7[%c4, %c0_43, %c0_44] : memref<9x128x128xbf16, #tpu.memory_space<vmem>>, vector<1x128x128xbf16>
    %54 = vector.shape_cast %53 : vector<1x128x128xbf16> to vector<128x128xbf16>
    %cst_45 = arith.constant dense<0.000000e+00> : vector<80x128xf32>
    %55 = tpu.matmul %52, %54, %cst_45 {dimension_numbers = #tpu.dot_dimension_numbers<[1], [0], [0], [1], [0, 0, 1, 1], [], []>} : vector<80x128xbf16>, vector<128x128xbf16>, vector<80x128xf32> -> vector<80x128xf32>
    %56 = arith.addf %51, %55 : vector<80x128xf32>
    %c50 = arith.constant 50 : index
    %c0_46 = arith.constant 0 : index
    %57 = vector.load %arg18[%c50, %c0_46] : memref<416x128xbf16, #tpu.memory_space<vmem>>, vector<80x128xbf16>
    %c5 = arith.constant 5 : index
    %c0_47 = arith.constant 0 : index
    %c0_48 = arith.constant 0 : index
    %58 = vector.load %arg7[%c5, %c0_47, %c0_48] : memref<9x128x128xbf16, #tpu.memory_space<vmem>>, vector<1x128x128xbf16>
    %59 = vector.shape_cast %58 : vector<1x128x128xbf16> to vector<128x128xbf16>
    %cst_49 = arith.constant dense<0.000000e+00> : vector<80x128xf32>
    %60 = tpu.matmul %57, %59, %cst_49 {dimension_numbers = #tpu.dot_dimension_numbers<[1], [0], [0], [1], [0, 0, 1, 1], [], []>} : vector<80x128xbf16>, vector<128x128xbf16>, vector<80x128xf32> -> vector<80x128xf32>
    %61 = arith.addf %56, %60 : vector<80x128xf32>
    %c86 = arith.constant 86 : index
    %c0_50 = arith.constant 0 : index
    %62 = vector.load %arg18[%c86, %c0_50] : memref<416x128xbf16, #tpu.memory_space<vmem>>, vector<80x128xbf16>
    %c6_51 = arith.constant 6 : index
    %c0_52 = arith.constant 0 : index
    %c0_53 = arith.constant 0 : index
    %63 = vector.load %arg7[%c6_51, %c0_52, %c0_53] : memref<9x128x128xbf16, #tpu.memory_space<vmem>>, vector<1x128x128xbf16>
    %64 = vector.shape_cast %63 : vector<1x128x128xbf16> to vector<128x128xbf16>
    %cst_54 = arith.constant dense<0.000000e+00> : vector<80x128xf32>
    %65 = tpu.matmul %62, %64, %cst_54 {dimension_numbers = #tpu.dot_dimension_numbers<[1], [0], [0], [1], [0, 0, 1, 1], [], []>} : vector<80x128xbf16>, vector<128x128xbf16>, vector<80x128xf32> -> vector<80x128xf32>
    %66 = arith.addf %61, %65 : vector<80x128xf32>
    %c88 = arith.constant 88 : index
    %c0_55 = arith.constant 0 : index
    %67 = vector.load %arg18[%c88, %c0_55] : memref<416x128xbf16, #tpu.memory_space<vmem>>, vector<80x128xbf16>
    %c7 = arith.constant 7 : index
    %c0_56 = arith.constant 0 : index
    %c0_57 = arith.constant 0 : index
    %68 = vector.load %arg7[%c7, %c0_56, %c0_57] : memref<9x128x128xbf16, #tpu.memory_space<vmem>>, vector<1x128x128xbf16>
    %69 = vector.shape_cast %68 : vector<1x128x128xbf16> to vector<128x128xbf16>
    %cst_58 = arith.constant dense<0.000000e+00> : vector<80x128xf32>
    %70 = tpu.matmul %67, %69, %cst_58 {dimension_numbers = #tpu.dot_dimension_numbers<[1], [0], [0], [1], [0, 0, 1, 1], [], []>} : vector<80x128xbf16>, vector<128x128xbf16>, vector<80x128xf32> -> vector<80x128xf32>
    %71 = arith.addf %66, %70 : vector<80x128xf32>
    %c90 = arith.constant 90 : index
    %c0_59 = arith.constant 0 : index
    %72 = vector.load %arg18[%c90, %c0_59] : memref<416x128xbf16, #tpu.memory_space<vmem>>, vector<80x128xbf16>
    %c8_60 = arith.constant 8 : index
    %c0_61 = arith.constant 0 : index
    %c0_62 = arith.constant 0 : index
    %73 = vector.load %arg7[%c8_60, %c0_61, %c0_62] : memref<9x128x128xbf16, #tpu.memory_space<vmem>>, vector<1x128x128xbf16>
    %74 = vector.shape_cast %73 : vector<1x128x128xbf16> to vector<128x128xbf16>
    %cst_63 = arith.constant dense<0.000000e+00> : vector<80x128xf32>
    %75 = tpu.matmul %72, %74, %cst_63 {dimension_numbers = #tpu.dot_dimension_numbers<[1], [0], [0], [1], [0, 0, 1, 1], [], []>} : vector<80x128xbf16>, vector<128x128xbf16>, vector<80x128xf32> -> vector<80x128xf32>
    %76 = arith.addf %71, %75 : vector<80x128xf32>
    %c0_64 = arith.constant 0 : index
    %c0_65 = arith.constant 0 : index
    %77 = vector.load %arg8[%c0_64, %c0_65] : memref<1x128xf32, #tpu.memory_space<vmem>>, vector<1x128xf32>
    %78 = vector.broadcast %77 : vector<1x128xf32> to vector<80x128xf32>
    %79 = arith.addf %76, %78 : vector<80x128xf32>
    %cst_66 = arith.constant 0.000000e+00 : f32
    %80 = vector.broadcast %cst_66 : f32 to vector<80x128xf32>
    %81 = arith.maximumf %79, %80 : vector<80x128xf32>
    %82 = arith.truncf %81 : vector<80x128xf32> to vector<80x128xbf16>
    %c0_67 = arith.constant 0 : index
    %c0_68 = arith.constant 0 : index
    %83 = vector.load %arg9[%c0_67, %c0_68] : memref<128x128xbf16, #tpu.memory_space<vmem>>, vector<128x128xbf16>
    %cst_69 = arith.constant dense<0.000000e+00> : vector<80x128xf32>
    %84 = tpu.matmul %82, %83, %cst_69 {dimension_numbers = #tpu.dot_dimension_numbers<[1], [0], [0], [1], [0, 0, 1, 1], [], []>} : vector<80x128xbf16>, vector<128x128xbf16>, vector<80x128xf32> -> vector<80x128xf32>
    %c0_70 = arith.constant 0 : index
    %c0_71 = arith.constant 0 : index
    %85 = vector.load %arg10[%c0_70, %c0_71] : memref<1x128xf32, #tpu.memory_space<vmem>>, vector<1x128xf32>
    %86 = vector.broadcast %85 : vector<1x128xf32> to vector<80x128xf32>
    %87 = arith.addf %84, %86 : vector<80x128xf32>
    %c0_72 = arith.constant 0 : index
    %c0_73 = arith.constant 0 : index
    %88 = vector.load %arg20[%c0_72, %c0_73] : memref<320x128xf32, #tpu.memory_space<vmem>>, vector<80x128xf32>
    tpu.vector_store %arg20[%c0_72, %c0_73], %87 {strides = array<i32>} : memref<320x128xf32, #tpu.memory_space<vmem>>, vector<80x128xf32>,
    %89 = vector.extract_strided_slice %0 {offsets = [0, 0], sizes = [80, 1], strides = [1, 1]} : vector<320x1xf32> to vector<80x1xf32>
    %90 = vector.broadcast %89 : vector<80x1xf32> to vector<80x128xf32>
    %91 = arith.mulf %87, %90 : vector<80x128xf32>
    %cst_74 = arith.constant dense<0.000000e+00> : vector<128xf32>
    %92 = vector.multi_reduction <add>, %91, %cst_74 [0] : vector<80x128xf32> to vector<128xf32>
    %93 = vector.shape_cast %92 : vector<128xf32> to vector<1x128xf32>
    %94 = arith.addf %30, %93 : vector<1x128xf32>
    %cst_75 = arith.constant 0.000000e+00 : f32
    %95 = vector.broadcast %cst_75 : f32 to vector<80x128xf32>
    %c86_76 = arith.constant 86 : index
    %c0_77 = arith.constant 0 : index
    %96 = vector.load %arg18[%c86_76, %c0_77] : memref<416x128xbf16, #tpu.memory_space<vmem>>, vector<80x128xbf16>
    %c0_78 = arith.constant 0 : index
    %c0_79 = arith.constant 0 : index
    %c0_80 = arith.constant 0 : index
    %97 = vector.load %arg7[%c0_78, %c0_79, %c0_80] : memref<9x128x128xbf16, #tpu.memory_space<vmem>>, vector<1x128x128xbf16>
    %98 = vector.shape_cast %97 : vector<1x128x128xbf16> to vector<128x128xbf16>
    %cst_81 = arith.constant dense<0.000000e+00> : vector<80x128xf32>
    %99 = tpu.matmul %96, %98, %cst_81 {dimension_numbers = #tpu.dot_dimension_numbers<[1], [0], [0], [1], [0, 0, 1, 1], [], []>} : vector<80x128xbf16>, vector<128x128xbf16>, vector<80x128xf32> -> vector<80x128xf32>
    %100 = arith.addf %95, %99 : vector<80x128xf32>
    %c88_82 = arith.constant 88 : index
    %c0_83 = arith.constant 0 : index
    %101 = vector.load %arg18[%c88_82, %c0_83] : memref<416x128xbf16, #tpu.memory_space<vmem>>, vector<80x128xbf16>
    %c1_84 = arith.constant 1 : index
    %c0_85 = arith.constant 0 : index
    %c0_86 = arith.constant 0 : index
    %102 = vector.load %arg7[%c1_84, %c0_85, %c0_86] : memref<9x128x128xbf16, #tpu.memory_space<vmem>>, vector<1x128x128xbf16>
    %103 = vector.shape_cast %102 : vector<1x128x128xbf16> to vector<128x128xbf16>
    %cst_87 = arith.constant dense<0.000000e+00> : vector<80x128xf32>
    %104 = tpu.matmul %101, %103, %cst_87 {dimension_numbers = #tpu.dot_dimension_numbers<[1], [0], [0], [1], [0, 0, 1, 1], [], []>} : vector<80x128xbf16>, vector<128x128xbf16>, vector<80x128xf32> -> vector<80x128xf32>
    %105 = arith.addf %100, %104 : vector<80x128xf32>
    %c90_88 = arith.constant 90 : index
    %c0_89 = arith.constant 0 : index
    %106 = vector.load %arg18[%c90_88, %c0_89] : memref<416x128xbf16, #tpu.memory_space<vmem>>, vector<80x128xbf16>
    %c2_90 = arith.constant 2 : index
    %c0_91 = arith.constant 0 : index
    %c0_92 = arith.constant 0 : index
    %107 = vector.load %arg7[%c2_90, %c0_91, %c0_92] : memref<9x128x128xbf16, #tpu.memory_space<vmem>>, vector<1x128x128xbf16>
    %108 = vector.shape_cast %107 : vector<1x128x128xbf16> to vector<128x128xbf16>
    %cst_93 = arith.constant dense<0.000000e+00> : vector<80x128xf32>
    %109 = tpu.matmul %106, %108, %cst_93 {dimension_numbers = #tpu.dot_dimension_numbers<[1], [0], [0], [1], [0, 0, 1, 1], [], []>} : vector<80x128xbf16>, vector<128x128xbf16>, vector<80x128xf32> -> vector<80x128xf32>
    %110 = arith.addf %105, %109 : vector<80x128xf32>
    %c126 = arith.constant 126 : index
    %c0_94 = arith.constant 0 : index
    %111 = vector.load %arg18[%c126, %c0_94] : memref<416x128xbf16, #tpu.memory_space<vmem>>, vector<80x128xbf16>
    %c3_95 = arith.constant 3 : index
    %c0_96 = arith.constant 0 : index
    %c0_97 = arith.constant 0 : index
    %112 = vector.load %arg7[%c3_95, %c0_96, %c0_97] : memref<9x128x128xbf16, #tpu.memory_space<vmem>>, vector<1x128x128xbf16>
    %113 = vector.shape_cast %112 : vector<1x128x128xbf16> to vector<128x128xbf16>
    %cst_98 = arith.constant dense<0.000000e+00> : vector<80x128xf32>
    %114 = tpu.matmul %111, %113, %cst_98 {dimension_numbers = #tpu.dot_dimension_numbers<[1], [0], [0], [1], [0, 0, 1, 1], [], []>} : vector<80x128xbf16>, vector<128x128xbf16>, vector<80x128xf32> -> vector<80x128xf32>
    %115 = arith.addf %110, %114 : vector<80x128xf32>
    %c128 = arith.constant 128 : index
    %c0_99 = arith.constant 0 : index
    %116 = vector.load %arg18[%c128, %c0_99] : memref<416x128xbf16, #tpu.memory_space<vmem>>, vector<80x128xbf16>
    %c4_100 = arith.constant 4 : index
    %c0_101 = arith.constant 0 : index
    %c0_102 = arith.constant 0 : index
    %117 = vector.load %arg7[%c4_100, %c0_101, %c0_102] : memref<9x128x128xbf16, #tpu.memory_space<vmem>>, vector<1x128x128xbf16>
    %118 = vector.shape_cast %117 : vector<1x128x128xbf16> to vector<128x128xbf16>
    %cst_103 = arith.constant dense<0.000000e+00> : vector<80x128xf32>
    %119 = tpu.matmul %116, %118, %cst_103 {dimension_numbers = #tpu.dot_dimension_numbers<[1], [0], [0], [1], [0, 0, 1, 1], [], []>} : vector<80x128xbf16>, vector<128x128xbf16>, vector<80x128xf32> -> vector<80x128xf32>
    %120 = arith.addf %115, %119 : vector<80x128xf32>
    %c130 = arith.constant 130 : index
    %c0_104 = arith.constant 0 : index
    %121 = vector.load %arg18[%c130, %c0_104] : memref<416x128xbf16, #tpu.memory_space<vmem>>, vector<80x128xbf16>
    %c5_105 = arith.constant 5 : index
    %c0_106 = arith.constant 0 : index
    %c0_107 = arith.constant 0 : index
    %122 = vector.load %arg7[%c5_105, %c0_106, %c0_107] : memref<9x128x128xbf16, #tpu.memory_space<vmem>>, vector<1x128x128xbf16>
    %123 = vector.shape_cast %122 : vector<1x128x128xbf16> to vector<128x128xbf16>
    %cst_108 = arith.constant dense<0.000000e+00> : vector<80x128xf32>
    %124 = tpu.matmul %121, %123, %cst_108 {dimension_numbers = #tpu.dot_dimension_numbers<[1], [0], [0], [1], [0, 0, 1, 1], [], []>} : vector<80x128xbf16>, vector<128x128xbf16>, vector<80x128xf32> -> vector<80x128xf32>
    %125 = arith.addf %120, %124 : vector<80x128xf32>
    %c166 = arith.constant 166 : index
    %c0_109 = arith.constant 0 : index
    %126 = vector.load %arg18[%c166, %c0_109] : memref<416x128xbf16, #tpu.memory_space<vmem>>, vector<80x128xbf16>
    %c6_110 = arith.constant 6 : index
    %c0_111 = arith.constant 0 : index
    %c0_112 = arith.constant 0 : index
    %127 = vector.load %arg7[%c6_110, %c0_111, %c0_112] : memref<9x128x128xbf16, #tpu.memory_space<vmem>>, vector<1x128x128xbf16>
    %128 = vector.shape_cast %127 : vector<1x128x128xbf16> to vector<128x128xbf16>
    %cst_113 = arith.constant dense<0.000000e+00> : vector<80x128xf32>
    %129 = tpu.matmul %126, %128, %cst_113 {dimension_numbers = #tpu.dot_dimension_numbers<[1], [0], [0], [1], [0, 0, 1, 1], [], []>} : vector<80x128xbf16>, vector<128x128xbf16>, vector<80x128xf32> -> vector<80x128xf32>
    %130 = arith.addf %125, %129 : vector<80x128xf32>
    %c168 = arith.constant 168 : index
    %c0_114 = arith.constant 0 : index
    %131 = vector.load %arg18[%c168, %c0_114] : memref<416x128xbf16, #tpu.memory_space<vmem>>, vector<80x128xbf16>
    %c7_115 = arith.constant 7 : index
    %c0_116 = arith.constant 0 : index
    %c0_117 = arith.constant 0 : index
    %132 = vector.load %arg7[%c7_115, %c0_116, %c0_117] : memref<9x128x128xbf16, #tpu.memory_space<vmem>>, vector<1x128x128xbf16>
    %133 = vector.shape_cast %132 : vector<1x128x128xbf16> to vector<128x128xbf16>
    %cst_118 = arith.constant dense<0.000000e+00> : vector<80x128xf32>
    %134 = tpu.matmul %131, %133, %cst_118 {dimension_numbers = #tpu.dot_dimension_numbers<[1], [0], [0], [1], [0, 0, 1, 1], [], []>} : vector<80x128xbf16>, vector<128x128xbf16>, vector<80x128xf32> -> vector<80x128xf32>
    %135 = arith.addf %130, %134 : vector<80x128xf32>
    %c170 = arith.constant 170 : index
    %c0_119 = arith.constant 0 : index
    %136 = vector.load %arg18[%c170, %c0_119] : memref<416x128xbf16, #tpu.memory_space<vmem>>, vector<80x128xbf16>
    %c8_120 = arith.constant 8 : index
    %c0_121 = arith.constant 0 : index
    %c0_122 = arith.constant 0 : index
    %137 = vector.load %arg7[%c8_120, %c0_121, %c0_122] : memref<9x128x128xbf16, #tpu.memory_space<vmem>>, vector<1x128x128xbf16>
    %138 = vector.shape_cast %137 : vector<1x128x128xbf16> to vector<128x128xbf16>
    %cst_123 = arith.constant dense<0.000000e+00> : vector<80x128xf32>
    %139 = tpu.matmul %136, %138, %cst_123 {dimension_numbers = #tpu.dot_dimension_numbers<[1], [0], [0], [1], [0, 0, 1, 1], [], []>} : vector<80x128xbf16>, vector<128x128xbf16>, vector<80x128xf32> -> vector<80x128xf32>
    %140 = arith.addf %135, %139 : vector<80x128xf32>
    %c0_124 = arith.constant 0 : index
    %c0_125 = arith.constant 0 : index
    %141 = vector.load %arg8[%c0_124, %c0_125] : memref<1x128xf32, #tpu.memory_space<vmem>>, vector<1x128xf32>
    %142 = vector.broadcast %141 : vector<1x128xf32> to vector<80x128xf32>
    %143 = arith.addf %140, %142 : vector<80x128xf32>
    %cst_126 = arith.constant 0.000000e+00 : f32
    %144 = vector.broadcast %cst_126 : f32 to vector<80x128xf32>
    %145 = arith.maximumf %143, %144 : vector<80x128xf32>
    %146 = arith.truncf %145 : vector<80x128xf32> to vector<80x128xbf16>
    %c0_127 = arith.constant 0 : index
    %c0_128 = arith.constant 0 : index
    %147 = vector.load %arg9[%c0_127, %c0_128] : memref<128x128xbf16, #tpu.memory_space<vmem>>, vector<128x128xbf16>
    %cst_129 = arith.constant dense<0.000000e+00> : vector<80x128xf32>
    %148 = tpu.matmul %146, %147, %cst_129 {dimension_numbers = #tpu.dot_dimension_numbers<[1], [0], [0], [1], [0, 0, 1, 1], [], []>} : vector<80x128xbf16>, vector<128x128xbf16>, vector<80x128xf32> -> vector<80x128xf32>
    %c0_130 = arith.constant 0 : index
    %c0_131 = arith.constant 0 : index
    %149 = vector.load %arg10[%c0_130, %c0_131] : memref<1x128xf32, #tpu.memory_space<vmem>>, vector<1x128xf32>
    %150 = vector.broadcast %149 : vector<1x128xf32> to vector<80x128xf32>
    %151 = arith.addf %148, %150 : vector<80x128xf32>
    %c80 = arith.constant 80 : index
    %c0_132 = arith.constant 0 : index
    %152 = vector.load %arg20[%c80, %c0_132] : memref<320x128xf32, #tpu.memory_space<vmem>>, vector<80x128xf32>
    tpu.vector_store %arg20[%c80, %c0_132], %151 {strides = array<i32>} : memref<320x128xf32, #tpu.memory_space<vmem>>, vector<80x128xf32>,
    %153 = vector.extract_strided_slice %0 {offsets = [80, 0], sizes = [80, 1], strides = [1, 1]} : vector<320x1xf32> to vector<80x1xf32>
    %154 = vector.broadcast %153 : vector<80x1xf32> to vector<80x128xf32>
    %155 = arith.mulf %151, %154 : vector<80x128xf32>
    %cst_133 = arith.constant dense<0.000000e+00> : vector<128xf32>
    %156 = vector.multi_reduction <add>, %155, %cst_133 [0] : vector<80x128xf32> to vector<128xf32>
    %157 = vector.shape_cast %156 : vector<128xf32> to vector<1x128xf32>
    %158 = arith.addf %94, %157 : vector<1x128xf32>
    %cst_134 = arith.constant 0.000000e+00 : f32
    %159 = vector.broadcast %cst_134 : f32 to vector<80x128xf32>
    %c166_135 = arith.constant 166 : index
    %c0_136 = arith.constant 0 : index
    %160 = vector.load %arg18[%c166_135, %c0_136] : memref<416x128xbf16, #tpu.memory_space<vmem>>, vector<80x128xbf16>
    %c0_137 = arith.constant 0 : index
    %c0_138 = arith.constant 0 : index
    %c0_139 = arith.constant 0 : index
    %161 = vector.load %arg7[%c0_137, %c0_138, %c0_139] : memref<9x128x128xbf16, #tpu.memory_space<vmem>>, vector<1x128x128xbf16>
    %162 = vector.shape_cast %161 : vector<1x128x128xbf16> to vector<128x128xbf16>
    %cst_140 = arith.constant dense<0.000000e+00> : vector<80x128xf32>
    %163 = tpu.matmul %160, %162, %cst_140 {dimension_numbers = #tpu.dot_dimension_numbers<[1], [0], [0], [1], [0, 0, 1, 1], [], []>} : vector<80x128xbf16>, vector<128x128xbf16>, vector<80x128xf32> -> vector<80x128xf32>
    %164 = arith.addf %159, %163 : vector<80x128xf32>
    %c168_141 = arith.constant 168 : index
    %c0_142 = arith.constant 0 : index
    %165 = vector.load %arg18[%c168_141, %c0_142] : memref<416x128xbf16, #tpu.memory_space<vmem>>, vector<80x128xbf16>
    %c1_143 = arith.constant 1 : index
    %c0_144 = arith.constant 0 : index
    %c0_145 = arith.constant 0 : index
    %166 = vector.load %arg7[%c1_143, %c0_144, %c0_145] : memref<9x128x128xbf16, #tpu.memory_space<vmem>>, vector<1x128x128xbf16>
    %167 = vector.shape_cast %166 : vector<1x128x128xbf16> to vector<128x128xbf16>
    %cst_146 = arith.constant dense<0.000000e+00> : vector<80x128xf32>
    %168 = tpu.matmul %165, %167, %cst_146 {dimension_numbers = #tpu.dot_dimension_numbers<[1], [0], [0], [1], [0, 0, 1, 1], [], []>} : vector<80x128xbf16>, vector<128x128xbf16>, vector<80x128xf32> -> vector<80x128xf32>
    %169 = arith.addf %164, %168 : vector<80x128xf32>
    %c170_147 = arith.constant 170 : index
    %c0_148 = arith.constant 0 : index
    %170 = vector.load %arg18[%c170_147, %c0_148] : memref<416x128xbf16, #tpu.memory_space<vmem>>, vector<80x128xbf16>
    %c2_149 = arith.constant 2 : index
    %c0_150 = arith.constant 0 : index
    %c0_151 = arith.constant 0 : index
    %171 = vector.load %arg7[%c2_149, %c0_150, %c0_151] : memref<9x128x128xbf16, #tpu.memory_space<vmem>>, vector<1x128x128xbf16>
    %172 = vector.shape_cast %171 : vector<1x128x128xbf16> to vector<128x128xbf16>
    %cst_152 = arith.constant dense<0.000000e+00> : vector<80x128xf32>
    %173 = tpu.matmul %170, %172, %cst_152 {dimension_numbers = #tpu.dot_dimension_numbers<[1], [0], [0], [1], [0, 0, 1, 1], [], []>} : vector<80x128xbf16>, vector<128x128xbf16>, vector<80x128xf32> -> vector<80x128xf32>
    %174 = arith.addf %169, %173 : vector<80x128xf32>
    %c206 = arith.constant 206 : index
    %c0_153 = arith.constant 0 : index
    %175 = vector.load %arg18[%c206, %c0_153] : memref<416x128xbf16, #tpu.memory_space<vmem>>, vector<80x128xbf16>
    %c3_154 = arith.constant 3 : index
    %c0_155 = arith.constant 0 : index
    %c0_156 = arith.constant 0 : index
    %176 = vector.load %arg7[%c3_154, %c0_155, %c0_156] : memref<9x128x128xbf16, #tpu.memory_space<vmem>>, vector<1x128x128xbf16>
    %177 = vector.shape_cast %176 : vector<1x128x128xbf16> to vector<128x128xbf16>
    %cst_157 = arith.constant dense<0.000000e+00> : vector<80x128xf32>
    %178 = tpu.matmul %175, %177, %cst_157 {dimension_numbers = #tpu.dot_dimension_numbers<[1], [0], [0], [1], [0, 0, 1, 1], [], []>} : vector<80x128xbf16>, vector<128x128xbf16>, vector<80x128xf32> -> vector<80x128xf32>
    %179 = arith.addf %174, %178 : vector<80x128xf32>
    %c208 = arith.constant 208 : index
    %c0_158 = arith.constant 0 : index
    %180 = vector.load %arg18[%c208, %c0_158] : memref<416x128xbf16, #tpu.memory_space<vmem>>, vector<80x128xbf16>
    %c4_159 = arith.constant 4 : index
    %c0_160 = arith.constant 0 : index
    %c0_161 = arith.constant 0 : index
    %181 = vector.load %arg7[%c4_159, %c0_160, %c0_161] : memref<9x128x128xbf16, #tpu.memory_space<vmem>>, vector<1x128x128xbf16>
    %182 = vector.shape_cast %181 : vector<1x128x128xbf16> to vector<128x128xbf16>
    %cst_162 = arith.constant dense<0.000000e+00> : vector<80x128xf32>
    %183 = tpu.matmul %180, %182, %cst_162 {dimension_numbers = #tpu.dot_dimension_numbers<[1], [0], [0], [1], [0, 0, 1, 1], [], []>} : vector<80x128xbf16>, vector<128x128xbf16>, vector<80x128xf32> -> vector<80x128xf32>
    %184 = arith.addf %179, %183 : vector<80x128xf32>
    %c210 = arith.constant 210 : index
    %c0_163 = arith.constant 0 : index
    %185 = vector.load %arg18[%c210, %c0_163] : memref<416x128xbf16, #tpu.memory_space<vmem>>, vector<80x128xbf16>
    %c5_164 = arith.constant 5 : index
    %c0_165 = arith.constant 0 : index
    %c0_166 = arith.constant 0 : index
    %186 = vector.load %arg7[%c5_164, %c0_165, %c0_166] : memref<9x128x128xbf16, #tpu.memory_space<vmem>>, vector<1x128x128xbf16>
    %187 = vector.shape_cast %186 : vector<1x128x128xbf16> to vector<128x128xbf16>
    %cst_167 = arith.constant dense<0.000000e+00> : vector<80x128xf32>
    %188 = tpu.matmul %185, %187, %cst_167 {dimension_numbers = #tpu.dot_dimension_numbers<[1], [0], [0], [1], [0, 0, 1, 1], [], []>} : vector<80x128xbf16>, vector<128x128xbf16>, vector<80x128xf32> -> vector<80x128xf32>
    %189 = arith.addf %184, %188 : vector<80x128xf32>
    %c246 = arith.constant 246 : index
    %c0_168 = arith.constant 0 : index
    %190 = vector.load %arg18[%c246, %c0_168] : memref<416x128xbf16, #tpu.memory_space<vmem>>, vector<80x128xbf16>
    %c6_169 = arith.constant 6 : index
    %c0_170 = arith.constant 0 : index
    %c0_171 = arith.constant 0 : index
    %191 = vector.load %arg7[%c6_169, %c0_170, %c0_171] : memref<9x128x128xbf16, #tpu.memory_space<vmem>>, vector<1x128x128xbf16>
    %192 = vector.shape_cast %191 : vector<1x128x128xbf16> to vector<128x128xbf16>
    %cst_172 = arith.constant dense<0.000000e+00> : vector<80x128xf32>
    %193 = tpu.matmul %190, %192, %cst_172 {dimension_numbers = #tpu.dot_dimension_numbers<[1], [0], [0], [1], [0, 0, 1, 1], [], []>} : vector<80x128xbf16>, vector<128x128xbf16>, vector<80x128xf32> -> vector<80x128xf32>
    %194 = arith.addf %189, %193 : vector<80x128xf32>
    %c248 = arith.constant 248 : index
    %c0_173 = arith.constant 0 : index
    %195 = vector.load %arg18[%c248, %c0_173] : memref<416x128xbf16, #tpu.memory_space<vmem>>, vector<80x128xbf16>
    %c7_174 = arith.constant 7 : index
    %c0_175 = arith.constant 0 : index
    %c0_176 = arith.constant 0 : index
    %196 = vector.load %arg7[%c7_174, %c0_175, %c0_176] : memref<9x128x128xbf16, #tpu.memory_space<vmem>>, vector<1x128x128xbf16>
    %197 = vector.shape_cast %196 : vector<1x128x128xbf16> to vector<128x128xbf16>
    %cst_177 = arith.constant dense<0.000000e+00> : vector<80x128xf32>
    %198 = tpu.matmul %195, %197, %cst_177 {dimension_numbers = #tpu.dot_dimension_numbers<[1], [0], [0], [1], [0, 0, 1, 1], [], []>} : vector<80x128xbf16>, vector<128x128xbf16>, vector<80x128xf32> -> vector<80x128xf32>
    %199 = arith.addf %194, %198 : vector<80x128xf32>
    %c250 = arith.constant 250 : index
    %c0_178 = arith.constant 0 : index
    %200 = vector.load %arg18[%c250, %c0_178] : memref<416x128xbf16, #tpu.memory_space<vmem>>, vector<80x128xbf16>
    %c8_179 = arith.constant 8 : index
    %c0_180 = arith.constant 0 : index
    %c0_181 = arith.constant 0 : index
    %201 = vector.load %arg7[%c8_179, %c0_180, %c0_181] : memref<9x128x128xbf16, #tpu.memory_space<vmem>>, vector<1x128x128xbf16>
    %202 = vector.shape_cast %201 : vector<1x128x128xbf16> to vector<128x128xbf16>
    %cst_182 = arith.constant dense<0.000000e+00> : vector<80x128xf32>
    %203 = tpu.matmul %200, %202, %cst_182 {dimension_numbers = #tpu.dot_dimension_numbers<[1], [0], [0], [1], [0, 0, 1, 1], [], []>} : vector<80x128xbf16>, vector<128x128xbf16>, vector<80x128xf32> -> vector<80x128xf32>
    %204 = arith.addf %199, %203 : vector<80x128xf32>
    %c0_183 = arith.constant 0 : index
    %c0_184 = arith.constant 0 : index
    %205 = vector.load %arg8[%c0_183, %c0_184] : memref<1x128xf32, #tpu.memory_space<vmem>>, vector<1x128xf32>
    %206 = vector.broadcast %205 : vector<1x128xf32> to vector<80x128xf32>
    %207 = arith.addf %204, %206 : vector<80x128xf32>
    %cst_185 = arith.constant 0.000000e+00 : f32
    %208 = vector.broadcast %cst_185 : f32 to vector<80x128xf32>
    %209 = arith.maximumf %207, %208 : vector<80x128xf32>
    %210 = arith.truncf %209 : vector<80x128xf32> to vector<80x128xbf16>
    %c0_186 = arith.constant 0 : index
    %c0_187 = arith.constant 0 : index
    %211 = vector.load %arg9[%c0_186, %c0_187] : memref<128x128xbf16, #tpu.memory_space<vmem>>, vector<128x128xbf16>
    %cst_188 = arith.constant dense<0.000000e+00> : vector<80x128xf32>
    %212 = tpu.matmul %210, %211, %cst_188 {dimension_numbers = #tpu.dot_dimension_numbers<[1], [0], [0], [1], [0, 0, 1, 1], [], []>} : vector<80x128xbf16>, vector<128x128xbf16>, vector<80x128xf32> -> vector<80x128xf32>
    %c0_189 = arith.constant 0 : index
    %c0_190 = arith.constant 0 : index
    %213 = vector.load %arg10[%c0_189, %c0_190] : memref<1x128xf32, #tpu.memory_space<vmem>>, vector<1x128xf32>
    %214 = vector.broadcast %213 : vector<1x128xf32> to vector<80x128xf32>
    %215 = arith.addf %212, %214 : vector<80x128xf32>
    %c160 = arith.constant 160 : index
    %c0_191 = arith.constant 0 : index
    %216 = vector.load %arg20[%c160, %c0_191] : memref<320x128xf32, #tpu.memory_space<vmem>>, vector<80x128xf32>
    tpu.vector_store %arg20[%c160, %c0_191], %215 {strides = array<i32>} : memref<320x128xf32, #tpu.memory_space<vmem>>, vector<80x128xf32>,
    %217 = vector.extract_strided_slice %0 {offsets = [160, 0], sizes = [80, 1], strides = [1, 1]} : vector<320x1xf32> to vector<80x1xf32>
    %218 = vector.broadcast %217 : vector<80x1xf32> to vector<80x128xf32>
    %219 = arith.mulf %215, %218 : vector<80x128xf32>
    %cst_192 = arith.constant dense<0.000000e+00> : vector<128xf32>
    %220 = vector.multi_reduction <add>, %219, %cst_192 [0] : vector<80x128xf32> to vector<128xf32>
    %221 = vector.shape_cast %220 : vector<128xf32> to vector<1x128xf32>
    %222 = arith.addf %158, %221 : vector<1x128xf32>
    %cst_193 = arith.constant 0.000000e+00 : f32
    %223 = vector.broadcast %cst_193 : f32 to vector<80x128xf32>
    %c246_194 = arith.constant 246 : index
    %c0_195 = arith.constant 0 : index
    %224 = vector.load %arg18[%c246_194, %c0_195] : memref<416x128xbf16, #tpu.memory_space<vmem>>, vector<80x128xbf16>
    %c0_196 = arith.constant 0 : index
    %c0_197 = arith.constant 0 : index
    %c0_198 = arith.constant 0 : index
    %225 = vector.load %arg7[%c0_196, %c0_197, %c0_198] : memref<9x128x128xbf16, #tpu.memory_space<vmem>>, vector<1x128x128xbf16>
    %226 = vector.shape_cast %225 : vector<1x128x128xbf16> to vector<128x128xbf16>
    %cst_199 = arith.constant dense<0.000000e+00> : vector<80x128xf32>
    %227 = tpu.matmul %224, %226, %cst_199 {dimension_numbers = #tpu.dot_dimension_numbers<[1], [0], [0], [1], [0, 0, 1, 1], [], []>} : vector<80x128xbf16>, vector<128x128xbf16>, vector<80x128xf32> -> vector<80x128xf32>
    %228 = arith.addf %223, %227 : vector<80x128xf32>
    %c248_200 = arith.constant 248 : index
    %c0_201 = arith.constant 0 : index
    %229 = vector.load %arg18[%c248_200, %c0_201] : memref<416x128xbf16, #tpu.memory_space<vmem>>, vector<80x128xbf16>
    %c1_202 = arith.constant 1 : index
    %c0_203 = arith.constant 0 : index
    %c0_204 = arith.constant 0 : index
    %230 = vector.load %arg7[%c1_202, %c0_203, %c0_204] : memref<9x128x128xbf16, #tpu.memory_space<vmem>>, vector<1x128x128xbf16>
    %231 = vector.shape_cast %230 : vector<1x128x128xbf16> to vector<128x128xbf16>
    %cst_205 = arith.constant dense<0.000000e+00> : vector<80x128xf32>
    %232 = tpu.matmul %229, %231, %cst_205 {dimension_numbers = #tpu.dot_dimension_numbers<[1], [0], [0], [1], [0, 0, 1, 1], [], []>} : vector<80x128xbf16>, vector<128x128xbf16>, vector<80x128xf32> -> vector<80x128xf32>
    %233 = arith.addf %228, %232 : vector<80x128xf32>
    %c250_206 = arith.constant 250 : index
    %c0_207 = arith.constant 0 : index
    %234 = vector.load %arg18[%c250_206, %c0_207] : memref<416x128xbf16, #tpu.memory_space<vmem>>, vector<80x128xbf16>
    %c2_208 = arith.constant 2 : index
    %c0_209 = arith.constant 0 : index
    %c0_210 = arith.constant 0 : index
    %235 = vector.load %arg7[%c2_208, %c0_209, %c0_210] : memref<9x128x128xbf16, #tpu.memory_space<vmem>>, vector<1x128x128xbf16>
    %236 = vector.shape_cast %235 : vector<1x128x128xbf16> to vector<128x128xbf16>
    %cst_211 = arith.constant dense<0.000000e+00> : vector<80x128xf32>
    %237 = tpu.matmul %234, %236, %cst_211 {dimension_numbers = #tpu.dot_dimension_numbers<[1], [0], [0], [1], [0, 0, 1, 1], [], []>} : vector<80x128xbf16>, vector<128x128xbf16>, vector<80x128xf32> -> vector<80x128xf32>
    %238 = arith.addf %233, %237 : vector<80x128xf32>
    %c286 = arith.constant 286 : index
    %c0_212 = arith.constant 0 : index
    %239 = vector.load %arg18[%c286, %c0_212] : memref<416x128xbf16, #tpu.memory_space<vmem>>, vector<80x128xbf16>
    %c3_213 = arith.constant 3 : index
    %c0_214 = arith.constant 0 : index
    %c0_215 = arith.constant 0 : index
    %240 = vector.load %arg7[%c3_213, %c0_214, %c0_215] : memref<9x128x128xbf16, #tpu.memory_space<vmem>>, vector<1x128x128xbf16>
    %241 = vector.shape_cast %240 : vector<1x128x128xbf16> to vector<128x128xbf16>
    %cst_216 = arith.constant dense<0.000000e+00> : vector<80x128xf32>
    %242 = tpu.matmul %239, %241, %cst_216 {dimension_numbers = #tpu.dot_dimension_numbers<[1], [0], [0], [1], [0, 0, 1, 1], [], []>} : vector<80x128xbf16>, vector<128x128xbf16>, vector<80x128xf32> -> vector<80x128xf32>
    %243 = arith.addf %238, %242 : vector<80x128xf32>
    %c288 = arith.constant 288 : index
    %c0_217 = arith.constant 0 : index
    %244 = vector.load %arg18[%c288, %c0_217] : memref<416x128xbf16, #tpu.memory_space<vmem>>, vector<80x128xbf16>
    %c4_218 = arith.constant 4 : index
    %c0_219 = arith.constant 0 : index
    %c0_220 = arith.constant 0 : index
    %245 = vector.load %arg7[%c4_218, %c0_219, %c0_220] : memref<9x128x128xbf16, #tpu.memory_space<vmem>>, vector<1x128x128xbf16>
    %246 = vector.shape_cast %245 : vector<1x128x128xbf16> to vector<128x128xbf16>
    %cst_221 = arith.constant dense<0.000000e+00> : vector<80x128xf32>
    %247 = tpu.matmul %244, %246, %cst_221 {dimension_numbers = #tpu.dot_dimension_numbers<[1], [0], [0], [1], [0, 0, 1, 1], [], []>} : vector<80x128xbf16>, vector<128x128xbf16>, vector<80x128xf32> -> vector<80x128xf32>
    %248 = arith.addf %243, %247 : vector<80x128xf32>
    %c290 = arith.constant 290 : index
    %c0_222 = arith.constant 0 : index
    %249 = vector.load %arg18[%c290, %c0_222] : memref<416x128xbf16, #tpu.memory_space<vmem>>, vector<80x128xbf16>
    %c5_223 = arith.constant 5 : index
    %c0_224 = arith.constant 0 : index
    %c0_225 = arith.constant 0 : index
    %250 = vector.load %arg7[%c5_223, %c0_224, %c0_225] : memref<9x128x128xbf16, #tpu.memory_space<vmem>>, vector<1x128x128xbf16>
    %251 = vector.shape_cast %250 : vector<1x128x128xbf16> to vector<128x128xbf16>
    %cst_226 = arith.constant dense<0.000000e+00> : vector<80x128xf32>
    %252 = tpu.matmul %249, %251, %cst_226 {dimension_numbers = #tpu.dot_dimension_numbers<[1], [0], [0], [1], [0, 0, 1, 1], [], []>} : vector<80x128xbf16>, vector<128x128xbf16>, vector<80x128xf32> -> vector<80x128xf32>
    %253 = arith.addf %248, %252 : vector<80x128xf32>
    %c326 = arith.constant 326 : index
    %c0_227 = arith.constant 0 : index
    %254 = vector.load %arg18[%c326, %c0_227] : memref<416x128xbf16, #tpu.memory_space<vmem>>, vector<80x128xbf16>
    %c6_228 = arith.constant 6 : index
    %c0_229 = arith.constant 0 : index
    %c0_230 = arith.constant 0 : index
    %255 = vector.load %arg7[%c6_228, %c0_229, %c0_230] : memref<9x128x128xbf16, #tpu.memory_space<vmem>>, vector<1x128x128xbf16>
    %256 = vector.shape_cast %255 : vector<1x128x128xbf16> to vector<128x128xbf16>
    %cst_231 = arith.constant dense<0.000000e+00> : vector<80x128xf32>
    %257 = tpu.matmul %254, %256, %cst_231 {dimension_numbers = #tpu.dot_dimension_numbers<[1], [0], [0], [1], [0, 0, 1, 1], [], []>} : vector<80x128xbf16>, vector<128x128xbf16>, vector<80x128xf32> -> vector<80x128xf32>
    %258 = arith.addf %253, %257 : vector<80x128xf32>
    %c328 = arith.constant 328 : index
    %c0_232 = arith.constant 0 : index
    %259 = vector.load %arg18[%c328, %c0_232] : memref<416x128xbf16, #tpu.memory_space<vmem>>, vector<80x128xbf16>
    %c7_233 = arith.constant 7 : index
    %c0_234 = arith.constant 0 : index
    %c0_235 = arith.constant 0 : index
    %260 = vector.load %arg7[%c7_233, %c0_234, %c0_235] : memref<9x128x128xbf16, #tpu.memory_space<vmem>>, vector<1x128x128xbf16>
    %261 = vector.shape_cast %260 : vector<1x128x128xbf16> to vector<128x128xbf16>
    %cst_236 = arith.constant dense<0.000000e+00> : vector<80x128xf32>
    %262 = tpu.matmul %259, %261, %cst_236 {dimension_numbers = #tpu.dot_dimension_numbers<[1], [0], [0], [1], [0, 0, 1, 1], [], []>} : vector<80x128xbf16>, vector<128x128xbf16>, vector<80x128xf32> -> vector<80x128xf32>
    %263 = arith.addf %258, %262 : vector<80x128xf32>
    %c330 = arith.constant 330 : index
    %c0_237 = arith.constant 0 : index
    %264 = vector.load %arg18[%c330, %c0_237] : memref<416x128xbf16, #tpu.memory_space<vmem>>, vector<80x128xbf16>
    %c8_238 = arith.constant 8 : index
    %c0_239 = arith.constant 0 : index
    %c0_240 = arith.constant 0 : index
    %265 = vector.load %arg7[%c8_238, %c0_239, %c0_240] : memref<9x128x128xbf16, #tpu.memory_space<vmem>>, vector<1x128x128xbf16>
    %266 = vector.shape_cast %265 : vector<1x128x128xbf16> to vector<128x128xbf16>
    %cst_241 = arith.constant dense<0.000000e+00> : vector<80x128xf32>
    %267 = tpu.matmul %264, %266, %cst_241 {dimension_numbers = #tpu.dot_dimension_numbers<[1], [0], [0], [1], [0, 0, 1, 1], [], []>} : vector<80x128xbf16>, vector<128x128xbf16>, vector<80x128xf32> -> vector<80x128xf32>
    %268 = arith.addf %263, %267 : vector<80x128xf32>
    %c0_242 = arith.constant 0 : index
    %c0_243 = arith.constant 0 : index
    %269 = vector.load %arg8[%c0_242, %c0_243] : memref<1x128xf32, #tpu.memory_space<vmem>>, vector<1x128xf32>
    %270 = vector.broadcast %269 : vector<1x128xf32> to vector<80x128xf32>
    %271 = arith.addf %268, %270 : vector<80x128xf32>
    %cst_244 = arith.constant 0.000000e+00 : f32
    %272 = vector.broadcast %cst_244 : f32 to vector<80x128xf32>
    %273 = arith.maximumf %271, %272 : vector<80x128xf32>
    %274 = arith.truncf %273 : vector<80x128xf32> to vector<80x128xbf16>
    %c0_245 = arith.constant 0 : index
    %c0_246 = arith.constant 0 : index
    %275 = vector.load %arg9[%c0_245, %c0_246] : memref<128x128xbf16, #tpu.memory_space<vmem>>, vector<128x128xbf16>
    %cst_247 = arith.constant dense<0.000000e+00> : vector<80x128xf32>
    %276 = tpu.matmul %274, %275, %cst_247 {dimension_numbers = #tpu.dot_dimension_numbers<[1], [0], [0], [1], [0, 0, 1, 1], [], []>} : vector<80x128xbf16>, vector<128x128xbf16>, vector<80x128xf32> -> vector<80x128xf32>
    %c0_248 = arith.constant 0 : index
    %c0_249 = arith.constant 0 : index
    %277 = vector.load %arg10[%c0_248, %c0_249] : memref<1x128xf32, #tpu.memory_space<vmem>>, vector<1x128xf32>
    %278 = vector.broadcast %277 : vector<1x128xf32> to vector<80x128xf32>
    %279 = arith.addf %276, %278 : vector<80x128xf32>
    %c240 = arith.constant 240 : index
    %c0_250 = arith.constant 0 : index
    %280 = vector.load %arg20[%c240, %c0_250] : memref<320x128xf32, #tpu.memory_space<vmem>>, vector<80x128xf32>
    tpu.vector_store %arg20[%c240, %c0_250], %279 {strides = array<i32>} : memref<320x128xf32, #tpu.memory_space<vmem>>, vector<80x128xf32>,
    %281 = vector.extract_strided_slice %0 {offsets = [240, 0], sizes = [80, 1], strides = [1, 1]} : vector<320x1xf32> to vector<80x1xf32>
    %282 = vector.broadcast %281 : vector<80x1xf32> to vector<80x128xf32>
    %283 = arith.mulf %279, %282 : vector<80x128xf32>
    %cst_251 = arith.constant dense<0.000000e+00> : vector<128xf32>
    %284 = vector.multi_reduction <add>, %283, %cst_251 [0] : vector<80x128xf32> to vector<128xf32>
    %285 = vector.shape_cast %284 : vector<128xf32> to vector<1x128xf32>
    %286 = arith.addf %222, %285 : vector<1x128xf32>
    %cst_252 = arith.constant 3.906250e-03 : f32
    %287 = vector.broadcast %cst_252 : f32 to vector<1x128xf32>
    %288 = arith.mulf %286, %287 : vector<1x128xf32>
    %289 = arith.truncf %288 : vector<1x128xf32> to vector<1x128xbf16>
    %c0_253 = arith.constant 0 : index
    %c0_254 = arith.constant 0 : index
    %290 = vector.load %arg11[%c0_253, %c0_254] : memref<128x128xbf16, #tpu.memory_space<vmem>>, vector<128x128xbf16>
    %cst_255 = arith.constant dense<0.000000e+00> : vector<1x128xf32>
    %291 = tpu.matmul %289, %290, %cst_255 {dimension_numbers = #tpu.dot_dimension_numbers<[1], [0], [0], [1], [0, 0, 1, 1], [], []>} : vector<1x128xbf16>, vector<128x128xbf16>, vector<1x128xf32> -> vector<1x128xf32>
    %c0_256 = arith.constant 0 : index
    %c0_257 = arith.constant 0 : index
    %292 = vector.load %arg12[%c0_256, %c0_257] : memref<1x128xf32, #tpu.memory_space<vmem>>, vector<1x128xf32>
    %293 = arith.addf %291, %292 : vector<1x128xf32>
    %cst_258 = arith.constant 0.000000e+00 : f32
    %294 = vector.broadcast %cst_258 : f32 to vector<1x128xf32>
    %295 = arith.maximumf %293, %294 : vector<1x128xf32>
    %296 = arith.truncf %295 : vector<1x128xf32> to vector<1x128xbf16>
    %c0_259 = arith.constant 0 : index
    %c0_260 = arith.constant 0 : index
    %297 = vector.load %arg13[%c0_259, %c0_260] : memref<128x128xbf16, #tpu.memory_space<vmem>>, vector<128x128xbf16>
    %cst_261 = arith.constant dense<0.000000e+00> : vector<1x128xf32>
    %298 = tpu.matmul %296, %297, %cst_261 {dimension_numbers = #tpu.dot_dimension_numbers<[1], [0], [0], [1], [0, 0, 1, 1], [], []>} : vector<1x128xbf16>, vector<128x128xbf16>, vector<1x128xf32> -> vector<1x128xf32>
    %c0_262 = arith.constant 0 : index
    %c0_263 = arith.constant 0 : index
    %299 = vector.load %arg14[%c0_262, %c0_263] : memref<1x128xf32, #tpu.memory_space<vmem>>, vector<1x128xf32>
    %300 = arith.addf %298, %299 : vector<1x128xf32>
    %301 = arith.negf %300 : vector<1x128xf32>
    %302 = math.exp %301 : vector<1x128xf32>
    %cst_264 = arith.constant 1.000000e+00 : f32
    %303 = vector.broadcast %cst_264 : f32 to vector<1x128xf32>
    %304 = arith.addf %303, %302 : vector<1x128xf32>
    %305 = arith.divf %303, %304 : vector<1x128xf32>
    %c0_265 = arith.constant 0 : index
    %c0_266 = arith.constant 0 : index
    %306 = vector.load %arg20[%c0_265, %c0_266] : memref<320x128xf32, #tpu.memory_space<vmem>>, vector<320x128xf32>
    %307 = vector.broadcast %305 : vector<1x128xf32> to vector<320x128xf32>
    %308 = arith.mulf %306, %307 : vector<320x128xf32>
    %c0_267 = arith.constant 0 : index
    %c0_268 = arith.constant 0 : index
    %309 = vector.load %arg19[%c0_267, %c0_268] : memref<320x128xf32, #tpu.memory_space<vmem>>, vector<320x128xf32>
    %310 = arith.addf %308, %309 : vector<320x128xf32>
    %cst_269 = arith.constant 0.000000e+00 : f32
    %311 = vector.broadcast %cst_269 : f32 to vector<320x128xf32>
    %312 = arith.maximumf %310, %311 : vector<320x128xf32>
    %313 = vector.broadcast %0 : vector<320x1xf32> to vector<320x128xf32>
    %314 = arith.mulf %312, %313 : vector<320x128xf32>
    %cst_270 = arith.constant dense<0.000000e+00> : vector<128xf32>
    %315 = vector.multi_reduction <add>, %314, %cst_270 [0] : vector<320x128xf32> to vector<128xf32>
    %316 = vector.shape_cast %315 : vector<128xf32> to vector<1x128xf32>
    %cst_271 = arith.constant 3.906250e-03 : f32
    %317 = vector.broadcast %cst_271 : f32 to vector<1x128xf32>
    %318 = arith.mulf %316, %317 : vector<1x128xf32>
    %319 = arith.truncf %318 : vector<1x128xf32> to vector<1x128xbf16>
    %c0_272 = arith.constant 0 : index
    %c0_273 = arith.constant 0 : index
    %320 = vector.load %arg15[%c0_272, %c0_273] : memref<128x128xbf16, #tpu.memory_space<vmem>>, vector<128x128xbf16>
    %cst_274 = arith.constant dense<0.000000e+00> : vector<1x128xf32>
    %321 = tpu.matmul %319, %320, %cst_274 {dimension_numbers = #tpu.dot_dimension_numbers<[1], [0], [0], [1], [0, 0, 1, 1], [], []>} : vector<1x128xbf16>, vector<128x128xbf16>, vector<1x128xf32> -> vector<1x128xf32>
    %c0_275 = arith.constant 0 : index
    %c0_276 = arith.constant 0 : index
    %322 = vector.load %arg16[%c0_275, %c0_276] : memref<1x128xf32, #tpu.memory_space<vmem>>, vector<1x128xf32>
    %323 = arith.addf %321, %322 : vector<1x128xf32>
    %c0_277 = arith.constant 0 : index
    %c0_278 = arith.constant 0 : index
    %c0_279 = arith.constant 0 : index
    %324 = vector.load %arg17[%c0_277, %c0_278, %c0_279] : memref<1x1x128xf32, #tpu.memory_space<vmem>>, vector<1x1x128xf32>
    %325 = vector.shape_cast %324 : vector<1x1x128xf32> to vector<1x128xf32>
    %326 = vector.shape_cast %323 : vector<1x128xf32> to vector<1x1x128xf32>
    tpu.vector_store %arg17[%c0_277, %c0_278, %c0_279], %326 {strides = array<i32>} : memref<1x1x128xf32, #tpu.memory_space<vmem>>, vector<1x1x128xf32>,
    return
  }
  func.func @transform_0(%arg0: i32) -> (i32, i32, i32) {
    %c0_i32 = arith.constant 0 : i32
    %c0_i32_0 = arith.constant 0 : i32
    %c0_i32_1 = arith.constant 0 : i32
    return %arg0, %c0_i32, %c0_i32_0 : i32, i32, i32
  }
  func.func @transform_1(%arg0: i32) -> (i32, i32) {
    %c0_i32 = arith.constant 0 : i32
    %c0_i32_0 = arith.constant 0 : i32
    %c0_i32_1 = arith.constant 0 : i32
    return %c0_i32, %c0_i32_0 : i32, i32
  }
  func.func @transform_2(%arg0: i32) -> (i32, i32) {
    %c0_i32 = arith.constant 0 : i32
    %c0_i32_0 = arith.constant 0 : i32
    %c0_i32_1 = arith.constant 0 : i32
    return %c0_i32, %c0_i32_0 : i32, i32
  }
  func.func @transform_3(%arg0: i32) -> (i32, i32) {
    %c0_i32 = arith.constant 0 : i32
    %c0_i32_0 = arith.constant 0 : i32
    %c0_i32_1 = arith.constant 0 : i32
    return %c0_i32, %c0_i32_0 : i32, i32
  }
  func.func @transform_4(%arg0: i32) -> (i32, i32) {
    %c0_i32 = arith.constant 0 : i32
    %c0_i32_0 = arith.constant 0 : i32
    %c0_i32_1 = arith.constant 0 : i32
    return %c0_i32, %c0_i32_0 : i32, i32
  }
  func.func @transform_5(%arg0: i32) -> (i32, i32) {
    %c0_i32 = arith.constant 0 : i32
    %c0_i32_0 = arith.constant 0 : i32
    %c0_i32_1 = arith.constant 0 : i32
    return %c0_i32, %c0_i32_0 : i32, i32
  }
  func.func @transform_6(%arg0: i32) -> (i32, i32, i32) {
    %c0_i32 = arith.constant 0 : i32
    %c0_i32_0 = arith.constant 0 : i32
    %c0_i32_1 = arith.constant 0 : i32
    %c0_i32_2 = arith.constant 0 : i32
    return %c0_i32, %c0_i32_0, %c0_i32_1 : i32, i32, i32
  }
  func.func @transform_7(%arg0: i32) -> (i32, i32) {
    %c0_i32 = arith.constant 0 : i32
    %c0_i32_0 = arith.constant 0 : i32
    %c0_i32_1 = arith.constant 0 : i32
    return %c0_i32, %c0_i32_0 : i32, i32
  }
  func.func @transform_8(%arg0: i32) -> (i32, i32) {
    %c0_i32 = arith.constant 0 : i32
    %c0_i32_0 = arith.constant 0 : i32
    %c0_i32_1 = arith.constant 0 : i32
    return %c0_i32, %c0_i32_0 : i32, i32
  }
  func.func @transform_9(%arg0: i32) -> (i32, i32) {
    %c0_i32 = arith.constant 0 : i32
    %c0_i32_0 = arith.constant 0 : i32
    %c0_i32_1 = arith.constant 0 : i32
    return %c0_i32, %c0_i32_0 : i32, i32
  }
  func.func @transform_10(%arg0: i32) -> (i32, i32) {
    %c0_i32 = arith.constant 0 : i32
    %c0_i32_0 = arith.constant 0 : i32
    %c0_i32_1 = arith.constant 0 : i32
    return %c0_i32, %c0_i32_0 : i32, i32
  }
  func.func @transform_11(%arg0: i32) -> (i32, i32) {
    %c0_i32 = arith.constant 0 : i32
    %c0_i32_0 = arith.constant 0 : i32
    %c0_i32_1 = arith.constant 0 : i32
    return %c0_i32, %c0_i32_0 : i32, i32
  }
  func.func @transform_12(%arg0: i32) -> (i32, i32) {
    %c0_i32 = arith.constant 0 : i32
    %c0_i32_0 = arith.constant 0 : i32
    %c0_i32_1 = arith.constant 0 : i32
    return %c0_i32, %c0_i32_0 : i32, i32
  }
  func.func @transform_13(%arg0: i32) -> (i32, i32) {
    %c0_i32 = arith.constant 0 : i32
    %c0_i32_0 = arith.constant 0 : i32
    %c0_i32_1 = arith.constant 0 : i32
    return %c0_i32, %c0_i32_0 : i32, i32
  }
  func.func @transform_14(%arg0: i32) -> (i32, i32) {
    %c0_i32 = arith.constant 0 : i32
    %c0_i32_0 = arith.constant 0 : i32
    %c0_i32_1 = arith.constant 0 : i32
    return %c0_i32, %c0_i32_0 : i32, i32
  }
  func.func @transform_15(%arg0: i32) -> (i32, i32) {
    %c0_i32 = arith.constant 0 : i32
    %c0_i32_0 = arith.constant 0 : i32
    %c0_i32_1 = arith.constant 0 : i32
    return %c0_i32, %c0_i32_0 : i32, i32
  }
  func.func @transform_16(%arg0: i32) -> (i32, i32, i32) {
    %c0_i32 = arith.constant 0 : i32
    %c0_i32_0 = arith.constant 0 : i32
    %c0_i32_1 = arith.constant 0 : i32
    return %arg0, %c0_i32, %c0_i32_0 : i32, i32, i32
  }
}

</mosaic_0001>

<bundles_post_ra>
// kernel: tile.8
= control target key start
LH: loop header
LB: loop body
LE: loop exit
PB: predicated region body
PF: predicated region fallthrough
CT: control target
= control target key end

     0   :  { %s28_s0 = inlined_call_operand.vmem [shape: f32[20], index: 0, kind: input, shape index: {}]   ;;  %s29_s1 = inlined_call_operand.vmem [shape: f32[16,20], index: 1, kind: output, shape index: {}]  }
   0x1   :  { %v4_v0 = vld [vmem:[%s28_s0] ss:$0 sm:$0xff] }
   0x2   :  { %5 = vst [vmem:[%s29_s1] sm:$0xff] %v4_v0  ;;  %8 = vst [vmem:[%s29_s1 + $0x8] sm:$0xff] %v4_v0 }

// kernel: tile.0
= control target key start
LH: loop header
LB: loop body
LE: loop exit
PB: predicated region body
PF: predicated region fallthrough
CT: control target
= control target key end

     0   :  { %s653_s8 = smov 126   ;;  %s654_s9 = smov 127   ;;  %vm3_vm0 = vcmask 7168   ;;  %s1302_s0 = inlined_call_operand.vmem [shape: f32[16,20], index: 0, kind: input, shape index: {}]   ;;  %s1303_s1 = inlined_call_operand.vmem [shape: f32[320,1], index: 1, kind: output, shape index: {}]  }
   0x1   :  { %v35_v0 = vld.sshfl [vmem:[%s1302_s0] sm:$0xff pattern:$0x36147250]   ;;  %v484_v1 = vld.sshfl [vmem:[%s1302_s0 + $0x8] sm:$0xff pattern:$0x36147250]  }
   0x2   :  { %36 = vrot.lane.b32.xlu1 %v35_v0, %s653_s8  ;;  %11 = vrot.lane.b32.xlu0 %v35_v0, %s654_s9  ;;  %s655_s12 = smov 125   ;;  %v502_v2 = vld.sshfl [vmem:[%s1302_s0 + $0x8] sm:$0xff pattern:$0x61472503]   ;;  %s656_s17 = smov 124   ;;  %v2_v10 = vld [vmem:[%s1302_s0] sm:$0xff]  }
   0x3   :  { %v85_v3 = vld.sshfl [vmem:[%s1302_s0] sm:$0xff pattern:$0x61472503]   ;;  %s657_s18 = smov 123   ;;  %s658_s19 = smov 122   ;;  %v469_v11 = vld [vmem:[%s1302_s0 + $0x8] sm:$0xff]  }
   0x4   :  { %s659_s20 = smov 121   ;;  %v537_v4 = vld.sshfl [vmem:[%s1302_s0 + $0x8] sm:$0xff pattern:$0x14725036]   ;;  %s660_s25 = smov 120  }
   0x5   :  { %v185_v5 = vld.sshfl [vmem:[%s1302_s0] sm:$0xff pattern:$0x14725036]   ;;  %s661_s26 = smov 119   ;;  %s662_s27 = smov 118  }
   0x6   :  { %49 = vrot.lane.b32.xlu1 %v484_v1, %s653_s8  ;;  %24 = vrot.lane.b32.xlu0 %v484_v1, %s654_s9  ;;  %s663_s28 = smov 117   ;;  %v566_v6 = vld.sshfl [vmem:[%s1302_s0 + $0x8] sm:$0xff pattern:$0x47250361]   ;;  %s664_s4 = smov 116  }
   0x7   :  { %v269_v7 = vld.sshfl [vmem:[%s1302_s0] sm:$0xff pattern:$0x47250361]   ;;  %s665_s5 = smov 115   ;;  %s666_s6 = smov 114  }
   0x8   :  { %s667_s7 = smov 113   ;;  %v602_v8 = vld.sshfl [vmem:[%s1302_s0 + $0x8] sm:$0xff pattern:$0x72503614]   ;;  %4 = vst.msk [vmem:[%s1303_s1] ss:$20 sm:$0xff] %vm3_vm0, %v2_v10  }
   0x9   :  { %v369_v9 = vld.sshfl [vmem:[%s1302_s0] sm:$0xff pattern:$0x72503614]   ;;  %470 = vst.msk [vmem:[%s1303_s1 + $0xa0] ss:$20 sm:$0xff] %vm3_vm0, %v469_v11   ;;  %s670_s21 = smov 110  }
   0xa   :  { %74 = vrot.lane.b32.xlu1 %v484_v1, %s655_s12  ;;  %61 = vrot.lane.b32.xlu0 %v35_v0, %s655_s12  ;;  %s671_s22 = smov 109  }
   0xe   :  { %99 = vrot.lane.b32.xlu1 %v502_v2, %s656_s17  ;;  %86 = vrot.lane.b32.xlu0 %v85_v3, %s656_s17 }
  0x12   :  { %124 = vrot.lane.b32.xlu1 %v502_v2, %s657_s18  ;;  %111 = vrot.lane.b32.xlu0 %v85_v3, %s657_s18 }
  0x16   :  { %149 = vrot.lane.b32.xlu1 %v502_v2, %s658_s19  ;;  %136 = vrot.lane.b32.xlu0 %v85_v3, %s658_s19  ;;  %s668_s19 = smov 112  }
  0x1a   :  { %174 = vrot.lane.b32.xlu1 %v502_v2, %s659_s20  ;;  %161 = vrot.lane.b32.xlu0 %v85_v3, %s659_s20  ;;  %s669_s20 = smov 111  }
  0x1e   :  { %197 = vrot.lane.b32.xlu1 %v537_v4, %s660_s25  ;;  %186 = vrot.lane.b32.xlu0 %v185_v5, %s660_s25 }
  0x22   :  { %218 = vrot.lane.b32.xlu1 %v537_v4, %s661_s26  ;;  %207 = vrot.lane.b32.xlu0 %v185_v5, %s661_s26 }
  0x26   :  { %239 = vrot.lane.b32.xlu1 %v537_v4, %s662_s27  ;;  %228 = vrot.lane.b32.xlu0 %v185_v5, %s662_s27 }
  0x2a   :  { %260 = vrot.lane.b32.xlu1 %v537_v4, %s663_s28  ;;  %249 = vrot.lane.b32.xlu0 %v185_v5, %s663_s28 }
  0x2e   :  { %283 = vrot.lane.b32.xlu1 %v566_v6, %s664_s4  ;;  %270 = vrot.lane.b32.xlu0 %v269_v7, %s664_s4 }
  0x32   :  { %308 = vrot.lane.b32.xlu1 %v566_v6, %s665_s5  ;;  %295 = vrot.lane.b32.xlu0 %v269_v7, %s665_s5 }
  0x36   :  { %333 = vrot.lane.b32.xlu1 %v566_v6, %s666_s6  ;;  %320 = vrot.lane.b32.xlu0 %v269_v7, %s666_s6 }
  0x3a   :  { %358 = vrot.lane.b32.xlu1 %v566_v6, %s667_s7  ;;  %345 = vrot.lane.b32.xlu0 %v269_v7, %s667_s7 }
  0x3e   :  { %383 = vrot.lane.b32.xlu1 %v602_v8, %s668_s19  ;;  %370 = vrot.lane.b32.xlu0 %v369_v9, %s668_s19 }
  0x42   :  { %408 = vrot.lane.b32.xlu1 %v602_v8, %s669_s20  ;;  %395 = vrot.lane.b32.xlu0 %v369_v9, %s669_s20 }
  0x46   :  { %433 = vrot.lane.b32.xlu1 %v602_v8, %s670_s21  ;;  %420 = vrot.lane.b32.xlu0 %v369_v9, %s670_s21 }
  0x4a   :  { %458 = vrot.lane.b32.xlu1 %v602_v8, %s671_s22  ;;  %445 = vrot.lane.b32.xlu0 %v369_v9, %s671_s22 }
  0x74   :  { %v37_v12 = vpop.permute.xlu1 %36   ;;  %v12_v13 = vpop.permute.xlu0 %11  }
  0x75   :  { %480 = vst.msk [vmem:[%s1303_s1 + $0x2] ss:$100 sm:$0x3] %vm3_vm0, %v37_v12   ;;  %481 = vst.msk [vmem:[%s1303_s1 - $0x9e] ss:$100 sm:$0xc] %vm3_vm0, %v37_v12  }
  0x76   :  { %482 = vst.msk [vmem:[%s1303_s1 + $0x142] ss:$-60 sm:$0x30] %vm3_vm0, %v37_v12   ;;  %483 = vst.msk [vmem:[%s1303_s1 + $0x1e2] ss:$-60 sm:$0xc0] %vm3_vm0, %v37_v12  }
  0x77   :  { %471 = vst.msk [vmem:[%s1303_s1 + $0x1] ss:$100 sm:$0x3] %vm3_vm0, %v12_v13   ;;  %472 = vst.msk [vmem:[%s1303_s1 - $0x9f] ss:$100 sm:$0xc] %vm3_vm0, %v12_v13  }
  0x78   :  { %473 = vst.msk [vmem:[%s1303_s1 + $0x141] ss:$-60 sm:$0x30] %vm3_vm0, %v12_v13   ;;  %474 = vst.msk [vmem:[%s1303_s1 + $0x1e1] ss:$-60 sm:$0xc0] %vm3_vm0, %v12_v13   ;;  %v50_v14 = vpop.permute.xlu1 %49   ;;  %v25_v15 = vpop.permute.xlu0 %24  }
  0x79   :  { %485 = vst.msk [vmem:[%s1303_s1 + $0xa2] ss:$100 sm:$0x3] %vm3_vm0, %v50_v14   ;;  %486 = vst.msk [vmem:[%s1303_s1 + $0x2] ss:$100 sm:$0xc] %vm3_vm0, %v50_v14  }
  0x7a   :  { %487 = vst.msk [vmem:[%s1303_s1 + $0x1e2] ss:$-60 sm:$0x30] %vm3_vm0, %v50_v14   ;;  %488 = vst.msk [vmem:[%s1303_s1 + $0x282] ss:$-60 sm:$0xc0] %vm3_vm0, %v50_v14  }
  0x7b   :  { %476 = vst.msk [vmem:[%s1303_s1 + $0xa1] ss:$100 sm:$0x3] %vm3_vm0, %v25_v15   ;;  %477 = vst.msk [vmem:[%s1303_s1 + $0x1] ss:$100 sm:$0xc] %vm3_vm0, %v25_v15  }
  0x7c   :  { %478 = vst.msk [vmem:[%s1303_s1 + $0x1e1] ss:$-60 sm:$0x30] %vm3_vm0, %v25_v15   ;;  %479 = vst.msk [vmem:[%s1303_s1 + $0x281] ss:$-60 sm:$0xc0] %vm3_vm0, %v25_v15   ;;  %v75_v16 = vpop.permute.xlu1 %74   ;;  %v62_v17 = vpop.permute.xlu0 %61  }
  0x7d   :  { %494 = vst.msk [vmem:[%s1303_s1 + $0xa3] ss:$100 sm:$0x3] %vm3_vm0, %v75_v16   ;;  %495 = vst.msk [vmem:[%s1303_s1 + $0x3] ss:$100 sm:$0xc] %vm3_vm0, %v75_v16  }
  0x7e   :  { %496 = vst.msk [vmem:[%s1303_s1 + $0x1e3] ss:$-60 sm:$0x30] %vm3_vm0, %v75_v16   ;;  %497 = vst.msk [vmem:[%s1303_s1 + $0x283] ss:$-60 sm:$0xc0] %vm3_vm0, %v75_v16  }
  0x7f   :  { %489 = vst.msk [vmem:[%s1303_s1 + $0x3] ss:$100 sm:$0x3] %vm3_vm0, %v62_v17   ;;  %490 = vst.msk [vmem:[%s1303_s1 - $0x9d] ss:$100 sm:$0xc] %vm3_vm0, %v62_v17  }
  0x80   :  { %491 = vst.msk [vmem:[%s1303_s1 + $0x143] ss:$-60 sm:$0x30] %vm3_vm0, %v62_v17   ;;  %492 = vst.msk [vmem:[%s1303_s1 + $0x1e3] ss:$-60 sm:$0xc0] %vm3_vm0, %v62_v17   ;;  %v100_v18 = vpop.permute.xlu1 %99   ;;  %v87_v19 = vpop.permute.xlu0 %86  }
  0x81   :  { %503 = vst.msk [vmem:[%s1303_s1 + $0xe0] ss:$-60 sm:$0x3] %vm3_vm0, %v100_v18   ;;  %504 = vst.msk [vmem:[%s1303_s1 + $0x180] ss:$-60 sm:$0xc] %vm3_vm0, %v100_v18  }
  0x82   :  { %505 = vst.msk [vmem:[%s1303_s1 + $0x220] ss:$-60 sm:$0x70] %vm3_vm0, %v100_v18   ;;  %506 = vst.msk [vmem:[%s1303_s1 + $0x115] sm:$0x80] %vm3_vm0, %v100_v18  }
  0x83   :  { %498 = vst.msk [vmem:[%s1303_s1 + $0x40] ss:$-60 sm:$0x3] %vm3_vm0, %v87_v19   ;;  %499 = vst.msk [vmem:[%s1303_s1 + $0xe0] ss:$-60 sm:$0xc] %vm3_vm0, %v87_v19  }
  0x84   :  { %500 = vst.msk [vmem:[%s1303_s1 + $0x180] ss:$-60 sm:$0x70] %vm3_vm0, %v87_v19   ;;  %501 = vst.msk [vmem:[%s1303_s1 + $0x75] sm:$0x80] %vm3_vm0, %v87_v19   ;;  %v125_v20 = vpop.permute.xlu1 %124   ;;  %v112_v21 = vpop.permute.xlu0 %111  }
  0x85   :  { %512 = vst.msk [vmem:[%s1303_s1 + $0xe1] ss:$-60 sm:$0x3] %vm3_vm0, %v125_v20   ;;  %513 = vst.msk [vmem:[%s1303_s1 + $0x181] ss:$-60 sm:$0xc] %vm3_vm0, %v125_v20  }
  0x86   :  { %514 = vst.msk [vmem:[%s1303_s1 + $0x221] ss:$-60 sm:$0x70] %vm3_vm0, %v125_v20   ;;  %515 = vst.msk [vmem:[%s1303_s1 + $0x116] sm:$0x80] %vm3_vm0, %v125_v20  }
  0x87   :  { %507 = vst.msk [vmem:[%s1303_s1 + $0x41] ss:$-60 sm:$0x3] %vm3_vm0, %v112_v21   ;;  %508 = vst.msk [vmem:[%s1303_s1 + $0xe1] ss:$-60 sm:$0xc] %vm3_vm0, %v112_v21  }
  0x88   :  { %509 = vst.msk [vmem:[%s1303_s1 + $0x181] ss:$-60 sm:$0x70] %vm3_vm0, %v112_v21   ;;  %510 = vst.msk [vmem:[%s1303_s1 + $0x76] sm:$0x80] %vm3_vm0, %v112_v21   ;;  %v150_v22 = vpop.permute.xlu1 %149   ;;  %v137_v23 = vpop.permute.xlu0 %136  }
  0x89   :  { %521 = vst.msk [vmem:[%s1303_s1 + $0xe2] ss:$-60 sm:$0x3] %vm3_vm0, %v150_v22   ;;  %522 = vst.msk [vmem:[%s1303_s1 + $0x182] ss:$-60 sm:$0xc] %vm3_vm0, %v150_v22  }
  0x8a   :  { %523 = vst.msk [vmem:[%s1303_s1 + $0x222] ss:$-60 sm:$0x70] %vm3_vm0, %v150_v22   ;;  %524 = vst.msk [vmem:[%s1303_s1 + $0x117] sm:$0x80] %vm3_vm0, %v150_v22  }
  0x8b   :  { %516 = vst.msk [vmem:[%s1303_s1 + $0x42] ss:$-60 sm:$0x3] %vm3_vm0, %v137_v23   ;;  %517 = vst.msk [vmem:[%s1303_s1 + $0xe2] ss:$-60 sm:$0xc] %vm3_vm0, %v137_v23  }
  0x8c   :  { %518 = vst.msk [vmem:[%s1303_s1 + $0x182] ss:$-60 sm:$0x70] %vm3_vm0, %v137_v23   ;;  %519 = vst.msk [vmem:[%s1303_s1 + $0x77] sm:$0x80] %vm3_vm0, %v137_v23   ;;  %v175_v24 = vpop.permute.xlu1 %174   ;;  %v162_v25 = vpop.permute.xlu0 %161  }
  0x8d   :  { %530 = vst.msk [vmem:[%s1303_s1 + $0xe3] ss:$-60 sm:$0x3] %vm3_vm0, %v175_v24   ;;  %531 = vst.msk [vmem:[%s1303_s1 + $0x183] ss:$-60 sm:$0xc] %vm3_vm0, %v175_v24  }
  0x8e   :  { %532 = vst.msk [vmem:[%s1303_s1 + $0x223] ss:$-60 sm:$0x70] %vm3_vm0, %v175_v24   ;;  %533 = vst.msk [vmem:[%s1303_s1 + $0x118] sm:$0x80] %vm3_vm0, %v175_v24  }
  0x8f   :  { %525 = vst.msk [vmem:[%s1303_s1 + $0x43] ss:$-60 sm:$0x3] %vm3_vm0, %v162_v25   ;;  %526 = vst.msk [vmem:[%s1303_s1 + $0xe3] ss:$-60 sm:$0xc] %vm3_vm0, %v162_v25  }
  0x90   :  { %527 = vst.msk [vmem:[%s1303_s1 + $0x183] ss:$-60 sm:$0x70] %vm3_vm0, %v162_v25   ;;  %528 = vst.msk [vmem:[%s1303_s1 + $0x78] sm:$0x80] %vm3_vm0, %v162_v25   ;;  %v198_v26 = vpop.permute.xlu1 %197   ;;  %v187_v27 = vpop.permute.xlu0 %186  }
  0x91   :  { %538 = vst.msk [vmem:[%s1303_s1 + $0x120] ss:$-60 sm:$0x7] %vm3_vm0, %v198_v26   ;;  %539 = vst.msk [vmem:[%s1303_s1 + $0x1c0] ss:$-60 sm:$0x18] %vm3_vm0, %v198_v26  }
  0x92   :  { %540 = vst.msk [vmem:[%s1303_s1 + $0x260] ss:$-60 sm:$0xe0] %vm3_vm0, %v198_v26   ;;  %534 = vst.msk [vmem:[%s1303_s1 + $0x80] ss:$-60 sm:$0x7] %vm3_vm0, %v187_v27  }
  0x93   :  { %535 = vst.msk [vmem:[%s1303_s1 + $0x120] ss:$-60 sm:$0x18] %vm3_vm0, %v187_v27   ;;  %536 = vst.msk [vmem:[%s1303_s1 + $0x1c0] ss:$-60 sm:$0xe0] %vm3_vm0, %v187_v27  }
  0x94   :  { %v219_v28 = vpop.permute.xlu1 %218   ;;  %v208_v29 = vpop.permute.xlu0 %207  }
  0x95   :  { %545 = vst.msk [vmem:[%s1303_s1 + $0x121] ss:$-60 sm:$0x7] %vm3_vm0, %v219_v28   ;;  %546 = vst.msk [vmem:[%s1303_s1 + $0x1c1] ss:$-60 sm:$0x18] %vm3_vm0, %v219_v28  }
  0x96   :  { %547 = vst.msk [vmem:[%s1303_s1 + $0x261] ss:$-60 sm:$0xe0] %vm3_vm0, %v219_v28   ;;  %541 = vst.msk [vmem:[%s1303_s1 + $0x81] ss:$-60 sm:$0x7] %vm3_vm0, %v208_v29  }
  0x97   :  { %542 = vst.msk [vmem:[%s1303_s1 + $0x121] ss:$-60 sm:$0x18] %vm3_vm0, %v208_v29   ;;  %543 = vst.msk [vmem:[%s1303_s1 + $0x1c1] ss:$-60 sm:$0xe0] %vm3_vm0, %v208_v29  }
  0x98   :  { %v240_v30 = vpop.permute.xlu1 %239   ;;  %v229_v31 = vpop.permute.xlu0 %228  }
  0x99   :  { %552 = vst.msk [vmem:[%s1303_s1 + $0x122] ss:$-60 sm:$0x7] %vm3_vm0, %v240_v30   ;;  %553 = vst.msk [vmem:[%s1303_s1 + $0x1c2] ss:$-60 sm:$0x18] %vm3_vm0, %v240_v30  }
  0x9a   :  { %554 = vst.msk [vmem:[%s1303_s1 + $0x262] ss:$-60 sm:$0xe0] %vm3_vm0, %v240_v30   ;;  %548 = vst.msk [vmem:[%s1303_s1 + $0x82] ss:$-60 sm:$0x7] %vm3_vm0, %v229_v31  }
  0x9b   :  { %549 = vst.msk [vmem:[%s1303_s1 + $0x122] ss:$-60 sm:$0x18] %vm3_vm0, %v229_v31   ;;  %550 = vst.msk [vmem:[%s1303_s1 + $0x1c2] ss:$-60 sm:$0xe0] %vm3_vm0, %v229_v31  }
  0x9c   :  { %v261_v32 = vpop.permute.xlu1 %260   ;;  %v250_v33 = vpop.permute.xlu0 %249  }
  0x9d   :  { %559 = vst.msk [vmem:[%s1303_s1 + $0x123] ss:$-60 sm:$0x7] %vm3_vm0, %v261_v32   ;;  %560 = vst.msk [vmem:[%s1303_s1 + $0x1c3] ss:$-60 sm:$0x18] %vm3_vm0, %v261_v32  }
  0x9e   :  { %561 = vst.msk [vmem:[%s1303_s1 + $0x263] ss:$-60 sm:$0xe0] %vm3_vm0, %v261_v32   ;;  %555 = vst.msk [vmem:[%s1303_s1 + $0x83] ss:$-60 sm:$0x7] %vm3_vm0, %v250_v33  }
  0x9f   :  { %556 = vst.msk [vmem:[%s1303_s1 + $0x123] ss:$-60 sm:$0x18] %vm3_vm0, %v250_v33   ;;  %557 = vst.msk [vmem:[%s1303_s1 + $0x1c3] ss:$-60 sm:$0xe0] %vm3_vm0, %v250_v33  }
  0xa0   :  { %v284_v34 = vpop.permute.xlu1 %283   ;;  %v271_v35 = vpop.permute.xlu0 %270  }
  0xa1   :  { %567 = vst.msk [vmem:[%s1303_s1 + $0xc0] ss:$100 sm:$0x3] %vm3_vm0, %v284_v34   ;;  %568 = vst.msk [vmem:[%s1303_s1 + $0x160] ss:$-60 sm:$0xc] %vm3_vm0, %v284_v34  }
  0xa2   :  { %569 = vst.msk [vmem:[%s1303_s1 + $0x200] ss:$-60 sm:$0x30] %vm3_vm0, %v284_v34   ;;  %570 = vst.msk [vmem:[%s1303_s1 + $0x2a0] ss:$-60 sm:$0xc0] %vm3_vm0, %v284_v34  }
  0xa3   :  { %562 = vst.msk [vmem:[%s1303_s1 + $0x20] ss:$100 sm:$0x3] %vm3_vm0, %v271_v35   ;;  %563 = vst.msk [vmem:[%s1303_s1 + $0xc0] ss:$-60 sm:$0xc] %vm3_vm0, %v271_v35  }
  0xa4   :  { %564 = vst.msk [vmem:[%s1303_s1 + $0x160] ss:$-60 sm:$0x30] %vm3_vm0, %v271_v35   ;;  %565 = vst.msk [vmem:[%s1303_s1 + $0x200] ss:$-60 sm:$0xc0] %vm3_vm0, %v271_v35   ;;  %v309_v36 = vpop.permute.xlu1 %308   ;;  %v296_v37 = vpop.permute.xlu0 %295  }
  0xa5   :  { %576 = vst.msk [vmem:[%s1303_s1 + $0xc1] ss:$100 sm:$0x3] %vm3_vm0, %v309_v36   ;;  %577 = vst.msk [vmem:[%s1303_s1 + $0x161] ss:$-60 sm:$0xc] %vm3_vm0, %v309_v36  }
  0xa6   :  { %578 = vst.msk [vmem:[%s1303_s1 + $0x201] ss:$-60 sm:$0x30] %vm3_vm0, %v309_v36   ;;  %579 = vst.msk [vmem:[%s1303_s1 + $0x2a1] ss:$-60 sm:$0xc0] %vm3_vm0, %v309_v36  }
  0xa7   :  { %571 = vst.msk [vmem:[%s1303_s1 + $0x21] ss:$100 sm:$0x3] %vm3_vm0, %v296_v37   ;;  %572 = vst.msk [vmem:[%s1303_s1 + $0xc1] ss:$-60 sm:$0xc] %vm3_vm0, %v296_v37  }
  0xa8   :  { %573 = vst.msk [vmem:[%s1303_s1 + $0x161] ss:$-60 sm:$0x30] %vm3_vm0, %v296_v37   ;;  %574 = vst.msk [vmem:[%s1303_s1 + $0x201] ss:$-60 sm:$0xc0] %vm3_vm0, %v296_v37   ;;  %v334_v38 = vpop.permute.xlu1 %333   ;;  %v321_v39 = vpop.permute.xlu0 %320  }
  0xa9   :  { %585 = vst.msk [vmem:[%s1303_s1 + $0xc2] ss:$100 sm:$0x3] %vm3_vm0, %v334_v38   ;;  %586 = vst.msk [vmem:[%s1303_s1 + $0x162] ss:$-60 sm:$0xc] %vm3_vm0, %v334_v38  }
  0xaa   :  { %587 = vst.msk [vmem:[%s1303_s1 + $0x202] ss:$-60 sm:$0x30] %vm3_vm0, %v334_v38   ;;  %588 = vst.msk [vmem:[%s1303_s1 + $0x2a2] ss:$-60 sm:$0xc0] %vm3_vm0, %v334_v38  }
  0xab   :  { %580 = vst.msk [vmem:[%s1303_s1 + $0x22] ss:$100 sm:$0x3] %vm3_vm0, %v321_v39   ;;  %581 = vst.msk [vmem:[%s1303_s1 + $0xc2] ss:$-60 sm:$0xc] %vm3_vm0, %v321_v39  }
  0xac   :  { %582 = vst.msk [vmem:[%s1303_s1 + $0x162] ss:$-60 sm:$0x30] %vm3_vm0, %v321_v39   ;;  %583 = vst.msk [vmem:[%s1303_s1 + $0x202] ss:$-60 sm:$0xc0] %vm3_vm0, %v321_v39   ;;  %v359_v40 = vpop.permute.xlu1 %358   ;;  %v346_v41 = vpop.permute.xlu0 %345  }
  0xad   :  { %594 = vst.msk [vmem:[%s1303_s1 + $0xc3] ss:$100 sm:$0x3] %vm3_vm0, %v359_v40   ;;  %595 = vst.msk [vmem:[%s1303_s1 + $0x163] ss:$-60 sm:$0xc] %vm3_vm0, %v359_v40  }
  0xae   :  { %596 = vst.msk [vmem:[%s1303_s1 + $0x203] ss:$-60 sm:$0x30] %vm3_vm0, %v359_v40   ;;  %597 = vst.msk [vmem:[%s1303_s1 + $0x2a3] ss:$-60 sm:$0xc0] %vm3_vm0, %v359_v40  }
  0xaf   :  { %589 = vst.msk [vmem:[%s1303_s1 + $0x23] ss:$100 sm:$0x3] %vm3_vm0, %v346_v41   ;;  %590 = vst.msk [vmem:[%s1303_s1 + $0xc3] ss:$-60 sm:$0xc] %vm3_vm0, %v346_v41  }
  0xb0   :  { %591 = vst.msk [vmem:[%s1303_s1 + $0x163] ss:$-60 sm:$0x30] %vm3_vm0, %v346_v41   ;;  %592 = vst.msk [vmem:[%s1303_s1 + $0x203] ss:$-60 sm:$0xc0] %vm3_vm0, %v346_v41   ;;  %v384_v42 = vpop.permute.xlu1 %383   ;;  %v371_v43 = vpop.permute.xlu0 %370  }
  0xb1   :  { %603 = vst.msk [vmem:[%s1303_s1 + $0x100] ss:$-60 sm:$0x3] %vm3_vm0, %v384_v42   ;;  %604 = vst.msk [vmem:[%s1303_s1 + $0x1a0] ss:$-60 sm:$0x1c] %vm3_vm0, %v384_v42  }
  0xb2   :  { %605 = vst.msk [vmem:[%s1303_s1 + $0x240] ss:$-60 sm:$0x60] %vm3_vm0, %v384_v42   ;;  %606 = vst.msk [vmem:[%s1303_s1 + $0x135] sm:$0x80] %vm3_vm0, %v384_v42  }
  0xb3   :  { %598 = vst.msk [vmem:[%s1303_s1 + $0x60] ss:$-60 sm:$0x3] %vm3_vm0, %v371_v43   ;;  %599 = vst.msk [vmem:[%s1303_s1 + $0x100] ss:$-60 sm:$0x1c] %vm3_vm0, %v371_v43  }
  0xb4   :  { %600 = vst.msk [vmem:[%s1303_s1 + $0x1a0] ss:$-60 sm:$0x60] %vm3_vm0, %v371_v43   ;;  %601 = vst.msk [vmem:[%s1303_s1 + $0x95] sm:$0x80] %vm3_vm0, %v371_v43   ;;  %v409_v44 = vpop.permute.xlu1 %408   ;;  %v396_v45 = vpop.permute.xlu0 %395  }
  0xb5   :  { %612 = vst.msk [vmem:[%s1303_s1 + $0x101] ss:$-60 sm:$0x3] %vm3_vm0, %v409_v44   ;;  %613 = vst.msk [vmem:[%s1303_s1 + $0x1a1] ss:$-60 sm:$0x1c] %vm3_vm0, %v409_v44  }
  0xb6   :  { %614 = vst.msk [vmem:[%s1303_s1 + $0x241] ss:$-60 sm:$0x60] %vm3_vm0, %v409_v44   ;;  %615 = vst.msk [vmem:[%s1303_s1 + $0x136] sm:$0x80] %vm3_vm0, %v409_v44  }
  0xb7   :  { %607 = vst.msk [vmem:[%s1303_s1 + $0x61] ss:$-60 sm:$0x3] %vm3_vm0, %v396_v45   ;;  %608 = vst.msk [vmem:[%s1303_s1 + $0x101] ss:$-60 sm:$0x1c] %vm3_vm0, %v396_v45  }
  0xb8   :  { %609 = vst.msk [vmem:[%s1303_s1 + $0x1a1] ss:$-60 sm:$0x60] %vm3_vm0, %v396_v45   ;;  %610 = vst.msk [vmem:[%s1303_s1 + $0x96] sm:$0x80] %vm3_vm0, %v396_v45   ;;  %v434_v46 = vpop.permute.xlu1 %433   ;;  %v421_v47 = vpop.permute.xlu0 %420  }
  0xb9   :  { %621 = vst.msk [vmem:[%s1303_s1 + $0x102] ss:$-60 sm:$0x3] %vm3_vm0, %v434_v46   ;;  %622 = vst.msk [vmem:[%s1303_s1 + $0x1a2] ss:$-60 sm:$0x1c] %vm3_vm0, %v434_v46  }
  0xba   :  { %623 = vst.msk [vmem:[%s1303_s1 + $0x242] ss:$-60 sm:$0x60] %vm3_vm0, %v434_v46   ;;  %624 = vst.msk [vmem:[%s1303_s1 + $0x137] sm:$0x80] %vm3_vm0, %v434_v46  }
  0xbb   :  { %616 = vst.msk [vmem:[%s1303_s1 + $0x62] ss:$-60 sm:$0x3] %vm3_vm0, %v421_v47   ;;  %617 = vst.msk [vmem:[%s1303_s1 + $0x102] ss:$-60 sm:$0x1c] %vm3_vm0, %v421_v47  }
  0xbc   :  { %618 = vst.msk [vmem:[%s1303_s1 + $0x1a2] ss:$-60 sm:$0x60] %vm3_vm0, %v421_v47   ;;  %619 = vst.msk [vmem:[%s1303_s1 + $0x97] sm:$0x80] %vm3_vm0, %v421_v47   ;;  %v459_v48 = vpop.permute.xlu1 %458   ;;  %v446_v49 = vpop.permute.xlu0 %445  }
  0xbd   :  { %630 = vst.msk [vmem:[%s1303_s1 + $0x103] ss:$-60 sm:$0x3] %vm3_vm0, %v459_v48   ;;  %631 = vst.msk [vmem:[%s1303_s1 + $0x1a3] ss:$-60 sm:$0x1c] %vm3_vm0, %v459_v48  }
  0xbe   :  { %632 = vst.msk [vmem:[%s1303_s1 + $0x243] ss:$-60 sm:$0x60] %vm3_vm0, %v459_v48   ;;  %633 = vst.msk [vmem:[%s1303_s1 + $0x138] sm:$0x80] %vm3_vm0, %v459_v48  }
  0xbf   :  { %625 = vst.msk [vmem:[%s1303_s1 + $0x63] ss:$-60 sm:$0x3] %vm3_vm0, %v446_v49   ;;  %626 = vst.msk [vmem:[%s1303_s1 + $0x103] ss:$-60 sm:$0x1c] %vm3_vm0, %v446_v49  }
  0xc0   :  { %627 = vst.msk [vmem:[%s1303_s1 + $0x1a3] ss:$-60 sm:$0x60] %vm3_vm0, %v446_v49   ;;  %628 = vst.msk [vmem:[%s1303_s1 + $0x98] sm:$0x80] %vm3_vm0, %v446_v49  }

// kernel: train_ck_net_forward.1
= control target key start
LH: loop header
LB: loop body
LE: loop exit
PB: predicated region body
PF: predicated region fallthrough
CT: control target
= control target key end

     0   :  { %s19175_s0 = inlined_call_operand.vmem [shape: bf16[2,320,128], index: 0, kind: input, shape index: {}]   ;;  %s19176_s1 = inlined_call_operand.vmem [shape: f32[320,1], index: 1, kind: input, shape index: {}]   ;;  %s19177_s2 = inlined_call_operand.vmem [shape: bf16[128,128], index: 2, kind: input, shape index: {}]   ;;  %s19178_s3 = inlined_call_operand.vmem [shape: f32[1,128], index: 3, kind: input, shape index: {}]   ;;  %s19179_s4 = inlined_call_operand.vmem [shape: bf16[128,256], index: 4, kind: input, shape index: {}]   ;;  %s19180_s5 = inlined_call_operand.vmem [shape: f32[1,256], index: 5, kind: input, shape index: {}]   ;;  %s19181_s6 = inlined_call_operand.vmem [shape: bf16[9,128,128], index: 6, kind: input, shape index: {}]   ;;  %s19182_s7 = inlined_call_operand.vmem [shape: f32[1,128], index: 7, kind: input, shape index: {}]   ;;  %s19183_s8 = inlined_call_operand.vmem [shape: bf16[128,128], index: 8, kind: input, shape index: {}]   ;;  %s19184_s9 = inlined_call_operand.vmem [shape: f32[1,128], index: 9, kind: input, shape index: {}]   ;;  %s19185_s10 = inlined_call_operand.vmem [shape: bf16[128,128], index: 10, kind: input, shape index: {}]   ;;  %s19186_s11 = inlined_call_operand.vmem [shape: f32[1,128], index: 11, kind: input, shape index: {}]   ;;  %s19187_s12 = inlined_call_operand.vmem [shape: bf16[128,128], index: 12, kind: input, shape index: {}]   ;;  %s19188_s13 = inlined_call_operand.vmem [shape: f32[1,128], index: 13, kind: input, shape index: {}]   ;;  %s19189_s14 = inlined_call_operand.vmem [shape: bf16[128,128], index: 14, kind: input, shape index: {}]   ;;  %s19190_s15 = inlined_call_operand.vmem [shape: f32[1,128], index: 15, kind: input, shape index: {}]   ;;  %s19191_s16 = inlined_call_operand.hbm [shape: f32[2,1,128], index: 16, kind: output, shape index: {}]  }
   0x1   :  { %19312 = sst [smem:[#allocation192_spill]] %s19175_s0 }
   0x2   :  { %21 = vsyncpa [#allocation6], 0 }
   0x3   :  { %23 = vsyncpa [#allocation6 + $0x1], 0  ;;  %s14524_s21 = smov 0   ;;  %s14526_s22 = smov 0  }
   0x4   :  { %s14528_s23 = smov 0   ;;  %s14530_s24 = smov 0  }
   0x5 LB: > { %19313 = sst [smem:[#allocation8_spill]] %s14421_s21  ;;  %s14545_s25 = sadd.s32 4294967295, %s14433_s24   ;;  %s14433_s24 = sphi %s14530_s24, %s19895_s24   ;;  %s14429_s23 = sphi %s14528_s23, %s19897_s23   ;;  %s14425_s22 = sphi %s14526_s22, %s19899_s22   ;;  %s14421_s21 = sphi %s14524_s21, %s19898_s21  }
   0x6   : > { %19314 = sst [smem:[#allocation9_spill]] %s14429_s23  ;;  %s10188_s26 = sadd.s32 4294967294, %s14433_s24  }
   0x7   : > { %19315 = sst [smem:[#allocation10_spill]] %s14433_s24  ;;  %s14549_s27 = sadd.s32 1, %s14433_s24  }
   0x8   : > { %19316 = sst [smem:[#allocation11_spill]] %s14549_s27  ;;  %s377_s28 = sadd.s32 1, %s14429_s23 }
   0x9   : > { %s374_s29 = ssub.s32 %s14433_s24, %s14549_s27  ;;  %p387_p0 = scmp.ne.s32.totalorder %s14429_s23, %s14425_s22 }
   0xa   : > { %p375_p1 = scmp.eq.s32.totalorder %s374_s29, 0  ;;  %p388_p2 = scmp.eq.s32.totalorder %s14545_s25, 1 }
   0xb   : > { %p393_p3 = scmp.ne.s32.totalorder %s14425_s22, %s14421_s21  ;;  %p394_p4 = scmp.eq.s32.totalorder %s10188_s26, 1 }
   0xc   : > { %s14560_s30 = scalar_select %p375_p1, %s14429_s23, %s377_s28  }
   0xd   : > { %p14562_p5 = por %p388_p2, %p387_p0  ;;  %p14566_p6 = por %p394_p4, %p393_p3 }
   0xe   : > { %19317 = sst [smem:[#allocation12_spill]] %s14560_s30  ;;  %p10191_p7 = scmp.ge.s32.totalorder %s14433_s24, 1 }
   0xf   : > { %s19319_s17 = scalar_select %p14566_p6, 1, 0 }
  0x10   : > { %p465_p8 = scmp.lt.s32.totalorder %s14433_s24, 3 }
  0x11   : > { %19320 = sst [smem:[#allocation13_spill]] %s19319_s17 }
  0x12   : > { %p466_p9 = pnand %p10191_p7, %p465_p8 }
  0x14   : > { %469 = sbr.rel (%p466_p9) target bundleno = 2981 (0xba5), region = 84 }
  0x19   : > { %v13686_v0 = vld [vmem:[%s19177_s2 + $0x38] sm:$0xff]   ;;  %v13687_v1 = vld [vmem:[%s19177_s2 + $0x30] sm:$0xff]   ;;  %v14435_v2 = vmov 0   ;;  %p514_p10 = scmp.lt.s32.totalorder %s14545_s25, 1  ;;  %v13688_v3 = vld [vmem:[%s19177_s2 + $0x28] sm:$0xff]   ;;  %s19321_s27 = sld [smem:[#allocation192_spill]] }
  0x1a   : > { %13684 = vset.pattern.permute.xlu0 %v14435_v2  ;;  %1745 = vst [vmem:[#allocation2] sm:$0xf] %v14435_v2  ;;  %1746 = vst [vmem:[#allocation2 + $0x4] sm:$0xf] %v14435_v2  ;;  %13685 = vset.pattern.permute.xlu1 %v14435_v2  ;;  %v13689_v4 = vld [vmem:[%s19177_s2 + $0x20] sm:$0xff]   ;;  %v521_v7 = vld [vmem:[%s19176_s1 + $0x8] sm:$0xff] }
  0x1b   : > { %1747 = vst [vmem:[#allocation2 + $0x8] sm:$0xf] %v14435_v2  ;;  %1748 = vst [vmem:[#allocation2 + $0xc] sm:$0xf] %v14435_v2  ;;  %12085 = vmatprep.subr.bf16.mxu0 %v13686_v0  ;;  %1424 = vmatprep.mubr.bf16.mxu1 %v14435_v2  ;;  %s515_s28 = scalar_select %p514_p10, %s14545_s25, 1  ;;  %v520_v5 = vld [vmem:[%s19176_s1] sm:$0xff] }
  0x1c   : > { %1749 = vst [vmem:[#allocation2 + $0x10] sm:$0xf] %v14435_v2  ;;  %1750 = vst [vmem:[#allocation2 + $0x14] sm:$0xf] %v14435_v2  ;;  %12086 = vmatpush3.bf16.msra.mxu0 %v13686_v0  ;;  %1026 = vperm.xlu0 %13684, %v520_v5   ;;  %v522_v8 = vld [vmem:[%s19176_s1 + $0x10] sm:$0xff]  ;;  %v13690_v9 = vld [vmem:[%s19177_s2 + $0x18] sm:$0xff]  }
  0x1d   : > { %1751 = vst [vmem:[#allocation2 + $0xb8] sm:$0xf] %v14435_v2  ;;  %1752 = vst [vmem:[#allocation2 + $0xbc] sm:$0xf] %v14435_v2  ;;  %12087 = vmatprep.subr.bf16.mxu0 %v13687_v1  ;;  %s13641_s19 = smul.u32 160, %s515_s28  ;;  %1036 = vperm.xlu1 %13685, %v522_v8   ;;  %v523_v10 = vld [vmem:[%s19176_s1 + $0x18] sm:$0xff] }
  0x1e   : > { %1753 = vst [vmem:[#allocation2 + $0xc0] sm:$0xf] %v14435_v2  ;;  %1754 = vst [vmem:[#allocation2 + $0xc4] sm:$0xf] %v14435_v2  ;;  %v524_v11 = vld [vmem:[%s19176_s1 + $0x20] sm:$0xff]  ;;  %v13691_v12 = vld [vmem:[%s19177_s2 + $0x10] sm:$0xff]  }
  0x1f   : > { %1755 = vst [vmem:[#allocation2 + $0xc8] sm:$0xf] %v14435_v2  ;;  %1756 = vst [vmem:[#allocation2 + $0xcc] sm:$0xf] %v14435_v2  ;;  %s14604_s17 = scalar_lea.vmem %s19321_s27, %s13641_s19  ;;  %v525_v13 = vld [vmem:[%s19176_s1 + $0x28] sm:$0xff]  ;;  %v526_v14 = vld [vmem:[%s19176_s1 + $0x30] sm:$0xff] }
  0x20   : > { %12088 = vmatpush3.bf16.msra.mxu0 %v13687_v1  ;;  %v13694_v6 = vld [vmem:[%s14604_s17] sm:$0xff]   ;;  %1031 = vperm.xlu0 %13684, %v521_v7   ;;  %v13692_v15 = vld [vmem:[%s19177_s2 + $0x8] sm:$0xff]   ;;  %v527_v16 = vld [vmem:[%s19176_s1 + $0x38] sm:$0xff]  ;;  %vm14437_vm0 = vmmov 0   ;;  %vm2163_vm1 = vcmask 1044480   ;;  %vm2357_vm2 = vcmask 1046528  }
  0x21   : > { %12089 = vmatprep.subr.bf16.mxu0 %v13688_v3  ;;  %12101 = vmatprep.mubr.bf16.mxu0 %v13694_v6  ;;  %v528_v17 = vld [vmem:[%s19176_s1 + $0x40] sm:$0xff]  ;;  %v529_v19 = vld [vmem:[%s19176_s1 + $0x48] sm:$0xff]  ;;  %v530_v20 = vld [vmem:[%s19176_s1 + $0x50] sm:$0xff]  ;;  %s512_s29 = sand.u32 1, %s14425_s22   ;;  %s11347_s20 = sshll.u32 %s14545_s25, 4 }
  0x22   : > { %1041 = vperm.xlu1 %13685, %v523_v10   ;;  %v13693_v18 = vld [vmem:[%s19177_s2] sm:$0xff]   ;;  %v531_v21 = vld [vmem:[%s19176_s1 + $0x58] sm:$0xff]  ;;  %v13695_v22 = vld [vmem:[%s14604_s17 + $0x8] sm:$0xff]   ;;  %s513_s23 = scalar_lea.vmem [#allocation5], %s512_s29  ;;  %s19134_s24 = scalar_lea.hbm %s19191_s16, %s11347_s20 }
  0x23   : > { %v532_v23 = vld [vmem:[%s19176_s1 + $0x60] sm:$0xff]  ;;  %v13696_v24 = vld [vmem:[%s14604_s17 + $0x10] sm:$0xff]   ;;  %v533_v25 = vld [vmem:[%s19176_s1 + $0x68] sm:$0xff]  ;;  %s10133_s27 = sshll.u32 %s513_s23, 4  ;;  %s10121_s30 = scalar_lea.sflag [#allocation6], %s512_s29  ;;  %s19136_s27 = int_to_ptr.vmem [resolvable:$true] %s10133_s27 }
  0x24   : > { %12090 = vmatpush3.bf16.msra.mxu0 %v13688_v3  ;;  %1046 = vperm.xlu0 %13684, %v524_v11   ;;  %v534_v26 = vld [vmem:[%s19176_s1 + $0x70] sm:$0xff]  ;;  %v13697_v27 = vld [vmem:[%s14604_s17 + $0x18] sm:$0xff]   ;;  %v536_v29 = vld [vmem:[%s19176_s1 + $0x80] sm:$0xff]  ;;  %s14373_s19 = scalar_lea.vmem %s19136_s27, 16  ;;  %s14438_s25 = smov [#allocation5]  }
  0x25   : > { %12091 = vmatprep.subr.bf16.mxu0 %v13689_v4  ;;  %v535_v28 = vld [vmem:[%s19176_s1 + $0x78] sm:$0xff]  ;;  %v13698_v30 = vld [vmem:[%s14604_s17 + $0x20] sm:$0xff]   ;;  %v538_v31 = vld [vmem:[%s19176_s1 + $0x90] sm:$0xff]  ;;  %p14374_p11 = scmp.ne.s32.totalorder %s19136_s27, %s14373_s19  ;;  %s14377_s26 = sshll.u32 %s14438_s25, 4  ;;  %s14378_s26 = int_to_ptr.vmem [resolvable:$false] %s14377_s26 }
  0x26   : > { %1051 = vperm.xlu1 %13685, %v525_v13   ;;  %v537_v32 = vld [vmem:[%s19176_s1 + $0x88] sm:$0xff]  ;;  %v539_v33 = vld [vmem:[%s19176_s1 + $0x98] sm:$0xff]  ;;  %v540_v35 = vld [vmem:[%s19176_s1 + $0xa0] sm:$0xff]  ;;  %s14379_s28 = scalar_lea.vmem %s14378_s26, 32  ;;  %p14380_p0 = scmp.lt.s32.totalorder %s19136_s27, %s14378_s26 }
  0x27   : > { %v13699_v34 = vld [vmem:[%s14604_s17 + $0x28] sm:$0xff]   ;;  %v13700_v36 = vld [vmem:[%s14604_s17 + $0x30] sm:$0xff]   ;;  %v543_v39 = vld [vmem:[%s19176_s1 + $0xb8] sm:$0xff]  ;;  %p14375_p12 = pnand %p14374_p11, %p14562_p5  ;;  %p14381_p1 = scmp.lt.s32.totalorder %s14379_s28, %s14373_s19 }
  0x28   : > { %12092 = vmatpush3.bf16.msra.mxu0 %v13689_v4  ;;  %1056 = vperm.xlu0 %13684, %v526_v14   ;;  %v541_v37 = vld [vmem:[%s19176_s1 + $0xa8] sm:$0xff]  ;;  %v542_v38 = vld [vmem:[%s19176_s1 + $0xb0] sm:$0xff]  ;;  %v13701_v40 = vld [vmem:[%s14604_s17 + $0x38] sm:$0xff]  }
  0x29   : > { %12093 = vmatprep.subr.bf16.mxu0 %v13690_v9  ;;  %v544_v41 = vld [vmem:[%s19176_s1 + $0xc0] sm:$0xff]  ;;  %v545_v43 = vld [vmem:[%s19176_s1 + $0xc8] sm:$0xff]  ;;  %v546_v44 = vld [vmem:[%s19176_s1 + $0xd0] sm:$0xff]  ;;  %p14376_p13 = pneg %p14375_p12  ;;  %p14382_p2 = por %p14381_p1, %p14380_p0 }
  0x2a   : > { %1061 = vperm.xlu1 %13685, %v527_v16   ;;  %v13702_v42 = vld [vmem:[%s14604_s17 + $0x40] sm:$0xff]   ;;  %v13714_v45 = vld [vmem:[%s19179_s4 + $0x74] ss:$8 sps:$4 sm:$0xff]   ;;  %v13716_v46 = vld [vmem:[%s19179_s4 + $0x70] ss:$8 sps:$4 sm:$0xff]  }
  0x2b   : > { %1392 = vmatprep.subr.bf16.mxu1 %v13714_v45  ;;  %v547_v47 = vld [vmem:[%s19176_s1 + $0xd8] sm:$0xff]  ;;  %v13703_v48 = vld [vmem:[%s14604_s17 + $0x48] sm:$0xff]   ;;  %v548_v49 = vld [vmem:[%s19176_s1 + $0xe0] sm:$0xff]  ;;  %p14383_p3 = pnand %p14382_p2, %p14376_p13 }
  0x2c   : > { %12094 = vmatpush3.bf16.msra.mxu0 %v13690_v9  ;;  %1066 = vperm.xlu0 %13684, %v528_v17   ;;  %v13717_v50 = vld [vmem:[%s19179_s4 + $0x64] ss:$8 sps:$4 sm:$0xff]   ;;  %v13719_v51 = vld [vmem:[%s19179_s4 + $0x60] ss:$8 sps:$4 sm:$0xff]   ;;  %v13704_v52 = vld [vmem:[%s14604_s17 + $0x50] sm:$0xff]  }
  0x2d   : > { %12095 = vmatprep.subr.bf16.mxu0 %v13691_v12  ;;  %1393 = vmatpush1.bf16.msra.mxu1 %v13716_v46  ;;  %v549_v53 = vld [vmem:[%s19176_s1 + $0xe8] sm:$0xff]  ;;  %v550_v54 = vld [vmem:[%s19176_s1 + $0xf0] sm:$0xff]  ;;  %v551_v57 = vld [vmem:[%s19176_s1 + $0xf8] sm:$0xff] }
  0x2e   : > { %1071 = vperm.xlu1 %13685, %v529_v19   ;;  %1394 = vmatprep.subr.bf16.mxu1 %v13717_v50  ;;  %v13720_v55 = vld [vmem:[%s19179_s4 + $0x54] ss:$8 sps:$4 sm:$0xff]   ;;  %v13722_v56 = vld [vmem:[%s19179_s4 + $0x50] ss:$8 sps:$4 sm:$0xff]   ;;  %v552_v59 = vld [vmem:[%s19176_s1 + $0x100] sm:$0xff] }
  0x2f   : > { %v13705_v58 = vld [vmem:[%s14604_s17 + $0x58] sm:$0xff]   ;;  %v13723_v60 = vld [vmem:[%s19179_s4 + $0x44] ss:$8 sps:$4 sm:$0xff]   ;;  %v13725_v61 = vld [vmem:[%s19179_s4 + $0x40] ss:$8 sps:$4 sm:$0xff]  }
  0x30   : > { %12096 = vmatpush3.bf16.msra.mxu0 %v13691_v12  ;;  %1076 = vperm.xlu0 %13684, %v530_v20   ;;  %v13706_v62 = vld [vmem:[%s14604_s17 + $0x60] sm:$0xff]   ;;  %v553_v63 = vld [vmem:[%s19176_s1 + $0x108] sm:$0xff]  ;;  %v554_v0 = vld [vmem:[%s19176_s1 + $0x110] sm:$0xff] }
  0x31   : > { %12097 = vmatprep.subr.bf16.mxu0 %v13692_v15  ;;  %1395 = vmatpush1.bf16.msra.mxu1 %v13719_v51  ;;  %v13726_v1 = vld [vmem:[%s19179_s4 + $0x34] ss:$8 sps:$4 sm:$0xff]   ;;  %v13707_v4 = vld [vmem:[%s14604_s17 + $0x68] sm:$0xff]   ;;  %v556_v5 = vld [vmem:[%s19176_s1 + $0x120] sm:$0xff] }
  0x32   : > { %1081 = vperm.xlu1 %13685, %v531_v21   ;;  %1396 = vmatprep.subr.bf16.mxu1 %v13720_v55  ;;  %v555_v3 = vld [vmem:[%s19176_s1 + $0x118] sm:$0xff]  ;;  %v13708_v6 = vld [vmem:[%s14604_s17 + $0x70] sm:$0xff]   ;;  %v557_v7 = vld [vmem:[%s19176_s1 + $0x128] sm:$0xff] }
  0x33   : > { %v558_v8 = vld [vmem:[%s19176_s1 + $0x130] sm:$0xff]  ;;  %v559_v9 = vld [vmem:[%s19176_s1 + $0x138] sm:$0xff]  ;;  %v13710_v11 = vld [vmem:[%s14604_s17 + $0x80] sm:$0xff]  }
  0x34   : > { %12098 = vmatpush3.bf16.msra.mxu0 %v13692_v15  ;;  %1086 = vperm.xlu0 %13684, %v532_v23   ;;  %v13709_v10 = vld [vmem:[%s14604_s17 + $0x78] sm:$0xff]   ;;  %v13711_v12 = vld [vmem:[%s14604_s17 + $0x88] sm:$0xff]   ;;  %v13712_v13 = vld [vmem:[%s14604_s17 + $0x90] sm:$0xff]  }
  0x35   : > { %12099 = vmatprep.subr.bf16.mxu0 %v13693_v18  ;;  %1397 = vmatpush1.bf16.msra.mxu1 %v13722_v56  ;;  %v13728_v14 = vld [vmem:[%s19179_s4 + $0x30] ss:$8 sps:$4 sm:$0xff]   ;;  %v13729_v15 = vld [vmem:[%s19179_s4 + $0x24] ss:$8 sps:$4 sm:$0xff]   ;;  %v13731_v17 = vld [vmem:[%s19179_s4 + $0x20] ss:$8 sps:$4 sm:$0xff]  }
  0x36   : > { %1091 = vperm.xlu1 %13685, %v533_v25   ;;  %1398 = vmatprep.subr.bf16.mxu1 %v13723_v60  ;;  %v13713_v16 = vld [vmem:[%s14604_s17 + $0x98] sm:$0xff]   ;;  %v13735_v20 = vld [vmem:[%s19179_s4 + $0x4] ss:$8 sps:$4 sm:$0xff]   ;;  %v13737_v21 = vld [vmem:[%s19179_s4] ss:$8 sps:$4 sm:$0xff]  }
  0x37   : > { %v13734_v19 = vld [vmem:[%s19179_s4 + $0x10] ss:$8 sps:$4 sm:$0xff]   ;;  %v14809_v23 = vld [vmem:[%s19178_s3] ss:$0 sm:$0xff] }
  0x38   : > { %12100 = vmatpush3.bf16.msra.mxu0 %v13693_v18  ;;  %1096 = vperm.xlu0 %13684, %v534_v26   ;;  %v13732_v18 = vld [vmem:[%s19179_s4 + $0x14] ss:$8 sps:$4 sm:$0xff]  }
  0x39   : > { %1399 = vmatpush1.bf16.msra.mxu1 %v13725_v61 }
  0x3a   : > { %1101 = vperm.xlu1 %13685, %v535_v28   ;;  %1400 = vmatprep.subr.bf16.mxu1 %v13726_v1 }
  0x3b   : > { %12102 = vmatmul.mubr.bf16.vlgmr.msra.gmra.mxu0 %v13695_v22 }
  0x3c   : > { %12105 = vmatprep.mubr.bf16.mxu0 %v13696_v24  ;;  %1106 = vperm.xlu0 %13684, %v536_v29  }
  0x3d   : > { %1401 = vmatpush1.bf16.msra.mxu1 %v13728_v14 }
  0x3e   : > { %1111 = vperm.xlu1 %13685, %v537_v32   ;;  %1402 = vmatprep.subr.bf16.mxu1 %v13729_v15 }
  0x40   : > { %1116 = vperm.xlu0 %13684, %v538_v31   ;;  %v13738_v31 = vld [vmem:[%s19181_s6 + $0x78] sm:$0xff]  }
  0x41   : > { %1403 = vmatpush1.bf16.msra.mxu1 %v13731_v17 }
  0x42   : > { %1121 = vperm.xlu1 %13685, %v539_v33   ;;  %1404 = vmatprep.subr.bf16.mxu1 %v13732_v18  ;;  %v19199_v33 = vmov 0.0  }
  0x43   : > { %12106 = vmatmul.mubr.bf16.gmra.mxu0 %v13697_v27  ;;  %12141 = vmatprep.subr.bf16.mxu0 %v19199_v33 }
  0x44   : > { %12109 = vmatprep.mubr.bf16.mxu0 %v13698_v30  ;;  %1126 = vperm.xlu0 %13684, %v540_v35  }
  0x45   : > { %1405 = vmatpush1.bf16.msra.mxu1 %v13734_v19  ;;  %12142 = vmatpush3.bf16.msra.mxu0 %v13738_v31  ;;  %v13742_v19 = vld [vmem:[%s19181_s6 + $0xf8] sm:$0xff]  }
  0x46   : > { %1131 = vperm.xlu1 %13685, %v541_v37   ;;  %1406 = vmatprep.subr.bf16.mxu1 %v13735_v20  ;;  %v13743_v20 = vld [vmem:[%s19181_s6 + $0x58] sm:$0xff]  }
  0x47   : > { %12143 = vmatprep.subr.bf16.mxu0 %v19199_v33 }
  0x48   : > { %1136 = vperm.xlu0 %13684, %v542_v38  }
  0x49   : > { %1407 = vmatpush1.bf16.msra.mxu1 %v13737_v21  ;;  %v1302_v21 = vlaneseq }
  0x4a   : > { %1141 = vperm.xlu1 %13685, %v543_v39   ;;  %12249 = vmatprep.subr.bf16.mxu1 %v19199_v33 }
  0x4b   : > { %12110 = vmatmul.mubr.bf16.gmra.mxu0 %v13699_v34 }
  0x4c   : > { %12113 = vmatprep.mubr.bf16.mxu0 %v13700_v36  ;;  %1146 = vperm.xlu0 %13684, %v544_v41  }
  0x4e   : > { %1151 = vperm.xlu1 %13685, %v545_v43  }
  0x50   : > { %1156 = vperm.xlu0 %13684, %v546_v44  }
  0x52   : > { %1161 = vperm.xlu1 %13685, %v547_v47   ;;  %v13739_v47 = vld [vmem:[%s19181_s6 + $0x70] sm:$0xff]  }
  0x53   : > { %12114 = vmatmul.mubr.bf16.gmra.mxu0 %v13701_v40 }
  0x54   : > { %12117 = vmatprep.mubr.bf16.mxu0 %v13702_v42  ;;  %1166 = vperm.xlu0 %13684, %v548_v49  }
  0x55   : > { %12144 = vmatpush3.bf16.msra.mxu0 %v13739_v47 }
  0x56   : > { %1171 = vperm.xlu1 %13685, %v549_v53   ;;  %12145 = vmatprep.subr.bf16.mxu0 %v19199_v33 }
  0x58   : > { %1176 = vperm.xlu0 %13684, %v550_v54  }
  0x5a   : > { %1181 = vperm.xlu1 %13685, %v551_v57  }
  0x5b   : > { %12118 = vmatmul.mubr.bf16.gmra.mxu0 %v13703_v48 }
  0x5c   : > { %12121 = vmatprep.mubr.bf16.mxu0 %v13704_v52  ;;  %1186 = vperm.xlu0 %13684, %v552_v59  }
  0x5e   : > { %1191 = vperm.xlu1 %13685, %v553_v63  }
  0x60   : > { %1196 = vperm.xlu0 %13684, %v554_v0  }
  0x62   : > { %1201 = vperm.xlu1 %13685, %v555_v3  }
  0x63   : > { %12122 = vmatmul.mubr.bf16.gmra.mxu0 %v13705_v58  ;;  %v13740_v58 = vld [vmem:[%s19181_s6 + $0x68] sm:$0xff]  }
  0x64   : > { %12125 = vmatprep.mubr.bf16.mxu0 %v13706_v62  ;;  %1206 = vperm.xlu0 %13684, %v556_v5  }
  0x65   : > { %12146 = vmatpush3.bf16.msra.mxu0 %v13740_v58 }
  0x66   : > { %1211 = vperm.xlu1 %13685, %v557_v7   ;;  %12147 = vmatprep.subr.bf16.mxu0 %v19199_v33 }
  0x68   : > { %1216 = vperm.xlu0 %13684, %v558_v8   ;;  %v13741_v8 = vld [vmem:[%s19181_s6 + $0x60] sm:$0xff]  }
  0x69   : > { %12148 = vmatpush3.bf16.msra.mxu0 %v13741_v8 }
  0x6a   : > { %1221 = vperm.xlu1 %13685, %v559_v9   ;;  %12149 = vmatprep.subr.bf16.mxu0 %v19199_v33 }
  0x6b   : > { %12126 = vmatmul.mubr.bf16.gmra.mxu0 %v13707_v4 }
  0x6c   : > { %12129 = vmatprep.mubr.bf16.mxu0 %v13708_v6 }
  0x6d   : > { %12150 = vmatpush3.bf16.msra.mxu0 %v13743_v20 }
  0x6e   : > { %12151 = vmatprep.subr.bf16.mxu0 %v19199_v33 }
  0x73   : > { %12130 = vmatmul.mubr.bf16.gmra.mxu0 %v13709_v10 }
  0x74   : > { %12133 = vmatprep.mubr.bf16.mxu0 %v13710_v11 }
  0x7b   : > { %12134 = vmatmul.mubr.bf16.gmra.mxu0 %v13711_v12 }
  0x7c   : > { %12137 = vmatprep.mubr.bf16.mxu0 %v13712_v13 }
  0x83   : > { %12138 = vmatmul.mubr.bf16.gmra.mxu0 %v13713_v16 }
  0x84   : > { %12157 = vmatprep.mubr.msk.bf16.mxu0 %vm14437_vm0, %v19199_v33 }
  0x97   : > { %v14812_v26 = vpop.permute.xlu0 %1026 }
  0x98   : > { %19322 = vst [vmem:[#allocation14_spill] sm:$0xff] %v14812_v26  ;;  %v14820_v34 = vpop.permute.xlu1 %1036 }
  0x99   : > { %19323 = vst [vmem:[#allocation15_spill] sm:$0xff] %v14820_v34 }
  0x9b   : > { %v14823_v37 = vpop.permute.xlu0 %1031 }
  0x9c   : > { %19324 = vst [vmem:[#allocation16_spill] sm:$0xff] %v14823_v37 }
  0x9d   : > { %v14832_v48 = vpop.permute.xlu1 %1041 }
  0x9e   : > { %19325 = vst [vmem:[#allocation17_spill] sm:$0xff] %v14832_v48 }
  0x9f   : > { %v14848_v62 = vpop.permute.xlu0 %1046 }
  0xa0   : > { %19327 = vst [vmem:[#allocation19_spill] sm:$0xff] %v14848_v62 }
  0xa1   : > { %v14843_v59 = vpop.permute.xlu1 %1051 }
  0xa2   : > { %19326 = vst [vmem:[#allocation18_spill] sm:$0xff] %v14843_v59 }
  0xa3   : > { %v14861_v11 = vpop.permute.xlu0 %1056 }
  0xa4   : > { %19329 = vst [vmem:[#allocation21_spill] sm:$0xff] %v14861_v11 }
  0xa5   : > { %v14853_v7 = vpop.permute.xlu1 %1061 }
  0xa6   : > { %19328 = vst [vmem:[#allocation20_spill] sm:$0xff] %v14853_v7 }
  0xfb   : > { %v12103_v22 = vpop.f32.mrf.mxu0 }
  0xfc   : > { %v834_v39 = vadd.f32 %v12103_v22, %v14809_v23  ;;  %v14874_v22 = vpop.permute.xlu1 %1071 }
  0xfd   : > { %v825_v24 = vpop.f32.mrf.mxu0  ;;  %19330 = vst [vmem:[#allocation22_spill] sm:$0xff] %v14874_v22 }
  0xfe   : > { %v826_v25 = vadd.f32 %v14809_v23, %v825_v24  ;;  %v986_v46 = vmax.f32 %v834_v39, 0.0 }
  0xff   : > { %v12104_v27 = vpop.f32.mrf.mxu0 }
 0x100   : > { %v984_v29 = vmax.f32 %v826_v25, 0.0  ;;  %v837_v35 = vadd.f32 %v12104_v27, %v14809_v23  ;;  %v1226_v52 = vmul.f32 %v14820_v34, %v986_v46  ;;  %v13744_v27 = vld [vmem:[%s19181_s6 + $0x50] sm:$0xff]  }
 0x101   : > { %v828_v28 = vpop.f32.mrf.mxu0  ;;  %12152 = vmatpush3.bf16.msra.mxu0 %v13744_v27 }
 0x102   : > { %v829_v30 = vadd.f32 %v14809_v23, %v828_v28  ;;  %v1224_v40 = vmul.f32 %v14812_v26, %v984_v29  ;;  %v987_v43 = vmax.f32 %v837_v35, 0.0  ;;  %v13745_v28 = vld [vmem:[%s19181_s6 + $0xf0] sm:$0xff]   ;;  %v14885_v29 = vshrl.u32 %v1302_v21, 7  ;;  %12153 = vmatprep.subr.bf16.mxu0 %v19199_v33 }
 0x103   : > { %v12107_v32 = vpop.f32.mrf.mxu0 }
 0x104   : > { %v985_v36 = vmax.f32 %v829_v30, 0.0  ;;  %v1227_v49 = vmul.f32 %v14832_v48, %v987_v43  ;;  %v850_v0 = vadd.f32 %v12107_v32, %v14809_v23  ;;  %19331 = vst [vmem:[#allocation23_spill] sm:$0xff] %v14885_v29  ;;  %v14887_v30 = vpop.permute.xlu0 %1066 }
 0x105   : > { %v841_v38 = vpop.f32.mrf.mxu0  ;;  %19332 = vst [vmem:[#allocation24_spill] sm:$0xff] %v14887_v30 }
 0x106   : > { %v1225_v41 = vmul.f32 %v14823_v37, %v985_v36  ;;  %v842_v53 = vadd.f32 %v14809_v23, %v841_v38  ;;  %v1265_v55 = vpack.c.bf16 %v1227_v49, %v1226_v52  ;;  %v990_v6 = vmax.f32 %v850_v0, 0.0  ;;  %v14896_v36 = vld [vmem:[%s19180_s5] sm:$0x3] }
 0x107   : > { %v12108_v42 = vpop.f32.mrf.mxu0  ;;  %v19198_v38 = vsub.s32 0, %v14885_v29  ;;  %v13747_v49 = vld [vmem:[%s19181_s6 + $0x40] sm:$0xff]  }
 0x108   : > { %v1264_v44 = vpack.c.bf16 %v1225_v41, %v1224_v40  ;;  %v988_v57 = vmax.f32 %v842_v53, 0.0  ;;  %v853_v60 = vadd.f32 %v12108_v42, %v14809_v23  ;;  %v1230_v13 = vmul.f32 %v14861_v11, %v990_v6  ;;  %v13746_v41 = vld [vmem:[%s19181_s6 + $0x48] sm:$0xff]  }
 0x109   : > { %v844_v45 = vpop.f32.mrf.mxu0  ;;  %v14906_v43 = vrot.slane %v14896_v36, %v19198_v38  ;;  %12154 = vmatpush3.bf16.msra.mxu0 %v13746_v41 }
 0x10a   : > { %1425 = vmatmul.mubr.bf16.vlgmr.msra.gmra.mxu1 %v1264_v44  ;;  %v845_v50 = vadd.f32 %v14809_v23, %v844_v45  ;;  %v1228_v1 = vmul.f32 %v14848_v62, %v988_v57  ;;  %v991_v3 = vmax.f32 %v853_v60, 0.0  ;;  %v14909_v45 = vpop.permute.xlu1 %1081  ;;  %12155 = vmatprep.subr.bf16.mxu0 %v19199_v33 }
 0x10b   : > { %1434 = vmatprep.mubr.bf16.mxu1 %v14435_v2  ;;  %v12111_v51 = vpop.f32.mrf.mxu0  ;;  %12250 = vmatpush3.bf16.msra.mxu1 %v13742_v19  ;;  %19333 = vst [vmem:[#allocation25_spill] sm:$0xff] %v14906_v43  ;;  %19334 = vst [vmem:[#allocation26_spill] sm:$0xff] %v14909_v45 }
 0x10c   : > { %v989_v54 = vmax.f32 %v845_v50, 0.0  ;;  %v1231_v9 = vmul.f32 %v14853_v7, %v991_v3  ;;  %12251 = vmatprep.subr.bf16.mxu1 %v19199_v33  ;;  %v866_v32 = vadd.f32 %v12111_v51, %v14809_v23  ;;  %v14917_v50 = vpop.permute.xlu0 %1076 }
 0x10d   : > { %v857_v56 = vpop.f32.mrf.mxu0  ;;  %19335 = vst [vmem:[#allocation27_spill] sm:$0xff] %v14917_v50  ;;  %12156 = vmatpush3.bf16.msra.mxu0 %v13747_v49 }
 0x10e   : > { %v1229_v61 = vmul.f32 %v14843_v59, %v989_v54  ;;  %v858_v14 = vadd.f32 %v14809_v23, %v857_v56  ;;  %v1267_v16 = vpack.c.bf16 %v1231_v9, %v1230_v13  ;;  %v994_v44 = vmax.f32 %v866_v32, 0.0  ;;  %12177 = vmatprep.subr.bf16.mxu0 %v19199_v33  ;;  %v14923_v58 = vpop.permute.xlu1 %1091 }
 0x10f   : > { %v12112_v63 = vpop.f32.mrf.mxu0  ;;  %12252 = vmatpush3.bf16.msra.mxu1 %v13745_v28  ;;  %19336 = vst [vmem:[#allocation28_spill] sm:$0xff] %v14923_v58 }
 0x110   : > { %v1266_v4 = vpack.c.bf16 %v1229_v61, %v1228_v1  ;;  %v992_v18 = vmax.f32 %v858_v14, 0.0  ;;  %v869_v24 = vadd.f32 %v12112_v63, %v14809_v23  ;;  %12253 = vmatprep.subr.bf16.mxu1 %v19199_v33  ;;  %v1234_v52 = vmul.f32 %v14917_v50, %v994_v44  ;;  %v14928_v63 = vpop.permute.xlu0 %1086  ;;  %v14953_v44 = vld [vmem:[#allocation2 + $0x8] sm:$0xf] }
 0x111   : > { %v860_v5 = vpop.f32.mrf.mxu0  ;;  %19337 = vst [vmem:[#allocation29_spill] sm:$0xff] %v14928_v63 }
 0x112   : > { %1435 = vmatmul.mubr.bf16.gmra.mxu1 %v1265_v55  ;;  %v861_v10 = vadd.f32 %v14809_v23, %v860_v5  ;;  %v1232_v35 = vmul.f32 %v14887_v30, %v992_v18  ;;  %v995_v39 = vmax.f32 %v869_v24, 0.0  ;;  %v14933_v9 = vpop.permute.xlu1 %1101 }
 0x113   : > { %1444 = vmatprep.mubr.bf16.mxu1 %v14435_v2  ;;  %v14863_v12 = vpop.f32.mrf.mxu0  ;;  %19338 = vst [vmem:[#allocation30_spill] sm:$0xff] %v14933_v9 }
 0x114   : > { %v993_v15 = vmax.f32 %v861_v10, 0.0  ;;  %v1235_v46 = vmul.f32 %v14909_v45, %v995_v39  ;;  %v882_v1 = vadd.f32 %v14863_v12, %v14809_v23  ;;  %v14938_v14 = vpop.permute.xlu0 %1096 }
 0x115   : > { %v873_v17 = vpop.f32.mrf.mxu0  ;;  %19339 = vst [vmem:[#allocation31_spill] sm:$0xff] %v14938_v14 }
 0x116   : > { %v1233_v25 = vmul.f32 %v14874_v22, %v993_v15  ;;  %v874_v53 = vadd.f32 %v14809_v23, %v873_v17  ;;  %v1269_v55 = vpack.c.bf16 %v1235_v46, %v1234_v52  ;;  %v998_v8 = vmax.f32 %v882_v1, 0.0  ;;  %v14942_v21 = vpop.permute.xlu1 %1111  ;;  %v14974_v1 = vld [vmem:[#allocation2 + $0x10] sm:$0xf] }
 0x117   : > { %v12116_v31 = vpop.f32.mrf.mxu0  ;;  %19340 = vst [vmem:[#allocation32_spill] sm:$0xff] %v14942_v21 }
 0x118   : > { %v1268_v40 = vpack.c.bf16 %v1233_v25, %v1232_v35  ;;  %v996_v57 = vmax.f32 %v874_v53, 0.0  ;;  %v885_v60 = vadd.f32 %v12116_v31, %v14809_v23  ;;  %v1238_v12 = vmul.f32 %v14938_v14, %v998_v8  ;;  %v14947_v27 = vpop.permute.xlu0 %1106 }
 0x119   : > { %v876_v42 = vpop.f32.mrf.mxu0  ;;  %19341 = vst [vmem:[#allocation33_spill] sm:$0xff] %v14947_v27 }
 0x11a   : > { %1445 = vmatmul.mubr.bf16.gmra.mxu1 %v1266_v4  ;;  %v877_v47 = vadd.f32 %v14809_v23, %v876_v42  ;;  %v1236_v3 = vmul.f32 %v14928_v63, %v996_v57  ;;  %v999_v4 = vmax.f32 %v885_v60, 0.0  ;;  %v14951_v42 = vld [vmem:[#allocation2 + $0x4] sm:$0xf]  ;;  %v14955_v46 = vpop.permute.xlu1 %1121 }
 0x11b   : > { %1454 = vmatprep.mubr.bf16.mxu1 %v14435_v2  ;;  %v12119_v51 = vpop.f32.mrf.mxu0  ;;  %19342 = vst [vmem:[#allocation34_spill] sm:$0xff] %v14955_v46 }
 0x11c   : > { %v997_v54 = vmax.f32 %v877_v47, 0.0  ;;  %v1239_v10 = vmul.f32 %v14933_v9, %v999_v4  ;;  %v898_v31 = vadd.f32 %v12119_v51, %v14809_v23  ;;  %v10294_v47 = vcombine.low %v14951_v42, %v14953_v44  ;;  %v14964_v52 = vpop.permute.xlu0 %1116 }
 0x11d   : > { %v889_v56 = vpop.f32.mrf.mxu0  ;;  %19343 = vst [vmem:[#allocation35_spill] sm:$0xff] %v14964_v52 }
 0x11e   : > { %v1237_v61 = vmul.f32 %v14923_v58, %v997_v54  ;;  %v1271_v18 = vpack.c.bf16 %v1239_v10, %v1238_v12  ;;  %v1002_v41 = vmax.f32 %v898_v31, 0.0  ;;  %12158 = vmatmul.mubr.bf16.vlgmr.msra.gmra.mxu0 %v10294_v47 }
 0x11f   : > { %v12120_v0 = vpop.f32.mrf.mxu0  ;;  %12161 = vmatprep.mubr.msk.bf16.mxu0 %vm14437_vm0, %v19199_v33 }
 0x120   : > { %v1270_v5 = vpack.c.bf16 %v1237_v61, %v1236_v3  ;;  %v901_v24 = vadd.f32 %v12120_v0, %v14809_v23  ;;  %v1242_v54 = vmul.f32 %v14964_v52, %v1002_v41  ;;  %v14972_v0 = vld [vmem:[#allocation2 + $0xc] sm:$0xf]  ;;  %v14976_v3 = vpop.permute.xlu1 %1131  ;;  %v14983_v8 = vpop.permute.xlu0 %1126 }
 0x121   : > { %v892_v6 = vpop.f32.mrf.mxu0  ;;  %19344 = vst [vmem:[#allocation36_spill] sm:$0xff] %v14976_v3  ;;  %v10295_v4 = vcombine.low %v14972_v0, %v14974_v1  ;;  %19345 = vst [vmem:[#allocation37_spill] sm:$0xff] %v14983_v8 }
 0x122   : > { %1455 = vmatmul.mubr.bf16.gmra.mxu1 %v1267_v16  ;;  %v893_v13 = vadd.f32 %v14809_v23, %v892_v6  ;;  %v890_v16 = vadd.f32 %v14809_v23, %v889_v56  ;;  %v1003_v35 = vmax.f32 %v901_v24, 0.0  ;;  %v10308_v24 = vcombine.low %v14953_v44, %v14972_v0 }
 0x123   : > { %1464 = vmatprep.mubr.bf16.mxu1 %v14435_v2  ;;  %v12123_v15 = vpop.f32.mrf.mxu0 }
 0x124   : > { %v1001_v17 = vmax.f32 %v893_v13, 0.0  ;;  %v1000_v20 = vmax.f32 %v890_v16, 0.0  ;;  %v1243_v49 = vmul.f32 %v14955_v46, %v1003_v35  ;;  %v13749_v13 = vld [vmem:[%s19181_s6 + $0xe8] sm:$0xff]   ;;  %v914_v12 = vadd.f32 %v12123_v15, %v14809_v23  ;;  %v13754_v15 = vld [vmem:[%s19181_s6 + $0xe0] sm:$0xff]   ;;  %v15007_v35 = vpop.permute.xlu0 %1136 }
 0x125   : > { %v905_v19 = vpop.f32.mrf.mxu0  ;;  %12254 = vmatpush3.bf16.msra.mxu1 %v13749_v13  ;;  %19347 = vst [vmem:[#allocation39_spill] sm:$0xff] %v15007_v35 }
 0x126   : > { %v1241_v25 = vmul.f32 %v14942_v21, %v1001_v17  ;;  %v1240_v32 = vmul.f32 %v14947_v27, %v1000_v20  ;;  %v1273_v57 = vpack.c.bf16 %v1243_v49, %v1242_v54  ;;  %12162 = vmatmul.mubr.bf16.gmra.mxu0 %v10295_v4  ;;  %12255 = vmatprep.subr.bf16.mxu1 %v19199_v33  ;;  %v13750_v20 = vld [vmem:[%s19181_s6 + $0x38] sm:$0xff]   ;;  %v13753_v49 = vld [vmem:[%s19181_s6 + $0x30] sm:$0xff]  }
 0x127   : > { %v12124_v28 = vpop.f32.mrf.mxu0  ;;  %12165 = vmatprep.mubr.msk.bf16.mxu0 %vm14437_vm0, %v19199_v33  ;;  %12178 = vmatpush3.bf16.msra.mxu0 %v13750_v20 }
 0x128   : > { %v1272_v39 = vpack.c.bf16 %v1241_v25, %v1240_v32  ;;  %v1006_v25 = vmax.f32 %v914_v12, 0.0  ;;  %12179 = vmatprep.subr.bf16.mxu0 %v19199_v33  ;;  %v13762_v12 = vld [vmem:[%s19181_s6 + $0xc8] sm:$0xff]  }
 0x129   : > { %12256 = vmatpush3.bf16.msra.mxu1 %v13754_v15  ;;  %v13761_v15 = vld [vmem:[%s19181_s6 + $0x18] sm:$0xff]  }
 0x12a   : > { %1465 = vmatmul.mubr.bf16.gmra.mxu1 %v1268_v40  ;;  %v908_v40 = vpop.f32.mrf.mxu0  ;;  %12257 = vmatprep.subr.bf16.mxu1 %v19199_v33  ;;  %v1246_v41 = vmul.f32 %v15007_v35, %v1006_v25 }
 0x12b   : > { %1474 = vmatprep.mubr.bf16.mxu1 %v14435_v2  ;;  %v909_v51 = vadd.f32 %v14809_v23, %v908_v40  ;;  %v13756_v40 = vld [vmem:[%s19181_s6 + $0xd8] sm:$0xff]   ;;  %12180 = vmatpush3.bf16.msra.mxu0 %v13753_v49 }
 0x12c   : > { %v14966_v53 = vpop.f32.mrf.mxu0  ;;  %12181 = vmatprep.subr.bf16.mxu0 %v19199_v33 }
 0x12d   : > { %v1005_v56 = vmax.f32 %v909_v51, 0.0  ;;  %12258 = vmatpush3.bf16.msra.mxu1 %v13756_v40 }
 0x12e   : > { %v921_v60 = vpop.f32.mrf.mxu0  ;;  %12259 = vmatprep.subr.bf16.mxu1 %v19199_v33 }
 0x12f   : > { %v1245_v6 = vmul.f32 %v14976_v3, %v1005_v56  ;;  %v922_v47 = vadd.f32 %v14809_v23, %v921_v60  ;;  %v13755_v56 = vld [vmem:[%s19181_s6 + $0x28] sm:$0xff]  }
 0x130   : > { %v12128_v10 = vpop.f32.mrf.mxu0  ;;  %12182 = vmatpush3.bf16.msra.mxu0 %v13755_v56 }
 0x131   : > { %v1008_v60 = vmax.f32 %v922_v47, 0.0  ;;  %v933_v4 = vadd.f32 %v12128_v10, %v14809_v23  ;;  %12183 = vmatprep.subr.bf16.mxu0 %v19199_v33 }
 0x132   : > { %1475 = vmatmul.mubr.bf16.gmra.mxu1 %v1269_v55  ;;  %v906_v55 = vadd.f32 %v14809_v23, %v905_v19  ;;  %v924_v19 = vpop.f32.mrf.mxu0 }
 0x133   : > { %1484 = vmatprep.mubr.bf16.mxu1 %v14435_v2  ;;  %v925_v32 = vadd.f32 %v14809_v23, %v924_v19 }
 0x134   : > { %v1004_v61 = vmax.f32 %v906_v55, 0.0 }
 0x135   : > { %v1009_v51 = vmax.f32 %v925_v32, 0.0 }
 0x136   : > { %v1244_v16 = vmul.f32 %v14983_v8, %v1004_v61 }
 0x13a   : > { %1485 = vmatmul.mubr.bf16.gmra.mxu1 %v1270_v5  ;;  %v917_v5 = vadd.f32 %v12124_v28, %v14809_v23  ;;  %v15001_v28 = vpop.permute.xlu1 %1141 }
 0x13b   : > { %1494 = vmatprep.mubr.bf16.mxu1 %v14435_v2  ;;  %19346 = vst [vmem:[#allocation38_spill] sm:$0xff] %v15001_v28 }
 0x13c   : > { %v1007_v17 = vmax.f32 %v917_v5, 0.0 }
 0x13e   : > { %v1247_v31 = vmul.f32 %v15001_v28, %v1007_v17  ;;  %v15028_v61 = vpop.permute.xlu1 %1151  ;;  %v13757_v17 = vld [vmem:[%s19181_s6 + $0x20] sm:$0xff]  }
 0x13f   : > { %19348 = vst [vmem:[#allocation40_spill] sm:$0xff] %v15028_v61  ;;  %v1249_v5 = vmul.f32 %v15028_v61, %v1009_v51  ;;  %12184 = vmatpush3.bf16.msra.mxu0 %v13757_v17 }
 0x140   : > { %v1275_v54 = vpack.c.bf16 %v1247_v31, %v1246_v41  ;;  %12185 = vmatprep.subr.bf16.mxu0 %v19199_v33 }
 0x142   : > { %1495 = vmatmul.mubr.bf16.gmra.mxu1 %v1271_v18  ;;  %v1274_v18 = vpack.c.bf16 %v1245_v6, %v1244_v16  ;;  %v15033_v6 = vpop.permute.xlu0 %1146  ;;  %v930_v16 = vadd.f32 %v14966_v53, %v14809_v23  ;;  %v13765_v53 = vld [vmem:[%s19181_s6 + $0xc0] sm:$0xff]   ;;  %v15054_v31 = vpop.permute.xlu1 %1161 }
 0x143   : > { %1504 = vmatprep.mubr.bf16.mxu1 %v14435_v2  ;;  %19349 = vst [vmem:[#allocation41_spill] sm:$0xff] %v15033_v6  ;;  %v1248_v10 = vmul.f32 %v15033_v6, %v1008_v60  ;;  %19350 = vst [vmem:[#allocation42_spill] sm:$0xff] %v15054_v31  ;;  %12186 = vmatpush3.bf16.msra.mxu0 %v13761_v15  ;;  %v2165_v15 = vrot.slane %v10308_v24, 3 }
 0x144   : > { %v1010_v25 = vmax.f32 %v930_v16, 0.0  ;;  %12187 = vmatprep.subr.bf16.mxu0 %v19199_v33 }
 0x145   : > { %v1276_v19 = vpack.c.bf16 %v1249_v5, %v1248_v10 }
 0x146   : > { %v15059_v41 = vpop.permute.xlu0 %1156  ;;  %v15069_v5 = vpop.permute.xlu1 %1171 }
 0x147   : > { %19351 = vst [vmem:[#allocation43_spill] sm:$0xff] %v15059_v41  ;;  %v1250_v49 = vmul.f32 %v15059_v41, %v1010_v25  ;;  %19352 = vst [vmem:[#allocation44_spill] sm:$0xff] %v15069_v5 }
 0x14a   : > { %1505 = vmatmul.mubr.bf16.gmra.mxu1 %v1272_v39  ;;  %v15009_v39 = vpop.f32.mrf.mxu0  ;;  %v15077_v10 = vpop.permute.xlu0 %1166 }
 0x14b   : > { %1514 = vmatprep.mubr.bf16.mxu1 %v14435_v2  ;;  %19353 = vst [vmem:[#allocation45_spill] sm:$0xff] %v15077_v10  ;;  %v15093_v44 = vpop.permute.xlu1 %1181 }
 0x14c   : > { %v937_v55 = vpop.f32.mrf.mxu0  ;;  %19354 = vst [vmem:[#allocation46_spill] sm:$0xff] %v15093_v44 }
 0x14d   : > { %v938_v51 = vadd.f32 %v14809_v23, %v937_v55  ;;  %v13769_v55 = vld [vmem:[%s19181_s6 + $0x8] sm:$0xff]  }
 0x14e   : > { %v12132_v13 = vpop.f32.mrf.mxu0 }
 0x150   : > { %v940_v20 = vpop.f32.mrf.mxu0 }
 0x151   : > { %v941_v40 = vadd.f32 %v14809_v23, %v940_v20  ;;  %v1957_v20 = vld [vmem:[#allocation2] sm:$0x8] }
 0x152   : > { %1515 = vmatmul.mubr.bf16.gmra.mxu1 %v1273_v57  ;;  %v13760_v57 = vld [vmem:[%s19181_s6 + $0xd0] sm:$0xff]   ;;  %v12135_v47 = vpop.f32.mrf.mxu0 }
 0x153   : > { %1524 = vmatprep.mubr.bf16.mxu1 %v14435_v2  ;;  %12260 = vmatpush3.bf16.msra.mxu1 %v13760_v57  ;;  %v1013_v56 = vmax.f32 %v941_v40, 0.0 }
 0x154   : > { %12261 = vmatprep.subr.bf16.mxu1 %v19199_v33  ;;  %v953_v60 = vpop.f32.mrf.mxu0 }
 0x155   : > { %v1253_v16 = vmul.f32 %v15069_v5, %v1013_v56 }
 0x156   : > { %v12136_v17 = vpop.f32.mrf.mxu0 }
 0x157   : > { %12262 = vmatpush3.bf16.msra.mxu1 %v13762_v12  ;;  %v949_v12 = vadd.f32 %v12132_v13, %v14809_v23  ;;  %v13772_v13 = vld [vmem:[%s19181_s6] sm:$0xff]  }
 0x158   : > { %12263 = vmatprep.subr.bf16.mxu1 %v19199_v33  ;;  %v956_v40 = vpop.f32.mrf.mxu0 }
 0x159   : > { %v1015_v25 = vmax.f32 %v949_v12, 0.0  ;;  %v957_v24 = vadd.f32 %v14809_v23, %v956_v40  ;;  %v962_v40 = vadd.f32 %v12135_v47, %v14809_v23 }
 0x15a   : > { %1525 = vmatmul.mubr.bf16.gmra.mxu1 %v1274_v18  ;;  %v1011_v18 = vmax.f32 %v933_v4, 0.0  ;;  %v1012_v4 = vmax.f32 %v938_v51, 0.0  ;;  %v15090_v51 = vld [vmem:[#allocation2 + $0x14] sm:$0xf]  ;;  %v12139_v56 = vpop.f32.mrf.mxu0 }
 0x15b   : > { %1534 = vmatprep.mubr.bf16.mxu1 %v14435_v2  ;;  %12264 = vmatpush3.bf16.msra.mxu1 %v13765_v53  ;;  %v10307_v53 = vcombine.low %v1957_v20, %v14951_v42  ;;  %v1255_v42 = vmul.f32 %v15093_v44, %v1015_v25  ;;  %v1017_v12 = vmax.f32 %v957_v24, 0.0 }
 0x15c   : > { %v1251_v32 = vmul.f32 %v15054_v31, %v1011_v18  ;;  %12321 = vmatprep.subr.bf16.mxu1 %v19199_v33  ;;  %v946_v18 = vadd.f32 %v15009_v39, %v14809_v23 }
 0x15d   : > { %v2164_v39 = vrot.slane %v10307_v53, 3 }
 0x15e   : > { %v1277_v57 = vpack.c.bf16 %v1251_v32, %v1250_v49  ;;  %v1014_v49 = vmax.f32 %v946_v18, 0.0  ;;  %v969_v18 = vpop.f32.mrf.mxu0 }
 0x15f   : > { %v15097_v0 = vsel %vm2163_vm1, %v2164_v39, %v2165_v15 }
 0x162   : > { %1535 = vmatmul.mubr.bf16.gmra.mxu1 %v1275_v54  ;;  %v13766_v54 = vld [vmem:[%s19181_s6 + $0x10] sm:$0xff]  }
 0x163   : > { %1544 = vmatprep.mubr.bf16.mxu1 %v14435_v2  ;;  %12188 = vmatpush3.bf16.msra.mxu0 %v13766_v54  ;;  %v15101_v54 = vpop.permute.xlu0 %1176 }
 0x164   : > { %12189 = vmatprep.subr.bf16.mxu0 %v19199_v33  ;;  %19355 = vst [vmem:[#allocation47_spill] sm:$0xff] %v15101_v54 }
 0x167   : > { %12190 = vmatpush3.bf16.msra.mxu0 %v13769_v55  ;;  %v954_v55 = vadd.f32 %v14809_v23, %v953_v60  ;;  %v15118_v60 = vpop.permute.xlu0 %1186 }
 0x168   : > { %12191 = vmatprep.subr.bf16.mxu0 %v19199_v33  ;;  %19357 = vst [vmem:[#allocation49_spill] sm:$0xff] %v15118_v60 }
 0x169   : > { %v1016_v20 = vmax.f32 %v954_v55, 0.0 }
 0x16a   : > { %1545 = vmatmul.mubr.bf16.gmra.mxu1 %v1276_v19  ;;  %v1252_v19 = vmul.f32 %v15077_v10, %v1012_v4  ;;  %v1254_v4 = vmul.f32 %v15101_v54, %v1014_v49 }
 0x16b   : > { %1554 = vmatprep.mubr.bf16.mxu1 %v14435_v2  ;;  %12192 = vmatpush3.bf16.msra.mxu0 %v13772_v13  ;;  %v15109_v13 = vpop.permute.xlu1 %1191  ;;  %v1256_v39 = vmul.f32 %v15118_v60, %v1016_v20 }
 0x16c   : > { %v1278_v32 = vpack.c.bf16 %v1253_v16, %v1252_v19  ;;  %12213 = vmatprep.subr.bf16.mxu0 %v19199_v33  ;;  %v1279_v16 = vpack.c.bf16 %v1255_v42, %v1254_v4  ;;  %19356 = vst [vmem:[#allocation48_spill] sm:$0xff] %v15109_v13  ;;  %v1257_v25 = vmul.f32 %v15109_v13, %v1017_v12  ;;  %v15129_v12 = vpop.permute.xlu0 %1196 }
 0x16d   : > { %19359 = vst [vmem:[#allocation51_spill] sm:$0xff] %v15129_v12 }
 0x16e   : > { %v1280_v42 = vpack.c.bf16 %v1257_v25, %v1256_v39 }
 0x16f   : > { %v15122_v4 = vpop.permute.xlu1 %1201 }
 0x170   : > { %19358 = vst [vmem:[#allocation50_spill] sm:$0xff] %v15122_v4 }
 0x172   : > { %1555 = vmatmul.mubr.bf16.gmra.mxu1 %v1277_v57  ;;  %v10309_v57 = vcombine.low %v14974_v1, %v15090_v51  ;;  %v965_v1 = vadd.f32 %v12136_v17, %v14809_v23 }
 0x173   : > { %1564 = vmatprep.mubr.bf16.mxu1 %v14435_v2  ;;  %v15132_v25 = vpop.permute.xlu1 %1211 }
 0x174   : > { %v15107_v19 = vrot.slane %v10309_v57, 3  ;;  %v1019_v49 = vmax.f32 %v965_v1, 0.0  ;;  %v1018_v57 = vmax.f32 %v962_v40, 0.0  ;;  %19360 = vst [vmem:[#allocation52_spill] sm:$0xff] %v15132_v25 }
 0x176   : > { %v15114_v53 = vsel %vm2163_vm1, %v2165_v15, %v15107_v19  ;;  %v1259_v17 = vmul.f32 %v15122_v4, %v1019_v49  ;;  %v14290_v15 = vld [vmem:[%s19178_s3] ss:$0 sm:$0xff]  ;;  %v1258_v23 = vmul.f32 %v15129_v12, %v1018_v57  ;;  %v15136_v49 = vpop.permute.xlu0 %1206 }
 0x177   : > { %v970_v47 = vadd.f32 %v14290_v15, %v969_v18  ;;  %19361 = vst [vmem:[#allocation53_spill] sm:$0xff] %v15136_v49  ;;  %v15139_v18 = vpop.permute.xlu1 %1221 }
 0x178   : > { %v1281_v20 = vpack.c.bf16 %v1259_v17, %v1258_v23  ;;  %19362 = vst [vmem:[#allocation54_spill] sm:$0xff] %v15139_v18 }
 0x179   : > { %v1020_v1 = vmax.f32 %v970_v47, 0.0  ;;  %v19364_v47 = vmov 0.0  }
 0x17a   : > { %1565 = vmatmul.mubr.bf16.gmra.mxu1 %v1278_v32  ;;  %v12140_v32 = vpop.f32.mrf.mxu0 }
 0x17b   : > { %1574 = vmatprep.mubr.bf16.mxu1 %v14435_v2  ;;  %v981_v40 = vadd.f32 %v14290_v15, %v12140_v32 }
 0x17c   : > { %v972_v24 = vpop.f32.mrf.mxu0 }
 0x17d   : > { %v973_v55 = vadd.f32 %v14290_v15, %v972_v24  ;;  %v1260_v24 = vmul.f32 %v15136_v49, %v1020_v1  ;;  %v1023_v38 = vmax.f32 %v981_v40, 0.0 }
 0x17f   : > { %v1263_v17 = vmul.f32 %v15139_v18, %v1023_v38 }
 0x182   : > { %1575 = vmatmul.mubr.bf16.gmra.mxu1 %v1279_v16  ;;  %v1021_v16 = vmax.f32 %v973_v55, 0.0  ;;  %v15143_v55 = vpop.permute.xlu0 %1216 }
 0x183   : > { %1584 = vmatprep.mubr.bf16.mxu1 %v14435_v2  ;;  %19363 = vst [vmem:[#allocation55_spill] sm:$0xff] %v15143_v55 }
 0x184   : > { %v1261_v39 = vmul.f32 %v15132_v25, %v1021_v16 }
 0x186   : > { %v1282_v33 = vpack.c.bf16 %v1261_v39, %v1260_v24 }
 0x18a   : > { %1585 = vmatmul.mubr.bf16.gmra.mxu1 %v1280_v42  ;;  %v978_v42 = vadd.f32 %v14290_v15, %v12139_v56  ;;  %v1308_v56 = vsub.s32 1, %v14885_v29 }
 0x18b   : > { %1594 = vmatprep.mubr.bf16.mxu1 %v14435_v2 }
 0x18c   : > { %v1022_v57 = vmax.f32 %v978_v42, 0.0  ;;  %v15150_v15 = vrot.slane %v14896_v36, %v1308_v56 }
 0x18e   : > { %v1262_v32 = vmul.f32 %v15143_v55, %v1022_v57 }
 0x190   : > { %v1283_v23 = vpack.c.bf16 %v1263_v17, %v1262_v32 }
 0x192   : > { %1595 = vmatmul.mubr.bf16.gmra.mxu1 %v1281_v20 }
 0x193   : > { %1604 = vmatprep.mubr.bf16.mxu1 %v14435_v2 }
 0x19a   : > { %1605 = vmatmul.mubr.bf16.gmra.mxu1 %v1282_v33 }
 0x19b   : > { %1614 = vmatprep.mubr.bf16.mxu1 %v14435_v2 }
 0x1a2   : > { %1615 = vmatmul.mubr.bf16.gmra.mxu1 %v1283_v23 }
 0x1a3   : > { %12265 = vmatprep.mubr.msk.bf16.mxu1 %vm14437_vm0, %v19364_v47 }
 0x1ca   : > { %v15152_v33 = vpop.f32.mrf.mxu1 }
 0x1cb   : > { %19365 = vst [vmem:[#allocation56_spill] sm:$0xff] %v15152_v33 }
 0x1cc   : > { %v1428_v16 = vpop.f32.mrf.mxu1 }
 0x1cd   : > { %v1429_v2 = vadd.f32 %v1428_v16, %v15150_v15 }
 0x1ce   : > { %v15155_v38 = vpop.f32.mrf.mxu1 }
 0x1cf   : > { %19366 = vst [vmem:[#allocation57_spill] sm:$0xff] %v15155_v38  ;;  %v1665_v1 = vmax.f32 %v1429_v2, 0.0 }
 0x1d0   : > { %v1432_v20 = vpop.f32.mrf.mxu1 }
 0x1d1   : > { %v1433_v40 = vadd.f32 %v1432_v20, %v15150_v15  ;;  %v1705_v57 = vmul.f32 %v1665_v1, %v14812_v26 }
 0x1d2   : > { %v15158_v39 = vpop.f32.mrf.mxu1 }
 0x1d3   : > { %19367 = vst [vmem:[#allocation58_spill] sm:$0xff] %v15158_v39  ;;  %v1666_v42 = vmax.f32 %v1433_v40, 0.0 }
 0x1d4   : > { %v1438_v24 = vpop.f32.mrf.mxu1 }
 0x1d5   : > { %v1706_v36 = vmul.f32 %v1666_v42, %v14823_v37  ;;  %v1439_v17 = vadd.f32 %v1438_v24, %v15150_v15 }
 0x1d6   : > { %v15163_v32 = vpop.f32.mrf.mxu1 }
 0x1d7   : > { %19368 = vst [vmem:[#allocation59_spill] sm:$0xff] %v15163_v32  ;;  %v11393_v23 = vpack.c.bf16 %v1706_v36, %v1705_v57  ;;  %v1667_v16 = vmax.f32 %v1439_v17, 0.0 }
 0x1d8   : > { %v1442_v56 = vpop.f32.mrf.mxu1 }
 0x1d9   : > { %11490 = vst [vmem:[#allocation2 + $0x18] sm:$0xff] %v11393_v23   ;;  %v1443_v2 = vadd.f32 %v1442_v56, %v15150_v15  ;;  %v1707_v40 = vmul.f32 %v1667_v16, %v14820_v34 }
 0x1da   : > { %v15166_v29 = vpop.f32.mrf.mxu1 }
 0x1db   : > { %19369 = vst [vmem:[#allocation60_spill] sm:$0xff] %v15166_v29  ;;  %v1668_v20 = vmax.f32 %v1443_v2, 0.0 }
 0x1dc   : > { %v1448_v39 = vpop.f32.mrf.mxu1 }
 0x1dd   : > { %v1708_v1 = vmul.f32 %v1668_v20, %v14832_v48  ;;  %v1449_v42 = vadd.f32 %v1448_v39, %v15150_v15 }
 0x1de   : > { %v15171_v38 = vpop.f32.mrf.mxu1 }
 0x1df   : > { %19370 = vst [vmem:[#allocation61_spill] sm:$0xff] %v15171_v38  ;;  %v11398_v24 = vpack.c.bf16 %v1708_v1, %v1707_v40  ;;  %v1669_v32 = vmax.f32 %v1449_v42, 0.0  ;;  %v2505_v1 = vld [vmem:[#allocation2 + $0x14] sm:$0x8] }
 0x1e0   : > { %v1452_v57 = vpop.f32.mrf.mxu1  ;;  %v15173_v36 = vld [vmem:[#allocation2 + $0x18] sm:$0xf]  ;;  %v15180_v16 = vld [vmem:[#allocation2 + $0x1c] sm:$0xf] }
 0x1e1   : > { %v15175_v17 = vld [vmem:[#allocation2 + $0x18] sm:$0xf]  ;;  %11491 = vst [vmem:[#allocation2 + $0x20] sm:$0xff] %v11398_v24   ;;  %v1453_v23 = vadd.f32 %v1452_v57, %v15150_v15  ;;  %v10296_v56 = vcombine.low %v15090_v51, %v15173_v36  ;;  %v1709_v42 = vmul.f32 %v1669_v32, %v14848_v62 }
 0x1e2   : > { %v15182_v2 = vpop.f32.mrf.mxu1  ;;  %v10367_v39 = vcombine.low %v2505_v1, %v15175_v17 }
 0x1e3   : > { %19371 = vst [vmem:[#allocation62_spill] sm:$0xff] %v15182_v2  ;;  %v1670_v20 = vmax.f32 %v1453_v23, 0.0  ;;  %12166 = vmatmul.mubr.bf16.gmra.mxu0 %v10296_v56  ;;  %v15193_v2 = vld [vmem:[#allocation2 + $0x1c] sm:$0xf] }
 0x1e4   : > { %v1458_v40 = vpop.f32.mrf.mxu1  ;;  %12169 = vmatprep.mubr.msk.bf16.mxu0 %vm14437_vm0, %v19364_v47 }
 0x1e5   : > { %v1710_v24 = vmul.f32 %v1670_v20, %v14843_v59  ;;  %v1459_v51 = vadd.f32 %v1458_v40, %v15150_v15 }
 0x1e6   : > { %v15191_v57 = vpop.f32.mrf.mxu1 }
 0x1e7   : > { %19372 = vst [vmem:[#allocation63_spill] sm:$0xff] %v15191_v57  ;;  %v11403_v38 = vpack.c.bf16 %v1710_v24, %v1709_v42  ;;  %v1671_v23 = vmax.f32 %v1459_v51, 0.0  ;;  %v2561_v57 = vrot.slane %v10367_v39, 3 }
 0x1e8   : > { %v1462_v56 = vpop.f32.mrf.mxu1  ;;  %v15196_v29 = vld [vmem:[#allocation2 + $0x20] sm:$0xf]  ;;  %v15205_v42 = vld [vmem:[#allocation2 + $0x24] sm:$0xf] }
 0x1e9   : > { %v15198_v33 = vld [vmem:[#allocation2 + $0x20] sm:$0xf]  ;;  %11492 = vst [vmem:[#allocation2 + $0x28] sm:$0xff] %v11403_v38   ;;  %v1463_v32 = vadd.f32 %v1462_v56, %v15150_v15  ;;  %v10297_v20 = vcombine.low %v15193_v2, %v15196_v29  ;;  %v13774_v38 = vld [vmem:[%s19181_s6 + $0x178] sm:$0xff]   ;;  %v1711_v59 = vmul.f32 %v1671_v23, %v14861_v11  ;;  %v13777_v23 = vld [vmem:[%s19181_s6 + $0x170] sm:$0xff]  }
 0x1ea   : > { %v10368_v40 = vcombine.low %v15180_v16, %v15198_v33  ;;  %v15207_v24 = vpop.f32.mrf.mxu1 }
 0x1eb   : > { %19373 = vst [vmem:[#allocation64_spill] sm:$0xff] %v15207_v24  ;;  %v1672_v51 = vmax.f32 %v1463_v32, 0.0  ;;  %12170 = vmatmul.mubr.bf16.gmra.mxu0 %v10297_v20  ;;  %v15222_v20 = vld [vmem:[#allocation2 + $0x24] sm:$0xf] }
 0x1ec   : > { %v2562_v43 = vrot.slane %v10368_v40, 3  ;;  %v1468_v56 = vpop.f32.mrf.mxu1  ;;  %12173 = vmatprep.mubr.msk.bf16.mxu0 %vm14437_vm0, %v19364_v47 }
 0x1ed   : > { %v1712_v62 = vmul.f32 %v1672_v51, %v14853_v7  ;;  %v1469_v24 = vadd.f32 %v1468_v56, %v15150_v15 }
 0x1ee   : > { %v2563_v1 = vsel %vm2163_vm1, %v2561_v57, %v2562_v43  ;;  %v15220_v32 = vpop.f32.mrf.mxu1 }
 0x1ef   : > { %19374 = vst [vmem:[#allocation65_spill] sm:$0xff] %v15220_v32  ;;  %12266 = vmatmul.mubr.bf16.vlgmr.msra.gmra.mxu1 %v2563_v1  ;;  %v11408_v39 = vpack.c.bf16 %v1712_v62, %v1711_v59  ;;  %v1673_v59 = vmax.f32 %v1469_v24, 0.0  ;;  %v13779_v24 = vld [vmem:[%s19181_s6 + $0x168] sm:$0xff]  }
 0x1f0   : > { %12269 = vmatprep.mubr.msk.bf16.mxu1 %vm14437_vm0, %v19364_v47  ;;  %12322 = vmatpush3.bf16.msra.mxu1 %v13774_v38  ;;  %v1472_v40 = vpop.f32.mrf.mxu1  ;;  %v1984_v51 = vld [vmem:[#allocation2 + $0x28] sm:$0xf]  ;;  %v15232_v57 = vld [vmem:[#allocation2 + $0x2c] sm:$0xf] }
 0x1f1   : > { %v15229_v7 = vld [vmem:[#allocation2 + $0x28] sm:$0xf]  ;;  %12323 = vmatprep.subr.bf16.mxu1 %v19364_v47  ;;  %11493 = vst [vmem:[#allocation2 + $0x30] sm:$0xff] %v11408_v39   ;;  %v1473_v62 = vadd.f32 %v1472_v40, %v15150_v15  ;;  %v10298_v1 = vcombine.low %v15222_v20, %v1984_v51  ;;  %v1713_v40 = vmul.f32 %v1673_v59, %v14887_v30  ;;  %v13780_v30 = vld [vmem:[%s19181_s6 + $0xb0] sm:$0xff]  }
 0x1f2   : > { %v10369_v38 = vcombine.low %v15205_v42, %v15229_v7  ;;  %v15238_v56 = vpop.f32.mrf.mxu1 }
 0x1f3   : > { %19375 = vst [vmem:[#allocation66_spill] sm:$0xff] %v15238_v56  ;;  %v1674_v11 = vmax.f32 %v1473_v62, 0.0  ;;  %12174 = vmatmul.mubr.bf16.gmra.mxu0 %v10298_v1  ;;  %v13776_v56 = vld [vmem:[%s19181_s6 + $0xb8] sm:$0xff]  }
 0x1f4   : > { %v2564_v48 = vrot.slane %v10369_v38, 3  ;;  %12324 = vmatpush3.bf16.msra.mxu1 %v13777_v23  ;;  %v1478_v39 = vpop.f32.mrf.mxu1  ;;  %12193 = vmatprep.mubr.msk.bf16.mxu0 %vm14437_vm0, %v19364_v47 }
 0x1f5   : > { %12325 = vmatprep.subr.bf16.mxu1 %v19364_v47  ;;  %v1714_v51 = vmul.f32 %v1674_v11, %v14874_v22  ;;  %v1479_v32 = vadd.f32 %v1478_v39, %v15150_v15  ;;  %v13781_v11 = vld [vmem:[%s19181_s6 + $0x160] sm:$0xff]   ;;  %v13784_v22 = vld [vmem:[%s19181_s6 + $0x158] sm:$0xff]  }
 0x1f6   : > { %v2565_v62 = vsel %vm2163_vm1, %v2562_v43, %v2564_v48  ;;  %v15252_v1 = vpop.f32.mrf.mxu1 }
 0x1f7   : > { %19376 = vst [vmem:[#allocation67_spill] sm:$0xff] %v15252_v1  ;;  %12270 = vmatmul.mubr.bf16.gmra.mxu1 %v2565_v62  ;;  %v11413_v23 = vpack.c.bf16 %v1714_v51, %v1713_v40  ;;  %v1675_v38 = vmax.f32 %v1479_v32, 0.0 }
 0x1f8   : > { %12273 = vmatprep.mubr.msk.bf16.mxu1 %vm14437_vm0, %v19364_v47  ;;  %12326 = vmatpush3.bf16.msra.mxu1 %v13779_v24  ;;  %v1482_v59 = vpop.f32.mrf.mxu1  ;;  %v15262_v39 = vld [vmem:[#allocation2 + $0x30] sm:$0xf]  ;;  %v15265_v43 = vld [vmem:[#allocation2 + $0x34] sm:$0xf] }
 0x1f9   : > { %12327 = vmatprep.subr.bf16.mxu1 %v19364_v47  ;;  %11494 = vst [vmem:[#allocation2 + $0x38] sm:$0xff] %v11413_v23   ;;  %v1483_v32 = vadd.f32 %v1482_v59, %v15150_v15  ;;  %v10370_v40 = vcombine.low %v15232_v57, %v15262_v39  ;;  %v1715_v23 = vmul.f32 %v1675_v38, %v14917_v50 }
 0x1fa   : > { %v15272_v51 = vpop.f32.mrf.mxu1 }
 0x1fb   : > { %19377 = vst [vmem:[#allocation68_spill] sm:$0xff] %v15272_v51  ;;  %v1676_v62 = vmax.f32 %v1483_v32, 0.0  ;;  %12194 = vmatmul.mubr.bf16.vlgmr.msra.gmra.mxu0 %v15097_v0  ;;  %v2566_v1 = vrot.slane %v10370_v40, 3  ;;  %v15284_v32 = vld [vmem:[#allocation2 + $0x30] sm:$0xf]  ;;  %v13782_v51 = vld [vmem:[%s19181_s6 + $0xa8] sm:$0xff]  }
 0x1fc   : > { %12328 = vmatpush3.bf16.msra.mxu1 %v13781_v11  ;;  %12214 = vmatpush3.bf16.msra.mxu0 %v13776_v56  ;;  %v1488_v59 = vpop.f32.mrf.mxu1  ;;  %v15286_v0 = vld [vmem:[#allocation2 + $0x34] sm:$0xf] }
 0x1fd   : > { %12197 = vmatprep.mubr.msk.bf16.mxu0 %vm14437_vm0, %v19364_v47  ;;  %v1716_v11 = vmul.f32 %v1676_v62, %v14909_v45  ;;  %v1489_v40 = vadd.f32 %v1488_v59, %v15150_v15  ;;  %v2567_v24 = vsel %vm2163_vm1, %v2564_v48, %v2566_v1  ;;  %12215 = vmatprep.subr.bf16.mxu0 %v19364_v47  ;;  %v13786_v48 = vld [vmem:[%s19181_s6 + $0x150] sm:$0xff]  }
 0x1fe   : > { %12329 = vmatprep.subr.bf16.mxu1 %v19364_v47  ;;  %v15293_v56 = vpop.f32.mrf.mxu1 }
 0x1ff   : > { %19378 = vst [vmem:[#allocation69_spill] sm:$0xff] %v15293_v56  ;;  %12274 = vmatmul.mubr.bf16.gmra.mxu1 %v2567_v24  ;;  %v11418_v38 = vpack.c.bf16 %v1716_v11, %v1715_v23  ;;  %v1677_v24 = vmax.f32 %v1489_v40, 0.0  ;;  %v10310_v11 = vcombine.low %v15173_v36, %v15193_v2  ;;  %v13789_v40 = vld [vmem:[%s19181_s6 + $0x148] sm:$0xff]   ;;  %v13785_v36 = vld [vmem:[%s19181_s6 + $0xa0] sm:$0xff]  }
 0x200   : > { %12277 = vmatprep.mubr.msk.bf16.mxu1 %vm14437_vm0, %v19364_v47  ;;  %12330 = vmatpush3.bf16.msra.mxu1 %v13784_v22  ;;  %v1492_v59 = vpop.f32.mrf.mxu1  ;;  %v2514_v56 = vld [vmem:[#allocation2 + $0x38] sm:$0xf]  ;;  %v13787_v2 = vld [vmem:[#allocation2 + $0x3c] ss:$0 sps:$4 sm:$0x77]  }
 0x201   : > { %12216 = vmatpush3.bf16.msra.mxu0 %v13780_v30  ;;  %12331 = vmatprep.subr.bf16.mxu1 %v19364_v47  ;;  %11495 = vst [vmem:[#allocation2 + $0x40] sm:$0xff] %v11418_v38   ;;  %v1493_v23 = vadd.f32 %v1492_v59, %v15150_v15  ;;  %v10371_v22 = vcombine.low %v15265_v43, %v2514_v56  ;;  %v2169_v62 = vrot.slane %v10310_v11, 3 }
 0x202   : > { %12217 = vmatprep.subr.bf16.mxu0 %v19364_v47  ;;  %v15311_v50 = vpop.f32.mrf.mxu1  ;;  %v1717_v56 = vmul.f32 %v1677_v24, %v14928_v63 }
 0x203   : > { %19379 = vst [vmem:[#allocation70_spill] sm:$0xff] %v15311_v50  ;;  %v1678_v45 = vmax.f32 %v1493_v23, 0.0  ;;  %12198 = vmatmul.mubr.bf16.gmra.mxu0 %v15114_v53  ;;  %v2568_v30 = vrot.slane %v10371_v22, 3  ;;  %v15327_v23 = vld [vmem:[#allocation2 + $0x38] sm:$0xf] }
 0x204   : > { %12332 = vmatpush3.bf16.msra.mxu1 %v13786_v48  ;;  %v1498_v38 = vpop.f32.mrf.mxu1  ;;  %12201 = vmatprep.mubr.msk.bf16.mxu0 %vm14437_vm0, %v19364_v47 }
 0x205   : > { %12218 = vmatpush3.bf16.msra.mxu0 %v13782_v51  ;;  %v1718_v53 = vmul.f32 %v1678_v45, %v14923_v58  ;;  %v1499_v48 = vadd.f32 %v1498_v38, %v15150_v15  ;;  %v2569_v59 = vsel %vm2163_vm1, %v2566_v1, %v2568_v30  ;;  %v15329_v51 = vld [vmem:[#allocation2 + $0x3c] sm:$0xf]  ;;  %12333 = vmatprep.subr.bf16.mxu1 %v19364_v47  ;;  %v13790_v45 = vld [vmem:[%s19181_s6 + $0x140] sm:$0xff]   ;;  %v2570_v38 = vrot.slane %v13787_v2, 3 }
 0x206   : > { %12219 = vmatprep.subr.bf16.mxu0 %v19364_v47  ;;  %v15331_v22 = vpop.f32.mrf.mxu1  ;;  %v10570_v11 = vcombine.low %v15327_v23, %v15329_v51 }
 0x207   : > { %19380 = vst [vmem:[#allocation71_spill] sm:$0xff] %v15331_v22  ;;  %12278 = vmatmul.mubr.bf16.gmra.mxu1 %v2569_v59  ;;  %v11423_v50 = vpack.c.bf16 %v1718_v53, %v1717_v56  ;;  %v1679_v1 = vmax.f32 %v1499_v48, 0.0  ;;  %v13788_v59 = vld [vmem:[%s19181_s6 + $0x98] sm:$0xff]   ;;  %v3852_v56 = vld [vmem:[#allocation2 + $0x2c] sm:$0xf]  ;;  %v2170_v48 = vsel %vm2163_vm1, %v15107_v19, %v2169_v62 }
 0x208   : > { %12281 = vmatprep.mubr.msk.bf16.mxu1 %vm14437_vm0, %v19364_v47  ;;  %12334 = vmatpush3.bf16.msra.mxu1 %v13789_v40  ;;  %v1502_v24 = vpop.f32.mrf.mxu1  ;;  %v3851_v53 = vld [vmem:[#allocation2 + $0x28] sm:$0x8]  ;;  %v3857_v22 = vld [vmem:[#allocation2 + $0x40] sm:$0xf]  ;;  %v3858_v23 = vld [vmem:[#allocation2 + $0x44] sm:$0xf] }
 0x209   : > { %12220 = vmatpush3.bf16.msra.mxu0 %v13785_v36  ;;  %12335 = vmatprep.subr.bf16.mxu1 %v19364_v47  ;;  %11496 = vst [vmem:[#allocation2 + $0x48] sm:$0xff] %v11423_v50   ;;  %v1503_v40 = vadd.f32 %v1502_v24, %v15150_v15  ;;  %v10311_v36 = vcombine.low %v15196_v29, %v15222_v20  ;;  %v13791_v29 = vld [vmem:[%s19181_s6 + $0x90] sm:$0xff]   ;;  %v4397_v26 = vld [vmem:[#allocation2 + $0x44] sm:$0xf] }
 0x20a   : > { %12221 = vmatprep.subr.bf16.mxu0 %v19364_v47  ;;  %v15349_v2 = vpop.f32.mrf.mxu1  ;;  %v1719_v50 = vmul.f32 %v1679_v1, %v14938_v14  ;;  %v2571_v24 = vsel %vm2163_vm1, %v2568_v30, %v2570_v38  ;;  %v10568_v20 = vcombine.low %v3851_v53, %v3852_v56  ;;  %v15366_v30 = vpop.f32.mrf.mxu0  ;;  %v10571_v1 = vcombine.low %v3857_v22, %v3858_v23  ;;  %v13795_v23 = vld [vmem:[#allocation2 + $0x28] ss:$0 sps:$4 sm:$0x77]  }
 0x20b   : > { %19381 = vst [vmem:[#allocation72_spill] sm:$0xff] %v15349_v2  ;;  %v1680_v58 = vmax.f32 %v1503_v40, 0.0  ;;  %12202 = vmatmul.mubr.bf16.gmra.mxu0 %v2170_v48  ;;  %v19383_v56 = vcombine.low %v15284_v32, %v15286_v0  ;;  %v13792_v48 = vld [vmem:[#allocation2 + $0x18] sm:$0xfe]  }
 0x20c   : > { %12336 = vmatpush3.bf16.msra.mxu1 %v13790_v45  ;;  %v1508_v51 = vpop.f32.mrf.mxu1  ;;  %12205 = vmatprep.mubr.msk.bf16.mxu0 %vm14437_vm0, %v19364_v47  ;;  %v15363_v45 = vld [vmem:[#allocation2 + $0x20] sm:$0xff]   ;;  %v12159_v2 = vpop.f32.mrf.mxu0 }
 0x20d   : > { %12222 = vmatpush3.bf16.msra.mxu0 %v13788_v59  ;;  %v1720_v19 = vmul.f32 %v1680_v58, %v14933_v9  ;;  %v1509_v40 = vadd.f32 %v1508_v51, %v15150_v15  ;;  %12393 = vmatprep.subr.bf16.mxu1 %v19364_v47  ;;  %v15370_v59 = vrot.slane %v10311_v36, 3  ;;  %v4057_v58 = vrot.slane %v19383_v56, 3  ;;  %v13794_v51 = vld [vmem:[%s19181_s6 + $0x88] sm:$0xff]  }
 0x20e   : > { %12223 = vmatprep.subr.bf16.mxu0 %v19364_v47  ;;  %v15368_v38 = vpop.f32.mrf.mxu1  ;;  %v15383_v0 = vpop.f32.mrf.mxu0  ;;  %v19385_v14 = vrot.slane %v15363_v45, 1 }
 0x20f   : > { %19382 = vst [vmem:[#allocation73_spill] sm:$0xff] %v15368_v38  ;;  %12282 = vmatmul.mubr.bf16.gmra.mxu1 %v2571_v24  ;;  %v11428_v53 = vpack.c.bf16 %v1720_v19, %v1719_v50  ;;  %v4056_v24 = vrot.slane %v10568_v20, 3  ;;  %v1681_v36 = vmax.f32 %v1509_v40, 0.0  ;;  %v2172_v2 = vsel %vm2163_vm1, %v2169_v62, %v15370_v59  ;;  %v13796_v62 = vld [vmem:[%s19181_s6 + $0x80] sm:$0xff]  }
 0x210   : > { %12337 = vmatprep.mubr.msk.bf16.mxu1 %vm14437_vm0, %v19364_v47  ;;  %v1512_v22 = vpop.f32.mrf.mxu1  ;;  %v3859_v50 = vld [vmem:[#allocation2 + $0x48] sm:$0xf]  ;;  %v3860_v56 = vld [vmem:[#allocation2 + $0x4c] sm:$0xf]  ;;  %v4059_v20 = vrot.slane %v10570_v11, 3  ;;  %v12160_v32 = vpop.f32.mrf.mxu0 }
 0x211   : > { %12224 = vmatpush3.bf16.msra.mxu0 %v13791_v29  ;;  %11497 = vst [vmem:[#allocation2 + $0x50] sm:$0xff] %v11428_v53   ;;  %v1513_v38 = vadd.f32 %v1512_v22, %v15150_v15  ;;  %v15390_v29 = vsel %vm2163_vm1, %v4056_v24, %v4057_v58  ;;  %v2925_v53 = vrot.slane %v13792_v48, 1  ;;  %v13798_v22 = vld [vmem:[%s19181_s6 + $0x1f8] sm:$0xff]   ;;  %v15400_v24 = vld [vmem:[#allocation2 + $0x28] sm:$0xff]   ;;  %v4061_v48 = vrot.slane %v10571_v1, 3 }
 0x212   : > { %12225 = vmatprep.subr.bf16.mxu0 %v19364_v47  ;;  %v15385_v19 = vpop.f32.mrf.mxu1  ;;  %v15402_v11 = vld [vmem:[#allocation2 + $0x48] sm:$0xf]  ;;  %v1721_v32 = vmul.f32 %v1681_v36, %v14947_v27  ;;  %v15414_v34 = vpop.f32.mrf.mxu0  ;;  %v2173_v1 = vrot.slane %v13795_v23, 3 }
 0x213   : > { %19384 = vst [vmem:[#allocation74_spill] sm:$0xff] %v15385_v19  ;;  %v1682_v40 = vmax.f32 %v1513_v38, 0.0  ;;  %12206 = vmatmul.mubr.bf16.gmra.mxu0 %v2172_v2  ;;  %v15405_v38 = vsel %vm2163_vm1, %v4057_v58, %v4059_v20  ;;  %v10572_v2 = vcombine.low %v3859_v50, %v3860_v56  ;;  %v2927_v63 = vsel %vm2357_vm2, %v2925_v53, %v19385_v14 }
 0x214   : > { %v1518_v9 = vpop.f32.mrf.mxu1  ;;  %12209 = vmatprep.mubr.msk.bf16.mxu0 %vm14437_vm0, %v19364_v47  ;;  %v10629_v58 = vcombine.low %v4397_v26, %v15402_v11  ;;  %v15420_v36 = vsel %vm2163_vm1, %v4059_v20, %v4061_v48  ;;  %v12163_v14 = vpop.f32.mrf.mxu0  ;;  %v13799_v26 = vld [vmem:[#allocation2 + $0x4] sm:$0xfe]   ;;  %v2928_v20 = vrot.slane %v15400_v24, 1 }
 0x215   : > { %12226 = vmatpush3.bf16.msra.mxu0 %v13794_v51  ;;  %v1722_v51 = vmul.f32 %v1682_v40, %v14942_v21  ;;  %v1519_v19 = vadd.f32 %v1518_v9, %v15150_v15  ;;  %v13802_v9 = vld [vmem:[%s19181_s6 + $0x1f0] sm:$0xff]   ;;  %v15427_v56 = vrot.slane %v10572_v2, 3  ;;  %v2358_v14 = vrot.slane %v13799_v26, 1 }
 0x216   : > { %12227 = vmatprep.subr.bf16.mxu0 %v19364_v47  ;;  %v15416_v37 = vpop.f32.mrf.mxu1  ;;  %v15433_v53 = vpop.f32.mrf.mxu0  ;;  %v15443_v2 = vld [vmem:[#allocation2 + $0xc] sm:$0xff]  }
 0x217   : > { %19386 = vst [vmem:[#allocation75_spill] sm:$0xff] %v15416_v37  ;;  %12338 = vmatmul.mubr.bf16.vlgmr.msra.gmra.mxu1 %v2927_v63  ;;  %v11433_v50 = vpack.c.bf16 %v1722_v51, %v1721_v32  ;;  %19387 = vst [vmem:[#allocation76_spill] sm:$0xff] %v15427_v56  ;;  %v1683_v63 = vmax.f32 %v1519_v19, 0.0  ;;  %v13804_v19 = vld [vmem:[%s19181_s6 + $0x1e8] sm:$0xff]   ;;  %v15448_v32 = vld [vmem:[#allocation2 + $0x30] sm:$0xff]   ;;  %v19240_v26 = vrot.slane %v15443_v2, 1 }
 0x218   : > { %12341 = vmatprep.mubr.msk.bf16.mxu1 %vm14437_vm0, %v19364_v47  ;;  %12394 = vmatpush3.bf16.msra.mxu1 %v13798_v22  ;;  %v1522_v40 = vpop.f32.mrf.mxu1  ;;  %v15437_v22 = vsel %vm2163_vm1, %v4061_v48, %v15427_v56  ;;  %v12164_v51 = vpop.f32.mrf.mxu0 }
 0x219   : > { %12228 = vmatpush3.bf16.msra.mxu0 %v13796_v62  ;;  %12395 = vmatprep.subr.bf16.mxu1 %v19364_v47  ;;  %11498 = vst [vmem:[#allocation2 + $0x58] sm:$0xff] %v11433_v50   ;;  %v1523_v23 = vadd.f32 %v1522_v40, %v15150_v15  ;;  %19388 = vst [vmem:[#allocation77_spill] sm:$0xff] %v15437_v22  ;;  %v2174_v62 = vsel %vm2163_vm1, %v15370_v59, %v2173_v1  ;;  %v4396_v50 = vld [vmem:[#allocation2 + $0x40] sm:$0xf]  ;;  %v4400_v51 = vld [vmem:[#allocation2 + $0x50] sm:$0xf] }
 0x21a   : > { %12285 = vmatprep.subr.bf16.mxu0 %v19364_v47  ;;  %v15439_v11 = vpop.f32.mrf.mxu1  ;;  %v1723_v59 = vmul.f32 %v1683_v63, %v14964_v52  ;;  %v13801_v63 = vld [vmem:[%s19181_s6 + $0x138] sm:$0xff]  }
 0x21b   : > { %19389 = vst [vmem:[#allocation78_spill] sm:$0xff] %v15439_v11  ;;  %v1684_v24 = vmax.f32 %v1523_v23, 0.0  ;;  %12210 = vmatmul.mubr.bf16.gmra.mxu0 %v2174_v62  ;;  %v19390_v23 = vrot.slane %v15363_v45, 1  ;;  %v4399_v62 = vld [vmem:[#allocation2 + $0x4c] sm:$0xf] }
 0x21c   : > { %12396 = vmatpush3.bf16.msra.mxu1 %v13802_v9  ;;  %v1528_v48 = vpop.f32.mrf.mxu1  ;;  %12229 = vmatprep.mubr.msk.bf16.mxu0 %vm14437_vm0, %v19364_v47  ;;  %v4395_v11 = vld [vmem:[#allocation2 + $0x3c] sm:$0x8]  ;;  %v10630_v27 = vcombine.low %v4399_v62, %v4400_v51  ;;  %v15485_v51 = vld [vmem:[#allocation2 + $0x14] sm:$0xff]  }
 0x21d   : > { %12397 = vmatprep.subr.bf16.mxu1 %v19364_v47  ;;  %v1724_v1 = vmul.f32 %v1684_v24, %v14955_v46  ;;  %v1529_v40 = vadd.f32 %v1528_v48, %v15150_v15  ;;  %v2929_v9 = vsel %vm2357_vm2, %v19390_v23, %v2928_v20  ;;  %v10628_v21 = vcombine.low %v4395_v11, %v4396_v50  ;;  %v13807_v24 = vld [vmem:[%s19181_s6 + $0x1e0] sm:$0xff]  }
 0x21e   : > { %v15459_v37 = vpop.f32.mrf.mxu1  ;;  %v4451_v48 = vrot.slane %v10629_v58, 3  ;;  %v2360_v11 = vsel %vm2357_vm2, %v2358_v14, %v19240_v26  ;;  %v13810_v58 = vld [vmem:[%s19181_s6 + $0x1d8] sm:$0xff]   ;;  %v4401_v14 = vld [vmem:[#allocation2 + $0x54] sm:$0xf] }
 0x21f   : > { %19391 = vst [vmem:[#allocation79_spill] sm:$0xff] %v15459_v37  ;;  %12342 = vmatmul.mubr.bf16.gmra.mxu1 %v2929_v9  ;;  %v11438_v56 = vpack.c.bf16 %v1724_v1, %v1723_v59  ;;  %v15475_v59 = vld [vmem:[#allocation2 + $0x54] sm:$0xf]  ;;  %v1685_v9 = vmax.f32 %v1529_v40, 0.0  ;;  %v4450_v37 = vrot.slane %v10628_v21, 3 }
 0x220   : > { %12345 = vmatprep.mubr.msk.bf16.mxu1 %vm14437_vm0, %v19364_v47  ;;  %12398 = vmatpush3.bf16.msra.mxu1 %v13804_v19  ;;  %v1532_v23 = vpop.f32.mrf.mxu1  ;;  %v4402_v50 = vld [vmem:[#allocation2 + $0x58] sm:$0xf]  ;;  %19392 = vst [vmem:[#allocation80_spill] sm:$0xff] %v15475_v59  ;;  %v15493_v40 = vld [vmem:[#allocation2 + $0x5c] sm:$0xf]  ;;  %v13805_v26 = vld [vmem:[%s19181_s6 + $0x130] sm:$0xff]  }
 0x221   : > { %12399 = vmatprep.subr.bf16.mxu1 %v19364_v47  ;;  %v15477_v1 = vld [vmem:[#allocation2 + $0x58] sm:$0xf]  ;;  %11499 = vst [vmem:[#allocation2 + $0x60] sm:$0xff] %v11438_v56   ;;  %v1533_v19 = vadd.f32 %v1532_v23, %v15150_v15  ;;  %v10631_v23 = vcombine.low %v4401_v14, %v4402_v50 }
 0x222   : > { %19393 = vst [vmem:[#allocation81_spill] sm:$0xff] %v15477_v1  ;;  %v15483_v62 = vpop.f32.mrf.mxu1  ;;  %v15489_v45 = vld [vmem:[#allocation2 + $0x58] sm:$0xf] }
 0x223   : > { %19394 = vst [vmem:[#allocation82_spill] sm:$0xff] %v15483_v62  ;;  %v1686_v46 = vmax.f32 %v1533_v19, 0.0  ;;  %12230 = vmatmul.mubr.bf16.vlgmr.msra.gmra.mxu0 %v2360_v11  ;;  %v15491_v56 = vld [vmem:[#allocation2 + $0x38] sm:$0xff]   ;;  %v19395_v62 = vrot.slane %v15448_v32, 1 }
 0x224   : > { %12400 = vmatpush3.bf16.msra.mxu1 %v13807_v24  ;;  %12286 = vmatpush3.bf16.msra.mxu0 %v13801_v63  ;;  %v1538_v52 = vpop.f32.mrf.mxu1  ;;  %v15506_v24 = vsel %vm2163_vm1, %v4450_v37, %v4451_v48  ;;  %v1725_v63 = vmul.f32 %v1685_v9, %v14983_v8  ;;  %v13808_v37 = vld [vmem:[%s19181_s6 + $0x128] sm:$0xff]   ;;  %v4455_v9 = vrot.slane %v10631_v23, 3  ;;  %v15538_v23 = vld [vmem:[#allocation2 + $0x5c] sm:$0xf]  ;;  %v19400_v8 = vrot.slane %v15485_v51, 1 }
 0x225   : > { %v2931_v22 = vsel %vm2357_vm2, %v2928_v20, %v19395_v62  ;;  %12233 = vmatprep.mubr.msk.bf16.mxu0 %vm14437_vm0, %v19364_v47  ;;  %19396 = vst [vmem:[#allocation83_spill] sm:$0xff] %v15506_v24  ;;  %v1726_v11 = vmul.f32 %v1686_v46, %v14976_v3  ;;  %v1539_v50 = vadd.f32 %v1538_v52, %v15150_v15  ;;  %v4453_v62 = vrot.slane %v10630_v27, 3  ;;  %v13813_v52 = vld [vmem:[%s19181_s6 + $0x1d0] sm:$0xff]   ;;  %v4403_v27 = vld [vmem:[#allocation2 + $0x5c] sm:$0xf] }
 0x226   : > { %12287 = vmatprep.subr.bf16.mxu0 %v19364_v47  ;;  %12401 = vmatprep.subr.bf16.mxu1 %v19364_v47  ;;  %v15513_v20 = vpop.f32.mrf.mxu1  ;;  %v15533_v46 = vld [vmem:[#allocation2 + $0x1c] sm:$0xff]  }
 0x227   : > { %19397 = vst [vmem:[#allocation84_spill] sm:$0xff] %v15513_v20  ;;  %12346 = vmatmul.mubr.bf16.gmra.mxu1 %v2931_v22  ;;  %v11443_v14 = vpack.c.bf16 %v1726_v11, %v1725_v63  ;;  %v15529_v21 = vsel %vm2163_vm1, %v4451_v48, %v4453_v62  ;;  %v1687_v19 = vmax.f32 %v1539_v50, 0.0  ;;  %v19401_v48 = vrot.slane %v15443_v2, 1 }
 0x228   : > { %12349 = vmatprep.mubr.msk.bf16.mxu1 %vm14437_vm0, %v19364_v47  ;;  %12402 = vmatpush3.bf16.msra.mxu1 %v13810_v58  ;;  %v1542_v22 = vpop.f32.mrf.mxu1  ;;  %v4404_v63 = vld [vmem:[#allocation2 + $0x60] sm:$0xf]  ;;  %19398 = vst [vmem:[#allocation85_spill] sm:$0xff] %v15529_v21  ;;  %v15552_v3 = vsel %vm2163_vm1, %v4453_v62, %v4455_v9  ;;  %v19402_v2 = vrot.slane %v15491_v56, 1 }
 0x229   : > { %12288 = vmatpush3.bf16.msra.mxu0 %v13805_v26  ;;  %12403 = vmatprep.subr.bf16.mxu1 %v19364_v47  ;;  %v15526_v11 = vld [vmem:[#allocation2 + $0x60] sm:$0xf]  ;;  %11500 = vst [vmem:[#allocation2 + $0x68] sm:$0xff] %v11443_v14   ;;  %v1543_v58 = vadd.f32 %v1542_v22, %v15150_v15  ;;  %v13816_v26 = vld [vmem:[%s19181_s6 + $0x1c8] sm:$0xff]   ;;  %v2362_v50 = vsel %vm2357_vm2, %v19401_v48, %v19400_v8  ;;  %v15549_v22 = vld [vmem:[#allocation2 + $0x64] sm:$0xf] }
 0x22a   : > { %12289 = vmatprep.subr.bf16.mxu0 %v19364_v47  ;;  %v15540_v20 = vpop.f32.mrf.mxu1  ;;  %v15547_v14 = vld [vmem:[#allocation2 + $0x60] sm:$0xf]  ;;  %v10632_v1 = vcombine.low %v4403_v27, %v4404_v63  ;;  %v19403_v8 = vrot.slane %v15448_v32, 1 }
 0x22b   : > { %19399 = vst [vmem:[#allocation86_spill] sm:$0xff] %v15540_v20  ;;  %v1688_v21 = vmax.f32 %v1543_v58, 0.0  ;;  %12234 = vmatmul.mubr.bf16.gmra.mxu0 %v2362_v50  ;;  %v13814_v20 = vld [vmem:[#allocation2 + $0x40] ss:$0 sps:$4 sm:$0x11]   ;;  %v2363_v50 = vrot.slane %v15533_v46, 1 }
 0x22c   : > { %12404 = vmatpush3.bf16.msra.mxu1 %v13813_v52  ;;  %v1548_v24 = vpop.f32.mrf.mxu1  ;;  %v2933_v48 = vsel %vm2357_vm2, %v19403_v8, %v19402_v2  ;;  %12237 = vmatprep.mubr.msk.bf16.mxu0 %vm14437_vm0, %v19364_v47  ;;  %v13811_v62 = vld [vmem:[%s19181_s6 + $0x120] sm:$0xff]   ;;  %v15566_v27 = vrot.slane %v10632_v1, 3  ;;  %v13815_v46 = vld [vmem:[%s19181_s6 + $0x118] sm:$0xff]  }
 0x22d   : > { %12290 = vmatpush3.bf16.msra.mxu0 %v13808_v37  ;;  %v1727_v37 = vmul.f32 %v1687_v19, %v15007_v35  ;;  %v1728_v63 = vmul.f32 %v1688_v21, %v15001_v28  ;;  %v1549_v32 = vadd.f32 %v1548_v24, %v15150_v15  ;;  %12405 = vmatprep.subr.bf16.mxu1 %v19364_v47  ;;  %v13818_v21 = vld [vmem:[%s19181_s6 + $0x1c0] sm:$0xff]   ;;  %v2934_v19 = vrot.slane %v13814_v20, 1 }
 0x22e   : > { %12291 = vmatprep.subr.bf16.mxu0 %v19364_v47  ;;  %v15575_v58 = vpop.f32.mrf.mxu1  ;;  %v15580_v1 = vsel %vm2163_vm1, %v4455_v9, %v15566_v27  ;;  %v15591_v9 = vld [vmem:[#allocation2 + $0x64] sm:$0xf]  ;;  %v19408_v20 = vrot.slane %v15485_v51, 1  ;;  %v13819_v51 = vld [vmem:[%s19181_s6 + $0x110] sm:$0xff]  }
 0x22f   : > { %19404 = vst [vmem:[#allocation87_spill] sm:$0xff] %v15575_v58  ;;  %12350 = vmatmul.mubr.bf16.gmra.mxu1 %v2933_v48  ;;  %v11448_v2 = vpack.c.bf16 %v1728_v63, %v1727_v37  ;;  %19405 = vst [vmem:[#allocation88_spill] sm:$0xff] %v15591_v9  ;;  %v1689_v48 = vmax.f32 %v1549_v32, 0.0  ;;  %v15597_v37 = vld [vmem:[#allocation2 + $0x24] sm:$0xff]   ;;  %v19409_v58 = vrot.slane %v15491_v56, 1 }
 0x230   : > { %12353 = vmatprep.mubr.msk.bf16.mxu1 %vm14437_vm0, %v19364_v47  ;;  %12406 = vmatpush3.bf16.msra.mxu1 %v13816_v26  ;;  %v1552_v24 = vpop.f32.mrf.mxu1  ;;  %v15593_v8 = vld [vmem:[#allocation2 + $0x68] sm:$0xf]  ;;  %v2364_v63 = vsel %vm2357_vm2, %v19408_v20, %v2363_v50  ;;  %v15606_v52 = vld [vmem:[#allocation2 + $0x6c] sm:$0xf] }
 0x231   : > { %12292 = vmatpush3.bf16.msra.mxu0 %v13811_v62  ;;  %12407 = vmatprep.subr.bf16.mxu1 %v19364_v47  ;;  %19406 = vst [vmem:[#allocation89_spill] sm:$0xff] %v15593_v8  ;;  %11501 = vst [vmem:[#allocation2 + $0x70] sm:$0xff] %v11448_v2   ;;  %v1553_v26 = vadd.f32 %v1552_v24, %v15150_v15  ;;  %v15604_v59 = vld [vmem:[#allocation2 + $0x68] sm:$0xf]  ;;  %v2935_v28 = vsel %vm2357_vm2, %v19409_v58, %v2934_v19  ;;  %v2365_v58 = vrot.slane %v15597_v37, 1 }
 0x232   : > { %12293 = vmatprep.subr.bf16.mxu0 %v19364_v47  ;;  %v15599_v62 = vpop.f32.mrf.mxu1  ;;  %v15633_v2 = vld [vmem:[#allocation2 + $0x30] sm:$0xf]  ;;  %v13822_v20 = vld [vmem:[#allocation2 + $0x2c] ss:$0 sps:$4 sm:$0x11]  }
 0x233   : > { %19407 = vst [vmem:[#allocation90_spill] sm:$0xff] %v15599_v62  ;;  %v1690_v32 = vmax.f32 %v1553_v26, 0.0  ;;  %12238 = vmatmul.mubr.bf16.gmra.mxu0 %v2364_v63  ;;  %v1729_v26 = vmul.f32 %v1689_v48, %v15033_v6  ;;  %v5736_v48 = vld [vmem:[#allocation2 + $0x54] sm:$0xf]  ;;  %v15635_v62 = vld [vmem:[#allocation2 + $0x6c] sm:$0xf] }
 0x234   : > { %12408 = vmatpush3.bf16.msra.mxu1 %v13818_v21  ;;  %v1558_v24 = vpop.f32.mrf.mxu1  ;;  %12241 = vmatprep.mubr.msk.bf16.mxu0 %vm14437_vm0, %v19364_v47  ;;  %19411 = vst [vmem:[#allocation92_spill] sm:$0xff] %v15635_v62 }
 0x235   : > { %12294 = vmatpush3.bf16.msra.mxu0 %v13815_v46  ;;  %v1730_v21 = vmul.f32 %v1690_v32, %v15028_v61  ;;  %v1559_v63 = vadd.f32 %v1558_v24, %v15150_v15  ;;  %12465 = vmatprep.subr.bf16.mxu1 %v19364_v47  ;;  %v13821_v46 = vld [vmem:[%s19181_s6 + $0x108] sm:$0xff]   ;;  %v5735_v32 = vld [vmem:[#allocation2 + $0x50] sm:$0x8] }
 0x236   : > { %12295 = vmatprep.subr.bf16.mxu0 %v19364_v47  ;;  %v15625_v56 = vpop.f32.mrf.mxu1  ;;  %v10829_v35 = vcombine.low %v5735_v32, %v5736_v48  ;;  %v15662_v32 = vld [vmem:[#allocation2 + $0x6c] sm:$0xf] }
 0x237   : > { %19410 = vst [vmem:[#allocation91_spill] sm:$0xff] %v15625_v56  ;;  %12354 = vmatmul.mubr.bf16.gmra.mxu1 %v2935_v28  ;;  %v11453_v19 = vpack.c.bf16 %v1730_v21, %v1729_v26  ;;  %v1691_v37 = vmax.f32 %v1559_v63, 0.0  ;;  %v19414_v21 = vcombine.low %v15489_v45, %v15493_v40  ;;  %v2367_v45 = vrot.slane %v13822_v20, 1 }
 0x238   : > { %12409 = vmatprep.mubr.msk.bf16.mxu1 %vm14437_vm0, %v19364_v47  ;;  %v1562_v24 = vpop.f32.mrf.mxu1  ;;  %v15637_v28 = vld [vmem:[#allocation2 + $0x70] sm:$0xf]  ;;  %v15648_v6 = vld [vmem:[#allocation2 + $0x74] sm:$0xf] }
 0x239   : > { %12296 = vmatpush3.bf16.msra.mxu0 %v13819_v51  ;;  %19412 = vst [vmem:[#allocation93_spill] sm:$0xff] %v15637_v28  ;;  %11502 = vst [vmem:[#allocation2 + $0x78] sm:$0xff] %v11453_v19   ;;  %v1563_v26 = vadd.f32 %v1562_v24, %v15150_v15  ;;  %v2366_v51 = vsel %vm2357_vm2, %v2363_v50, %v2365_v58  ;;  %v15646_v61 = vld [vmem:[#allocation2 + $0x70] sm:$0xf]  ;;  %v15650_v19 = vld [vmem:[#allocation2 + $0x2c] sm:$0xf] }
 0x23a   : > { %12297 = vmatprep.subr.bf16.mxu0 %v19364_v47  ;;  %v15643_v56 = vpop.f32.mrf.mxu1  ;;  %v10486_v24 = vcombine.low %v15650_v19, %v15633_v2  ;;  %v13823_v50 = vld [vmem:[%s19181_s6 + $0x100] sm:$0xff]   ;;  %v5941_v48 = vrot.slane %v19414_v21, 3  ;;  %v5940_v21 = vrot.slane %v10829_v35, 3  ;;  %v2368_v35 = vsel %vm2357_vm2, %v2365_v58, %v2367_v45 }
 0x23b   : > { %19413 = vst [vmem:[#allocation94_spill] sm:$0xff] %v15643_v56  ;;  %v1692_v8 = vmax.f32 %v1563_v26, 0.0  ;;  %12242 = vmatmul.mubr.bf16.gmra.mxu0 %v2366_v51  ;;  %v15664_v26 = vld [vmem:[#allocation2 + $0x70] sm:$0xf]  ;;  %v10833_v51 = vcombine.low %v15646_v61, %v15648_v6  ;;  %v15678_v6 = vld [vmem:[#allocation2 + $0x38] sm:$0xf]  ;;  %v19419_v58 = vcombine.low %v15547_v14, %v15549_v22 }
 0x23c   : > { %v1568_v63 = vpop.f32.mrf.mxu1  ;;  %12245 = vmatprep.mubr.msk.bf16.mxu0 %vm14437_vm0, %v19364_v47 }
 0x23d   : > { %12298 = vmatpush3.bf16.msra.mxu0 %v13821_v46  ;;  %v1731_v46 = vmul.f32 %v1691_v37, %v15059_v41  ;;  %v1732_v56 = vmul.f32 %v1692_v8, %v15054_v31  ;;  %v1569_v28 = vadd.f32 %v1568_v63, %v15150_v15  ;;  %v15681_v8 = vsel %vm2163_vm1, %v5940_v21, %v5941_v48 }
 0x23e   : > { %12299 = vmatprep.subr.bf16.mxu0 %v19364_v47  ;;  %v15672_v62 = vpop.f32.mrf.mxu1  ;;  %19416 = vst [vmem:[#allocation96_spill] sm:$0xff] %v15681_v8  ;;  %v5943_v45 = vrot.slane %v19419_v58, 3  ;;  %v6283_v58 = vld [vmem:[#allocation2 + $0x74] sm:$0xf] }
 0x23f   : > { %19415 = vst [vmem:[#allocation95_spill] sm:$0xff] %v15672_v62  ;;  %12410 = vmatmul.mubr.bf16.vlgmr.msra.gmra.mxu1 %v10486_v24  ;;  %v11458_v9 = vpack.c.bf16 %v1732_v56, %v1731_v46  ;;  %v1693_v37 = vmax.f32 %v1569_v28, 0.0  ;;  %v15688_v24 = vld [vmem:[#allocation2 + $0x34] sm:$0xf]  ;;  %v6280_v62 = vld [vmem:[#allocation2 + $0x68] sm:$0xf] }
 0x240   : > { %12413 = vmatprep.mubr.msk.bf16.mxu1 %vm14437_vm0, %v19364_v47  ;;  %v1572_v61 = vpop.f32.mrf.mxu1  ;;  %v10487_v46 = vcombine.low %v15688_v24, %v15678_v6  ;;  %v15706_v40 = vld [vmem:[#allocation2 + $0x78] sm:$0xf]  ;;  %v15718_v22 = vsel %vm2163_vm1, %v5941_v48, %v5943_v45 }
 0x241   : > { %12300 = vmatpush3.bf16.msra.mxu0 %v13823_v50  ;;  %11503 = vst [vmem:[#allocation2 + $0x80] sm:$0xff] %v11458_v9   ;;  %v1573_v63 = vadd.f32 %v1572_v61, %v15150_v15  ;;  %v1733_v9 = vmul.f32 %v1693_v37, %v15077_v10  ;;  %v15708_v37 = vld [vmem:[#allocation2 + $0x7c] sm:$0xf]  ;;  %19422 = vst [vmem:[#allocation101_spill] sm:$0xff] %v15718_v22  ;;  %v19424_v10 = vcombine.low %v15604_v59, %v15606_v52 }
 0x242   : > { %12357 = vmatprep.subr.bf16.mxu0 %v19364_v47  ;;  %v15685_v20 = vpop.f32.mrf.mxu1  ;;  %19420 = vst [vmem:[#allocation99_spill] sm:$0xff] %v15708_v37  ;;  %v10891_v48 = vcombine.low %v6283_v58, %v15706_v40  ;;  %v15768_v58 = vld [vmem:[#allocation2 + $0x48] sm:$0xf] }
 0x243   : > { %19417 = vst [vmem:[#allocation97_spill] sm:$0xff] %v15685_v20  ;;  %v1694_v56 = vmax.f32 %v1573_v63, 0.0  ;;  %12246 = vmatmul.mubr.bf16.gmra.mxu0 %v2368_v35  ;;  %v15704_v35 = vld [vmem:[#allocation2 + $0x40] sm:$0xf]  ;;  %v5945_v31 = vrot.slane %v19424_v10, 3 }
 0x244   : > { %v1578_v50 = vpop.f32.mrf.mxu1  ;;  %12301 = vmatprep.mubr.msk.bf16.mxu0 %vm14437_vm0, %v19364_v47 }
 0x245   : > { %v1734_v28 = vmul.f32 %v1694_v56, %v15069_v5  ;;  %v1579_v21 = vadd.f32 %v1578_v50, %v15150_v15  ;;  %v13827_v50 = vld [vmem:[%s19181_s6 + $0x1b8] sm:$0xff]  }
 0x246   : > { %v15697_v61 = vpop.f32.mrf.mxu1  ;;  %v6285_v5 = vld [vmem:[#allocation2 + $0x7c] sm:$0xf] }
 0x247   : > { %19418 = vst [vmem:[#allocation98_spill] sm:$0xff] %v15697_v61  ;;  %12414 = vmatmul.mubr.bf16.gmra.mxu1 %v10487_v46  ;;  %v11463_v63 = vpack.c.bf16 %v1734_v28, %v1733_v9  ;;  %v1695_v56 = vmax.f32 %v1579_v21, 0.0  ;;  %v15721_v28 = vld [vmem:[#allocation2 + $0x3c] sm:$0xf]  ;;  %v15738_v21 = vrot.slane %v10833_v51, 3  ;;  %v15755_v51 = vsel %vm2163_vm1, %v5943_v45, %v5945_v31 }
 0x248   : > { %12417 = vmatprep.mubr.msk.bf16.mxu1 %vm14437_vm0, %v19364_v47  ;;  %v1582_v20 = vpop.f32.mrf.mxu1  ;;  %v15713_v46 = vld [vmem:[#allocation2 + $0x80] sm:$0xf]  ;;  %v15736_v22 = vld [vmem:[#allocation2 + $0x84] sm:$0xf]  ;;  %v10488_v10 = vcombine.low %v15721_v28, %v15704_v35  ;;  %19427 = vst [vmem:[#allocation104_spill] sm:$0xff] %v15755_v51  ;;  %v19430_v45 = vcombine.low %v15662_v32, %v15664_v26 }
 0x249   : > { %v15715_v14 = vld [vmem:[#allocation2 + $0x80] sm:$0xf]  ;;  %11504 = vst [vmem:[#allocation2 + $0x88] sm:$0xff] %v11463_v63   ;;  %v1583_v9 = vadd.f32 %v1582_v20, %v15150_v15  ;;  %v19425_v20 = vcombine.low %v15175_v17, %v15180_v16  ;;  %19426 = vst [vmem:[#allocation103_spill] sm:$0xff] %v15738_v21  ;;  %v13829_v17 = vld [vmem:[%s19181_s6 + $0x1b0] sm:$0xff]   ;;  %v15759_v40 = vsel %vm2163_vm1, %v5945_v31, %v15738_v21 }
 0x24a   : > { %19421 = vst [vmem:[#allocation100_spill] sm:$0xff] %v15715_v14  ;;  %v15725_v61 = vpop.f32.mrf.mxu1  ;;  %v15734_v63 = vld [vmem:[#allocation2 + $0x80] sm:$0xf]  ;;  %v1735_v14 = vmul.f32 %v1695_v56, %v15101_v54  ;;  %19428 = vst [vmem:[#allocation105_spill] sm:$0xff] %v15759_v40  ;;  %v6279_v56 = vld [vmem:[#allocation2 + $0x64] sm:$0x8] }
 0x24b   : > { %19423 = vst [vmem:[#allocation102_spill] sm:$0xff] %v15725_v61  ;;  %v1696_v41 = vmax.f32 %v1583_v9, 0.0  ;;  %12302 = vmatmul.mubr.bf16.vlgmr.msra.gmra.mxu0 %v19425_v20  ;;  %v10892_v61 = vcombine.low %v6285_v5, %v15713_v46  ;;  %v10889_v46 = vcombine.low %v6279_v56, %v6280_v62  ;;  %v6335_v31 = vrot.slane %v19430_v45, 3  ;;  %v15781_v54 = vld [vmem:[#allocation2 + $0x44] sm:$0xf] }
 0x24c   : > { %12358 = vmatpush3.bf16.msra.mxu0 %v13827_v50  ;;  %v1588_v59 = vpop.f32.mrf.mxu1  ;;  %12305 = vmatprep.mubr.msk.bf16.mxu0 %vm14437_vm0, %v19364_v47 }
 0x24d   : > { %v1736_v52 = vmul.f32 %v1696_v41, %v15093_v44  ;;  %v1589_v5 = vadd.f32 %v1588_v59, %v15150_v15  ;;  %12359 = vmatprep.subr.bf16.mxu0 %v19364_v47  ;;  %v13831_v41 = vld [vmem:[%s19181_s6 + $0x1a8] sm:$0xff]   ;;  %v6287_v59 = vld [vmem:[#allocation2 + $0x84] sm:$0xf]  ;;  %v6334_v32 = vrot.slane %v10889_v46, 3 }
 0x24e   : > { %v15761_v50 = vpop.f32.mrf.mxu1  ;;  %v13833_v46 = vld [vmem:[%s19181_s6 + $0x1a0] sm:$0xff]  }
 0x24f   : > { %19429 = vst [vmem:[#allocation106_spill] sm:$0xff] %v15761_v50  ;;  %12418 = vmatmul.mubr.bf16.gmra.mxu1 %v10488_v10  ;;  %v11468_v9 = vpack.c.bf16 %v1736_v52, %v1735_v14  ;;  %v15773_v10 = vld [vmem:[#allocation2 + $0x84] sm:$0xf]  ;;  %v1697_v62 = vmax.f32 %v1589_v5, 0.0 }
 0x250   : > { %12421 = vmatprep.mubr.msk.bf16.mxu1 %vm14437_vm0, %v19364_v47  ;;  %v1592_v20 = vpop.f32.mrf.mxu1  ;;  %12360 = vmatpush3.bf16.msra.mxu0 %v13829_v17  ;;  %v6288_v16 = vld [vmem:[#allocation2 + $0x88] sm:$0xf]  ;;  %19431 = vst [vmem:[#allocation107_spill] sm:$0xff] %v15773_v10 }
 0x251   : > { %11505 = vst [vmem:[#allocation2 + $0x90] sm:$0xff] %v11468_v9   ;;  %v1593_v14 = vadd.f32 %v1592_v20, %v15150_v15  ;;  %12361 = vmatprep.subr.bf16.mxu0 %v19364_v47  ;;  %v15777_v52 = vld [vmem:[#allocation2 + $0x88] sm:$0xf]  ;;  %v10893_v56 = vcombine.low %v6287_v59, %v6288_v16  ;;  %v19434_v9 = vcombine.low %v15198_v33, %v15205_v42  ;;  %v15797_v20 = vld [vmem:[#allocation2 + $0x8c] sm:$0xf]  ;;  %v6337_v33 = vrot.slane %v10891_v48, 3 }
 0x252   : > { %19432 = vst [vmem:[#allocation108_spill] sm:$0xff] %v15777_v52  ;;  %v15779_v50 = vpop.f32.mrf.mxu1  ;;  %v15788_v5 = vld [vmem:[#allocation2 + $0x88] sm:$0xf]  ;;  %v10489_v16 = vcombine.low %v15781_v54, %v15768_v58  ;;  %v15800_v59 = vsel %vm2163_vm1, %v6334_v32, %v6335_v31  ;;  %v1737_v42 = vmul.f32 %v1697_v62, %v15118_v60  ;;  %v13836_v48 = vld [vmem:[%s19181_s6 + $0x198] sm:$0xff]   ;;  %v19444_v60 = vcombine.low %v15229_v7, %v15232_v57 }
 0x253   : > { %19433 = vst [vmem:[#allocation109_spill] sm:$0xff] %v15779_v50  ;;  %v1698_v17 = vmax.f32 %v1593_v14, 0.0  ;;  %12306 = vmatmul.mubr.bf16.gmra.mxu0 %v19434_v9  ;;  %19435 = vst [vmem:[#allocation110_spill] sm:$0xff] %v15800_v59  ;;  %v6339_v9 = vrot.slane %v10892_v61, 3  ;;  %v15809_v50 = vsel %vm2163_vm1, %v6335_v31, %v6337_v33  ;;  %v15811_v44 = vrot.slane %v10893_v56, 3  ;;  %v14114_v59 = vld [vmem:[%s19183_s8 + $0x18] sm:$0xff]  }
 0x254   : > { %v1598_v45 = vpop.f32.mrf.mxu1  ;;  %12362 = vmatpush3.bf16.msra.mxu0 %v13831_v41  ;;  %12309 = vmatprep.mubr.msk.bf16.mxu0 %vm14437_vm0, %v19364_v47  ;;  %19437 = vst [vmem:[#allocation112_spill] sm:$0xff] %v15809_v50  ;;  %v15818_v61 = vld [vmem:[#allocation2 + $0x8c] sm:$0xf] }
 0x255   : > { %v1738_v41 = vmul.f32 %v1698_v17, %v15109_v13  ;;  %v1599_v14 = vadd.f32 %v1598_v45, %v15150_v15  ;;  %12363 = vmatprep.subr.bf16.mxu0 %v19364_v47  ;;  %19438 = vst [vmem:[#allocation113_spill] sm:$0xff] %v15811_v44  ;;  %v3275_v17 = vld [vmem:[#allocation2 + $0x50] sm:$0xf]  ;;  %19439 = vst [vmem:[#allocation114_spill] sm:$0xff] %v15818_v61  ;;  %v15823_v31 = vsel %vm2163_vm1, %v6337_v33, %v6339_v9 }
 0x256   : > { %v15806_v26 = vpop.f32.mrf.mxu1  ;;  %19441 = vst [vmem:[#allocation116_spill] sm:$0xff] %v15823_v31  ;;  %v15827_v56 = vsel %vm2163_vm1, %v6339_v9, %v15811_v44 }
 0x257   : > { %19436 = vst [vmem:[#allocation111_spill] sm:$0xff] %v15806_v26  ;;  %12422 = vmatmul.mubr.bf16.gmra.mxu1 %v10489_v16  ;;  %v11473_v32 = vpack.c.bf16 %v1738_v41, %v1737_v42  ;;  %19442 = vst [vmem:[#allocation117_spill] sm:$0xff] %v15827_v56  ;;  %v1699_v42 = vmax.f32 %v1599_v14, 0.0  ;;  %v13838_v16 = vld [vmem:[%s19181_s6 + $0x190] sm:$0xff]  }
 0x258   : > { %12425 = vmatprep.mubr.msk.bf16.mxu1 %vm14437_vm0, %v19364_v47  ;;  %v1602_v62 = vpop.f32.mrf.mxu1  ;;  %12364 = vmatpush3.bf16.msra.mxu0 %v13833_v46  ;;  %v15820_v45 = vld [vmem:[#allocation2 + $0x90] sm:$0xf]  ;;  %v15837_v13 = vld [vmem:[#allocation2 + $0x94] sm:$0xf] }
 0x259   : > { %19440 = vst [vmem:[#allocation115_spill] sm:$0xff] %v15820_v45  ;;  %11506 = vst [vmem:[#allocation2 + $0x98] sm:$0xff] %v11473_v32   ;;  %v1603_v41 = vadd.f32 %v1602_v62, %v15150_v15  ;;  %12365 = vmatprep.subr.bf16.mxu0 %v19364_v47  ;;  %v15835_v26 = vld [vmem:[#allocation2 + $0x90] sm:$0xf]  ;;  %v15844_v32 = vld [vmem:[#allocation2 + $0x4c] sm:$0xf]  ;;  %v1739_v33 = vmul.f32 %v1699_v42, %v15129_v12 }
 0x25a   : > { %v15833_v46 = vpop.f32.mrf.mxu1  ;;  %v10490_v62 = vcombine.low %v15844_v32, %v3275_v17  ;;  %v15865_v42 = vld [vmem:[#allocation2 + $0x94] sm:$0xf]  ;;  %v14059_v44 = vld [vmem:[#allocation2 + $0x8c] sm:$0xff]  }
 0x25b   : > { %19443 = vst [vmem:[#allocation118_spill] sm:$0xff] %v15833_v46  ;;  %v1700_v9 = vmax.f32 %v1603_v41, 0.0  ;;  %12310 = vmatmul.mubr.bf16.gmra.mxu0 %v19444_v60  ;;  %v7620_v41 = vld [vmem:[#allocation2 + $0x7c] sm:$0xf]  ;;  %19446 = vst [vmem:[#allocation120_spill] sm:$0xff] %v15865_v42 }
 0x25c   : > { %v1608_v14 = vpop.f32.mrf.mxu1  ;;  %12366 = vmatpush3.bf16.msra.mxu0 %v13836_v48  ;;  %12313 = vmatprep.mubr.msk.bf16.mxu0 %vm14437_vm0, %v19364_v47  ;;  %v13839_v48 = vld [vmem:[%s19181_s6 + $0x188] sm:$0xff]  }
 0x25d   : > { %v1740_v7 = vmul.f32 %v1700_v9, %v15122_v4  ;;  %v1609_v60 = vadd.f32 %v1608_v14, %v15150_v15  ;;  %12367 = vmatprep.subr.bf16.mxu0 %v19364_v47  ;;  %v7619_v14 = vld [vmem:[#allocation2 + $0x78] sm:$0x8] }
 0x25e   : > { %v15858_v57 = vpop.f32.mrf.mxu1  ;;  %v11090_v61 = vcombine.low %v7619_v14, %v7620_v41  ;;  %v8165_v41 = vld [vmem:[#allocation2 + $0x94] sm:$0xf]  ;;  %v2708_v14 = vld [vmem:[#allocation2 + $0x3c] sm:$0xf] }
 0x25f   : > { %19445 = vst [vmem:[#allocation119_spill] sm:$0xff] %v15858_v57  ;;  %12426 = vmatmul.mubr.bf16.gmra.mxu1 %v10490_v62  ;;  %v11478_v17 = vpack.c.bf16 %v1740_v7, %v1739_v33  ;;  %v1701_v4 = vmax.f32 %v1609_v60, 0.0  ;;  %v19450_v60 = vcombine.low %v15734_v63, %v15736_v22  ;;  %v3072_v22 = vld [vmem:[#allocation2 + $0x28] sm:$0x8] }
 0x260   : > { %12481 = vmatprep.mubr.msk.bf16.mxu1 %vm14437_vm0, %v19364_v47  ;;  %v1612_v46 = vpop.f32.mrf.mxu1  ;;  %12368 = vmatpush3.bf16.msra.mxu0 %v13838_v16  ;;  %v15867_v9 = vld [vmem:[#allocation2 + $0x98] sm:$0xf]  ;;  %v7628_v7 = vld [vmem:[#allocation2 + $0x9c] sm:$0xf]  ;;  %v19449_v16 = vcombine.low %v15262_v39, %v15265_v43  ;;  %v7824_v42 = vrot.slane %v11090_v61, 3  ;;  %v10456_v61 = vcombine.low %v3072_v22, %v15650_v19 }
 0x261   : > { %19447 = vst [vmem:[#allocation121_spill] sm:$0xff] %v15867_v9  ;;  %11507 = vst [vmem:[#allocation2 + $0xa0] sm:$0xff] %v11478_v17   ;;  %v1613_v62 = vadd.f32 %v1612_v46, %v15150_v15  ;;  %12369 = vmatprep.subr.bf16.mxu0 %v19364_v47  ;;  %v7627_v33 = vld [vmem:[#allocation2 + $0x98] sm:$0xf]  ;;  %v13841_v46 = vld [vmem:[%s19181_s6 + $0x180] sm:$0xff]   ;;  %v7825_v17 = vrot.slane %v19450_v60, 3 }
 0x262   : > { %v15871_v57 = vpop.f32.mrf.mxu1  ;;  %v8166_v12 = vld [vmem:[#allocation2 + $0x98] sm:$0xf] }
 0x263   : > { %19448 = vst [vmem:[#allocation122_spill] sm:$0xff] %v15871_v57  ;;  %v1702_v45 = vmax.f32 %v1613_v62, 0.0  ;;  %12314 = vmatmul.mubr.bf16.gmra.mxu0 %v19449_v16  ;;  %v11094_v62 = vcombine.low %v7627_v33, %v7628_v7  ;;  %v1741_v57 = vmul.f32 %v1701_v4, %v15136_v49  ;;  %v11151_v16 = vcombine.low %v8165_v41, %v8166_v12  ;;  %v14291_v33 = vld [vmem:[#allocation2 + $0x38] sm:$0xf]  ;;  %v8167_v41 = vld [vmem:[#allocation2 + $0x9c] sm:$0xf] }
 0x264   : > { %v1618_v52 = vpop.f32.mrf.mxu1  ;;  %12370 = vmatpush3.bf16.msra.mxu0 %v13839_v48  ;;  %12317 = vmatprep.mubr.msk.bf16.mxu0 %vm14437_vm0, %v19364_v47  ;;  %v10457_v7 = vcombine.low %v15633_v2, %v15688_v24  ;;  %v13843_v19 = vld [vmem:[%s19181_s6 + $0x238] sm:$0xff]   ;;  %v19455_v24 = vcombine.low %v15835_v26, %v15837_v13 }
 0x265   : > { %v1742_v39 = vmul.f32 %v1702_v45, %v15132_v25  ;;  %v1619_v43 = vadd.f32 %v1618_v52, %v15150_v15  ;;  %12371 = vmatprep.subr.bf16.mxu0 %v19364_v47  ;;  %v10401_v45 = vcombine.low %v14291_v33, %v2708_v14  ;;  %v15895_v52 = vsel %vm2163_vm1, %v7824_v42, %v7825_v17  ;;  %v13919_v25 = vld [vmem:[%s19183_s8 + $0x28] sm:$0xff]  }
 0x266   : > { %v15890_v48 = vpop.f32.mrf.mxu1  ;;  %19452 = vst [vmem:[#allocation124_spill] sm:$0xff] %v15895_v52  ;;  %v3129_v2 = vrot.slane %v10457_v7, 3  ;;  %v15916_v14 = vrot.slane %v11094_v62, 3  ;;  %v8219_v7 = vrot.slane %v11151_v16, 3  ;;  %v13844_v16 = vld [vmem:[%s19181_s6 + $0x230] sm:$0xff]  }
 0x267   : > { %19451 = vst [vmem:[#allocation123_spill] sm:$0xff] %v15890_v48  ;;  %v11483_v9 = vpack.c.bf16 %v1742_v39, %v1741_v57  ;;  %v1703_v63 = vmax.f32 %v1619_v43, 0.0  ;;  %v19453_v57 = vcombine.low %v15788_v5, %v15797_v20  ;;  %v7829_v5 = vrot.slane %v19455_v24, 3  ;;  %v8163_v20 = vld [vmem:[#allocation2 + $0x8c] sm:$0x8] }
 0x268   : > { %v1622_v10 = vpop.f32.mrf.mxu1  ;;  %12372 = vmatpush3.bf16.msra.mxu0 %v13841_v46  ;;  %v8168_v46 = vld [vmem:[#allocation2 + $0xa0] sm:$0xf]  ;;  %v3128_v43 = vrot.slane %v10456_v61, 3  ;;  %19456 = vst [vmem:[#allocation126_spill] sm:$0xff] %v15916_v14  ;;  %v8169_v13 = vld [vmem:[#allocation2 + $0xa4] sm:$0xf]  ;;  %v10458_v61 = vcombine.low %v15678_v6, %v15721_v28 }
 0x269   : > { %11508 = vst [vmem:[#allocation2 + $0xa8] sm:$0xff] %v11483_v9   ;;  %v1623_v4 = vadd.f32 %v1622_v10, %v15150_v15  ;;  %12429 = vmatprep.subr.bf16.mxu0 %v19364_v47  ;;  %v7827_v9 = vrot.slane %v19453_v57, 3  ;;  %v8164_v15 = vld [vmem:[#allocation2 + $0x90] sm:$0xf]  ;;  %v1743_v10 = vmul.f32 %v1703_v63, %v15143_v55  ;;  %v15929_v62 = vsel %vm2163_vm1, %v7829_v5, %v15916_v14 }
 0x26a   : > { %v11150_v22 = vcombine.low %v8163_v20, %v8164_v15  ;;  %19460 = vst [vmem:[#allocation130_spill] sm:$0xff] %v15929_v62  ;;  %v3131_v28 = vrot.slane %v10458_v61, 3  ;;  %v13851_v61 = vld [vmem:[%s19181_s6 + $0x210] sm:$0xff]   ;;  %v14068_v50 = vld [vmem:[#allocation2 + $0xa4] ss:$0 sps:$4 sm:$0x11]  }
 0x26b   : > { %v1704_v12 = vmax.f32 %v1623_v4, 0.0  ;;  %12318 = vmatmul.mubr.bf16.gmra.mxu0 %v10401_v45  ;;  %v15908_v60 = vsel %vm2163_vm1, %v7825_v17, %v7827_v9  ;;  %v15918_v4 = vld [vmem:[#allocation2 + $0xa4] sm:$0xf]  ;;  %v15923_v33 = vsel %vm2163_vm1, %v7827_v9, %v7829_v5  ;;  %v11152_v45 = vcombine.low %v8167_v41, %v8168_v46 }
 0x26c   : > { %12373 = vmatprep.mubr.msk.bf16.mxu0 %vm14437_vm0, %v19364_v47  ;;  %19454 = vst [vmem:[#allocation125_spill] sm:$0xff] %v15908_v60  ;;  %19457 = vst [vmem:[#allocation127_spill] sm:$0xff] %v15918_v4  ;;  %v8218_v9 = vrot.slane %v11150_v22, 3  ;;  %v3132_v41 = vsel %vm2163_vm1, %v3129_v2, %v3131_v28  ;;  %v10459_v22 = vcombine.low %v15704_v35, %v15781_v54  ;;  %v13849_v35 = vld [vmem:[%s19181_s6 + $0x218] sm:$0xff]  }
 0x26d   : > { %v1744_v42 = vmul.f32 %v1704_v12, %v15139_v18  ;;  %19459 = vst [vmem:[#allocation129_spill] sm:$0xff] %v15923_v33  ;;  %v3130_v12 = vsel %vm2163_vm1, %v3128_v43, %v3129_v2  ;;  %v8221_v15 = vrot.slane %v11152_v45, 3  ;;  %v14295_v18 = vld [vmem:[#allocation2 + $0x38] sm:$0xf]  ;;  %v14058_v33 = vld [vmem:[#allocation2 + $0x84] sm:$0xff]  }
 0x26e   : > { %v3133_v54 = vrot.slane %v10459_v22, 3  ;;  %v13857_v22 = vld [vmem:[#allocation2 + $0x3c] sm:$0xff]  }
 0x26f   : > { %v11488_v39 = vpack.c.bf16 %v1744_v42, %v1743_v10  ;;  %v15941_v42 = vsel %vm2163_vm1, %v8218_v9, %v8219_v7  ;;  %v15944_v6 = vsel %vm2163_vm1, %v8219_v7, %v8221_v15  ;;  %v13847_v7 = vld [vmem:[%s19181_s6 + $0x220] sm:$0xff]   ;;  %v13852_v9 = vld [vmem:[%s19181_s6 + $0x208] sm:$0xff]  }
 0x270   : > { %v8170_v63 = vld [vmem:[#allocation2 + $0xa8] sm:$0xf]  ;;  %19461 = vst [vmem:[#allocation131_spill] sm:$0xff] %v15941_v42  ;;  %19462 = vst [vmem:[#allocation132_spill] sm:$0xff] %v15944_v6  ;;  %v8171_v24 = vld [vmem:[#allocation2 + $0xac] sm:$0xf] }
 0x271   : > { %v15920_v17 = vld [vmem:[#allocation2 + $0xa8] sm:$0xf]  ;;  %11509 = vst [vmem:[#allocation2 + $0xb0] sm:$0xff] %v11488_v39   ;;  %v11153_v57 = vcombine.low %v8169_v13, %v8170_v63  ;;  %v15953_v20 = vld [vmem:[#allocation2 + $0xac] sm:$0xf]  ;;  %v3134_v13 = vsel %vm2163_vm1, %v3131_v28, %v3133_v54  ;;  %v13856_v28 = vld [vmem:[#allocation2 + $0x34] sm:$0xff]  }
 0x272   : > { %19458 = vst [vmem:[#allocation128_spill] sm:$0xff] %v15920_v17  ;;  %19464 = vst [vmem:[#allocation134_spill] sm:$0xff] %v15953_v20  ;;  %v13884_v6 = vld [vmem:[#allocation2 + $0x34] sm:$0xff]   ;;  %v14057_v60 = vld [vmem:[#allocation2 + $0x7c] sm:$0xfe]  }
 0x273   : > { %12374 = vmatmul.mubr.bf16.vlgmr.msra.gmra.mxu0 %v3130_v12  ;;  %v8223_v10 = vrot.slane %v11153_v57, 3  ;;  %v10460_v12 = vcombine.low %v15768_v58, %v15844_v32  ;;  %v13853_v32 = vld [vmem:[#allocation2 + $0x50] ss:$0 sps:$4 sm:$0x77]   ;;  %v7260_v37 = vrot.slane %v14057_v60, 1 }
 0x274   : > { %12430 = vmatpush3.bf16.msra.mxu0 %v13843_v19  ;;  %12377 = vmatprep.mubr.msk.bf16.mxu0 %vm14437_vm0, %v19364_v47  ;;  %v13846_v19 = vld [vmem:[%s19181_s6 + $0x228] sm:$0xff]   ;;  %v14061_v60 = vld [vmem:[%s19181_s6 + $0x70] sm:$0xff]  }
 0x275   : > { %12431 = vmatprep.subr.bf16.mxu0 %v19364_v47  ;;  %v15947_v46 = vsel %vm2163_vm1, %v8221_v15, %v8223_v10  ;;  %v3135_v57 = vrot.slane %v10460_v12, 3  ;;  %v13854_v15 = vld [vmem:[%s19181_s6 + $0x200] sm:$0xff]  }
 0x276   : > { %19463 = vst [vmem:[#allocation133_spill] sm:$0xff] %v15947_v46  ;;  %v13860_v12 = vld [vmem:[#allocation2 + $0x44] sm:$0xff]  }
 0x277   : > { %v3136_v58 = vsel %vm2163_vm1, %v3133_v54, %v3135_v57  ;;  %v3495_v54 = vrot.slane %v13857_v22, 1 }
 0x278   : > { %12432 = vmatpush3.bf16.msra.mxu0 %v13844_v16  ;;  %v8172_v5 = vld [vmem:[#allocation2 + $0xb0] sm:$0xf]  ;;  %v3137_v16 = vrot.slane %v13853_v32, 3 }
 0x279   : > { %12433 = vmatprep.subr.bf16.mxu0 %v19364_v47  ;;  %v15955_v39 = vld [vmem:[#allocation2 + $0xb0] sm:$0xf]  ;;  %v11154_v43 = vcombine.low %v8171_v24, %v8172_v5  ;;  %v3493_v24 = vrot.slane %v13856_v28, 1 }
 0x27a   : > { %19465 = vst [vmem:[#allocation135_spill] sm:$0xff] %v15955_v39  ;;  %v13863_v28 = vld [vmem:[#allocation2 + $0x4c] sm:$0xff]   ;;  %v14297_v39 = vld [vmem:[#allocation2 + $0x40] sm:$0xf] }
 0x27b   : > { %12378 = vmatmul.mubr.bf16.gmra.mxu0 %v3132_v41  ;;  %v15962_v45 = vrot.slane %v11154_v43, 3  ;;  %v13858_v43 = vld [vmem:[%s19181_s6 + $0x78] sm:$0xff]  }
 0x27c   : > { %12434 = vmatpush3.bf16.msra.mxu0 %v13846_v19  ;;  %12381 = vmatprep.mubr.msk.bf16.mxu0 %vm14437_vm0, %v19364_v47  ;;  %v13855_v19 = vld [vmem:[#allocation2 + $0x2c] sm:$0xfe]  }
 0x27d   : > { %19466 = vst [vmem:[#allocation136_spill] sm:$0xff] %v15962_v45  ;;  %12435 = vmatprep.subr.bf16.mxu0 %v19364_v47  ;;  %v15972_v2 = vsel %vm2163_vm1, %v8223_v10, %v15962_v45  ;;  %v3138_v10 = vsel %vm2163_vm1, %v3135_v57, %v3137_v16  ;;  %v3492_v5 = vrot.slane %v13855_v19, 1  ;;  %v13862_v57 = vld [vmem:[%s19181_s6 + $0x60] sm:$0xff]  }
 0x27e   : > { %19467 = vst [vmem:[#allocation137_spill] sm:$0xff] %v15972_v2 }
 0x27f   : > { %v3494_v41 = vsel %vm2357_vm2, %v3492_v5, %v3493_v24 }
 0x280   : > { %12436 = vmatpush3.bf16.msra.mxu0 %v13847_v7  ;;  %v13859_v7 = vld [vmem:[%s19181_s6 + $0x70] sm:$0xff]  }
 0x281   : > { %12437 = vmatprep.subr.bf16.mxu0 %v19364_v47 }
 0x283   : > { %12382 = vmatmul.mubr.bf16.gmra.mxu0 %v3134_v13  ;;  %v3496_v13 = vsel %vm2357_vm2, %v3493_v24, %v3495_v54  ;;  %v13865_v24 = vld [vmem:[%s19181_s6 + $0x50] sm:$0xff]  }
 0x284   : > { %12438 = vmatpush3.bf16.msra.mxu0 %v13849_v35  ;;  %12385 = vmatprep.mubr.msk.bf16.mxu0 %vm14437_vm0, %v19364_v47  ;;  %v13861_v35 = vld [vmem:[%s19181_s6 + $0x68] sm:$0xff]  }
 0x285   : > { %12439 = vmatprep.subr.bf16.mxu0 %v19364_v47 }
 0x288   : > { %12440 = vmatpush3.bf16.msra.mxu0 %v13851_v61 }
 0x289   : > { %12441 = vmatprep.subr.bf16.mxu0 %v19364_v47 }
 0x28b   : > { %12386 = vmatmul.mubr.bf16.gmra.mxu0 %v3136_v58  ;;  %v3497_v58 = vrot.slane %v13860_v12, 1 }
 0x28c   : > { %12442 = vmatpush3.bf16.msra.mxu0 %v13852_v9  ;;  %12389 = vmatprep.mubr.msk.bf16.mxu0 %vm14437_vm0, %v19364_v47 }
 0x28d   : > { %12443 = vmatprep.subr.bf16.mxu0 %v19364_v47 }
 0x290   : > { %12444 = vmatpush3.bf16.msra.mxu0 %v13854_v15  ;;  %v13864_v15 = vld [vmem:[%s19181_s6 + $0x58] sm:$0xff]  }
 0x291   : > { %12501 = vmatprep.subr.bf16.mxu0 %v19364_v47 }
 0x293   : > { %12390 = vmatmul.mubr.bf16.gmra.mxu0 %v3138_v10  ;;  %v3498_v10 = vsel %vm2357_vm2, %v3495_v54, %v3497_v58  ;;  %v13867_v54 = vld [vmem:[%s19181_s6 + $0x48] sm:$0xff]  }
 0x294   : > { %12445 = vmatprep.mubr.msk.bf16.mxu0 %vm14437_vm0, %v19364_v47 }
 0x29b   : > { %12446 = vmatmul.mubr.bf16.vlgmr.msra.gmra.mxu0 %v3494_v41  ;;  %v3499_v41 = vrot.slane %v13863_v28, 1 }
 0x29c   : > { %12449 = vmatprep.mubr.msk.bf16.mxu0 %vm14437_vm0, %v19364_v47  ;;  %12502 = vmatpush3.bf16.msra.mxu0 %v13858_v43 }
 0x29d   : > { %12503 = vmatprep.subr.bf16.mxu0 %v19364_v47  ;;  %v3500_v12 = vsel %vm2357_vm2, %v3497_v58, %v3499_v41 }
 0x2a0   : > { %12504 = vmatpush3.bf16.msra.mxu0 %v13859_v7 }
 0x2a1   : > { %12505 = vmatprep.subr.bf16.mxu0 %v19364_v47 }
 0x2a3   : > { %v16017_v61 = vpop.f32.mrf.mxu0  ;;  %12450 = vmatmul.mubr.bf16.gmra.mxu0 %v3496_v13 }
 0x2a4   : > { %12453 = vmatprep.mubr.msk.bf16.mxu0 %vm14437_vm0, %v19364_v47  ;;  %12506 = vmatpush3.bf16.msra.mxu0 %v13861_v35 }
 0x2a5   : > { %v12167_v9 = vpop.f32.mrf.mxu0  ;;  %12507 = vmatprep.subr.bf16.mxu0 %v19364_v47 }
 0x2a7   : > { %v16025_v32 = vpop.f32.mrf.mxu0 }
 0x2a8   : > { %12508 = vmatpush3.bf16.msra.mxu0 %v13862_v57  ;;  %v13866_v57 = vld [vmem:[#allocation2 + $0x54] ss:$0 sps:$4 sm:$0x11]  }
 0x2a9   : > { %v12168_v16 = vpop.f32.mrf.mxu0  ;;  %12509 = vmatprep.subr.bf16.mxu0 %v19364_v47 }
 0x2aa   : > { %v13868_v16 = vld [vmem:[%s19181_s6 + $0x40] sm:$0xff]  }
 0x2ab   : > { %v16032_v19 = vpop.f32.mrf.mxu0  ;;  %12454 = vmatmul.mubr.bf16.gmra.mxu0 %v3498_v10 }
 0x2ac   : > { %12457 = vmatprep.mubr.msk.bf16.mxu0 %vm14437_vm0, %v19364_v47  ;;  %12510 = vmatpush3.bf16.msra.mxu0 %v13864_v15 }
 0x2ad   : > { %v12171_v5 = vpop.f32.mrf.mxu0  ;;  %12511 = vmatprep.subr.bf16.mxu0 %v19364_v47 }
 0x2af   : > { %v16040_v43 = vpop.f32.mrf.mxu1  ;;  %v16042_v22 = vpop.f32.mrf.mxu0 }
 0x2b0   : > { %12512 = vmatpush3.bf16.msra.mxu0 %v13865_v24  ;;  %v3501_v24 = vrot.slane %v13866_v57, 1 }
 0x2b1   : > { %v12267_v7 = vpop.f32.mrf.mxu1  ;;  %v12172_v35 = vpop.f32.mrf.mxu0  ;;  %12513 = vmatprep.subr.bf16.mxu0 %v19364_v47 }
 0x2b3   : > { %v16048_v13 = vpop.f32.mrf.mxu1  ;;  %v16051_v9 = vpop.f32.mrf.mxu0  ;;  %12458 = vmatmul.mubr.bf16.gmra.mxu0 %v3500_v12 }
 0x2b4   : > { %12461 = vmatprep.mubr.msk.bf16.mxu0 %vm14437_vm0, %v19364_v47  ;;  %12514 = vmatpush3.bf16.msra.mxu0 %v13867_v54  ;;  %v3502_v54 = vsel %vm2357_vm2, %v3499_v41, %v3501_v24  ;;  %v13914_v41 = vld [vmem:[%s19183_s8 + $0x38] sm:$0xff]  }
 0x2b5   : > { %v12268_v15 = vpop.f32.mrf.mxu1  ;;  %v12175_v10 = vpop.f32.mrf.mxu0  ;;  %12515 = vmatprep.subr.bf16.mxu0 %v19364_v47  ;;  %12466 = vmatpush3.bf16.msra.mxu1 %v13914_v41  ;;  %v13917_v41 = vld [vmem:[%s19183_s8 + $0x30] sm:$0xff]  }
 0x2b6   : > { %12467 = vmatprep.subr.bf16.mxu1 %v19364_v47 }
 0x2b7   : > { %v16059_v28 = vpop.f32.mrf.mxu1  ;;  %v16061_v58 = vpop.f32.mrf.mxu0 }
 0x2b8   : > { %12516 = vmatpush3.bf16.msra.mxu0 %v13868_v16 }
 0x2b9   : > { %v12271_v5 = vpop.f32.mrf.mxu1  ;;  %v12176_v7 = vpop.f32.mrf.mxu0  ;;  %12573 = vmatprep.subr.bf16.mxu0 %v19364_v47  ;;  %12468 = vmatpush3.bf16.msra.mxu1 %v13917_v41 }
 0x2ba   : > { %v13872_v5 = vld [vmem:[%s19181_s6 + $0xb8] sm:$0xff]   ;;  %v14292_v7 = vld [vmem:[#allocation2 + $0x30] sm:$0xf]  ;;  %12469 = vmatprep.subr.bf16.mxu1 %v19364_v47 }
 0x2bb   : > { %v16064_v35 = vpop.f32.mrf.mxu1  ;;  %v16067_v12 = vpop.f32.mrf.mxu0  ;;  %12462 = vmatmul.mubr.bf16.gmra.mxu0 %v3502_v54  ;;  %v14293_v54 = vld [vmem:[#allocation2 + $0x2c] sm:$0xf] }
 0x2bc   : > { %12517 = vmatprep.mubr.msk.bf16.mxu0 %vm14437_vm0, %v19364_v47  ;;  %v2263_v2 = vadd.f32 %v16067_v12, %v15366_v30  ;;  %v4249_v30 = vrot.slane %v13884_v6, 1 }
 0x2bd   : > { %v12272_v15 = vpop.f32.mrf.mxu1  ;;  %v12195_v10 = vpop.f32.mrf.mxu0  ;;  %12470 = vmatpush3.bf16.msra.mxu1 %v13919_v25 }
 0x2be   : > { %v10555_v15 = vcombine.low %v14293_v54, %v14292_v7  ;;  %12471 = vmatprep.subr.bf16.mxu1 %v19364_v47 }
 0x2bf   : > { %v16071_v57 = vpop.f32.mrf.mxu1  ;;  %v16073_v63 = vpop.f32.mrf.mxu0 }
 0x2c1   : > { %v12275_v16 = vpop.f32.mrf.mxu1  ;;  %v12196_v24 = vpop.f32.mrf.mxu0 }
 0x2c2   : > { %v13873_v24 = vld [vmem:[%s19181_s6 + $0xb0] sm:$0xff]  }
 0x2c3   : > { %v16081_v26 = vpop.f32.mrf.mxu1  ;;  %v16083_v10 = vpop.f32.mrf.mxu0  ;;  %12518 = vmatmul.mubr.bf16.vlgmr.msra.gmra.mxu0 %v10555_v15 }
 0x2c4   : > { %12521 = vmatprep.mubr.msk.bf16.mxu0 %vm14437_vm0, %v19364_v47  ;;  %12574 = vmatpush3.bf16.msra.mxu0 %v13872_v5  ;;  %v13875_v5 = vld [vmem:[%s19181_s6 + $0xa8] sm:$0xff]  }
 0x2c5   : > { %v12276_v16 = vpop.f32.mrf.mxu1  ;;  %v12199_v48 = vpop.f32.mrf.mxu0  ;;  %12575 = vmatprep.subr.bf16.mxu0 %v19364_v47 }
 0x2c6   : > { %v14294_v16 = vld [vmem:[#allocation2 + $0x34] sm:$0xf] }
 0x2c7   : > { %v16095_v7 = vpop.f32.mrf.mxu1  ;;  %v16097_v54 = vpop.f32.mrf.mxu0  ;;  %v10556_v55 = vcombine.low %v14294_v16, %v14295_v18  ;;  %v13876_v18 = vld [vmem:[%s19181_s6 + $0xa0] sm:$0xff]  }
 0x2c8   : > { %12576 = vmatpush3.bf16.msra.mxu0 %v13873_v24 }
 0x2c9   : > { %v12279_v15 = vpop.f32.mrf.mxu1  ;;  %v12200_v48 = vpop.f32.mrf.mxu0  ;;  %12577 = vmatprep.subr.bf16.mxu0 %v19364_v47 }
 0x2cb   : > { %v16107_v49 = vpop.f32.mrf.mxu1  ;;  %v2278_v41 = vpop.f32.mrf.mxu0  ;;  %12522 = vmatmul.mubr.bf16.gmra.mxu0 %v10556_v55 }
 0x2cc   : > { %v16110_v24 = vadd.f32 %v2278_v41, %v16017_v61  ;;  %12525 = vmatprep.mubr.msk.bf16.mxu0 %vm14437_vm0, %v19364_v47  ;;  %12578 = vmatpush3.bf16.msra.mxu0 %v13875_v5  ;;  %v13878_v5 = vld [vmem:[%s19181_s6 + $0x98] sm:$0xff]   ;;  %v13922_v41 = vld [vmem:[%s19183_s8 + $0x20] sm:$0xff]  }
 0x2cd   : > { %v12280_v15 = vpop.f32.mrf.mxu1  ;;  %v12203_v48 = vpop.f32.mrf.mxu0  ;;  %12579 = vmatprep.subr.bf16.mxu0 %v19364_v47  ;;  %12472 = vmatpush3.bf16.msra.mxu1 %v13922_v41 }
 0x2ce   : > { %v14296_v48 = vld [vmem:[#allocation2 + $0x3c] sm:$0xf]  ;;  %12473 = vmatprep.subr.bf16.mxu1 %v19364_v47 }
 0x2cf   : > { %v16119_v16 = vpop.f32.mrf.mxu1  ;;  %v2281_v25 = vpop.f32.mrf.mxu0  ;;  %v10557_v20 = vcombine.low %v14296_v48, %v14297_v39  ;;  %v13879_v39 = vld [vmem:[%s19181_s6 + $0x90] sm:$0xff]   ;;  %v13881_v48 = vld [vmem:[%s19181_s6 + $0x88] sm:$0xff]  }
 0x2d0   : > { %v16122_v55 = vadd.f32 %v2281_v25, %v16025_v32  ;;  %12580 = vmatpush3.bf16.msra.mxu0 %v13876_v18 }
 0x2d1   : > { %v12283_v61 = vpop.f32.mrf.mxu1  ;;  %v12204_v15 = vpop.f32.mrf.mxu0  ;;  %12581 = vmatprep.subr.bf16.mxu0 %v19364_v47 }
 0x2d2   : > { %v13925_v61 = vld [vmem:[%s19183_s8 + $0x18] sm:$0xff]  }
 0x2d3   : > { %v16131_v17 = vpop.f32.mrf.mxu1  ;;  %v2286_v32 = vpop.f32.mrf.mxu0  ;;  %12526 = vmatmul.mubr.bf16.gmra.mxu0 %v10557_v20  ;;  %12474 = vmatpush3.bf16.msra.mxu1 %v13925_v61  ;;  %v13928_v61 = vld [vmem:[%s19183_s8 + $0x10] sm:$0xff]  }
 0x2d4   : > { %v16135_v18 = vadd.f32 %v2286_v32, %v16032_v19  ;;  %12529 = vmatprep.mubr.msk.bf16.mxu0 %vm14437_vm0, %v19364_v47  ;;  %12582 = vmatpush3.bf16.msra.mxu0 %v13878_v5 }
 0x2d5   : > { %v12284_v25 = vpop.f32.mrf.mxu1  ;;  %v12207_v41 = vpop.f32.mrf.mxu0  ;;  %12583 = vmatprep.subr.bf16.mxu0 %v19364_v47  ;;  %12475 = vmatprep.subr.bf16.mxu1 %v19364_v47 }
 0x2d6   : > { %v14298_v25 = vld [vmem:[#allocation2 + $0x44] sm:$0xf]  ;;  %v14299_v41 = vld [vmem:[#allocation2 + $0x48] sm:$0xf] }
 0x2d7   : > { %v16146_v20 = vpop.f32.mrf.mxu1  ;;  %v2289_v19 = vpop.f32.mrf.mxu0  ;;  %v10558_v4 = vcombine.low %v14298_v25, %v14299_v41  ;;  %12476 = vmatpush3.bf16.msra.mxu1 %v13928_v61 }
 0x2d8   : > { %v16150_v15 = vadd.f32 %v2289_v19, %v16042_v22  ;;  %12584 = vmatpush3.bf16.msra.mxu0 %v13879_v39  ;;  %12477 = vmatprep.subr.bf16.mxu1 %v19364_v47 }
 0x2d9   : > { %v12339_v5 = vpop.f32.mrf.mxu1  ;;  %v12208_v32 = vpop.f32.mrf.mxu0  ;;  %12585 = vmatprep.subr.bf16.mxu0 %v19364_v47 }
 0x2da   : > { %v13882_v5 = vld [vmem:[%s19181_s6 + $0x80] sm:$0xff]  }
 0x2db   : > { %v16159_v45 = vpop.f32.mrf.mxu1  ;;  %v2294_v22 = vpop.f32.mrf.mxu0  ;;  %12530 = vmatmul.mubr.bf16.gmra.mxu0 %v10558_v4  ;;  %v3878_v4 = vld [vmem:[#allocation2 + $0x50] sm:$0xf] }
 0x2dc   : > { %v16162_v39 = vadd.f32 %v2294_v22, %v16051_v9  ;;  %12533 = vmatprep.mubr.msk.bf16.mxu0 %vm14437_vm0, %v19364_v47  ;;  %12586 = vmatpush3.bf16.msra.mxu0 %v13881_v48  ;;  %v13931_v48 = vld [vmem:[%s19183_s8 + $0x8] sm:$0xff]  }
 0x2dd   : > { %v12340_v19 = vpop.f32.mrf.mxu1  ;;  %v12211_v32 = vpop.f32.mrf.mxu0  ;;  %12587 = vmatprep.subr.bf16.mxu0 %v19364_v47  ;;  %12478 = vmatpush3.bf16.msra.mxu1 %v13931_v48 }
 0x2de   : > { %v14300_v19 = vld [vmem:[#allocation2 + $0x4c] sm:$0xf]  ;;  %12479 = vmatprep.subr.bf16.mxu1 %v19364_v47 }
 0x2df   : > { %v16171_v25 = vpop.f32.mrf.mxu1  ;;  %v2297_v41 = vpop.f32.mrf.mxu0  ;;  %v10559_v32 = vcombine.low %v14300_v19, %v3878_v4 }
 0x2e0   : > { %v16174_v9 = vadd.f32 %v2297_v41, %v16061_v58  ;;  %12588 = vmatpush3.bf16.msra.mxu0 %v13882_v5 }
 0x2e1   : > { %v12343_v61 = vpop.f32.mrf.mxu1  ;;  %v12212_v22 = vpop.f32.mrf.mxu0  ;;  %12645 = vmatprep.subr.bf16.mxu0 %v19364_v47 }
 0x2e2   : > { %v13883_v61 = vld [vmem:[#allocation2 + $0x2c] sm:$0xfe]   ;;  %v2266_v22 = vadd.f32 %v16073_v63, %v15383_v0  ;;  %v2271_v0 = vadd.f32 %v16083_v10, %v15414_v34 }
 0x2e3   : > { %v16182_v46 = vpop.f32.mrf.mxu1  ;;  %v2456_v58 = vpop.f32.mrf.mxu0  ;;  %12534 = vmatmul.mubr.bf16.gmra.mxu0 %v10559_v32  ;;  %v4248_v14 = vrot.slane %v13883_v61, 1  ;;  %v13887_v34 = vld [vmem:[%s19181_s6 + $0x130] sm:$0xff]  }
 0x2e4   : > { %v2495_v5 = vadd.f32 %v2456_v58, %v2263_v2  ;;  %12589 = vmatprep.mubr.msk.bf16.mxu0 %vm14437_vm0, %v19364_v47  ;;  %v13886_v2 = vld [vmem:[%s19181_s6 + $0x138] sm:$0xff]   ;;  %v13933_v58 = vld [vmem:[%s19183_s8] sm:$0xff]  }
 0x2e5   : > { %v12344_v41 = vpop.f32.mrf.mxu1  ;;  %v12231_v4 = vpop.f32.mrf.mxu0  ;;  %v4250_v63 = vsel %vm2357_vm2, %v4248_v14, %v4249_v30  ;;  %12480 = vmatpush3.bf16.msra.mxu1 %v13933_v58 }
 0x2e6   : > { %v16192_v12 = vadd.f32 %v16040_v43, %v2495_v5  ;;  %v13885_v43 = vld [vmem:[#allocation2 + $0x3c] sm:$0xff]   ;;  %12537 = vmatprep.subr.bf16.mxu1 %v19364_v47 }
 0x2e7   : > { %v16189_v19 = vpop.f32.mrf.mxu1  ;;  %v2459_v48 = vpop.f32.mrf.mxu0 }
 0x2e8   : > { %v2496_v32 = vadd.f32 %v2459_v48, %v2266_v22  ;;  %v4251_v22 = vrot.slane %v13885_v43, 1 }
 0x2e9   : > { %v12347_v42 = vpop.f32.mrf.mxu1  ;;  %v12232_v41 = vpop.f32.mrf.mxu0 }
 0x2ea   : > { %v16206_v42 = vadd.f32 %v16048_v13, %v2496_v32  ;;  %v2274_v13 = vadd.f32 %v16097_v54, %v15433_v53  ;;  %v4252_v53 = vsel %vm2357_vm2, %v4249_v30, %v4251_v22  ;;  %v13888_v54 = vld [vmem:[#allocation2 + $0x44] sm:$0xff]  }
 0x2eb   : > { %v16202_v6 = vpop.f32.mrf.mxu1  ;;  %v2464_v5 = vpop.f32.mrf.mxu0  ;;  %12590 = vmatmul.mubr.bf16.vlgmr.msra.gmra.mxu0 %v4250_v63 }
 0x2ec   : > { %v2497_v61 = vadd.f32 %v2464_v5, %v2271_v0  ;;  %12593 = vmatprep.mubr.msk.bf16.mxu0 %vm14437_vm0, %v19364_v47  ;;  %12646 = vmatpush3.bf16.msra.mxu0 %v13886_v2  ;;  %v13889_v2 = vld [vmem:[%s19181_s6 + $0x128] sm:$0xff]  }
 0x2ed   : > { %v12348_v4 = vpop.f32.mrf.mxu1  ;;  %v12235_v14 = vpop.f32.mrf.mxu0  ;;  %12647 = vmatprep.subr.bf16.mxu0 %v19364_v47 }
 0x2ee   : > { %v16220_v48 = vadd.f32 %v16059_v28, %v2497_v61  ;;  %v13890_v4 = vld [vmem:[%s19181_s6 + $0x120] sm:$0xff]  }
 0x2ef   : > { %v16217_v10 = vpop.f32.mrf.mxu1  ;;  %v2467_v32 = vpop.f32.mrf.mxu0 }
 0x2f0   : > { %v2498_v58 = vadd.f32 %v2467_v32, %v2274_v13  ;;  %12648 = vmatpush3.bf16.msra.mxu0 %v13887_v34 }
 0x2f1   : > { %v12351_v41 = vpop.f32.mrf.mxu1  ;;  %v12236_v0 = vpop.f32.mrf.mxu0  ;;  %12649 = vmatprep.subr.bf16.mxu0 %v19364_v47 }
 0x2f2   : > { %v16230_v43 = vadd.f32 %v16064_v35, %v2498_v58  ;;  %v4253_v35 = vrot.slane %v13888_v54, 1  ;;  %v13892_v58 = vld [vmem:[%s19181_s6 + $0x118] sm:$0xff]  }
 0x2f3   : > { %v16226_v63 = vpop.f32.mrf.mxu1  ;;  %v2472_v28 = vpop.f32.mrf.mxu0  ;;  %12594 = vmatmul.mubr.bf16.gmra.mxu0 %v4252_v53  ;;  %v13891_v53 = vld [vmem:[#allocation2 + $0x4c] sm:$0xff]  }
 0x2f4   : > { %v2499_v5 = vadd.f32 %v2472_v28, %v16110_v24  ;;  %12597 = vmatprep.mubr.msk.bf16.mxu0 %vm14437_vm0, %v19364_v47  ;;  %12650 = vmatpush3.bf16.msra.mxu0 %v13889_v2  ;;  %v4254_v0 = vsel %vm2357_vm2, %v4251_v22, %v4253_v35 }
 0x2f5   : > { %v12352_v61 = vpop.f32.mrf.mxu1  ;;  %v12239_v34 = vpop.f32.mrf.mxu0  ;;  %12651 = vmatprep.subr.bf16.mxu0 %v19364_v47 }
 0x2f6   : > { %v16242_v14 = vadd.f32 %v16071_v57, %v2499_v5  ;;  %v13893_v5 = vld [vmem:[%s19181_s6 + $0x110] sm:$0xff]  }
 0x2f7   : > { %v16239_v30 = vpop.f32.mrf.mxu1  ;;  %v2475_v13 = vpop.f32.mrf.mxu0 }
 0x2f8   : > { %v2500_v24 = vadd.f32 %v2475_v13, %v16122_v55  ;;  %12652 = vmatpush3.bf16.msra.mxu0 %v13890_v4 }
 0x2f9   : > { %v12355_v32 = vpop.f32.mrf.mxu1  ;;  %v12240_v41 = vpop.f32.mrf.mxu0  ;;  %12653 = vmatprep.subr.bf16.mxu0 %v19364_v47 }
 0x2fa   : > { %v16253_v57 = vadd.f32 %v16081_v26, %v2500_v24  ;;  %v4255_v26 = vrot.slane %v13891_v53, 1  ;;  %v13895_v24 = vld [vmem:[%s19181_s6 + $0x108] sm:$0xff]  }
 0x2fb   : > { %v16249_v2 = vpop.f32.mrf.mxu1  ;;  %v2480_v54 = vpop.f32.mrf.mxu0  ;;  %12598 = vmatmul.mubr.bf16.gmra.mxu0 %v4254_v0  ;;  %v13894_v0 = vld [vmem:[#allocation2 + $0x54] ss:$0 sps:$4 sm:$0x11]  }
 0x2fc   : > { %v2501_v55 = vadd.f32 %v2480_v54, %v16135_v18  ;;  %12601 = vmatprep.mubr.msk.bf16.mxu0 %vm14437_vm0, %v19364_v47  ;;  %12654 = vmatpush3.bf16.msra.mxu0 %v13892_v58  ;;  %v4256_v41 = vsel %vm2357_vm2, %v4253_v35, %v4255_v26 }
 0x2fd   : > { %v12356_v28 = vpop.f32.mrf.mxu1  ;;  %v12243_v61 = vpop.f32.mrf.mxu0  ;;  %12655 = vmatprep.subr.bf16.mxu0 %v19364_v47 }
 0x2fe   : > { %v16265_v4 = vadd.f32 %v16095_v7, %v2501_v55  ;;  %v13896_v55 = vld [vmem:[%s19181_s6 + $0x100] sm:$0xff]  }
 0x2ff   : > { %v16262_v22 = vpop.f32.mrf.mxu1  ;;  %v2483_v34 = vpop.f32.mrf.mxu0 }
 0x300   : > { %v2502_v18 = vadd.f32 %v2483_v34, %v16150_v15  ;;  %12656 = vmatpush3.bf16.msra.mxu0 %v13893_v5 }
 0x301   : > { %v12411_v13 = vpop.f32.mrf.mxu1  ;;  %v12244_v32 = vpop.f32.mrf.mxu0  ;;  %12657 = vmatprep.subr.bf16.mxu0 %v19364_v47 }
 0x302   : > { %v16276_v7 = vadd.f32 %v16107_v49, %v2502_v18  ;;  %v4257_v49 = vrot.slane %v13894_v0, 1 }
 0x303   : > { %v16272_v58 = vpop.f32.mrf.mxu1  ;;  %v2488_v53 = vpop.f32.mrf.mxu0  ;;  %12602 = vmatmul.mubr.bf16.gmra.mxu0 %v4256_v41 }
 0x304   : > { %v2503_v15 = vadd.f32 %v2488_v53, %v16162_v39  ;;  %12605 = vmatprep.mubr.msk.bf16.mxu0 %vm14437_vm0, %v19364_v47  ;;  %12658 = vmatpush3.bf16.msra.mxu0 %v13895_v24  ;;  %v4258_v24 = vsel %vm2357_vm2, %v4255_v26, %v4257_v49  ;;  %v14302_v49 = vld [vmem:[#allocation2 + $0x40] sm:$0xf] }
 0x305   : > { %v12412_v54 = vpop.f32.mrf.mxu1  ;;  %v12247_v28 = vpop.f32.mrf.mxu0  ;;  %12659 = vmatprep.subr.bf16.mxu0 %v19364_v47 }
 0x306   : > { %v16288_v5 = vadd.f32 %v16119_v16, %v2503_v15 }
 0x307   : > { %v16285_v35 = vpop.f32.mrf.mxu1  ;;  %v2491_v61 = vpop.f32.mrf.mxu0 }
 0x308   : > { %v2504_v39 = vadd.f32 %v2491_v61, %v16174_v9  ;;  %12660 = vmatpush3.bf16.msra.mxu0 %v13896_v55 }
 0x309   : > { %v12415_v34 = vpop.f32.mrf.mxu1  ;;  %v12248_v18 = vpop.f32.mrf.mxu0  ;;  %12717 = vmatprep.subr.bf16.mxu0 %v19364_v47 }
 0x30a   : > { %v16296_v32 = vadd.f32 %v16131_v17, %v2504_v39  ;;  %v13900_v17 = vld [vmem:[%s19181_s6 + $0x1b8] sm:$0xff]  }
 0x30b   : > { %v16292_v13 = vpop.f32.mrf.mxu1  ;;  %v2820_v41 = vpop.f32.mrf.mxu0  ;;  %12606 = vmatmul.mubr.bf16.gmra.mxu0 %v4258_v24 }
 0x30c   : > { %v2859_v16 = vadd.f32 %v2820_v41, %v16192_v12  ;;  %12661 = vmatprep.mubr.msk.bf16.mxu0 %vm14437_vm0, %v19364_v47  ;;  %v14301_v12 = vld [vmem:[#allocation2 + $0x44] sm:$0xf] }
 0x30d   : > { %v12416_v0 = vpop.f32.mrf.mxu1  ;;  %v12303_v9 = vpop.f32.mrf.mxu0  ;;  %v10658_v61 = vcombine.low %v14302_v49, %v14301_v12 }
 0x30e   : > { %v16304_v15 = vadd.f32 %v16146_v20, %v2859_v16 }
 0x30f   : > { %v16301_v53 = vpop.f32.mrf.mxu1  ;;  %v2823_v54 = vpop.f32.mrf.mxu0 }
 0x310   : > { %v2860_v26 = vadd.f32 %v2823_v54, %v16206_v42  ;;  %v13901_v42 = vld [vmem:[%s19181_s6 + $0x1b0] sm:$0xff]   ;;  %v13903_v54 = vld [vmem:[%s19181_s6 + $0x1a8] sm:$0xff]  }
 0x311   : > { %v12419_v55 = vpop.f32.mrf.mxu1  ;;  %v12304_v28 = vpop.f32.mrf.mxu0 }
 0x312   : > { %v16313_v34 = vadd.f32 %v16159_v45, %v2860_v26  ;;  %v14303_v55 = vld [vmem:[#allocation2 + $0x48] sm:$0xf] }
 0x313   : > { %v16310_v39 = vpop.f32.mrf.mxu1  ;;  %v2828_v18 = vpop.f32.mrf.mxu0  ;;  %12662 = vmatmul.mubr.bf16.vlgmr.msra.gmra.mxu0 %v10658_v61 }
 0x314   : > { %v2861_v20 = vadd.f32 %v2828_v18, %v16220_v48  ;;  %12665 = vmatprep.mubr.msk.bf16.mxu0 %vm14437_vm0, %v19364_v47  ;;  %12718 = vmatpush3.bf16.msra.mxu0 %v13900_v17  ;;  %v14304_v17 = vld [vmem:[#allocation2 + $0x4c] sm:$0xf]  ;;  %v13904_v18 = vld [vmem:[%s19181_s6 + $0x1a0] sm:$0xff]  }
 0x315   : > { %v12420_v24 = vpop.f32.mrf.mxu1  ;;  %v12307_v41 = vpop.f32.mrf.mxu0  ;;  %12719 = vmatprep.subr.bf16.mxu0 %v19364_v47  ;;  %v10659_v28 = vcombine.low %v14303_v55, %v14304_v17 }
 0x316   : > { %v16325_v45 = vadd.f32 %v16171_v25, %v2861_v20 }
 0x317   : > { %v16322_v16 = vpop.f32.mrf.mxu1  ;;  %v2831_v0 = vpop.f32.mrf.mxu0 }
 0x318   : > { %v2862_v48 = vadd.f32 %v2831_v0, %v16230_v43  ;;  %12720 = vmatpush3.bf16.msra.mxu0 %v13901_v42  ;;  %v13906_v0 = vld [vmem:[%s19181_s6 + $0x198] sm:$0xff]  }
 0x319   : > { %v12423_v9 = vpop.f32.mrf.mxu1  ;;  %v12308_v26 = vpop.f32.mrf.mxu0  ;;  %12721 = vmatprep.subr.bf16.mxu0 %v19364_v47 }
 0x31a   : > { %v16335_v25 = vadd.f32 %v16182_v46, %v2862_v48  ;;  %v14305_v9 = vld [vmem:[#allocation2 + $0x50] sm:$0xf] }
 0x31b   : > { %v16332_v12 = vpop.f32.mrf.mxu1  ;;  %v2836_v49 = vpop.f32.mrf.mxu0  ;;  %12666 = vmatmul.mubr.bf16.gmra.mxu0 %v10659_v28 }
 0x31c   : > { %v2863_v43 = vadd.f32 %v2836_v49, %v16242_v14  ;;  %12669 = vmatprep.mubr.msk.bf16.mxu0 %vm14437_vm0, %v19364_v47  ;;  %12722 = vmatpush3.bf16.msra.mxu0 %v13903_v54  ;;  %v14306_v54 = vld [vmem:[#allocation2 + $0x54] sm:$0xf] }
 0x31d   : > { %v12424_v61 = vpop.f32.mrf.mxu1  ;;  %v12311_v20 = vpop.f32.mrf.mxu0  ;;  %12723 = vmatprep.subr.bf16.mxu0 %v19364_v47  ;;  %v10660_v26 = vcombine.low %v14305_v9, %v14306_v54  ;;  %v13907_v49 = vld [vmem:[%s19181_s6 + $0x190] sm:$0xff]   ;;  %v4597_v54 = vld [vmem:[#allocation2 + $0x64] sm:$0xf] }
 0x31e   : > { %v16347_v46 = vadd.f32 %v16189_v19, %v2863_v43 }
 0x31f   : > { %v16344_v24 = vpop.f32.mrf.mxu1  ;;  %v2839_v42 = vpop.f32.mrf.mxu0 }
 0x320   : > { %v2864_v14 = vadd.f32 %v2839_v42, %v16253_v57  ;;  %12724 = vmatpush3.bf16.msra.mxu0 %v13904_v18  ;;  %v14307_v42 = vld [vmem:[#allocation2 + $0x58] sm:$0xf] }
 0x321   : > { %v12427_v41 = vpop.f32.mrf.mxu1  ;;  %v12312_v48 = vpop.f32.mrf.mxu0  ;;  %12725 = vmatprep.subr.bf16.mxu0 %v19364_v47 }
 0x322   : > { %v16357_v19 = vadd.f32 %v16202_v6, %v2864_v14  ;;  %v14308_v14 = vld [vmem:[#allocation2 + $0x5c] sm:$0xf] }
 0x323   : > { %v16354_v55 = vpop.f32.mrf.mxu1  ;;  %v2844_v17 = vpop.f32.mrf.mxu0  ;;  %12670 = vmatmul.mubr.bf16.gmra.mxu0 %v10660_v26  ;;  %v10661_v41 = vcombine.low %v14307_v42, %v14308_v14 }
 0x324   : > { %v2865_v57 = vadd.f32 %v2844_v17, %v16265_v4  ;;  %12673 = vmatprep.mubr.msk.bf16.mxu0 %vm14437_vm0, %v19364_v47  ;;  %12726 = vmatpush3.bf16.msra.mxu0 %v13906_v0  ;;  %v13909_v4 = vld [vmem:[%s19181_s6 + $0x188] sm:$0xff]  }
 0x325   : > { %v12428_v28 = vpop.f32.mrf.mxu1  ;;  %v12315_v43 = vpop.f32.mrf.mxu0  ;;  %12727 = vmatprep.subr.bf16.mxu0 %v19364_v47 }
 0x326   : > { %v16367_v61 = vadd.f32 %v16217_v10, %v2865_v57  ;;  %v14309_v57 = vld [vmem:[#allocation2 + $0x60] sm:$0xf]  ;;  %v14310_v43 = vld [vmem:[#allocation2 + $0x58] sm:$0xf] }
 0x327   : > { %v2847_v6 = vpop.f32.mrf.mxu0  ;;  %v10662_v28 = vcombine.low %v14309_v57, %v4597_v54 }
 0x328   : > { %v2866_v18 = vadd.f32 %v2847_v6, %v16276_v7  ;;  %12728 = vmatpush3.bf16.msra.mxu0 %v13907_v49  ;;  %v13910_v7 = vld [vmem:[%s19181_s6 + $0x180] sm:$0xff]   ;;  %v4959_v49 = vld [vmem:[#allocation2 + $0x50] sm:$0x8]  ;;  %v14311_v6 = vld [vmem:[#allocation2 + $0x5c] sm:$0xf] }
 0x329   : > { %v12316_v20 = vpop.f32.mrf.mxu0  ;;  %12729 = vmatprep.subr.bf16.mxu0 %v19364_v47 }
 0x32a   : > { %v16375_v0 = vadd.f32 %v16226_v63, %v2866_v18  ;;  %v10718_v18 = vcombine.low %v14310_v43, %v14311_v6 }
 0x32b   : > { %v2852_v48 = vpop.f32.mrf.mxu0  ;;  %12674 = vmatmul.mubr.bf16.gmra.mxu0 %v10661_v41 }
 0x32c   : > { %v2867_v10 = vadd.f32 %v2852_v48, %v16288_v5  ;;  %12677 = vmatprep.mubr.msk.bf16.mxu0 %vm14437_vm0, %v19364_v47  ;;  %12730 = vmatpush3.bf16.msra.mxu0 %v13909_v4  ;;  %v5015_v41 = vrot.slane %v10718_v18, 3 }
 0x32d   : > { %v12319_v9 = vpop.f32.mrf.mxu0  ;;  %12731 = vmatprep.subr.bf16.mxu0 %v19364_v47 }
 0x32e   : > { %v16385_v26 = vadd.f32 %v16239_v30, %v2867_v10 }
 0x32f   : > { %v2855_v63 = vpop.f32.mrf.mxu0 }
 0x330   : > { %v2868_v17 = vadd.f32 %v2855_v63, %v16296_v32  ;;  %12732 = vmatpush3.bf16.msra.mxu0 %v13910_v7  ;;  %v14312_v32 = vld [vmem:[#allocation2 + $0x54] sm:$0xf]  ;;  %v14313_v63 = vld [vmem:[#allocation2 + $0x60] sm:$0xf] }
 0x331   : > { %v12320_v5 = vpop.f32.mrf.mxu0  ;;  %12789 = vmatprep.subr.bf16.mxu0 %v19364_v47  ;;  %v10717_v42 = vcombine.low %v4959_v49, %v14312_v32  ;;  %v14315_v32 = vld [vmem:[#allocation2 + $0x68] sm:$0xf] }
 0x332   : > { %v16390_v4 = vadd.f32 %v16249_v2, %v2868_v17  ;;  %v13916_v2 = vld [vmem:[%s19181_s6 + $0x238] sm:$0xff]   ;;  %v14314_v17 = vld [vmem:[#allocation2 + $0x64] sm:$0xf] }
 0x333   : > { %v3226_v20 = vpop.f32.mrf.mxu0  ;;  %12678 = vmatmul.mubr.bf16.gmra.mxu0 %v10662_v28  ;;  %v5014_v9 = vrot.slane %v10717_v42, 3  ;;  %v10719_v5 = vcombine.low %v14313_v63, %v14314_v17  ;;  %v14316_v42 = vld [vmem:[#allocation2 + $0x6c] sm:$0xf] }
 0x334   : > { %v3265_v30 = vadd.f32 %v3226_v20, %v16304_v15  ;;  %12733 = vmatprep.mubr.msk.bf16.mxu0 %vm14437_vm0, %v19364_v47 }
 0x335   : > { %v12375_v14 = vpop.f32.mrf.mxu0  ;;  %v5016_v15 = vsel %vm2163_vm1, %v5014_v9, %v5015_v41  ;;  %v5017_v43 = vrot.slane %v10719_v5, 3  ;;  %v14317_v5 = vld [vmem:[#allocation2 + $0x70] sm:$0xf] }
 0x336   : > { %v16396_v48 = vadd.f32 %v16262_v22, %v3265_v30  ;;  %v10720_v14 = vcombine.low %v14315_v32, %v14316_v42 }
 0x337   : > { %v3229_v10 = vpop.f32.mrf.mxu0  ;;  %v5018_v30 = vsel %vm2163_vm1, %v5015_v41, %v5017_v43 }
 0x338   : > { %v3266_v7 = vadd.f32 %v3229_v10, %v16313_v34  ;;  %v13918_v34 = vld [vmem:[%s19181_s6 + $0x230] sm:$0xff]   ;;  %v5019_v41 = vrot.slane %v10720_v14, 3 }
 0x339   : > { %v12376_v54 = vpop.f32.mrf.mxu0 }
 0x33a   : > { %v16404_v57 = vadd.f32 %v16272_v58, %v3266_v7  ;;  %v13923_v7 = vld [vmem:[%s19181_s6 + $0x220] sm:$0xff]   ;;  %v4968_v54 = vld [vmem:[#allocation2 + $0x74] sm:$0xf]  ;;  %v5020_v17 = vsel %vm2163_vm1, %v5017_v43, %v5019_v41 }
 0x33b   : > { %v3234_v28 = vpop.f32.mrf.mxu0  ;;  %12734 = vmatmul.mubr.bf16.vlgmr.msra.gmra.mxu0 %v5016_v15 }
 0x33c   : > { %v3267_v22 = vadd.f32 %v3234_v28, %v16325_v45  ;;  %12737 = vmatprep.mubr.msk.bf16.mxu0 %vm14437_vm0, %v19364_v47  ;;  %12790 = vmatpush3.bf16.msra.mxu0 %v13916_v2  ;;  %v13921_v45 = vld [vmem:[%s19181_s6 + $0x228] sm:$0xff]   ;;  %v10721_v28 = vcombine.low %v14317_v5, %v4968_v54 }
 0x33d   : > { %v12379_v49 = vpop.f32.mrf.mxu0  ;;  %12791 = vmatprep.subr.bf16.mxu0 %v19364_v47 }
 0x33e   : > { %v16414_v6 = vadd.f32 %v16285_v35, %v3267_v22  ;;  %v5021_v43 = vrot.slane %v10721_v28, 3 }
 0x33f   : > { %v3237_v58 = vpop.f32.mrf.mxu0 }
 0x340   : > { %v3268_v18 = vadd.f32 %v3237_v58, %v16335_v25  ;;  %12792 = vmatpush3.bf16.msra.mxu0 %v13918_v34 }
 0x341   : > { %v12380_v20 = vpop.f32.mrf.mxu0  ;;  %12793 = vmatprep.subr.bf16.mxu0 %v19364_v47 }
 0x342   : > { %v16423_v10 = vadd.f32 %v16292_v13, %v3268_v18  ;;  %v5022_v20 = vsel %vm2163_vm1, %v5019_v41, %v5021_v43  ;;  %v13935_v41 = vld [vmem:[#allocation2 + $0x5c] sm:$0xff]  }
 0x343   : > { %v3242_v35 = vpop.f32.mrf.mxu0  ;;  %12738 = vmatmul.mubr.bf16.gmra.mxu0 %v5018_v30  ;;  %v13929_v30 = vld [vmem:[#allocation2 + $0x78] ss:$0 sps:$4 sm:$0x77]  }
 0x344   : > { %v3269_v25 = vadd.f32 %v3242_v35, %v16347_v46  ;;  %12741 = vmatprep.mubr.msk.bf16.mxu0 %vm14437_vm0, %v19364_v47  ;;  %12794 = vmatpush3.bf16.msra.mxu0 %v13921_v45  ;;  %v13926_v46 = vld [vmem:[%s19181_s6 + $0x218] sm:$0xff]   ;;  %v5023_v35 = vrot.slane %v13929_v30, 3 }
 0x345   : > { %v12383_v9 = vpop.f32.mrf.mxu0  ;;  %12795 = vmatprep.subr.bf16.mxu0 %v19364_v47 }
 0x346   : > { %v16433_v2 = vadd.f32 %v16301_v53, %v3269_v25  ;;  %v5024_v9 = vsel %vm2163_vm1, %v5021_v43, %v5023_v35 }
 0x347   : > { %v3245_v13 = vpop.f32.mrf.mxu0 }
 0x348   : > { %v3270_v15 = vadd.f32 %v3245_v13, %v16357_v19  ;;  %12796 = vmatpush3.bf16.msra.mxu0 %v13923_v7  ;;  %v13927_v19 = vld [vmem:[%s19181_s6 + $0x210] sm:$0xff]  }
 0x349   : > { %v12384_v63 = vpop.f32.mrf.mxu0  ;;  %12797 = vmatprep.subr.bf16.mxu0 %v19364_v47 }
 0x34a   : > { %v16442_v22 = vadd.f32 %v16310_v39, %v3270_v15  ;;  %v5377_v63 = vrot.slane %v13935_v41, 1 }
 0x34b   : > { %v3250_v53 = vpop.f32.mrf.mxu0  ;;  %12742 = vmatmul.mubr.bf16.gmra.mxu0 %v5020_v17 }
 0x34c   : > { %v3271_v34 = vadd.f32 %v3250_v53, %v16367_v61  ;;  %12745 = vmatprep.mubr.msk.bf16.mxu0 %vm14437_vm0, %v19364_v47  ;;  %12798 = vmatpush3.bf16.msra.mxu0 %v13926_v46  ;;  %v13930_v61 = vld [vmem:[%s19181_s6 + $0x208] sm:$0xff]  }
 0x34d   : > { %v12387_v49 = vpop.f32.mrf.mxu0  ;;  %12799 = vmatprep.subr.bf16.mxu0 %v19364_v47 }
 0x34e   : > { %v16452_v58 = vadd.f32 %v16322_v16, %v3271_v34  ;;  %v13937_v49 = vld [vmem:[#allocation2 + $0x64] sm:$0xff]  }
 0x34f   : > { %v3253_v39 = vpop.f32.mrf.mxu0 }
 0x350   : > { %v3272_v18 = vadd.f32 %v3253_v39, %v16375_v0  ;;  %12800 = vmatpush3.bf16.msra.mxu0 %v13927_v19  ;;  %v13932_v0 = vld [vmem:[%s19181_s6 + $0x200] sm:$0xff]  }
 0x351   : > { %v12388_v45 = vpop.f32.mrf.mxu0  ;;  %12801 = vmatprep.subr.bf16.mxu0 %v19364_v47 }
 0x352   : > { %v16461_v32 = vadd.f32 %v16332_v12, %v3272_v18 }
 0x353   : > { %v3258_v42 = vpop.f32.mrf.mxu0  ;;  %12746 = vmatmul.mubr.bf16.gmra.mxu0 %v5022_v20  ;;  %v13936_v20 = vld [vmem:[%s19181_s6 + $0x38] sm:$0xff]  }
 0x354   : > { %v3273_v16 = vadd.f32 %v3258_v42, %v16385_v26  ;;  %12749 = vmatprep.mubr.msk.bf16.mxu0 %vm14437_vm0, %v19364_v47  ;;  %12802 = vmatpush3.bf16.msra.mxu0 %v13930_v61  ;;  %v5379_v42 = vrot.slane %v13937_v49, 1 }
 0x355   : > { %v12391_v14 = vpop.f32.mrf.mxu0  ;;  %12803 = vmatprep.subr.bf16.mxu0 %v19364_v47 }
 0x356   : > { %v16471_v25 = vadd.f32 %v16344_v24, %v3273_v16  ;;  %v13934_v24 = vld [vmem:[#allocation2 + $0x54] sm:$0xfe]   ;;  %v13943_v14 = vld [vmem:[%s19181_s6 + $0x68] sm:$0xff]  }
 0x357   : > { %v3261_v12 = vpop.f32.mrf.mxu0  ;;  %v5376_v28 = vrot.slane %v13934_v24, 1  ;;  %v13945_v24 = vld [vmem:[%s19181_s6 + $0x60] sm:$0xff]  }
 0x358   : > { %v3274_v7 = vadd.f32 %v3261_v12, %v16390_v4  ;;  %12804 = vmatpush3.bf16.msra.mxu0 %v13932_v0  ;;  %v16485_v4 = vld [vmem:[%s19182_s7] ss:$0 sm:$0xff]  ;;  %v13939_v12 = vld [vmem:[%s19181_s6 + $0x30] sm:$0xff]  }
 0x359   : > { %v12392_v26 = vpop.f32.mrf.mxu0  ;;  %12861 = vmatprep.subr.bf16.mxu0 %v19364_v47  ;;  %v5378_v19 = vsel %vm2357_vm2, %v5376_v28, %v5377_v63 }
 0x35a   : > { %v16477_v13 = vadd.f32 %v16354_v55, %v3274_v7  ;;  %v5380_v26 = vsel %vm2357_vm2, %v5377_v63, %v5379_v42  ;;  %v13941_v63 = vld [vmem:[%s19181_s6 + $0x28] sm:$0xff]  }
 0x35b   : > { %v3590_v54 = vpop.f32.mrf.mxu0  ;;  %12750 = vmatmul.mubr.bf16.gmra.mxu0 %v5024_v9 }
 0x35c   : > { %v3629_v15 = vadd.f32 %v3590_v54, %v16396_v48  ;;  %12805 = vmatprep.mubr.msk.bf16.mxu0 %vm14437_vm0, %v19364_v47  ;;  %v13938_v48 = vld [vmem:[%s19181_s6 + $0x78] sm:$0xff]  }
 0x35d   : > { %v12447_v46 = vpop.f32.mrf.mxu0 }
 0x35e   : > { %v3646_v5 = vadd.f32 %v16485_v4, %v3629_v15 }
 0x35f   : > { %v3593_v17 = vpop.f32.mrf.mxu0 }
 0x360   : > { %v3630_v55 = vadd.f32 %v3593_v17, %v16404_v57  ;;  %v3656_v39 = vmax.f32 %v3646_v5, 0.0  ;;  %v13940_v57 = vld [vmem:[%s19181_s6 + $0x70] sm:$0xff]  }
 0x361   : > { %v12448_v53 = vpop.f32.mrf.mxu0 }
 0x362   : > { %v3647_v34 = vadd.f32 %v16485_v4, %v3630_v55 }
 0x363   : > { %v3598_v43 = vpop.f32.mrf.mxu0  ;;  %12806 = vmatmul.mubr.bf16.vlgmr.msra.gmra.mxu0 %v5378_v19 }
 0x364   : > { %v3657_v18 = vmax.f32 %v3647_v34, 0.0  ;;  %v3631_v61 = vadd.f32 %v3598_v43, %v16414_v6  ;;  %12809 = vmatprep.mubr.msk.bf16.mxu0 %vm14437_vm0, %v19364_v47  ;;  %12862 = vmatpush3.bf16.msra.mxu0 %v13938_v48  ;;  %v13948_v48 = vld [vmem:[%s19181_s6 + $0x58] sm:$0xff]   ;;  %v13944_v34 = vld [vmem:[%s19181_s6 + $0x20] sm:$0xff]  }
 0x365   : > { %v12451_v45 = vpop.f32.mrf.mxu0  ;;  %12863 = vmatprep.subr.bf16.mxu0 %v19364_v47 }
 0x366   : > { %v3666_v30 = vpack.c.bf16 %v3657_v18, %v3656_v39  ;;  %v3648_v6 = vadd.f32 %v16485_v4, %v3631_v61 }
 0x367   : > { %v3601_v16 = vpop.f32.mrf.mxu0 }
 0x368   : > { %v3632_v0 = vadd.f32 %v3601_v16, %v16423_v10  ;;  %12482 = vmatmul.mubr.bf16.vlgmr.msra.gmra.mxu1 %v3666_v30  ;;  %12864 = vmatpush3.bf16.msra.mxu0 %v13940_v57  ;;  %v13942_v10 = vld [vmem:[#allocation2 + $0x6c] sm:$0xff]   ;;  %v3658_v41 = vmax.f32 %v3648_v6, 0.0 }
 0x369   : > { %12538 = vmatpush3.bf16.msra.mxu1 %v13936_v20  ;;  %v12452_v35 = vpop.f32.mrf.mxu0  ;;  %12485 = vmatprep.mubr.msk.bf16.mxu1 %vm14437_vm0, %v19364_v47  ;;  %v13949_v57 = vld [vmem:[%s19181_s6 + $0x50] sm:$0xff]   ;;  %v13947_v20 = vld [vmem:[%s19181_s6 + $0x18] sm:$0xff]  }
 0x36a   : > { %v3649_v7 = vadd.f32 %v16485_v4, %v3632_v0  ;;  %12539 = vmatprep.subr.bf16.mxu1 %v19364_v47  ;;  %12865 = vmatprep.subr.bf16.mxu0 %v19364_v47  ;;  %v13952_v0 = vld [vmem:[%s19181_s6 + $0x48] sm:$0xff]   ;;  %v13950_v35 = vld [vmem:[%s19181_s6 + $0x10] sm:$0xff]  }
 0x36b   : > { %v3606_v9 = vpop.f32.mrf.mxu0  ;;  %12810 = vmatmul.mubr.bf16.gmra.mxu0 %v5380_v26 }
 0x36c   : > { %v3659_v54 = vmax.f32 %v3649_v7, 0.0  ;;  %v3633_v15 = vadd.f32 %v3606_v9, %v16433_v2  ;;  %12813 = vmatprep.mubr.msk.bf16.mxu0 %vm14437_vm0, %v19364_v47  ;;  %12866 = vmatpush3.bf16.msra.mxu0 %v13943_v14  ;;  %v5381_v2 = vrot.slane %v13942_v10, 1 }
 0x36d   : > { %v12455_v46 = vpop.f32.mrf.mxu0  ;;  %12540 = vmatpush3.bf16.msra.mxu1 %v13939_v12  ;;  %12867 = vmatprep.subr.bf16.mxu0 %v19364_v47 }
 0x36e   : > { %v3667_v17 = vpack.c.bf16 %v3659_v54, %v3658_v41  ;;  %12541 = vmatprep.subr.bf16.mxu1 %v19364_v47  ;;  %v3650_v55 = vadd.f32 %v16485_v4, %v3633_v15  ;;  %v5382_v49 = vsel %vm2357_vm2, %v5379_v42, %v5381_v2  ;;  %v13954_v54 = vld [vmem:[%s19181_s6 + $0x40] sm:$0xff]  }
 0x36f   : > { %v3609_v5 = vpop.f32.mrf.mxu0 }
 0x370   : > { %v3634_v28 = vadd.f32 %v3609_v5, %v16442_v22  ;;  %12486 = vmatmul.mubr.bf16.gmra.mxu1 %v3667_v17  ;;  %12868 = vmatpush3.bf16.msra.mxu0 %v13945_v24  ;;  %v13946_v22 = vld [vmem:[#allocation2 + $0x74] sm:$0xff]   ;;  %v3660_v39 = vmax.f32 %v3650_v55, 0.0  ;;  %v13953_v24 = vld [vmem:[%s19181_s6 + $0x8] sm:$0xff]   ;;  %v13955_v55 = vld [vmem:[%s19181_s6] sm:$0xff]  }
 0x371   : > { %v12456_v53 = vpop.f32.mrf.mxu0  ;;  %12542 = vmatpush3.bf16.msra.mxu1 %v13941_v63  ;;  %12489 = vmatprep.mubr.msk.bf16.mxu1 %vm14437_vm0, %v19364_v47 }
 0x372   : > { %v3651_v19 = vadd.f32 %v16485_v4, %v3634_v28  ;;  %12543 = vmatprep.subr.bf16.mxu1 %v19364_v47  ;;  %12869 = vmatprep.subr.bf16.mxu0 %v19364_v47 }
 0x373   : > { %v3614_v43 = vpop.f32.mrf.mxu0  ;;  %12814 = vmatmul.mubr.bf16.gmra.mxu0 %v5382_v49 }
 0x374   : > { %v3661_v18 = vmax.f32 %v3651_v19, 0.0  ;;  %v3635_v61 = vadd.f32 %v3614_v43, %v16452_v58  ;;  %12817 = vmatprep.mubr.msk.bf16.mxu0 %vm14437_vm0, %v19364_v47  ;;  %12870 = vmatpush3.bf16.msra.mxu0 %v13948_v48  ;;  %v5383_v58 = vrot.slane %v13946_v22, 1  ;;  %v13961_v22 = vld [vmem:[%s19181_s6 + $0xb8] sm:$0xff]  }
 0x375   : > { %v12459_v45 = vpop.f32.mrf.mxu0  ;;  %12544 = vmatpush3.bf16.msra.mxu1 %v13944_v34  ;;  %12871 = vmatprep.subr.bf16.mxu0 %v19364_v47 }
 0x376   : > { %v3668_v30 = vpack.c.bf16 %v3661_v18, %v3660_v39  ;;  %12545 = vmatprep.subr.bf16.mxu1 %v19364_v47  ;;  %v3652_v16 = vadd.f32 %v16485_v4, %v3635_v61  ;;  %v5384_v7 = vsel %vm2357_vm2, %v5381_v2, %v5383_v58  ;;  %v14318_v39 = vld [vmem:[#allocation2 + $0x58] sm:$0xf]  ;;  %v14319_v18 = vld [vmem:[#allocation2 + $0x54] sm:$0xf] }
 0x377   : > { %v3617_v42 = vpop.f32.mrf.mxu0  ;;  %v10816_v61 = vcombine.low %v14319_v18, %v14318_v39  ;;  %v13964_v45 = vld [vmem:[%s19181_s6 + $0xb0] sm:$0xff]  }
 0x378   : > { %v3636_v6 = vadd.f32 %v3617_v42, %v16461_v32  ;;  %12490 = vmatmul.mubr.bf16.gmra.mxu1 %v3668_v30  ;;  %12872 = vmatpush3.bf16.msra.mxu0 %v13949_v57  ;;  %v13951_v32 = vld [vmem:[#allocation2 + $0x7c] ss:$0 sps:$4 sm:$0x11]   ;;  %v3662_v10 = vmax.f32 %v3652_v16, 0.0  ;;  %v13967_v42 = vld [vmem:[%s19181_s6 + $0xa8] sm:$0xff]  }
 0x379   : > { %v12460_v14 = vpop.f32.mrf.mxu0  ;;  %12546 = vmatpush3.bf16.msra.mxu1 %v13947_v20  ;;  %12493 = vmatprep.mubr.msk.bf16.mxu1 %vm14437_vm0, %v19364_v47  ;;  %v5385_v63 = vrot.slane %v13951_v32, 1  ;;  %v13958_v30 = vld [vmem:[%s19181_s6 + $0xf8] sm:$0xff]   ;;  %v13965_v32 = vld [vmem:[%s19181_s6 + $0xe8] sm:$0xff]   ;;  %v13980_v39 = vld [vmem:[#allocation2 + $0x50] ss:$0 sps:$4 sm:$0x77]  }
 0x37a   : > { %v3653_v12 = vadd.f32 %v16485_v4, %v3636_v6  ;;  %12547 = vmatprep.subr.bf16.mxu1 %v19364_v47  ;;  %12873 = vmatprep.subr.bf16.mxu0 %v19364_v47  ;;  %v14320_v6 = vld [vmem:[#allocation2 + $0x5c] sm:$0xf]  ;;  %v19468_v18 = vld [vmem:[#allocation77_spill] sm:$0xff] }
 0x37b   : > { %v3622_v26 = vpop.f32.mrf.mxu0  ;;  %12818 = vmatmul.mubr.bf16.gmra.mxu0 %v5384_v7  ;;  %v5386_v48 = vsel %vm2357_vm2, %v5383_v58, %v5385_v63 }
 0x37c   : > { %v3663_v9 = vmax.f32 %v3653_v12, 0.0  ;;  %v3637_v41 = vadd.f32 %v3622_v26, %v16471_v25  ;;  %12821 = vmatprep.mubr.msk.bf16.mxu0 %vm14437_vm0, %v19364_v47  ;;  %12874 = vmatpush3.bf16.msra.mxu0 %v13952_v0  ;;  %v14321_v0 = vld [vmem:[#allocation2 + $0x60] sm:$0xf] }
 0x37d   : > { %v12463_v15 = vpop.f32.mrf.mxu0  ;;  %12548 = vmatpush3.bf16.msra.mxu1 %v13950_v35  ;;  %12875 = vmatprep.subr.bf16.mxu0 %v19364_v47  ;;  %v10817_v14 = vcombine.low %v14320_v6, %v14321_v0  ;;  %v13962_v35 = vld [vmem:[%s19181_s6 + $0xf0] sm:$0xff]   ;;  %v13970_v12 = vld [vmem:[%s19181_s6 + $0xa0] sm:$0xff]   ;;  %v4065_v6 = vrot.slane %v13980_v39, 3 }
 0x37e   : > { %v3669_v46 = vpack.c.bf16 %v3663_v9, %v3662_v10  ;;  %12549 = vmatprep.subr.bf16.mxu1 %v19364_v47  ;;  %v3654_v17 = vadd.f32 %v16485_v4, %v3637_v41  ;;  %v13973_v10 = vld [vmem:[%s19181_s6 + $0x98] sm:$0xff]   ;;  %v14322_v41 = vld [vmem:[#allocation2 + $0x64] sm:$0xf] }
 0x37f   : > { %v3625_v25 = vpop.f32.mrf.mxu0  ;;  %v13983_v0 = vld [vmem:[#allocation2 + $0x54] sm:$0xfe]  }
 0x380   : > { %v3638_v2 = vadd.f32 %v3625_v25, %v16477_v13  ;;  %12494 = vmatmul.mubr.bf16.gmra.mxu1 %v3669_v46  ;;  %12876 = vmatpush3.bf16.msra.mxu0 %v13954_v54  ;;  %v3664_v53 = vmax.f32 %v3654_v17, 0.0  ;;  %v14323_v54 = vld [vmem:[#allocation2 + $0x68] sm:$0xf]  ;;  %v13975_v46 = vld [vmem:[%s19181_s6 + $0x90] sm:$0xff]   ;;  %v13972_v25 = vld [vmem:[%s19181_s6 + $0xd8] sm:$0xff]  }
 0x381   : > { %v12464_v5 = vpop.f32.mrf.mxu0  ;;  %12550 = vmatpush3.bf16.msra.mxu1 %v13953_v24  ;;  %12497 = vmatprep.mubr.msk.bf16.mxu1 %vm14437_vm0, %v19364_v47  ;;  %v10818_v15 = vcombine.low %v14322_v41, %v14323_v54  ;;  %v13968_v24 = vld [vmem:[%s19181_s6 + $0xe0] sm:$0xff]  }
 0x382   : > { %v3655_v28 = vadd.f32 %v16485_v4, %v3638_v2  ;;  %12551 = vmatprep.subr.bf16.mxu1 %v19364_v47  ;;  %12933 = vmatprep.subr.bf16.mxu0 %v19364_v47  ;;  %v13978_v2 = vld [vmem:[%s19181_s6 + $0x88] sm:$0xff]  }
 0x383   : > { %v16590_v13 = vpop.f32.mrf.mxu0  ;;  %12822 = vmatmul.mubr.bf16.gmra.mxu0 %v5386_v48 }
 0x384   : > { %v3665_v34 = vmax.f32 %v3655_v28, 0.0  ;;  %12877 = vmatprep.mubr.msk.bf16.mxu0 %vm14437_vm0, %v19364_v47  ;;  %v14325_v28 = vld [vmem:[#allocation2 + $0x70] sm:$0xf] }
 0x385   : > { %v12519_v19 = vpop.f32.mrf.mxu0  ;;  %12552 = vmatpush3.bf16.msra.mxu1 %v13955_v55  ;;  %v14324_v55 = vld [vmem:[#allocation2 + $0x6c] sm:$0xf] }
 0x386   : > { %v3670_v49 = vpack.c.bf16 %v3665_v34, %v3664_v53  ;;  %12609 = vmatprep.subr.bf16.mxu1 %v19364_v47  ;;  %v10819_v48 = vcombine.low %v14324_v55, %v14325_v28  ;;  %v13976_v53 = vld [vmem:[%s19181_s6 + $0xd0] sm:$0xff]   ;;  %v13981_v34 = vld [vmem:[%s19181_s6 + $0x80] sm:$0xff]   ;;  %v13994_v28 = vld [vmem:[%s19181_s6 + $0x128] sm:$0xff]  }
 0x387   : > { %v16595_v4 = vpop.f32.mrf.mxu0  ;;  %v19470_v55 = vld [vmem:[#allocation83_spill] sm:$0xff] }
 0x388   : > { %12498 = vmatmul.mubr.bf16.gmra.mxu1 %v3670_v49  ;;  %v13979_v49 = vld [vmem:[%s19181_s6 + $0xc8] sm:$0xff]  }
 0x389   : > { %v12520_v43 = vpop.f32.mrf.mxu0  ;;  %12553 = vmatprep.mubr.msk.bf16.mxu1 %vm14437_vm0, %v19364_v47 }
 0x38b   : > { %v16602_v57 = vpop.f32.mrf.mxu0  ;;  %12878 = vmatmul.mubr.bf16.vlgmr.msra.gmra.mxu0 %v10816_v61 }
 0x38c   : > { %12881 = vmatprep.mubr.msk.bf16.mxu0 %vm14437_vm0, %v19364_v47  ;;  %12934 = vmatpush3.bf16.msra.mxu0 %v13961_v22  ;;  %v5762_v22 = vld [vmem:[#allocation2 + $0x78] sm:$0xf] }
 0x38d   : > { %v12523_v20 = vpop.f32.mrf.mxu0  ;;  %12935 = vmatprep.subr.bf16.mxu0 %v19364_v47 }
 0x38f   : > { %v16613_v58 = vpop.f32.mrf.mxu0 }
 0x390   : > { %12554 = vmatmul.mubr.bf16.vlgmr.msra.gmra.mxu1 %v15390_v29  ;;  %12936 = vmatpush3.bf16.msra.mxu0 %v13964_v45  ;;  %v14326_v45 = vld [vmem:[#allocation2 + $0x74] sm:$0xf] }
 0x391   : > { %12610 = vmatpush3.bf16.msra.mxu1 %v13958_v30  ;;  %v12524_v16 = vpop.f32.mrf.mxu0  ;;  %12557 = vmatprep.mubr.msk.bf16.mxu1 %vm14437_vm0, %v19364_v47  ;;  %v10820_v20 = vcombine.low %v14326_v45, %v5762_v22  ;;  %v13982_v30 = vld [vmem:[%s19181_s6 + $0xc0] sm:$0xff]  }
 0x392   : > { %12611 = vmatprep.subr.bf16.mxu1 %v19364_v47  ;;  %12937 = vmatprep.subr.bf16.mxu0 %v19364_v47  ;;  %v13997_v22 = vld [vmem:[%s19181_s6 + $0x120] sm:$0xff]  }
 0x393   : > { %v16626_v29 = vpop.f32.mrf.mxu0  ;;  %12882 = vmatmul.mubr.bf16.gmra.mxu0 %v10817_v14 }
 0x394   : > { %12885 = vmatprep.mubr.msk.bf16.mxu0 %vm14437_vm0, %v19364_v47  ;;  %12938 = vmatpush3.bf16.msra.mxu0 %v13967_v42  ;;  %v13984_v42 = vld [vmem:[#allocation2 + $0x5c] sm:$0xff]  }
 0x395   : > { %v12527_v7 = vpop.f32.mrf.mxu0  ;;  %12612 = vmatpush3.bf16.msra.mxu1 %v13962_v35  ;;  %12939 = vmatprep.subr.bf16.mxu0 %v19364_v47  ;;  %v6133_v35 = vrot.slane %v13984_v42, 1 }
 0x396   : > { %12613 = vmatprep.subr.bf16.mxu1 %v19364_v47  ;;  %v19469_v7 = vld [vmem:[#allocation76_spill] sm:$0xff] }
 0x397   : > { %v16638_v26 = vpop.f32.mrf.mxu0 }
 0x398   : > { %12558 = vmatmul.mubr.bf16.gmra.mxu1 %v15405_v38  ;;  %12940 = vmatpush3.bf16.msra.mxu0 %v13970_v12 }
 0x399   : > { %v12528_v9 = vpop.f32.mrf.mxu0  ;;  %12614 = vmatpush3.bf16.msra.mxu1 %v13965_v32  ;;  %12561 = vmatprep.mubr.msk.bf16.mxu1 %vm14437_vm0, %v19364_v47  ;;  %v4066_v32 = vsel %vm2163_vm1, %v19469_v7, %v4065_v6  ;;  %v13995_v6 = vld [vmem:[%s19181_s6 + $0x160] sm:$0xff]   ;;  %v14002_v7 = vld [vmem:[%s19181_s6 + $0x110] sm:$0xff]  }
 0x39a   : > { %12615 = vmatprep.subr.bf16.mxu1 %v19364_v47  ;;  %12941 = vmatprep.subr.bf16.mxu0 %v19364_v47  ;;  %v13988_v9 = vld [vmem:[%s19181_s6 + $0x138] sm:$0xff]  }
 0x39b   : > { %v16651_v38 = vpop.f32.mrf.mxu0  ;;  %12886 = vmatmul.mubr.bf16.gmra.mxu0 %v10818_v15  ;;  %v13987_v15 = vld [vmem:[#allocation2 + $0x64] sm:$0xff]  }
 0x39c   : > { %12889 = vmatprep.mubr.msk.bf16.mxu0 %vm14437_vm0, %v19364_v47  ;;  %12942 = vmatpush3.bf16.msra.mxu0 %v13973_v10  ;;  %v6132_v10 = vrot.slane %v13983_v0, 1 }
 0x39d   : > { %v12531_v63 = vpop.f32.mrf.mxu0  ;;  %12616 = vmatpush3.bf16.msra.mxu1 %v13968_v24  ;;  %12943 = vmatprep.subr.bf16.mxu0 %v19364_v47 }
 0x39e   : > { %12617 = vmatprep.subr.bf16.mxu1 %v19364_v47  ;;  %v6134_v54 = vsel %vm2357_vm2, %v6132_v10, %v6133_v35  ;;  %v13999_v10 = vld [vmem:[%s19181_s6 + $0x158] sm:$0xff]  }
 0x39f   : > { %v16663_v17 = vpop.f32.mrf.mxu0 }
 0x3a0   : > { %12562 = vmatmul.mubr.bf16.gmra.mxu1 %v15420_v36  ;;  %12944 = vmatpush3.bf16.msra.mxu0 %v13975_v46  ;;  %v13991_v46 = vld [vmem:[%s19181_s6 + $0x130] sm:$0xff]  }
 0x3a1   : > { %v12532_v5 = vpop.f32.mrf.mxu0  ;;  %12618 = vmatpush3.bf16.msra.mxu1 %v13972_v25  ;;  %12565 = vmatprep.mubr.msk.bf16.mxu1 %vm14437_vm0, %v19364_v47  ;;  %v13986_v25 = vld [vmem:[%s19181_s6 + $0x178] sm:$0xff]  }
 0x3a2   : > { %12619 = vmatprep.subr.bf16.mxu1 %v19364_v47  ;;  %12945 = vmatprep.subr.bf16.mxu0 %v19364_v47 }
 0x3a3   : > { %v16676_v36 = vpop.f32.mrf.mxu0  ;;  %12890 = vmatmul.mubr.bf16.gmra.mxu0 %v10819_v48 }
 0x3a4   : > { %12893 = vmatprep.mubr.msk.bf16.mxu0 %vm14437_vm0, %v19364_v47  ;;  %12946 = vmatpush3.bf16.msra.mxu0 %v13978_v2  ;;  %v6135_v2 = vrot.slane %v13987_v15, 1 }
 0x3a5   : > { %v12535_v19 = vpop.f32.mrf.mxu0  ;;  %12620 = vmatpush3.bf16.msra.mxu1 %v13976_v53  ;;  %12947 = vmatprep.subr.bf16.mxu0 %v19364_v47  ;;  %v13989_v53 = vld [vmem:[%s19181_s6 + $0x170] sm:$0xff]  }
 0x3a6   : > { %12621 = vmatprep.subr.bf16.mxu1 %v19364_v47  ;;  %v13993_v19 = vld [vmem:[#allocation2 + $0x6c] sm:$0xff]  }
 0x3a7   : > { %v16688_v43 = vpop.f32.mrf.mxu0 }
 0x3a8   : > { %12566 = vmatmul.mubr.bf16.gmra.mxu1 %v19468_v18  ;;  %12948 = vmatpush3.bf16.msra.mxu0 %v13981_v34  ;;  %v6136_v34 = vsel %vm2357_vm2, %v6133_v35, %v6135_v2  ;;  %v13992_v18 = vld [vmem:[%s19181_s6 + $0x168] sm:$0xff]  }
 0x3a9   : > { %v12536_v61 = vpop.f32.mrf.mxu0  ;;  %12622 = vmatpush3.bf16.msra.mxu1 %v13979_v49  ;;  %12569 = vmatprep.mubr.msk.bf16.mxu1 %vm14437_vm0, %v19364_v47 }
 0x3aa   : > { %12623 = vmatprep.subr.bf16.mxu1 %v19364_v47  ;;  %13005 = vmatprep.subr.bf16.mxu0 %v19364_v47  ;;  %v6137_v61 = vrot.slane %v13993_v19, 1 }
 0x3ab   : > { %v16698_v16 = vpop.f32.mrf.mxu0  ;;  %12894 = vmatmul.mubr.bf16.gmra.mxu0 %v10820_v20  ;;  %v19471_v20 = vld [vmem:[#allocation85_spill] sm:$0xff] }
 0x3ac   : > { %12949 = vmatprep.mubr.msk.bf16.mxu0 %vm14437_vm0, %v19364_v47  ;;  %v6138_v0 = vsel %vm2357_vm2, %v6135_v2, %v6137_v61  ;;  %v14008_v2 = vld [vmem:[%s19181_s6 + $0x100] sm:$0xff]  }
 0x3ad   : > { %v12591_v14 = vpop.f32.mrf.mxu0  ;;  %12624 = vmatpush3.bf16.msra.mxu1 %v13982_v30  ;;  %v14000_v30 = vld [vmem:[%s19181_s6 + $0x118] sm:$0xff]  }
 0x3ae   : > { %12681 = vmatprep.subr.bf16.mxu1 %v19364_v47  ;;  %v13998_v14 = vld [vmem:[#allocation2 + $0x74] sm:$0xff]  }
 0x3af   : > { %v16703_v12 = vpop.f32.mrf.mxu0 }
 0x3b0   : > { %12570 = vmatmul.mubr.bf16.gmra.mxu1 %v4066_v32 }
 0x3b1   : > { %v12592_v41 = vpop.f32.mrf.mxu0  ;;  %12625 = vmatprep.mubr.msk.bf16.mxu1 %vm14437_vm0, %v19364_v47 }
 0x3b3   : > { %v16713_v24 = vpop.f32.mrf.mxu0  ;;  %12950 = vmatmul.mubr.bf16.vlgmr.msra.gmra.mxu0 %v6134_v54  ;;  %v14005_v54 = vld [vmem:[%s19181_s6 + $0x108] sm:$0xff]  }
 0x3b4   : > { %12953 = vmatprep.mubr.msk.bf16.mxu0 %vm14437_vm0, %v19364_v47  ;;  %13006 = vmatpush3.bf16.msra.mxu0 %v13988_v9  ;;  %v6139_v9 = vrot.slane %v13998_v14, 1  ;;  %v14327_v14 = vld [vmem:[#allocation2 + $0x6c] sm:$0xf] }
 0x3b5   : > { %v12595_v63 = vpop.f32.mrf.mxu0  ;;  %13007 = vmatprep.subr.bf16.mxu0 %v19364_v47 }
 0x3b6   : > { %v6140_v63 = vsel %vm2357_vm2, %v6137_v61, %v6139_v9 }
 0x3b7   : > { %v16724_v5 = vpop.f32.mrf.mxu0 }
 0x3b8   : > { %12626 = vmatmul.mubr.bf16.vlgmr.msra.gmra.mxu1 %v19470_v55  ;;  %13008 = vmatpush3.bf16.msra.mxu0 %v13991_v46  ;;  %v14003_v46 = vld [vmem:[%s19181_s6 + $0x150] sm:$0xff]  }
 0x3b9   : > { %12682 = vmatpush3.bf16.msra.mxu1 %v13986_v25  ;;  %v12596_v48 = vpop.f32.mrf.mxu0  ;;  %12629 = vmatprep.mubr.msk.bf16.mxu1 %vm14437_vm0, %v19364_v47  ;;  %v14004_v25 = vld [vmem:[#allocation2 + $0x7c] ss:$0 sps:$4 sm:$0x11]  }
 0x3ba   : > { %12683 = vmatprep.subr.bf16.mxu1 %v19364_v47  ;;  %13009 = vmatprep.subr.bf16.mxu0 %v19364_v47  ;;  %v6141_v48 = vrot.slane %v14004_v25, 1 }
 0x3bb   : > { %v16738_v49 = vpop.f32.mrf.mxu0  ;;  %12954 = vmatmul.mubr.bf16.gmra.mxu0 %v6136_v34  ;;  %v14007_v34 = vld [vmem:[#allocation2 + $0x64] ss:$0 sps:$4 sm:$0x77]  }
 0x3bc   : > { %12957 = vmatprep.mubr.msk.bf16.mxu0 %vm14437_vm0, %v19364_v47  ;;  %13010 = vmatpush3.bf16.msra.mxu0 %v13994_v28  ;;  %v14006_v28 = vld [vmem:[%s19181_s6 + $0x148] sm:$0xff]  }
 0x3bd   : > { %v12599_v39 = vpop.f32.mrf.mxu0  ;;  %12684 = vmatpush3.bf16.msra.mxu1 %v13989_v53  ;;  %13011 = vmatprep.subr.bf16.mxu0 %v19364_v47 }
 0x3be   : > { %12685 = vmatprep.subr.bf16.mxu1 %v19364_v47  ;;  %v6142_v39 = vsel %vm2357_vm2, %v6139_v9, %v6141_v48 }
 0x3bf   : > { %v16750_v45 = vpop.f32.mrf.mxu0 }
 0x3c0   : > { %12630 = vmatmul.mubr.bf16.gmra.mxu1 %v19471_v20  ;;  %13012 = vmatpush3.bf16.msra.mxu0 %v13997_v22  ;;  %v14009_v22 = vld [vmem:[%s19181_s6 + $0x140] sm:$0xff]  }
 0x3c1   : > { %v12600_v42 = vpop.f32.mrf.mxu0  ;;  %12686 = vmatpush3.bf16.msra.mxu1 %v13992_v18  ;;  %12633 = vmatprep.mubr.msk.bf16.mxu1 %vm14437_vm0, %v19364_v47 }
 0x3c2   : > { %12687 = vmatprep.subr.bf16.mxu1 %v19364_v47  ;;  %13013 = vmatprep.subr.bf16.mxu0 %v19364_v47  ;;  %v14012_v42 = vld [vmem:[#allocation2 + $0x48] sm:$0xff]  }
 0x3c3   : > { %v16764_v35 = vpop.f32.mrf.mxu0  ;;  %12958 = vmatmul.mubr.bf16.gmra.mxu0 %v6138_v0 }
 0x3c4   : > { %12961 = vmatprep.mubr.msk.bf16.mxu0 %vm14437_vm0, %v19364_v47  ;;  %13014 = vmatpush3.bf16.msra.mxu0 %v14000_v30 }
 0x3c5   : > { %v12603_v32 = vpop.f32.mrf.mxu0  ;;  %12688 = vmatpush3.bf16.msra.mxu1 %v13995_v6  ;;  %13015 = vmatprep.subr.bf16.mxu0 %v19364_v47  ;;  %v14016_v6 = vld [vmem:[%s19181_s6 + $0x1b8] sm:$0xff]  }
 0x3c6   : > { %12689 = vmatprep.subr.bf16.mxu1 %v19364_v47 }
 0x3c7   : > { %v16776_v41 = vpop.f32.mrf.mxu0 }
 0x3c8   : > { %12634 = vmatmul.mubr.bf16.gmra.mxu1 %v15552_v3  ;;  %13016 = vmatpush3.bf16.msra.mxu0 %v14002_v7  ;;  %v14328_v7 = vld [vmem:[#allocation2 + $0x68] sm:$0xf] }
 0x3c9   : > { %v12604_v15 = vpop.f32.mrf.mxu0  ;;  %12690 = vmatpush3.bf16.msra.mxu1 %v13999_v10  ;;  %12637 = vmatprep.mubr.msk.bf16.mxu1 %vm14437_vm0, %v19364_v47  ;;  %v10919_v32 = vcombine.low %v14328_v7, %v14327_v14  ;;  %v14011_v10 = vld [vmem:[#allocation2 + $0x40] sm:$0xfe]   ;;  %v14024_v7 = vld [vmem:[#allocation2 + $0x58] sm:$0xff]  }
 0x3ca   : > { %12691 = vmatprep.subr.bf16.mxu1 %v19364_v47  ;;  %13017 = vmatprep.subr.bf16.mxu0 %v19364_v47 }
 0x3cb   : > { %v16790_v3 = vpop.f32.mrf.mxu0  ;;  %12962 = vmatmul.mubr.bf16.gmra.mxu0 %v6140_v63  ;;  %v14013_v63 = vld [vmem:[%s19181_s6 + $0x1f8] sm:$0xff]  }
 0x3cc   : > { %12965 = vmatprep.mubr.msk.bf16.mxu0 %vm14437_vm0, %v19364_v47  ;;  %13018 = vmatpush3.bf16.msra.mxu0 %v14005_v54  ;;  %v4813_v54 = vrot.slane %v14012_v42, 1 }
 0x3cd   : > { %v12607_v55 = vpop.f32.mrf.mxu0  ;;  %12692 = vmatpush3.bf16.msra.mxu1 %v14003_v46  ;;  %13019 = vmatprep.subr.bf16.mxu0 %v19364_v47  ;;  %v4812_v46 = vrot.slane %v14011_v10, 1 }
 0x3ce   : > { %12693 = vmatprep.subr.bf16.mxu1 %v19364_v47  ;;  %v14018_v55 = vld [vmem:[#allocation2 + $0x50] sm:$0xff]  }
 0x3cf   : > { %v16802_v53 = vpop.f32.mrf.mxu0 }
 0x3d0   : > { %12638 = vmatmul.mubr.bf16.gmra.mxu1 %v15580_v1  ;;  %13020 = vmatpush3.bf16.msra.mxu0 %v14008_v2  ;;  %v4459_v1 = vrot.slane %v14007_v34, 3  ;;  %v4814_v2 = vsel %vm2357_vm2, %v4812_v46, %v4813_v54  ;;  %v14329_v34 = vld [vmem:[#allocation2 + $0x70] sm:$0xf] }
 0x3d1   : > { %v12608_v19 = vpop.f32.mrf.mxu0  ;;  %12694 = vmatpush3.bf16.msra.mxu1 %v14006_v28  ;;  %12641 = vmatprep.mubr.msk.bf16.mxu1 %vm14437_vm0, %v19364_v47  ;;  %v14022_v28 = vld [vmem:[%s19181_s6 + $0x1a8] sm:$0xff]  }
 0x3d2   : > { %12695 = vmatprep.subr.bf16.mxu1 %v19364_v47  ;;  %13077 = vmatprep.subr.bf16.mxu0 %v19364_v47  ;;  %v4460_v30 = vsel %vm2163_vm1, %v15566_v27, %v4459_v1  ;;  %v14019_v27 = vld [vmem:[%s19181_s6 + $0x1b0] sm:$0xff]  }
 0x3d3   : > { %v16813_v18 = vpop.f32.mrf.mxu0  ;;  %12966 = vmatmul.mubr.bf16.gmra.mxu0 %v6142_v39  ;;  %v14330_v19 = vld [vmem:[#allocation2 + $0x74] sm:$0xf] }
 0x3d4   : > { %13021 = vmatprep.mubr.msk.bf16.mxu0 %vm14437_vm0, %v19364_v47  ;;  %v14017_v39 = vld [vmem:[%s19181_s6 + $0x1f0] sm:$0xff]  }
 0x3d5   : > { %v12663_v61 = vpop.f32.mrf.mxu0  ;;  %12696 = vmatpush3.bf16.msra.mxu1 %v14009_v22  ;;  %v10920_v22 = vcombine.low %v14329_v34, %v14330_v19 }
 0x3d6   : > { %12753 = vmatprep.subr.bf16.mxu1 %v19364_v47  ;;  %v4815_v61 = vrot.slane %v14018_v55, 1  ;;  %v14030_v55 = vld [vmem:[%s19181_s6 + $0x190] sm:$0xff]  }
 0x3d7   : > { %v16818_v20 = vpop.f32.mrf.mxu0 }
 0x3d8   : > { %12642 = vmatmul.mubr.bf16.gmra.mxu1 %v4460_v30  ;;  %v14025_v30 = vld [vmem:[%s19181_s6 + $0x1a0] sm:$0xff]   ;;  %v4816_v14 = vsel %vm2357_vm2, %v4813_v54, %v4815_v61 }
 0x3d9   : > { %v12664_v0 = vpop.f32.mrf.mxu0  ;;  %12697 = vmatprep.mubr.msk.bf16.mxu1 %vm14437_vm0, %v19364_v47 }
 0x3db   : > { %v16827_v9 = vpop.f32.mrf.mxu0  ;;  %13022 = vmatmul.mubr.bf16.vlgmr.msra.gmra.mxu0 %v10919_v32  ;;  %v14028_v32 = vld [vmem:[%s19181_s6 + $0x198] sm:$0xff]  }
 0x3dc   : > { %13025 = vmatprep.mubr.msk.bf16.mxu0 %vm14437_vm0, %v19364_v47  ;;  %13078 = vmatpush3.bf16.msra.mxu0 %v14016_v6  ;;  %v14020_v6 = vld [vmem:[%s19181_s6 + $0x1e8] sm:$0xff]  }
 0x3dd   : > { %v12667_v15 = vpop.f32.mrf.mxu0  ;;  %13079 = vmatprep.subr.bf16.mxu0 %v19364_v47 }
 0x3de   : > { %v14332_v15 = vld [vmem:[#allocation2 + $0x7c] sm:$0xf] }
 0x3df   : > { %v16838_v25 = vpop.f32.mrf.mxu0 }
 0x3e0   : > { %12698 = vmatmul.mubr.bf16.vlgmr.msra.gmra.mxu1 %v4814_v2  ;;  %13080 = vmatpush3.bf16.msra.mxu0 %v14019_v27  ;;  %v14331_v27 = vld [vmem:[#allocation2 + $0x78] sm:$0xf]  ;;  %v4817_v2 = vrot.slane %v14024_v7, 1  ;;  %v14031_v7 = vld [vmem:[%s19181_s6 + $0x1d0] sm:$0xff]  }
 0x3e1   : > { %12754 = vmatpush3.bf16.msra.mxu1 %v14013_v63  ;;  %v12668_v48 = vpop.f32.mrf.mxu0  ;;  %12701 = vmatprep.mubr.msk.bf16.mxu1 %vm14437_vm0, %v19364_v47  ;;  %v10921_v46 = vcombine.low %v14331_v27, %v14332_v15  ;;  %v14023_v63 = vld [vmem:[%s19181_s6 + $0x1e0] sm:$0xff]   ;;  %v14034_v15 = vld [vmem:[%s19181_s6 + $0x1c8] sm:$0xff]  }
 0x3e2   : > { %12755 = vmatprep.subr.bf16.mxu1 %v19364_v47  ;;  %13081 = vmatprep.subr.bf16.mxu0 %v19364_v47  ;;  %v14027_v48 = vld [vmem:[%s19181_s6 + $0x1d8] sm:$0xff]   ;;  %v4818_v19 = vsel %vm2357_vm2, %v4815_v61, %v4817_v2 }
 0x3e3   : > { %v16851_v1 = vpop.f32.mrf.mxu0  ;;  %13026 = vmatmul.mubr.bf16.gmra.mxu0 %v10920_v22  ;;  %v14029_v22 = vld [vmem:[#allocation2 + $0x60] sm:$0xff]  }
 0x3e4   : > { %13029 = vmatprep.mubr.msk.bf16.mxu0 %vm14437_vm0, %v19364_v47  ;;  %13082 = vmatpush3.bf16.msra.mxu0 %v14022_v28 }
 0x3e5   : > { %v12671_v42 = vpop.f32.mrf.mxu0  ;;  %12756 = vmatpush3.bf16.msra.mxu1 %v14017_v39  ;;  %13083 = vmatprep.subr.bf16.mxu0 %v19364_v47  ;;  %v14033_v39 = vld [vmem:[%s19181_s6 + $0x188] sm:$0xff]  }
 0x3e6   : > { %12757 = vmatprep.subr.bf16.mxu1 %v19364_v47  ;;  %v14333_v42 = vld [vmem:[#allocation2 + $0x80] sm:$0xf] }
 0x3e7   : > { %v16863_v0 = vpop.f32.mrf.mxu0 }
 0x3e8   : > { %12702 = vmatmul.mubr.bf16.gmra.mxu1 %v4816_v14  ;;  %13084 = vmatpush3.bf16.msra.mxu0 %v14025_v30 }
 0x3e9   : > { %v12672_v10 = vpop.f32.mrf.mxu0  ;;  %12758 = vmatpush3.bf16.msra.mxu1 %v14020_v6  ;;  %12705 = vmatprep.mubr.msk.bf16.mxu1 %vm14437_vm0, %v19364_v47  ;;  %v14334_v6 = vld [vmem:[#allocation2 + $0x84] sm:$0xf] }
 0x3ea   : > { %12759 = vmatprep.subr.bf16.mxu1 %v19364_v47  ;;  %13085 = vmatprep.subr.bf16.mxu0 %v19364_v47  ;;  %v10922_v14 = vcombine.low %v14333_v42, %v14334_v6  ;;  %v14036_v10 = vld [vmem:[%s19181_s6 + $0x180] sm:$0xff]  }
 0x3eb   : > { %v16876_v54 = vpop.f32.mrf.mxu0  ;;  %13030 = vmatmul.mubr.bf16.gmra.mxu0 %v10921_v46  ;;  %v6481_v46 = vld [vmem:[#allocation2 + $0x8c] sm:$0xf]  ;;  %v14336_v42 = vld [vmem:[#allocation2 + $0x80] sm:$0xf]  ;;  %v14337_v6 = vld [vmem:[#allocation2 + $0x84] sm:$0xf] }
 0x3ec   : > { %13033 = vmatprep.mubr.msk.bf16.mxu0 %vm14437_vm0, %v19364_v47  ;;  %13086 = vmatpush3.bf16.msra.mxu0 %v14028_v32  ;;  %v4819_v32 = vrot.slane %v14029_v22, 1 }
 0x3ed   : > { %v12675_v28 = vpop.f32.mrf.mxu0  ;;  %12760 = vmatpush3.bf16.msra.mxu1 %v14023_v63  ;;  %13087 = vmatprep.subr.bf16.mxu0 %v19364_v47 }
 0x3ee   : > { %12761 = vmatprep.subr.bf16.mxu1 %v19364_v47  ;;  %v14035_v28 = vld [vmem:[#allocation2 + $0x68] ss:$0 sps:$4 sm:$0x11]  }
 0x3ef   : > { %v16888_v34 = vpop.f32.mrf.mxu0 }
 0x3f0   : > { %12706 = vmatmul.mubr.bf16.gmra.mxu1 %v4818_v19  ;;  %13088 = vmatpush3.bf16.msra.mxu0 %v14030_v55  ;;  %v4820_v55 = vsel %vm2357_vm2, %v4817_v2, %v4819_v32  ;;  %v14335_v19 = vld [vmem:[#allocation2 + $0x88] sm:$0xf]  ;;  %v10979_v2 = vcombine.low %v14336_v42, %v14337_v6  ;;  %v14340_v42 = vld [vmem:[#allocation2 + $0x8c] sm:$0xf] }
 0x3f1   : > { %v12676_v30 = vpop.f32.mrf.mxu0  ;;  %12762 = vmatpush3.bf16.msra.mxu1 %v14027_v48  ;;  %12709 = vmatprep.mubr.msk.bf16.mxu1 %vm14437_vm0, %v19364_v47  ;;  %v10923_v22 = vcombine.low %v14335_v19, %v6481_v46 }
 0x3f2   : > { %12763 = vmatprep.subr.bf16.mxu1 %v19364_v47  ;;  %13089 = vmatprep.subr.bf16.mxu0 %v19364_v47  ;;  %v6843_v30 = vld [vmem:[#allocation2 + $0x78] sm:$0x8]  ;;  %v6899_v46 = vrot.slane %v10979_v2, 3 }
 0x3f3   : > { %v16901_v61 = vpop.f32.mrf.mxu0  ;;  %13034 = vmatmul.mubr.bf16.gmra.mxu0 %v10922_v14 }
 0x3f4   : > { %19472 = vst [vmem:[#allocation77_spill] sm:$0xff] %v16901_v61  ;;  %13037 = vmatprep.mubr.msk.bf16.mxu0 %vm14437_vm0, %v19364_v47  ;;  %13090 = vmatpush3.bf16.msra.mxu0 %v14033_v39  ;;  %v14037_v39 = vld [vmem:[%s19181_s6 + $0x1c0] sm:$0xff]  }
 0x3f5   : > { %v12679_v27 = vpop.f32.mrf.mxu0  ;;  %12764 = vmatpush3.bf16.msra.mxu1 %v14031_v7  ;;  %13091 = vmatprep.subr.bf16.mxu0 %v19364_v47  ;;  %v4821_v7 = vrot.slane %v14035_v28, 1  ;;  %v14042_v28 = vld [vmem:[%s19181_s6 + $0x238] sm:$0xff]  }
 0x3f6   : > { %12765 = vmatprep.subr.bf16.mxu1 %v19364_v47 }
 0x3f7   : > { %v16913_v63 = vpop.f32.mrf.mxu0 }
 0x3f8   : > { %19473 = vst [vmem:[#allocation76_spill] sm:$0xff] %v16913_v63  ;;  %12710 = vmatmul.mubr.bf16.gmra.mxu1 %v4820_v55  ;;  %13092 = vmatpush3.bf16.msra.mxu0 %v14036_v10  ;;  %v14338_v10 = vld [vmem:[#allocation2 + $0x7c] sm:$0xf]  ;;  %v14086_v63 = vld [vmem:[#allocation2 + $0x84] sm:$0xff]  }
 0x3f9   : > { %v12680_v48 = vpop.f32.mrf.mxu0  ;;  %12766 = vmatpush3.bf16.msra.mxu1 %v14034_v15  ;;  %12713 = vmatprep.mubr.msk.bf16.mxu1 %vm14437_vm0, %v19364_v47  ;;  %v10978_v27 = vcombine.low %v6843_v30, %v14338_v10 }
 0x3fa   : > { %12767 = vmatprep.subr.bf16.mxu1 %v19364_v47  ;;  %13149 = vmatprep.subr.bf16.mxu0 %v19364_v47  ;;  %v4822_v48 = vsel %vm2357_vm2, %v4819_v32, %v4821_v7  ;;  %v14044_v32 = vld [vmem:[%s19181_s6 + $0x230] sm:$0xff]  }
 0x3fb   : > { %v16923_v14 = vpop.f32.mrf.mxu0  ;;  %13038 = vmatmul.mubr.bf16.gmra.mxu0 %v10923_v22  ;;  %v6898_v19 = vrot.slane %v10978_v27, 3 }
 0x3fc   : > { %13093 = vmatprep.mubr.msk.bf16.mxu0 %vm14437_vm0, %v19364_v47 }
 0x3fd   : > { %v12735_v15 = vpop.f32.mrf.mxu0  ;;  %12768 = vmatpush3.bf16.msra.mxu1 %v14037_v39  ;;  %v6900_v30 = vsel %vm2163_vm1, %v6898_v19, %v6899_v46  ;;  %v14339_v39 = vld [vmem:[#allocation2 + $0x88] sm:$0xf] }
 0x3fe   : > { %12825 = vmatprep.subr.bf16.mxu1 %v19364_v47  ;;  %v10980_v6 = vcombine.low %v14339_v39, %v14340_v42  ;;  %v19474_v15 = vld [vmem:[#allocation80_spill] sm:$0xff]  ;;  %v14341_v39 = vld [vmem:[#allocation2 + $0x90] sm:$0xf]  ;;  %v14342_v42 = vld [vmem:[#allocation2 + $0x94] sm:$0xf] }
 0x3ff   : > { %v16928_v55 = vpop.f32.mrf.mxu0 }
 0x400   : > { %12714 = vmatmul.mubr.bf16.gmra.mxu1 %v4822_v48  ;;  %v6901_v10 = vrot.slane %v10980_v6, 3  ;;  %v19475_v48 = vld [vmem:[#allocation81_spill] sm:$0xff]  ;;  %v10981_v6 = vcombine.low %v14341_v39, %v14342_v42  ;;  %v14343_v42 = vld [vmem:[#allocation2 + $0x98] sm:$0xf] }
 0x401   : > { %v12736_v22 = vpop.f32.mrf.mxu0  ;;  %12769 = vmatprep.mubr.msk.bf16.mxu1 %vm14437_vm0, %v19364_v47  ;;  %v19476_v19 = vcombine.low %v19474_v15, %v19475_v48 }
 0x402   : > { %v14046_v22 = vld [vmem:[%s19181_s6 + $0x228] sm:$0xff]   ;;  %v6903_v48 = vrot.slane %v10981_v6, 3 }
 0x403   : > { %v16937_v2 = vpop.f32.mrf.mxu0  ;;  %13094 = vmatmul.mubr.bf16.vlgmr.msra.gmra.mxu0 %v6900_v30  ;;  %v6902_v30 = vsel %vm2163_vm1, %v6899_v46, %v6901_v10  ;;  %v6852_v46 = vld [vmem:[#allocation2 + $0x9c] sm:$0xf] }
 0x404   : > { %13097 = vmatprep.mubr.msk.bf16.mxu0 %vm14437_vm0, %v19364_v47  ;;  %13150 = vmatpush3.bf16.msra.mxu0 %v14042_v28  ;;  %v6904_v39 = vsel %vm2163_vm1, %v6901_v10, %v6903_v48  ;;  %v10982_v6 = vcombine.low %v14343_v42, %v6852_v46  ;;  %v19480_v10 = vld [vmem:[#allocation88_spill] sm:$0xff] }
 0x405   : > { %v12739_v7 = vpop.f32.mrf.mxu0  ;;  %13151 = vmatprep.subr.bf16.mxu0 %v19364_v47 }
 0x407   : > { %v16945_v27 = vpop.f32.mrf.mxu0 }
 0x408   : > { %12770 = vmatmul.mubr.bf16.vlgmr.msra.gmra.mxu1 %v19476_v19  ;;  %13152 = vmatpush3.bf16.msra.mxu0 %v14044_v32  ;;  %v14048_v32 = vld [vmem:[%s19181_s6 + $0x220] sm:$0xff]  }
 0x409   : > { %v12740_v28 = vpop.f32.mrf.mxu0  ;;  %12773 = vmatprep.mubr.msk.bf16.mxu1 %vm14437_vm0, %v19364_v47  ;;  %13153 = vmatprep.subr.bf16.mxu0 %v19364_v47 }
 0x40a   : > { %v19477_v28 = vcombine.low %v15538_v23, %v15526_v11  ;;  %v14052_v11 = vld [vmem:[%s19181_s6 + $0x210] sm:$0xff]  }
 0x40b   : > { %v16957_v7 = vpop.f32.mrf.mxu0  ;;  %13098 = vmatmul.mubr.bf16.gmra.mxu0 %v6902_v30 }
 0x40c   : > { %13101 = vmatprep.mubr.msk.bf16.mxu0 %vm14437_vm0, %v19364_v47  ;;  %13154 = vmatpush3.bf16.msra.mxu0 %v14046_v22  ;;  %v14050_v22 = vld [vmem:[%s19181_s6 + $0x218] sm:$0xff]  }
 0x40d   : > { %v12743_v15 = vpop.f32.mrf.mxu0  ;;  %13155 = vmatprep.subr.bf16.mxu0 %v19364_v47 }
 0x40f   : > { %v16965_v19 = vpop.f32.mrf.mxu0 }
 0x410   : > { %12774 = vmatmul.mubr.bf16.gmra.mxu1 %v19477_v28  ;;  %13156 = vmatpush3.bf16.msra.mxu0 %v14048_v32  ;;  %v6905_v32 = vrot.slane %v10982_v6, 3  ;;  %v14053_v6 = vld [vmem:[#allocation2 + $0xa0] ss:$0 sps:$4 sm:$0x77]  }
 0x411   : > { %v12744_v30 = vpop.f32.mrf.mxu0  ;;  %12777 = vmatprep.mubr.msk.bf16.mxu1 %vm14437_vm0, %v19364_v47  ;;  %13157 = vmatprep.subr.bf16.mxu0 %v19364_v47 }
 0x412   : > { %v19481_v30 = vld [vmem:[#allocation89_spill] sm:$0xff]  ;;  %v6906_v42 = vsel %vm2163_vm1, %v6903_v48, %v6905_v32 }
 0x413   : > { %v16977_v15 = vpop.f32.mrf.mxu0  ;;  %13102 = vmatmul.mubr.bf16.gmra.mxu0 %v6904_v39  ;;  %v19482_v46 = vcombine.low %v19480_v10, %v19481_v30  ;;  %v14054_v39 = vld [vmem:[%s19181_s6 + $0x208] sm:$0xff]   ;;  %v6907_v30 = vrot.slane %v14053_v6, 3  ;;  %v5161_v6 = vld [vmem:[#allocation2 + $0x78] sm:$0xf] }
 0x414   : > { %19478 = vst [vmem:[#allocation83_spill] sm:$0xff] %v16977_v15  ;;  %13105 = vmatprep.mubr.msk.bf16.mxu0 %vm14437_vm0, %v19364_v47  ;;  %13158 = vmatpush3.bf16.msra.mxu0 %v14050_v22  ;;  %v19486_v48 = vld [vmem:[#allocation93_spill] sm:$0xff] }
 0x415   : > { %v12747_v23 = vpop.f32.mrf.mxu0  ;;  %13159 = vmatprep.subr.bf16.mxu0 %v19364_v47 }
 0x417   : > { %v16985_v28 = vpop.f32.mrf.mxu0 }
 0x418   : > { %19479 = vst [vmem:[#allocation85_spill] sm:$0xff] %v16985_v28  ;;  %12778 = vmatmul.mubr.bf16.gmra.mxu1 %v19482_v46  ;;  %13160 = vmatpush3.bf16.msra.mxu0 %v14052_v11  ;;  %v14056_v11 = vld [vmem:[%s19181_s6 + $0x200] sm:$0xff]   ;;  %v8017_v28 = vrot.slane %v14086_v63, 1  ;;  %v14087_v63 = vld [vmem:[#allocation2 + $0x8c] sm:$0xff]  }
 0x419   : > { %v12748_v22 = vpop.f32.mrf.mxu0  ;;  %12781 = vmatprep.mubr.msk.bf16.mxu1 %vm14437_vm0, %v19364_v47  ;;  %13161 = vmatprep.subr.bf16.mxu0 %v19364_v47 }
 0x41a   : > { %v19485_v22 = vld [vmem:[#allocation92_spill] sm:$0xff] }
 0x41b   : > { %v16997_v23 = vpop.f32.mrf.mxu0  ;;  %13106 = vmatmul.mubr.bf16.gmra.mxu0 %v6906_v42  ;;  %v19487_v62 = vcombine.low %v19485_v22, %v19486_v48  ;;  %v7261_v48 = vrot.slane %v14058_v33, 1 }
 0x41c   : > { %19483 = vst [vmem:[#allocation80_spill] sm:$0xff] %v16997_v23  ;;  %13109 = vmatprep.mubr.msk.bf16.mxu0 %vm14437_vm0, %v19364_v47  ;;  %13162 = vmatpush3.bf16.msra.mxu0 %v14054_v39  ;;  %v6908_v39 = vsel %vm2163_vm1, %v6905_v32, %v6907_v30  ;;  %v14060_v32 = vld [vmem:[%s19181_s6 + $0x78] sm:$0xff]  }
 0x41d   : > { %v12751_v10 = vpop.f32.mrf.mxu0  ;;  %13163 = vmatprep.subr.bf16.mxu0 %v19364_v47 }
 0x41f   : > { %v17005_v46 = vpop.f32.mrf.mxu0 }
 0x420   : > { %19484 = vst [vmem:[#allocation81_spill] sm:$0xff] %v17005_v46  ;;  %12782 = vmatmul.mubr.bf16.gmra.mxu1 %v19487_v62  ;;  %13164 = vmatpush3.bf16.msra.mxu0 %v14056_v11  ;;  %v14344_v62 = vld [vmem:[#allocation2 + $0x74] sm:$0xf] }
 0x421   : > { %v12752_v42 = vpop.f32.mrf.mxu0  ;;  %12785 = vmatprep.mubr.msk.bf16.mxu1 %vm14437_vm0, %v19364_v47  ;;  %13221 = vmatprep.subr.bf16.mxu0 %v19364_v47  ;;  %v10751_v11 = vcombine.low %v14344_v62, %v5161_v6 }
 0x423   : > { %v17014_v10 = vpop.f32.mrf.mxu0  ;;  %13110 = vmatmul.mubr.bf16.gmra.mxu0 %v6908_v39 }
 0x424   : > { %13165 = vmatprep.mubr.msk.bf16.mxu0 %vm14437_vm0, %v19364_v47 }
 0x425   : > { %v12807_v22 = vpop.f32.mrf.mxu0 }
 0x426   : > { %v7262_v22 = vsel %vm2357_vm2, %v7260_v37, %v7261_v48  ;;  %v14103_v37 = vld [vmem:[%s19183_s8 + $0x38] sm:$0xff]  }
 0x427   : > { %v17018_v42 = vpop.f32.mrf.mxu0  ;;  %12826 = vmatpush3.bf16.msra.mxu1 %v14103_v37 }
 0x428   : > { %v17020_v52 = vpop.f32.mrf.mxu1  ;;  %12786 = vmatmul.mubr.bf16.gmra.mxu1 %v10751_v11  ;;  %12827 = vmatprep.subr.bf16.mxu1 %v19364_v47 }
 0x429   : > { %19488 = vst [vmem:[#allocation88_spill] sm:$0xff] %v17020_v52  ;;  %v12808_v30 = vpop.f32.mrf.mxu0  ;;  %12841 = vmatprep.mubr.msk.bf16.mxu1 %vm14437_vm0, %v19364_v47 }
 0x42a   : > { %v12483_v39 = vpop.f32.mrf.mxu1  ;;  %v7263_v30 = vrot.slane %v14059_v44, 1 }
 0x42b   : > { %v17028_v6 = vpop.f32.mrf.mxu0  ;;  %13166 = vmatmul.mubr.bf16.vlgmr.msra.gmra.mxu0 %v7262_v22 }
 0x42c   : > { %v17030_v33 = vpop.f32.mrf.mxu1  ;;  %13169 = vmatprep.mubr.msk.bf16.mxu0 %vm14437_vm0, %v19364_v47  ;;  %13222 = vmatpush3.bf16.msra.mxu0 %v14060_v32  ;;  %v14063_v32 = vld [vmem:[%s19181_s6 + $0x68] sm:$0xff]  }
 0x42d   : > { %19489 = vst [vmem:[#allocation89_spill] sm:$0xff] %v17030_v33  ;;  %v12811_v62 = vpop.f32.mrf.mxu0  ;;  %13223 = vmatprep.subr.bf16.mxu0 %v19364_v47 }
 0x42e   : > { %v12484_v11 = vpop.f32.mrf.mxu1  ;;  %v7264_v62 = vsel %vm2357_vm2, %v7261_v48, %v7263_v30  ;;  %v14106_v48 = vld [vmem:[%s19183_s8 + $0x30] sm:$0xff]  }
 0x42f   : > { %v17041_v39 = vpop.f32.mrf.mxu0  ;;  %v14062_v11 = vld [vmem:[#allocation2 + $0x94] sm:$0xff]   ;;  %12828 = vmatpush3.bf16.msra.mxu1 %v14106_v48  ;;  %v14065_v48 = vld [vmem:[#allocation2 + $0x9c] sm:$0xff]  }
 0x430   : > { %v17043_v22 = vpop.f32.mrf.mxu1  ;;  %13224 = vmatpush3.bf16.msra.mxu0 %v14061_v60  ;;  %12829 = vmatprep.subr.bf16.mxu1 %v19364_v47 }
 0x431   : > { %19490 = vst [vmem:[#allocation92_spill] sm:$0xff] %v17043_v22  ;;  %v12812_v52 = vpop.f32.mrf.mxu0  ;;  %13225 = vmatprep.subr.bf16.mxu0 %v19364_v47 }
 0x432   : > { %v12487_v44 = vpop.f32.mrf.mxu1  ;;  %v14064_v52 = vld [vmem:[%s19181_s6 + $0x60] sm:$0xff]  }
 0x433   : > { %v17051_v33 = vpop.f32.mrf.mxu0  ;;  %13170 = vmatmul.mubr.bf16.gmra.mxu0 %v7264_v62  ;;  %v7265_v44 = vrot.slane %v14062_v11, 1 }
 0x434   : > { %v17053_v56 = vpop.f32.mrf.mxu1  ;;  %13173 = vmatprep.mubr.msk.bf16.mxu0 %vm14437_vm0, %v19364_v47  ;;  %13226 = vmatpush3.bf16.msra.mxu0 %v14063_v32  ;;  %v14066_v32 = vld [vmem:[%s19181_s6 + $0x58] sm:$0xff]  }
 0x435   : > { %19491 = vst [vmem:[#allocation93_spill] sm:$0xff] %v17053_v56  ;;  %v12815_v60 = vpop.f32.mrf.mxu0  ;;  %13227 = vmatprep.subr.bf16.mxu0 %v19364_v47  ;;  %v7266_v22 = vsel %vm2357_vm2, %v7263_v30, %v7265_v44 }
 0x436   : > { %v12488_v37 = vpop.f32.mrf.mxu1 }
 0x437   : > { %v17064_v62 = vpop.f32.mrf.mxu0  ;;  %v14109_v37 = vld [vmem:[%s19183_s8 + $0x28] sm:$0xff]  }
 0x438   : > { %v17066_v56 = vpop.f32.mrf.mxu1  ;;  %13228 = vmatpush3.bf16.msra.mxu0 %v14064_v52  ;;  %12830 = vmatpush3.bf16.msra.mxu1 %v14109_v37 }
 0x439   : > { %19492 = vst [vmem:[#allocation138_spill] sm:$0xff] %v17066_v56  ;;  %v12816_v60 = vpop.f32.mrf.mxu0  ;;  %13229 = vmatprep.subr.bf16.mxu0 %v19364_v47  ;;  %12831 = vmatprep.subr.bf16.mxu1 %v19364_v47 }
 0x43a   : > { %v12491_v11 = vpop.f32.mrf.mxu1  ;;  %v14067_v60 = vld [vmem:[%s19181_s6 + $0x50] sm:$0xff]  }
 0x43b   : > { %v17077_v31 = vpop.f32.mrf.mxu0  ;;  %13174 = vmatmul.mubr.bf16.gmra.mxu0 %v7266_v22  ;;  %v7267_v11 = vrot.slane %v14065_v48, 1  ;;  %v14112_v22 = vld [vmem:[%s19183_s8 + $0x20] sm:$0xff]  }
 0x43c   : > { %19493 = vst [vmem:[#allocation139_spill] sm:$0xff] %v17077_v31  ;;  %v17079_v52 = vpop.f32.mrf.mxu1  ;;  %13177 = vmatprep.mubr.msk.bf16.mxu0 %vm14437_vm0, %v19364_v47  ;;  %13230 = vmatpush3.bf16.msra.mxu0 %v14066_v32  ;;  %v14069_v32 = vld [vmem:[%s19181_s6 + $0x48] sm:$0xff]  }
 0x43d   : > { %19494 = vst [vmem:[#allocation140_spill] sm:$0xff] %v17079_v52  ;;  %v12819_v56 = vpop.f32.mrf.mxu0  ;;  %13231 = vmatprep.subr.bf16.mxu0 %v19364_v47  ;;  %12832 = vmatpush3.bf16.msra.mxu1 %v14112_v22  ;;  %v14070_v22 = vld [vmem:[%s19181_s6 + $0x40] sm:$0xff]  }
 0x43e   : > { %v12492_v30 = vpop.f32.mrf.mxu1  ;;  %12833 = vmatprep.subr.bf16.mxu1 %v19364_v47 }
 0x43f   : > { %v17091_v37 = vpop.f32.mrf.mxu0  ;;  %v7268_v30 = vsel %vm2357_vm2, %v7265_v44, %v7267_v11 }
 0x440   : > { %19495 = vst [vmem:[#allocation141_spill] sm:$0xff] %v17091_v37  ;;  %v17093_v52 = vpop.f32.mrf.mxu1  ;;  %13232 = vmatpush3.bf16.msra.mxu0 %v14067_v60 }
 0x441   : > { %19496 = vst [vmem:[#allocation142_spill] sm:$0xff] %v17093_v52  ;;  %v12820_v56 = vpop.f32.mrf.mxu0  ;;  %13233 = vmatprep.subr.bf16.mxu0 %v19364_v47  ;;  %12834 = vmatpush3.bf16.msra.mxu1 %v14114_v59 }
 0x442   : > { %v12495_v48 = vpop.f32.mrf.mxu1  ;;  %12835 = vmatprep.subr.bf16.mxu1 %v19364_v47 }
 0x443   : > { %v17104_v52 = vpop.f32.mrf.mxu0  ;;  %13178 = vmatmul.mubr.bf16.gmra.mxu0 %v7268_v30  ;;  %v7269_v48 = vrot.slane %v14068_v50, 1 }
 0x444   : > { %19497 = vst [vmem:[#allocation143_spill] sm:$0xff] %v17104_v52  ;;  %v17106_v60 = vpop.f32.mrf.mxu1  ;;  %13181 = vmatprep.mubr.msk.bf16.mxu0 %vm14437_vm0, %v19364_v47  ;;  %13234 = vmatpush3.bf16.msra.mxu0 %v14069_v32 }
 0x445   : > { %19498 = vst [vmem:[#allocation144_spill] sm:$0xff] %v17106_v60  ;;  %v12823_v56 = vpop.f32.mrf.mxu0  ;;  %13235 = vmatprep.subr.bf16.mxu0 %v19364_v47  ;;  %v7270_v40 = vsel %vm2357_vm2, %v7267_v11, %v7269_v48  ;;  %v14074_v11 = vld [vmem:[%s19181_s6 + $0xb8] sm:$0xff]   ;;  %v14345_v48 = vld [vmem:[#allocation2 + $0x80] sm:$0xf] }
 0x446   : > { %v12496_v44 = vpop.f32.mrf.mxu1 }
 0x447   : > { %v17115_v21 = vpop.f32.mrf.mxu0 }
 0x448   : > { %19499 = vst [vmem:[#allocation145_spill] sm:$0xff] %v17115_v21  ;;  %v17117_v30 = vpop.f32.mrf.mxu1  ;;  %13236 = vmatpush3.bf16.msra.mxu0 %v14070_v22 }
 0x449   : > { %19500 = vst [vmem:[#allocation146_spill] sm:$0xff] %v17117_v30  ;;  %v12824_v60 = vpop.f32.mrf.mxu0  ;;  %13293 = vmatprep.subr.bf16.mxu0 %v19364_v47 }
 0x44a   : > { %v12499_v32 = vpop.f32.mrf.mxu1  ;;  %v14117_v60 = vld [vmem:[%s19183_s8 + $0x10] sm:$0xff]  }
 0x44b   : > { %v17121_v51 = vpop.f32.mrf.mxu0  ;;  %13182 = vmatmul.mubr.bf16.gmra.mxu0 %v7270_v40  ;;  %v14346_v32 = vld [vmem:[#allocation2 + $0x7c] sm:$0xf]  ;;  %12836 = vmatpush3.bf16.msra.mxu1 %v14117_v60 }
 0x44c   : > { %19501 = vst [vmem:[#allocation147_spill] sm:$0xff] %v17121_v51  ;;  %v17123_v56 = vpop.f32.mrf.mxu1  ;;  %13237 = vmatprep.mubr.msk.bf16.mxu0 %vm14437_vm0, %v19364_v47  ;;  %12837 = vmatprep.subr.bf16.mxu1 %v19364_v47  ;;  %v14348_v51 = vld [vmem:[#allocation2 + $0x88] sm:$0xf] }
 0x44d   : > { %19502 = vst [vmem:[#allocation148_spill] sm:$0xff] %v17123_v56  ;;  %v12879_v50 = vpop.f32.mrf.mxu0  ;;  %v11077_v56 = vcombine.low %v14346_v32, %v14345_v48 }
 0x44e   : > { %v12500_v59 = vpop.f32.mrf.mxu1 }
 0x44f   : > { %v17127_v44 = vpop.f32.mrf.mxu0 }
 0x450   : > { %19503 = vst [vmem:[#allocation149_spill] sm:$0xff] %v17127_v44  ;;  %v17132_v22 = vpop.f32.mrf.mxu1 }
 0x451   : > { %v12880_v40 = vpop.f32.mrf.mxu0  ;;  %v4155_v31 = vadd.f32 %v17132_v22, %v16590_v13 }
 0x452   : > { %v12555_v30 = vpop.f32.mrf.mxu1  ;;  %v14075_v40 = vld [vmem:[%s19181_s6 + $0xb0] sm:$0xff]  }
 0x453   : > { %v17138_v50 = vpop.f32.mrf.mxu0  ;;  %13238 = vmatmul.mubr.bf16.vlgmr.msra.gmra.mxu0 %v11077_v56  ;;  %v14122_v30 = vld [vmem:[%s19183_s8 + $0x8] sm:$0xff]   ;;  %v14123_v56 = vld [vmem:[%s19183_s8] sm:$0xff]  }
 0x454   : > { %19504 = vst [vmem:[#allocation150_spill] sm:$0xff] %v17138_v50  ;;  %v17140_v59 = vpop.f32.mrf.mxu1  ;;  %13241 = vmatprep.mubr.msk.bf16.mxu0 %vm14437_vm0, %v19364_v47  ;;  %13294 = vmatpush3.bf16.msra.mxu0 %v14074_v11  ;;  %v14347_v50 = vld [vmem:[#allocation2 + $0x84] sm:$0xf] }
 0x455   : > { %v12883_v44 = vpop.f32.mrf.mxu0  ;;  %13295 = vmatprep.subr.bf16.mxu0 %v19364_v47  ;;  %12838 = vmatpush3.bf16.msra.mxu1 %v14122_v30 }
 0x456   : > { %v12556_v60 = vpop.f32.mrf.mxu1  ;;  %v14077_v44 = vld [vmem:[%s19181_s6 + $0xa8] sm:$0xff]   ;;  %12839 = vmatprep.subr.bf16.mxu1 %v19364_v47 }
 0x457   : > { %v17151_v48 = vpop.f32.mrf.mxu0  ;;  %v11078_v60 = vcombine.low %v14347_v50, %v14348_v51 }
 0x458   : > { %19505 = vst [vmem:[#allocation151_spill] sm:$0xff] %v17151_v48  ;;  %v17156_v11 = vpop.f32.mrf.mxu1  ;;  %13296 = vmatpush3.bf16.msra.mxu0 %v14075_v40  ;;  %v14078_v40 = vld [vmem:[%s19181_s6 + $0xa0] sm:$0xff]  }
 0x459   : > { %v12884_v32 = vpop.f32.mrf.mxu0  ;;  %13297 = vmatprep.subr.bf16.mxu0 %v19364_v47  ;;  %12840 = vmatpush3.bf16.msra.mxu1 %v14123_v56  ;;  %v14080_v56 = vld [vmem:[%s19181_s6 + $0x98] sm:$0xff]  }
 0x45a   : > { %v12559_v30 = vpop.f32.mrf.mxu1  ;;  %12897 = vmatprep.subr.bf16.mxu1 %v19364_v47 }
 0x45b   : > { %v17163_v48 = vpop.f32.mrf.mxu0  ;;  %13242 = vmatmul.mubr.bf16.gmra.mxu0 %v11078_v60  ;;  %v14349_v30 = vld [vmem:[#allocation2 + $0x8c] sm:$0xf] }
 0x45c   : > { %19506 = vst [vmem:[#allocation152_spill] sm:$0xff] %v17163_v48  ;;  %v17165_v8 = vpop.f32.mrf.mxu1  ;;  %13245 = vmatprep.mubr.msk.bf16.mxu0 %vm14437_vm0, %v19364_v47  ;;  %13298 = vmatpush3.bf16.msra.mxu0 %v14077_v44  ;;  %v14350_v48 = vld [vmem:[#allocation2 + $0x90] sm:$0xf] }
 0x45d   : > { %v12887_v32 = vpop.f32.mrf.mxu0  ;;  %13299 = vmatprep.subr.bf16.mxu0 %v19364_v47  ;;  %v11079_v21 = vcombine.low %v14349_v30, %v14350_v48 }
 0x45e   : > { %v12560_v51 = vpop.f32.mrf.mxu1 }
 0x45f   : > { %v17174_v50 = vpop.f32.mrf.mxu0 }
 0x460   : > { %19507 = vst [vmem:[#allocation153_spill] sm:$0xff] %v17174_v50  ;;  %v17176_v60 = vpop.f32.mrf.mxu1  ;;  %13300 = vmatpush3.bf16.msra.mxu0 %v14078_v40  ;;  %v14081_v40 = vld [vmem:[%s19181_s6 + $0x90] sm:$0xff]  }
 0x461   : > { %v12888_v44 = vpop.f32.mrf.mxu0  ;;  %13301 = vmatprep.subr.bf16.mxu0 %v19364_v47  ;;  %v14351_v50 = vld [vmem:[#allocation2 + $0x94] sm:$0xf] }
 0x462   : > { %v12563_v32 = vpop.f32.mrf.mxu1 }
 0x463   : > { %v17182_v46 = vpop.f32.mrf.mxu0  ;;  %13246 = vmatmul.mubr.bf16.gmra.mxu0 %v11079_v21  ;;  %v14083_v21 = vld [vmem:[%s19181_s6 + $0x88] sm:$0xff]  }
 0x464   : > { %19508 = vst [vmem:[#allocation154_spill] sm:$0xff] %v17182_v46  ;;  %v17184_v51 = vpop.f32.mrf.mxu1  ;;  %13249 = vmatprep.mubr.msk.bf16.mxu0 %vm14437_vm0, %v19364_v47  ;;  %13302 = vmatpush3.bf16.msra.mxu0 %v14080_v56  ;;  %v14352_v56 = vld [vmem:[#allocation2 + $0x98] sm:$0xf] }
 0x465   : > { %v12891_v44 = vpop.f32.mrf.mxu0  ;;  %13303 = vmatprep.subr.bf16.mxu0 %v19364_v47  ;;  %v11080_v52 = vcombine.low %v14351_v50, %v14352_v56  ;;  %v7646_v56 = vld [vmem:[#allocation2 + $0xa0] sm:$0xf] }
 0x466   : > { %v12564_v48 = vpop.f32.mrf.mxu1 }
 0x467   : > { %v17192_v30 = vpop.f32.mrf.mxu0 }
 0x468   : > { %19509 = vst [vmem:[#allocation155_spill] sm:$0xff] %v17192_v30  ;;  %v17194_v32 = vpop.f32.mrf.mxu1  ;;  %13304 = vmatpush3.bf16.msra.mxu0 %v14081_v40  ;;  %v14084_v40 = vld [vmem:[%s19181_s6 + $0x80] sm:$0xff]  }
 0x469   : > { %v12892_v46 = vpop.f32.mrf.mxu0  ;;  %13305 = vmatprep.subr.bf16.mxu0 %v19364_v47 }
 0x46a   : > { %v12567_v23 = vpop.f32.mrf.mxu1 }
 0x46b   : > { %v17200_v44 = vpop.f32.mrf.mxu0  ;;  %13250 = vmatmul.mubr.bf16.gmra.mxu0 %v11080_v52 }
 0x46c   : > { %19510 = vst [vmem:[#allocation156_spill] sm:$0xff] %v17200_v44  ;;  %v17202_v48 = vpop.f32.mrf.mxu1  ;;  %13253 = vmatprep.mubr.msk.bf16.mxu0 %vm14437_vm0, %v19364_v47  ;;  %13306 = vmatpush3.bf16.msra.mxu0 %v14083_v21  ;;  %v14353_v44 = vld [vmem:[#allocation2 + $0x9c] sm:$0xf] }
 0x46d   : > { %v12895_v46 = vpop.f32.mrf.mxu0  ;;  %13307 = vmatprep.subr.bf16.mxu0 %v19364_v47  ;;  %v11081_v37 = vcombine.low %v14353_v44, %v7646_v56  ;;  %v4158_v44 = vadd.f32 %v17140_v59, %v16595_v4  ;;  %v4163_v4 = vadd.f32 %v17156_v11, %v16602_v57  ;;  %v8019_v11 = vrot.slane %v14087_v63, 1 }
 0x46e   : > { %v12568_v50 = vpop.f32.mrf.mxu1 }
 0x46f   : > { %v17210_v30 = vpop.f32.mrf.mxu0  ;;  %v8020_v63 = vsel %vm2357_vm2, %v8017_v28, %v8019_v11 }
 0x470   : > { %19511 = vst [vmem:[#allocation157_spill] sm:$0xff] %v17210_v30  ;;  %v17212_v23 = vpop.f32.mrf.mxu1  ;;  %13308 = vmatpush3.bf16.msra.mxu0 %v14084_v40  ;;  %v14085_v30 = vld [vmem:[#allocation2 + $0x7c] sm:$0xfe]  }
 0x471   : > { %v12896_v52 = vpop.f32.mrf.mxu0  ;;  %13365 = vmatprep.subr.bf16.mxu0 %v19364_v47  ;;  %v8016_v22 = vrot.slane %v14085_v30, 1 }
 0x472   : > { %v12571_v21 = vpop.f32.mrf.mxu1 }
 0x473   : > { %v17217_v46 = vpop.f32.mrf.mxu0  ;;  %13254 = vmatmul.mubr.bf16.gmra.mxu0 %v11081_v37  ;;  %v4385_v21 = vadd.f32 %v16698_v16, %v4155_v31  ;;  %v14088_v37 = vld [vmem:[%s19181_s6 + $0x138] sm:$0xff]   ;;  %v4386_v31 = vadd.f32 %v16703_v12, %v4158_v44  ;;  %v4387_v44 = vadd.f32 %v16713_v24, %v4163_v4 }
 0x474   : > { %19512 = vst [vmem:[#allocation158_spill] sm:$0xff] %v17217_v46  ;;  %v17219_v50 = vpop.f32.mrf.mxu1  ;;  %13309 = vmatprep.mubr.msk.bf16.mxu0 %vm14437_vm0, %v19364_v47 }
 0x475   : > { %v12951_v40 = vpop.f32.mrf.mxu0 }
 0x476   : > { %v12572_v52 = vpop.f32.mrf.mxu1  ;;  %v8018_v40 = vsel %vm2357_vm2, %v8016_v22, %v8017_v28 }
 0x477   : > { %v17225_v56 = vpop.f32.mrf.mxu0  ;;  %v4166_v52 = vadd.f32 %v17165_v8, %v16613_v58  ;;  %v4171_v8 = vadd.f32 %v17176_v60, %v16626_v29 }
 0x478   : > { %v4548_v13 = vpop.f32.mrf.mxu1 }
 0x479   : > { %v17231_v46 = vadd.f32 %v4548_v13, %v4385_v21  ;;  %v12952_v61 = vpop.f32.mrf.mxu0  ;;  %v14091_v13 = vld [vmem:[%s19181_s6 + $0x128] sm:$0xff]   ;;  %v4388_v24 = vadd.f32 %v16724_v5, %v4166_v52 }
 0x47a   : > { %v12627_v15 = vpop.f32.mrf.mxu1  ;;  %v14089_v61 = vld [vmem:[%s19181_s6 + $0x130] sm:$0xff]  }
 0x47b   : > { %v17236_v59 = vpop.f32.mrf.mxu0  ;;  %13310 = vmatmul.mubr.bf16.vlgmr.msra.gmra.mxu0 %v8018_v40 }
 0x47c   : > { %v4551_v16 = vpop.f32.mrf.mxu1  ;;  %13313 = vmatprep.mubr.msk.bf16.mxu0 %vm14437_vm0, %v19364_v47  ;;  %13366 = vmatpush3.bf16.msra.mxu0 %v14088_v37 }
 0x47d   : > { %v17244_v15 = vadd.f32 %v4551_v16, %v4386_v31  ;;  %v12955_v30 = vpop.f32.mrf.mxu0  ;;  %13367 = vmatprep.subr.bf16.mxu0 %v19364_v47  ;;  %v14090_v31 = vld [vmem:[#allocation2 + $0x94] sm:$0xff]   ;;  %v14092_v16 = vld [vmem:[%s19181_s6 + $0x120] sm:$0xff]  }
 0x47e   : > { %v12628_v57 = vpop.f32.mrf.mxu1  ;;  %v8021_v60 = vrot.slane %v14090_v31, 1  ;;  %v4174_v30 = vadd.f32 %v17184_v51, %v16638_v26  ;;  %v4179_v26 = vadd.f32 %v17194_v32, %v16651_v38 }
 0x47f   : > { %v17249_v12 = vpop.f32.mrf.mxu0  ;;  %v4389_v57 = vadd.f32 %v16738_v49, %v4171_v8  ;;  %v14095_v8 = vld [vmem:[%s19181_s6 + $0x110] sm:$0xff]  }
 0x480   : > { %v4556_v21 = vpop.f32.mrf.mxu1  ;;  %13368 = vmatpush3.bf16.msra.mxu0 %v14089_v61  ;;  %v4390_v49 = vadd.f32 %v16750_v45, %v4174_v30 }
 0x481   : > { %v17255_v22 = vadd.f32 %v4556_v21, %v4387_v44  ;;  %v12956_v37 = vpop.f32.mrf.mxu0  ;;  %13369 = vmatprep.subr.bf16.mxu0 %v19364_v47  ;;  %v14094_v44 = vld [vmem:[%s19181_s6 + $0x118] sm:$0xff]  }
 0x482   : > { %v12631_v40 = vpop.f32.mrf.mxu1 }
 0x483   : > { %v17261_v58 = vpop.f32.mrf.mxu0  ;;  %13314 = vmatmul.mubr.bf16.gmra.mxu0 %v8020_v63  ;;  %v8022_v40 = vsel %vm2357_vm2, %v8019_v11, %v8021_v60  ;;  %v14093_v63 = vld [vmem:[#allocation2 + $0x9c] sm:$0xff]  }
 0x484   : > { %v4559_v4 = vpop.f32.mrf.mxu1  ;;  %13317 = vmatprep.mubr.msk.bf16.mxu0 %vm14437_vm0, %v19364_v47  ;;  %13370 = vmatpush3.bf16.msra.mxu0 %v14091_v13  ;;  %v8023_v32 = vrot.slane %v14093_v63, 1 }
 0x485   : > { %v17269_v61 = vadd.f32 %v4559_v4, %v4388_v24  ;;  %v12959_v28 = vpop.f32.mrf.mxu0  ;;  %13371 = vmatprep.subr.bf16.mxu0 %v19364_v47  ;;  %v4182_v4 = vadd.f32 %v17202_v48, %v16663_v17  ;;  %v4187_v17 = vadd.f32 %v17212_v23, %v16676_v36 }
 0x486   : > { %v12632_v29 = vpop.f32.mrf.mxu1 }
 0x487   : > { %v17274_v5 = vpop.f32.mrf.mxu0  ;;  %v14097_v29 = vld [vmem:[%s19181_s6 + $0x108] sm:$0xff]  }
 0x488   : > { %v4564_v52 = vpop.f32.mrf.mxu1  ;;  %13372 = vmatpush3.bf16.msra.mxu0 %v14092_v16  ;;  %v4391_v16 = vadd.f32 %v16764_v35, %v4179_v26  ;;  %v4392_v35 = vadd.f32 %v16776_v41, %v4182_v4  ;;  %v4190_v26 = vadd.f32 %v17219_v50, %v16688_v43 }
 0x489   : > { %v17280_v21 = vadd.f32 %v4564_v52, %v4389_v57  ;;  %v12960_v13 = vpop.f32.mrf.mxu0  ;;  %13373 = vmatprep.subr.bf16.mxu0 %v19364_v47 }
 0x48a   : > { %v12635_v37 = vpop.f32.mrf.mxu1  ;;  %v14096_v13 = vld [vmem:[#allocation2 + $0xa4] ss:$0 sps:$4 sm:$0x11]  }
 0x48b   : > { %v17286_v51 = vpop.f32.mrf.mxu0  ;;  %13318 = vmatmul.mubr.bf16.gmra.mxu0 %v8022_v40  ;;  %v14098_v40 = vld [vmem:[%s19181_s6 + $0x100] sm:$0xff]   ;;  %v8025_v23 = vrot.slane %v14096_v13, 1  ;;  %v14354_v13 = vld [vmem:[#allocation2 + $0x94] sm:$0xf] }
 0x48c   : > { %v4567_v31 = vpop.f32.mrf.mxu1  ;;  %13321 = vmatprep.mubr.msk.bf16.mxu0 %vm14437_vm0, %v19364_v47  ;;  %13374 = vmatpush3.bf16.msra.mxu0 %v14094_v44  ;;  %v8024_v44 = vsel %vm2357_vm2, %v8021_v60, %v8023_v32 }
 0x48d   : > { %v17294_v24 = vadd.f32 %v4567_v31, %v4390_v49  ;;  %v12963_v11 = vpop.f32.mrf.mxu0  ;;  %13375 = vmatprep.subr.bf16.mxu0 %v19364_v47  ;;  %v4393_v49 = vadd.f32 %v16790_v3, %v4187_v17  ;;  %v8026_v4 = vsel %vm2357_vm2, %v8023_v32, %v8025_v23  ;;  %v14102_v32 = vld [vmem:[%s19181_s6 + $0x1b8] sm:$0xff]   ;;  %v14355_v17 = vld [vmem:[#allocation2 + $0x90] sm:$0xf] }
 0x48e   : > { %v12636_v38 = vpop.f32.mrf.mxu1 }
 0x48f   : > { %v17299_v45 = vpop.f32.mrf.mxu0 }
 0x490   : > { %v4572_v28 = vpop.f32.mrf.mxu1  ;;  %13376 = vmatpush3.bf16.msra.mxu0 %v14095_v8 }
 0x491   : > { %v17305_v30 = vadd.f32 %v4572_v28, %v4391_v16  ;;  %v12964_v57 = vpop.f32.mrf.mxu0  ;;  %13377 = vmatprep.subr.bf16.mxu0 %v19364_v47  ;;  %v4394_v28 = vadd.f32 %v16802_v53, %v4190_v26  ;;  %v11180_v53 = vcombine.low %v14355_v17, %v14354_v13 }
 0x492   : > { %v12639_v52 = vpop.f32.mrf.mxu1 }
 0x493   : > { %v17311_v48 = vpop.f32.mrf.mxu0  ;;  %13322 = vmatmul.mubr.bf16.gmra.mxu0 %v8024_v44 }
 0x494   : > { %v4575_v37 = vpop.f32.mrf.mxu1  ;;  %13325 = vmatprep.mubr.msk.bf16.mxu0 %vm14437_vm0, %v19364_v47  ;;  %13378 = vmatpush3.bf16.msra.mxu0 %v14097_v29 }
 0x495   : > { %v17319_v63 = vadd.f32 %v4575_v37, %v4392_v35  ;;  %v12967_v60 = vpop.f32.mrf.mxu0  ;;  %13379 = vmatprep.subr.bf16.mxu0 %v19364_v47 }
 0x496   : > { %v12640_v36 = vpop.f32.mrf.mxu1  ;;  %v14104_v60 = vld [vmem:[%s19181_s6 + $0x1b0] sm:$0xff]  }
 0x497   : > { %v17324_v41 = vpop.f32.mrf.mxu0 }
 0x498   : > { %v4580_v31 = vpop.f32.mrf.mxu1  ;;  %13380 = vmatpush3.bf16.msra.mxu0 %v14098_v40 }
 0x499   : > { %v17327_v8 = vadd.f32 %v4580_v31, %v4393_v49  ;;  %v12968_v11 = vpop.f32.mrf.mxu0  ;;  %13437 = vmatprep.subr.bf16.mxu0 %v19364_v47  ;;  %v14107_v31 = vld [vmem:[%s19181_s6 + $0x1a8] sm:$0xff]  }
 0x49a   : > { %v12643_v38 = vpop.f32.mrf.mxu1 }
 0x49b   : > { %v17331_v16 = vpop.f32.mrf.mxu0  ;;  %13326 = vmatmul.mubr.bf16.gmra.mxu0 %v8026_v4  ;;  %v14356_v38 = vld [vmem:[#allocation2 + $0x98] sm:$0xf]  ;;  %v14357_v4 = vld [vmem:[#allocation2 + $0x9c] sm:$0xf] }
 0x49c   : > { %v4583_v43 = vpop.f32.mrf.mxu1  ;;  %13381 = vmatprep.mubr.msk.bf16.mxu0 %vm14437_vm0, %v19364_v47 }
 0x49d   : > { %v17336_v3 = vadd.f32 %v4583_v43, %v4394_v28  ;;  %v13023_v50 = vpop.f32.mrf.mxu0  ;;  %v11181_v28 = vcombine.low %v14356_v38, %v14357_v4 }
 0x49e   : > { %v12644_v29 = vpop.f32.mrf.mxu1 }
 0x49f   : > { %v17338_v57 = vpop.f32.mrf.mxu0 }
 0x4a0   : > { %19513 = vst [vmem:[#allocation159_spill] sm:$0xff] %v17338_v57  ;;  %v17340_v52 = vpop.f32.mrf.mxu1 }
 0x4a1   : > { %v13024_v44 = vpop.f32.mrf.mxu0 }
 0x4a2   : > { %v12699_v35 = vpop.f32.mrf.mxu1 }
 0x4a3   : > { %v17345_v37 = vpop.f32.mrf.mxu0  ;;  %13382 = vmatmul.mubr.bf16.vlgmr.msra.gmra.mxu0 %v11180_v53  ;;  %v14111_v35 = vld [vmem:[%s19181_s6 + $0x198] sm:$0xff]  }
 0x4a4   : > { %19514 = vst [vmem:[#allocation160_spill] sm:$0xff] %v17345_v37  ;;  %v17347_v40 = vpop.f32.mrf.mxu1  ;;  %13385 = vmatprep.mubr.msk.bf16.mxu0 %vm14437_vm0, %v19364_v47  ;;  %13438 = vmatpush3.bf16.msra.mxu0 %v14102_v32  ;;  %v14108_v32 = vld [vmem:[%s19181_s6 + $0x1a0] sm:$0xff]  }
 0x4a5   : > { %v13027_v36 = vpop.f32.mrf.mxu0  ;;  %13439 = vmatprep.subr.bf16.mxu0 %v19364_v47 }
 0x4a6   : > { %v12700_v23 = vpop.f32.mrf.mxu1  ;;  %v14358_v36 = vld [vmem:[#allocation2 + $0xa0] sm:$0xf] }
 0x4a7   : > { %v17355_v26 = vpop.f32.mrf.mxu0  ;;  %v14359_v23 = vld [vmem:[#allocation2 + $0xa4] sm:$0xf] }
 0x4a8   : > { %19515 = vst [vmem:[#allocation161_spill] sm:$0xff] %v17355_v26  ;;  %v17357_v49 = vpop.f32.mrf.mxu1  ;;  %13440 = vmatpush3.bf16.msra.mxu0 %v14104_v60  ;;  %v14364_v26 = vld [vmem:[#allocation2 + $0xac] sm:$0xf] }
 0x4a9   : > { %v13028_v11 = vpop.f32.mrf.mxu0  ;;  %13441 = vmatprep.subr.bf16.mxu0 %v19364_v47 }
 0x4aa   : > { %v12703_v43 = vpop.f32.mrf.mxu1 }
 0x4ab   : > { %v17363_v50 = vpop.f32.mrf.mxu0  ;;  %13386 = vmatmul.mubr.bf16.gmra.mxu0 %v11181_v28  ;;  %v14113_v28 = vld [vmem:[%s19181_s6 + $0x190] sm:$0xff]  }
 0x4ac   : > { %19516 = vst [vmem:[#allocation162_spill] sm:$0xff] %v17363_v50  ;;  %v17365_v29 = vpop.f32.mrf.mxu1  ;;  %13389 = vmatprep.mubr.msk.bf16.mxu0 %vm14437_vm0, %v19364_v47  ;;  %13442 = vmatpush3.bf16.msra.mxu0 %v14107_v31  ;;  %v11182_v31 = vcombine.low %v14358_v36, %v14359_v23  ;;  %v14360_v23 = vld [vmem:[#allocation2 + $0xa8] sm:$0xf] }
 0x4ad   : > { %v13031_v44 = vpop.f32.mrf.mxu0  ;;  %13443 = vmatprep.subr.bf16.mxu0 %v19364_v47 }
 0x4ae   : > { %v12704_v13 = vpop.f32.mrf.mxu1 }
 0x4af   : > { %v17373_v17 = vpop.f32.mrf.mxu0 }
 0x4b0   : > { %19517 = vst [vmem:[#allocation163_spill] sm:$0xff] %v17373_v17  ;;  %v17375_v53 = vpop.f32.mrf.mxu1  ;;  %13444 = vmatpush3.bf16.msra.mxu0 %v14108_v32  ;;  %v8727_v17 = vld [vmem:[#allocation2 + $0xa0] sm:$0x8] }
 0x4b1   : > { %v13032_v60 = vpop.f32.mrf.mxu0  ;;  %13445 = vmatprep.subr.bf16.mxu0 %v19364_v47 }
 0x4b2   : > { %v12707_v11 = vpop.f32.mrf.mxu1  ;;  %v14116_v60 = vld [vmem:[%s19181_s6 + $0x188] sm:$0xff]  }
 0x4b3   : > { %v17381_v38 = vpop.f32.mrf.mxu0  ;;  %13390 = vmatmul.mubr.bf16.gmra.mxu0 %v11182_v31 }
 0x4b4   : > { %19518 = vst [vmem:[#allocation164_spill] sm:$0xff] %v17381_v38  ;;  %v17383_v4 = vpop.f32.mrf.mxu1  ;;  %13393 = vmatprep.mubr.msk.bf16.mxu0 %vm14437_vm0, %v19364_v47  ;;  %13446 = vmatpush3.bf16.msra.mxu0 %v14111_v35  ;;  %v14361_v35 = vld [vmem:[#allocation2 + $0xac] sm:$0xf]  ;;  %v14362_v38 = vld [vmem:[#allocation2 + $0xb0] sm:$0xf] }
 0x4b5   : > { %v13035_v43 = vpop.f32.mrf.mxu0  ;;  %13447 = vmatprep.subr.bf16.mxu0 %v19364_v47  ;;  %v11183_v31 = vcombine.low %v14360_v23, %v14361_v35  ;;  %v8365_v35 = vld [vmem:[#allocation2 + $0xb4] sm:$0xf] }
 0x4b6   : > { %v12708_v32 = vpop.f32.mrf.mxu1 }
 0x4b7   : > { %v17391_v44 = vpop.f32.mrf.mxu0 }
 0x4b8   : > { %19519 = vst [vmem:[#allocation165_spill] sm:$0xff] %v17391_v44  ;;  %v17393_v13 = vpop.f32.mrf.mxu1  ;;  %13448 = vmatpush3.bf16.msra.mxu0 %v14113_v28  ;;  %v14118_v28 = vld [vmem:[%s19181_s6 + $0x180] sm:$0xff]  }
 0x4b9   : > { %v13036_v36 = vpop.f32.mrf.mxu0  ;;  %13449 = vmatprep.subr.bf16.mxu0 %v19364_v47 }
 0x4ba   : > { %v12711_v11 = vpop.f32.mrf.mxu1 }
 0x4bb   : > { %v17399_v43 = vpop.f32.mrf.mxu0  ;;  %13394 = vmatmul.mubr.bf16.gmra.mxu0 %v11183_v31  ;;  %v4747_v31 = vadd.f32 %v16813_v18, %v17231_v46  ;;  %v14365_v18 = vld [vmem:[#allocation2 + $0xa4] sm:$0xf] }
 0x4bc   : > { %19520 = vst [vmem:[#allocation166_spill] sm:$0xff] %v17399_v43  ;;  %v17401_v32 = vpop.f32.mrf.mxu1  ;;  %13397 = vmatprep.mubr.msk.bf16.mxu0 %vm14437_vm0, %v19364_v47  ;;  %13450 = vmatpush3.bf16.msra.mxu0 %v14116_v60  ;;  %v11184_v60 = vcombine.low %v14362_v38, %v8365_v35  ;;  %v11239_v46 = vcombine.low %v8727_v17, %v14365_v18 }
 0x4bd   : > { %v13039_v36 = vpop.f32.mrf.mxu0  ;;  %13451 = vmatprep.subr.bf16.mxu0 %v19364_v47  ;;  %v4748_v38 = vadd.f32 %v16818_v20, %v17244_v15  ;;  %v4749_v17 = vadd.f32 %v16827_v9, %v17255_v22  ;;  %v17445_v9 = vld [vmem:[%s19182_s7] ss:$0 sm:$0xff] }
 0x4be   : > { %v12712_v23 = vpop.f32.mrf.mxu1  ;;  %v14363_v36 = vld [vmem:[#allocation2 + $0xa8] sm:$0xf] }
 0x4bf   : > { %v17409_v44 = vpop.f32.mrf.mxu0  ;;  %v11240_v37 = vcombine.low %v14363_v36, %v14364_v26  ;;  %v4949_v23 = vadd.f32 %v17340_v52, %v4747_v31  ;;  %v4950_v26 = vadd.f32 %v17347_v40, %v4748_v38  ;;  %v8732_v31 = vld [vmem:[#allocation2 + $0xb4] sm:$0xf]  ;;  %v8782_v36 = vrot.slane %v11239_v46, 3  ;;  %v14366_v40 = vld [vmem:[#allocation2 + $0xb0] sm:$0xf] }
 0x4c0   : > { %19521 = vst [vmem:[#allocation167_spill] sm:$0xff] %v17409_v44  ;;  %v17411_v11 = vpop.f32.mrf.mxu1  ;;  %13452 = vmatpush3.bf16.msra.mxu0 %v14118_v28  ;;  %v11241_v38 = vcombine.low %v14366_v40, %v8732_v31 }
 0x4c1   : > { %v13040_v43 = vpop.f32.mrf.mxu0  ;;  %13509 = vmatprep.subr.bf16.mxu0 %v19364_v47  ;;  %v8783_v28 = vrot.slane %v11240_v37, 3  ;;  %v5151_v52 = vadd.f32 %v16923_v14, %v4949_v23  ;;  %v5152_v46 = vadd.f32 %v16928_v55, %v4950_v26 }
 0x4c2   : > { %v12715_v50 = vpop.f32.mrf.mxu1 }
 0x4c3   : > { %v17417_v57 = vpop.f32.mrf.mxu0  ;;  %13398 = vmatmul.mubr.bf16.gmra.mxu0 %v11184_v60  ;;  %v8784_v37 = vsel %vm2163_vm1, %v8782_v36, %v8783_v28  ;;  %v8733_v36 = vld [vmem:[#allocation2 + $0xb8] sm:$0xf] }
 0x4c4   : > { %19522 = vst [vmem:[#allocation168_spill] sm:$0xff] %v17417_v57  ;;  %v17419_v44 = vpop.f32.mrf.mxu1  ;;  %13453 = vmatprep.mubr.msk.bf16.mxu0 %vm14437_vm0, %v19364_v47  ;;  %v14125_v57 = vld [vmem:[%s19181_s6 + $0x238] sm:$0xff]  }
 0x4c5   : > { %v13095_v43 = vpop.f32.mrf.mxu0 }
 0x4c6   : > { %v12716_v50 = vpop.f32.mrf.mxu1  ;;  %v4951_v43 = vadd.f32 %v17357_v49, %v4749_v17  ;;  %v8734_v17 = vld [vmem:[#allocation2 + $0xbc] sm:$0xf] }
 0x4c7   : > { %v17426_v35 = vpop.f32.mrf.mxu0  ;;  %v4750_v50 = vadd.f32 %v16838_v25, %v17269_v61  ;;  %v8785_v61 = vrot.slane %v11241_v38, 3 }
 0x4c8   : > { %v5272_v60 = vpop.f32.mrf.mxu1 }
 0x4c9   : > { %v5311_v20 = vadd.f32 %v5272_v60, %v5151_v52  ;;  %v13096_v15 = vpop.f32.mrf.mxu0  ;;  %v4952_v25 = vadd.f32 %v17365_v29, %v4750_v50  ;;  %v4751_v29 = vadd.f32 %v16851_v1, %v17280_v21  ;;  %v4752_v1 = vadd.f32 %v16863_v0, %v17294_v24  ;;  %v8736_v0 = vld [vmem:[#allocation2 + $0xc4] sm:$0xf] }
 0x4ca   : > { %v12771_v18 = vpop.f32.mrf.mxu1  ;;  %v14130_v15 = vld [vmem:[%s19181_s6 + $0x228] sm:$0xff]  }
 0x4cb   : > { %v5513_v14 = vadd.f32 %v17014_v10, %v5311_v20  ;;  %v17437_v23 = vpop.f32.mrf.mxu0  ;;  %13454 = vmatmul.mubr.bf16.vlgmr.msra.gmra.mxu0 %v8784_v37  ;;  %v14127_v10 = vld [vmem:[%s19181_s6 + $0x230] sm:$0xff]   ;;  %v5154_v38 = vadd.f32 %v16945_v27, %v4952_v25  ;;  %v4954_v24 = vadd.f32 %v17383_v4, %v4752_v1 }
 0x4cc   : > { %v5275_v22 = vpop.f32.mrf.mxu1  ;;  %13457 = vmatprep.mubr.msk.bf16.mxu0 %vm14437_vm0, %v19364_v47  ;;  %13510 = vmatpush3.bf16.msra.mxu0 %v14125_v57  ;;  %v5153_v57 = vadd.f32 %v16937_v2, %v4951_v43  ;;  %v8786_v2 = vsel %vm2163_vm1, %v8783_v28, %v8785_v61  ;;  %v11242_v43 = vcombine.low %v8733_v36, %v8734_v17  ;;  %v14126_v28 = vld [vmem:[%s19181_s6 + $0x38] sm:$0xff]  }
 0x4cd   : > { %v5312_v49 = vadd.f32 %v5275_v22, %v5152_v46  ;;  %v13099_v52 = vpop.f32.mrf.mxu0  ;;  %13511 = vmatprep.subr.bf16.mxu0 %v19364_v47  ;;  %v5530_v26 = vadd.f32 %v17445_v9, %v5513_v14  ;;  %v4953_v14 = vadd.f32 %v17375_v53, %v4751_v29 }
 0x4ce   : > { %v12772_v55 = vpop.f32.mrf.mxu1  ;;  %v8735_v52 = vld [vmem:[#allocation2 + $0xc0] sm:$0xf] }
 0x4cf   : > { %v5514_v31 = vadd.f32 %v17018_v42, %v5312_v49  ;;  %v17456_v60 = vpop.f32.mrf.mxu0  ;;  %v5540_v46 = vmax.f32 %v5530_v26, 0.0  ;;  %v8787_v55 = vrot.slane %v11242_v43, 3  ;;  %v5155_v36 = vadd.f32 %v16957_v7, %v4953_v14  ;;  %v14134_v7 = vld [vmem:[%s19181_s6 + $0x218] sm:$0xff]  }
 0x4d0   : > { %v5280_v20 = vpop.f32.mrf.mxu1  ;;  %13512 = vmatpush3.bf16.msra.mxu0 %v14127_v10  ;;  %v11243_v4 = vcombine.low %v8735_v52, %v8736_v0  ;;  %v4754_v14 = vadd.f32 %v16888_v34, %v17319_v63  ;;  %v14136_v34 = vld [vmem:[%s19181_s6 + $0x210] sm:$0xff]   ;;  %v14138_v52 = vld [vmem:[#allocation2 + $0xc8] ss:$0 sps:$4 sm:$0x77]  }
 0x4d1   : > { %v5531_v18 = vadd.f32 %v17445_v9, %v5514_v31  ;;  %v5313_v37 = vadd.f32 %v5280_v20, %v5153_v57  ;;  %v13100_v40 = vpop.f32.mrf.mxu0  ;;  %13513 = vmatprep.subr.bf16.mxu0 %v19364_v47  ;;  %v14129_v20 = vld [vmem:[%s19181_s6 + $0x30] sm:$0xff]  }
 0x4d2   : > { %v12775_v42 = vpop.f32.mrf.mxu1  ;;  %v8788_v40 = vsel %vm2163_vm1, %v8785_v61, %v8787_v55  ;;  %v19524_v0 = vld [vmem:[#allocation77_spill] sm:$0xff] }
 0x4d3   : > { %v5541_v50 = vmax.f32 %v5531_v18, 0.0  ;;  %v5515_v22 = vadd.f32 %v17028_v6, %v5313_v37  ;;  %v17470_v10 = vpop.f32.mrf.mxu0  ;;  %13458 = vmatmul.mubr.bf16.gmra.mxu0 %v8786_v2  ;;  %v14131_v6 = vld [vmem:[%s19181_s6 + $0x220] sm:$0xff]   ;;  %v5156_v42 = vadd.f32 %v16965_v19, %v4954_v24  ;;  %v14132_v19 = vld [vmem:[%s19181_s6 + $0x28] sm:$0xff]  }
 0x4d4   : > { %v5283_v21 = vpop.f32.mrf.mxu1  ;;  %13461 = vmatprep.mubr.msk.bf16.mxu0 %vm14437_vm0, %v19364_v47  ;;  %13514 = vmatpush3.bf16.msra.mxu0 %v14130_v15  ;;  %v4753_v15 = vadd.f32 %v16876_v54, %v17305_v30 }
 0x4d5   : > { %v5550_v27 = vpack.c.bf16 %v5541_v50, %v5540_v46  ;;  %v5314_v53 = vadd.f32 %v5283_v21, %v5154_v38  ;;  %v13103_v49 = vpop.f32.mrf.mxu0  ;;  %13515 = vmatprep.subr.bf16.mxu0 %v19364_v47  ;;  %v5532_v26 = vadd.f32 %v17445_v9, %v5515_v22 }
 0x4d6   : > { %v12776_v25 = vpop.f32.mrf.mxu1  ;;  %v4955_v54 = vadd.f32 %v17393_v13, %v4753_v15  ;;  %v8789_v13 = vrot.slane %v11243_v4, 3  ;;  %v19526_v15 = vld [vmem:[#allocation139_spill] sm:$0xff] }
 0x4d7   : > { %v5516_v31 = vadd.f32 %v17041_v39, %v5314_v53  ;;  %12842 = vmatmul.mubr.bf16.vlgmr.msra.gmra.mxu1 %v5550_v27  ;;  %v17486_v57 = vpop.f32.mrf.mxu0  ;;  %v5542_v30 = vmax.f32 %v5532_v26, 0.0  ;;  %v19523_v27 = vld [vmem:[#allocation83_spill] sm:$0xff] }
 0x4d8   : > { %12898 = vmatpush3.bf16.msra.mxu1 %v14126_v28  ;;  %v5288_v17 = vpop.f32.mrf.mxu1  ;;  %12845 = vmatprep.mubr.msk.bf16.mxu1 %vm14437_vm0, %v19364_v47  ;;  %v5157_v53 = vadd.f32 %v19523_v27, %v4955_v54 }
 0x4d9   : > { %v5533_v39 = vadd.f32 %v17445_v9, %v5516_v31  ;;  %v5315_v29 = vadd.f32 %v5288_v17, %v5155_v36  ;;  %v13104_v18 = vpop.f32.mrf.mxu0  ;;  %12899 = vmatprep.subr.bf16.mxu1 %v19364_v47  ;;  %13516 = vmatpush3.bf16.msra.mxu0 %v14131_v6  ;;  %v8790_v6 = vsel %vm2163_vm1, %v8787_v55, %v8789_v13  ;;  %v14139_v55 = vld [vmem:[%s19181_s6 + $0x208] sm:$0xff]  }
 0x4da   : > { %v12779_v37 = vpop.f32.mrf.mxu1  ;;  %13517 = vmatprep.subr.bf16.mxu0 %v19364_v47  ;;  %v19525_v36 = vld [vmem:[#allocation85_spill] sm:$0xff] }
 0x4db   : > { %v5543_v2 = vmax.f32 %v5533_v39, 0.0  ;;  %v5517_v38 = vadd.f32 %v17051_v33, %v5315_v29  ;;  %v17506_v43 = vpop.f32.mrf.mxu0  ;;  %13462 = vmatmul.mubr.bf16.gmra.mxu0 %v8788_v40  ;;  %v4956_v33 = vadd.f32 %v17401_v32, %v4754_v14  ;;  %v14135_v32 = vld [vmem:[%s19181_s6 + $0x20] sm:$0xff]   ;;  %v8791_v37 = vrot.slane %v14138_v52, 3 }
 0x4dc   : > { %v5291_v46 = vpop.f32.mrf.mxu1  ;;  %12900 = vmatpush3.bf16.msra.mxu1 %v14129_v20  ;;  %13465 = vmatprep.mubr.msk.bf16.mxu0 %vm14437_vm0, %v19364_v47  ;;  %v19527_v40 = vld [vmem:[#allocation76_spill] sm:$0xff] }
 0x4dd   : > { %v5551_v61 = vpack.c.bf16 %v5543_v2, %v5542_v30  ;;  %v5316_v50 = vadd.f32 %v5291_v46, %v5156_v42  ;;  %v13107_v22 = vpop.f32.mrf.mxu0  ;;  %12901 = vmatprep.subr.bf16.mxu1 %v19364_v47  ;;  %13518 = vmatpush3.bf16.msra.mxu0 %v14134_v7  ;;  %v5534_v1 = vadd.f32 %v17445_v9, %v5517_v38  ;;  %v14137_v7 = vld [vmem:[%s19181_s6 + $0x18] sm:$0xff]   ;;  %v14141_v2 = vld [vmem:[%s19181_s6 + $0x200] sm:$0xff]  }
 0x4de   : > { %v12780_v63 = vpop.f32.mrf.mxu1  ;;  %13519 = vmatprep.subr.bf16.mxu0 %v19364_v47  ;;  %v5158_v17 = vadd.f32 %v19525_v36, %v4956_v33  ;;  %v8792_v33 = vsel %vm2163_vm1, %v8789_v13, %v8791_v37 }
 0x4df   : > { %v5518_v21 = vadd.f32 %v17064_v62, %v5316_v50  ;;  %12846 = vmatmul.mubr.bf16.gmra.mxu1 %v5551_v61  ;;  %v17523_v28 = vpop.f32.mrf.mxu0  ;;  %v4755_v62 = vadd.f32 %v19524_v0, %v17327_v8  ;;  %v5544_v4 = vmax.f32 %v5534_v1, 0.0  ;;  %v19529_v50 = vld [vmem:[#allocation80_spill] sm:$0xff]  ;;  %v19531_v0 = vld [vmem:[#allocation81_spill] sm:$0xff] }
 0x4e0   : > { %v5296_v49 = vpop.f32.mrf.mxu1  ;;  %12902 = vmatpush3.bf16.msra.mxu1 %v14132_v19  ;;  %12849 = vmatprep.mubr.msk.bf16.mxu1 %vm14437_vm0, %v19364_v47  ;;  %v19528_v19 = vld [vmem:[#allocation141_spill] sm:$0xff] }
 0x4e1   : > { %v5535_v24 = vadd.f32 %v17445_v9, %v5518_v21  ;;  %v5317_v25 = vadd.f32 %v5296_v49, %v5157_v53  ;;  %v13108_v26 = vpop.f32.mrf.mxu0  ;;  %12903 = vmatprep.subr.bf16.mxu1 %v19364_v47  ;;  %13520 = vmatpush3.bf16.msra.mxu0 %v14136_v34  ;;  %v4957_v20 = vadd.f32 %v17411_v11, %v4755_v62  ;;  %v14143_v53 = vld [vmem:[#allocation2 + $0xac] sm:$0xff]  }
 0x4e2   : > { %v12783_v31 = vpop.f32.mrf.mxu1  ;;  %13521 = vmatprep.subr.bf16.mxu0 %v19364_v47  ;;  %v4756_v11 = vadd.f32 %v19527_v40, %v17336_v3  ;;  %v14144_v26 = vld [vmem:[%s19181_s6 + $0x8] sm:$0xff]  }
 0x4e3   : > { %v5545_v8 = vmax.f32 %v5535_v24, 0.0  ;;  %v5519_v39 = vadd.f32 %v19526_v15, %v5317_v25  ;;  %v17543_v29 = vpop.f32.mrf.mxu0  ;;  %13466 = vmatmul.mubr.bf16.gmra.mxu0 %v8790_v6  ;;  %v5159_v22 = vadd.f32 %v19529_v50, %v4957_v20  ;;  %v19530_v6 = vld [vmem:[#allocation143_spill] sm:$0xff]  ;;  %v14142_v25 = vld [vmem:[#allocation2 + $0xa4] sm:$0xfe]   ;;  %v9145_v20 = vrot.slane %v14143_v53, 1 }
 0x4e4   : > { %v5299_v18 = vpop.f32.mrf.mxu1  ;;  %12904 = vmatpush3.bf16.msra.mxu1 %v14135_v32  ;;  %13469 = vmatprep.mubr.msk.bf16.mxu0 %vm14437_vm0, %v19364_v47  ;;  %v4958_v14 = vadd.f32 %v17419_v44, %v4756_v11  ;;  %v14140_v44 = vld [vmem:[%s19181_s6 + $0x10] sm:$0xff]   ;;  %v17604_v50 = vld [vmem:[#allocation2 + $0xbc] sm:$0xff]  }
 0x4e5   : > { %v5552_v42 = vpack.c.bf16 %v5545_v8, %v5544_v4  ;;  %v5318_v54 = vadd.f32 %v5299_v18, %v5158_v17  ;;  %v13111_v30 = vpop.f32.mrf.mxu0  ;;  %12905 = vmatprep.subr.bf16.mxu1 %v19364_v47  ;;  %13522 = vmatpush3.bf16.msra.mxu0 %v14139_v55  ;;  %v5536_v46 = vadd.f32 %v17445_v9, %v5519_v39  ;;  %v19532_v8 = vld [vmem:[#allocation145_spill] sm:$0xff]  ;;  %v9144_v18 = vrot.slane %v14142_v25, 1 }
 0x4e6   : > { %v12784_v38 = vpop.f32.mrf.mxu1  ;;  %13523 = vmatprep.subr.bf16.mxu0 %v19364_v47  ;;  %v5160_v62 = vadd.f32 %v19531_v0, %v4958_v14 }
 0x4e7   : > { %v5520_v61 = vadd.f32 %v19528_v19, %v5318_v54  ;;  %12850 = vmatmul.mubr.bf16.gmra.mxu1 %v5552_v42  ;;  %v17560_v3 = vpop.f32.mrf.mxu0  ;;  %v5546_v49 = vmax.f32 %v5536_v46, 0.0  ;;  %v9146_v11 = vsel %vm2357_vm2, %v9144_v18, %v9145_v20  ;;  %v14146_v42 = vld [vmem:[#allocation2 + $0xb4] sm:$0xff]  }
 0x4e8   : > { %v5304_v34 = vpop.f32.mrf.mxu1  ;;  %12906 = vmatpush3.bf16.msra.mxu1 %v14137_v7  ;;  %12853 = vmatprep.mubr.msk.bf16.mxu1 %vm14437_vm0, %v19364_v47  ;;  %v14145_v7 = vld [vmem:[%s19181_s6] sm:$0xff]   ;;  %v14159_v18 = vld [vmem:[#allocation2 + $0x78] ss:$0 sps:$4 sm:$0x77]  }
 0x4e9   : > { %v5537_v63 = vadd.f32 %v17445_v9, %v5520_v61  ;;  %v5319_v1 = vadd.f32 %v5304_v34, %v5159_v22  ;;  %v13112_v21 = vpop.f32.mrf.mxu0  ;;  %12907 = vmatprep.subr.bf16.mxu1 %v19364_v47  ;;  %13524 = vmatpush3.bf16.msra.mxu0 %v14141_v2  ;;  %v14148_v34 = vld [vmem:[%s19181_s6 + $0xf8] sm:$0xff]  }
 0x4ea   : > { %v12787_v27 = vpop.f32.mrf.mxu1  ;;  %13581 = vmatprep.subr.bf16.mxu0 %v19364_v47  ;;  %v14150_v21 = vld [vmem:[%s19181_s6 + $0xf0] sm:$0xff]  }
 0x4eb   : > { %v5547_v13 = vmax.f32 %v5537_v63, 0.0  ;;  %v5521_v32 = vadd.f32 %v19530_v6, %v5319_v1  ;;  %v17573_v52 = vpop.f32.mrf.mxu0  ;;  %13470 = vmatmul.mubr.bf16.gmra.mxu0 %v8792_v33  ;;  %v19533_v63 = vld [vmem:[#allocation96_spill] sm:$0xff] }
 0x4ec   : > { %v5307_v24 = vpop.f32.mrf.mxu1  ;;  %12908 = vmatpush3.bf16.msra.mxu1 %v14140_v44  ;;  %13525 = vmatprep.mubr.msk.bf16.mxu0 %vm14437_vm0, %v19364_v47  ;;  %v19307_v44 = vrot.slane %v17604_v50, 1 }
 0x4ed   : > { %v5553_v55 = vpack.c.bf16 %v5547_v13, %v5546_v49  ;;  %v5320_v31 = vadd.f32 %v5307_v24, %v5160_v62  ;;  %v13167_v36 = vpop.f32.mrf.mxu0  ;;  %12909 = vmatprep.subr.bf16.mxu1 %v19364_v47  ;;  %v5538_v4 = vadd.f32 %v17445_v9, %v5521_v32  ;;  %v14152_v13 = vld [vmem:[%s19181_s6 + $0xe8] sm:$0xff]   ;;  %v14153_v62 = vld [vmem:[%s19181_s6 + $0xe0] sm:$0xff]  }
 0x4ee   : > { %v12788_v17 = vpop.f32.mrf.mxu1  ;;  %v19534_v32 = vld [vmem:[#allocation101_spill] sm:$0xff] }
 0x4ef   : > { %v5522_v15 = vadd.f32 %v19532_v8, %v5320_v31  ;;  %12854 = vmatmul.mubr.bf16.gmra.mxu1 %v5553_v55  ;;  %v17584_v39 = vpop.f32.mrf.mxu0  ;;  %v5548_v54 = vmax.f32 %v5538_v4, 0.0  ;;  %v19535_v31 = vld [vmem:[#allocation104_spill] sm:$0xff]  ;;  %v14157_v17 = vld [vmem:[%s19181_s6 + $0xd0] sm:$0xff]  }
 0x4f0   : > { %12910 = vmatpush3.bf16.msra.mxu1 %v14144_v26  ;;  %12857 = vmatprep.mubr.msk.bf16.mxu1 %vm14437_vm0, %v19364_v47  ;;  %v14155_v26 = vld [vmem:[%s19181_s6 + $0xd8] sm:$0xff]   ;;  %v14158_v8 = vld [vmem:[%s19181_s6 + $0xc8] sm:$0xff]  }
 0x4f1   : > { %v5539_v37 = vadd.f32 %v17445_v9, %v5522_v15  ;;  %v13168_v40 = vpop.f32.mrf.mxu0  ;;  %12911 = vmatprep.subr.bf16.mxu1 %v19364_v47  ;;  %v9147_v9 = vrot.slane %v14146_v42, 1  ;;  %v5949_v42 = vrot.slane %v14159_v18, 3  ;;  %v14170_v18 = vld [vmem:[%s19181_s6 + $0x150] sm:$0xff]  }
 0x4f2   : > { %v14160_v40 = vld [vmem:[%s19181_s6 + $0xc0] sm:$0xff]  }
 0x4f3   : > { %v5549_v30 = vmax.f32 %v5539_v37, 0.0  ;;  %v17594_v2 = vpop.f32.mrf.mxu0  ;;  %13526 = vmatmul.mubr.bf16.vlgmr.msra.gmra.mxu0 %v9146_v11  ;;  %v9148_v61 = vsel %vm2357_vm2, %v9145_v20, %v9147_v9  ;;  %v9150_v53 = vsel %vm2357_vm2, %v9147_v9, %v19307_v44 }
 0x4f4   : > { %12912 = vmatpush3.bf16.msra.mxu1 %v14145_v7  ;;  %13529 = vmatprep.mubr.msk.bf16.mxu0 %vm14437_vm0, %v19364_v47  ;;  %v19536_v7 = vld [vmem:[#allocation105_spill] sm:$0xff] }
 0x4f5   : > { %v5554_v38 = vpack.c.bf16 %v5549_v30, %v5548_v54  ;;  %v13171_v14 = vpop.f32.mrf.mxu0  ;;  %12969 = vmatprep.subr.bf16.mxu1 %v19364_v47 }
 0x4f7   : > { %12858 = vmatmul.mubr.bf16.gmra.mxu1 %v5554_v38  ;;  %v17599_v46 = vpop.f32.mrf.mxu0  ;;  %v19537_v38 = vld [vmem:[#allocation103_spill] sm:$0xff] }
 0x4f8   : > { %12913 = vmatprep.mubr.msk.bf16.mxu1 %vm14437_vm0, %v19364_v47  ;;  %v5950_v14 = vsel %vm2163_vm1, %v19537_v38, %v5949_v42  ;;  %v19548_v38 = vld [vmem:[#allocation117_spill] sm:$0xff] }
 0x4f9   : > { %v13172_v19 = vpop.f32.mrf.mxu0 }
 0x4fb   : > { %v17606_v22 = vpop.f32.mrf.mxu0  ;;  %13530 = vmatmul.mubr.bf16.gmra.mxu0 %v9148_v61 }
 0x4fc   : > { %13533 = vmatprep.mubr.msk.bf16.mxu0 %vm14437_vm0, %v19364_v47 }
 0x4fd   : > { %v13175_v33 = vpop.f32.mrf.mxu0 }
 0x4ff   : > { %12914 = vmatmul.mubr.bf16.vlgmr.msra.gmra.mxu1 %v19533_v63  ;;  %v17615_v1 = vpop.f32.mrf.mxu0  ;;  %v19540_v63 = vld [vmem:[#allocation110_spill] sm:$0xff] }
 0x500   : > { %12970 = vmatpush3.bf16.msra.mxu1 %v14148_v34  ;;  %12917 = vmatprep.mubr.msk.bf16.mxu1 %vm14437_vm0, %v19364_v47  ;;  %v14162_v34 = vld [vmem:[%s19181_s6 + $0x178] sm:$0xff]  }
 0x501   : > { %v13176_v27 = vpop.f32.mrf.mxu0  ;;  %12971 = vmatprep.subr.bf16.mxu1 %v19364_v47 }
 0x502   : > { %v14163_v27 = vld [vmem:[%s19181_s6 + $0x170] sm:$0xff]  }
 0x503   : > { %v17626_v49 = vpop.f32.mrf.mxu0  ;;  %13534 = vmatmul.mubr.bf16.gmra.mxu0 %v9150_v53 }
 0x504   : > { %12972 = vmatpush3.bf16.msra.mxu1 %v14150_v21  ;;  %13537 = vmatprep.mubr.msk.bf16.mxu0 %vm14437_vm0, %v19364_v47 }
 0x505   : > { %v13179_v6 = vpop.f32.mrf.mxu0  ;;  %12973 = vmatprep.subr.bf16.mxu1 %v19364_v47 }
 0x506   : > { %v14165_v6 = vld [vmem:[%s19181_s6 + $0x168] sm:$0xff]  }
 0x507   : > { %12918 = vmatmul.mubr.bf16.gmra.mxu1 %v19534_v32  ;;  %v17635_v0 = vpop.f32.mrf.mxu0 }
 0x508   : > { %12974 = vmatpush3.bf16.msra.mxu1 %v14152_v13  ;;  %12921 = vmatprep.mubr.msk.bf16.mxu1 %vm14437_vm0, %v19364_v47 }
 0x509   : > { %v13180_v24 = vpop.f32.mrf.mxu0  ;;  %12975 = vmatprep.subr.bf16.mxu1 %v19364_v47 }
 0x50b   : > { %v17643_v25 = vpop.f32.mrf.mxu0 }
 0x50c   : > { %12976 = vmatpush3.bf16.msra.mxu1 %v14153_v62  ;;  %v19543_v62 = vld [vmem:[#allocation112_spill] sm:$0xff] }
 0x50d   : > { %v13183_v55 = vpop.f32.mrf.mxu0  ;;  %12977 = vmatprep.subr.bf16.mxu1 %v19364_v47 }
 0x50f   : > { %12922 = vmatmul.mubr.bf16.gmra.mxu1 %v19535_v31  ;;  %v17650_v36 = vpop.f32.mrf.mxu0 }
 0x510   : > { %12978 = vmatpush3.bf16.msra.mxu1 %v14155_v26  ;;  %12925 = vmatprep.mubr.msk.bf16.mxu1 %vm14437_vm0, %v19364_v47  ;;  %v14166_v26 = vld [vmem:[%s19181_s6 + $0x160] sm:$0xff]  }
 0x511   : > { %v13184_v20 = vpop.f32.mrf.mxu0  ;;  %12979 = vmatprep.subr.bf16.mxu1 %v19364_v47 }
 0x513   : > { %v17658_v4 = vpop.f32.mrf.mxu0 }
 0x514   : > { %12980 = vmatpush3.bf16.msra.mxu1 %v14157_v17  ;;  %v14168_v17 = vld [vmem:[%s19181_s6 + $0x158] sm:$0xff]  }
 0x515   : > { %v13239_v15 = vpop.f32.mrf.mxu0  ;;  %12981 = vmatprep.subr.bf16.mxu1 %v19364_v47 }
 0x517   : > { %12926 = vmatmul.mubr.bf16.gmra.mxu1 %v19536_v7  ;;  %v17665_v37 = vpop.f32.mrf.mxu0 }
 0x518   : > { %12982 = vmatpush3.bf16.msra.mxu1 %v14158_v8  ;;  %12929 = vmatprep.mubr.msk.bf16.mxu1 %vm14437_vm0, %v19364_v47  ;;  %v19546_v8 = vld [vmem:[#allocation116_spill] sm:$0xff] }
 0x519   : > { %v13240_v11 = vpop.f32.mrf.mxu0  ;;  %12983 = vmatprep.subr.bf16.mxu1 %v19364_v47 }
 0x51a   : > { %v14171_v11 = vld [vmem:[%s19181_s6 + $0x148] sm:$0xff]  }
 0x51b   : > { %v17673_v54 = vpop.f32.mrf.mxu0 }
 0x51c   : > { %12984 = vmatpush3.bf16.msra.mxu1 %v14160_v40 }
 0x51d   : > { %v13243_v30 = vpop.f32.mrf.mxu0  ;;  %13041 = vmatprep.subr.bf16.mxu1 %v19364_v47 }
 0x51e   : > { %v14172_v30 = vld [vmem:[#allocation2 + $0x8c] ss:$0 sps:$4 sm:$0x77]  }
 0x51f   : > { %12930 = vmatmul.mubr.bf16.gmra.mxu1 %v5950_v14  ;;  %v17678_v9 = vpop.f32.mrf.mxu0 }
 0x520   : > { %19538 = vst [vmem:[#allocation83_spill] sm:$0xff] %v17678_v9  ;;  %12985 = vmatprep.mubr.msk.bf16.mxu1 %vm14437_vm0, %v19364_v47 }
 0x521   : > { %v13244_v19 = vpop.f32.mrf.mxu0 }
 0x522   : > { %v14173_v19 = vld [vmem:[%s19181_s6 + $0x140] sm:$0xff]  }
 0x523   : > { %v17682_v61 = vpop.f32.mrf.mxu0 }
 0x524   : > { %19539 = vst [vmem:[#allocation77_spill] sm:$0xff] %v17682_v61 }
 0x525   : > { %v13247_v33 = vpop.f32.mrf.mxu0 }
 0x526   : > { %v6343_v33 = vrot.slane %v14172_v30, 3 }
 0x527   : > { %12986 = vmatmul.mubr.bf16.vlgmr.msra.gmra.mxu1 %v19540_v63  ;;  %v17688_v21 = vpop.f32.mrf.mxu0 }
 0x528   : > { %19541 = vst [vmem:[#allocation85_spill] sm:$0xff] %v17688_v21  ;;  %13042 = vmatpush3.bf16.msra.mxu1 %v14162_v34  ;;  %12989 = vmatprep.mubr.msk.bf16.mxu1 %vm14437_vm0, %v19364_v47 }
 0x529   : > { %v13248_v53 = vpop.f32.mrf.mxu0  ;;  %13043 = vmatprep.subr.bf16.mxu1 %v19364_v47 }
 0x52a   : > { %v19550_v53 = vld [vmem:[#allocation113_spill] sm:$0xff] }
 0x52b   : > { %v17696_v13 = vpop.f32.mrf.mxu0 }
 0x52c   : > { %19542 = vst [vmem:[#allocation139_spill] sm:$0xff] %v17696_v13  ;;  %13044 = vmatpush3.bf16.msra.mxu1 %v14163_v27  ;;  %v19608_v13 = vld [vmem:[#allocation158_spill] sm:$0xff] }
 0x52d   : > { %v13251_v32 = vpop.f32.mrf.mxu0  ;;  %13045 = vmatprep.subr.bf16.mxu1 %v19364_v47 }
 0x52e   : > { %v14175_v32 = vld [vmem:[#allocation2 + $0x70] sm:$0xff]  }
 0x52f   : > { %12990 = vmatmul.mubr.bf16.gmra.mxu1 %v19543_v62  ;;  %v17703_v24 = vpop.f32.mrf.mxu0 }
 0x530   : > { %19544 = vst [vmem:[#allocation76_spill] sm:$0xff] %v17703_v24  ;;  %13046 = vmatpush3.bf16.msra.mxu1 %v14165_v6  ;;  %12993 = vmatprep.mubr.msk.bf16.mxu1 %vm14437_vm0, %v19364_v47  ;;  %v6344_v6 = vsel %vm2163_vm1, %v19550_v53, %v6343_v33 }
 0x531   : > { %v13252_v55 = vpop.f32.mrf.mxu0  ;;  %13047 = vmatprep.subr.bf16.mxu1 %v19364_v47 }
 0x533   : > { %v17711_v31 = vpop.f32.mrf.mxu0 }
 0x534   : > { %19545 = vst [vmem:[#allocation141_spill] sm:$0xff] %v17711_v31  ;;  %13048 = vmatpush3.bf16.msra.mxu1 %v14166_v26  ;;  %v14174_v26 = vld [vmem:[#allocation2 + $0x68] sm:$0xfe]  }
 0x535   : > { %v13255_v20 = vpop.f32.mrf.mxu0  ;;  %13049 = vmatprep.subr.bf16.mxu1 %v19364_v47 }
 0x537   : > { %12994 = vmatmul.mubr.bf16.gmra.mxu1 %v19546_v8  ;;  %v17718_v15 = vpop.f32.mrf.mxu0  ;;  %v6696_v8 = vrot.slane %v14174_v26, 1 }
 0x538   : > { %19547 = vst [vmem:[#allocation80_spill] sm:$0xff] %v17718_v15  ;;  %13050 = vmatpush3.bf16.msra.mxu1 %v14168_v17  ;;  %12997 = vmatprep.mubr.msk.bf16.mxu1 %vm14437_vm0, %v19364_v47  ;;  %v6697_v17 = vrot.slane %v14175_v32, 1  ;;  %v14181_v32 = vld [vmem:[#allocation2 + $0x80] sm:$0xff]  }
 0x539   : > { %v13256_v7 = vpop.f32.mrf.mxu0  ;;  %13051 = vmatprep.subr.bf16.mxu1 %v19364_v47 }
 0x53b   : > { %v17726_v40 = vpop.f32.mrf.mxu0 }
 0x53c   : > { %13052 = vmatpush3.bf16.msra.mxu1 %v14170_v18  ;;  %v14176_v18 = vld [vmem:[%s19181_s6 + $0x1f8] sm:$0xff]  }
 0x53d   : > { %v13311_v42 = vpop.f32.mrf.mxu0  ;;  %13053 = vmatprep.subr.bf16.mxu1 %v19364_v47 }
 0x53e   : > { %v14178_v42 = vld [vmem:[#allocation2 + $0x78] sm:$0xff]  }
 0x53f   : > { %12998 = vmatmul.mubr.bf16.gmra.mxu1 %v19548_v38  ;;  %v17733_v14 = vpop.f32.mrf.mxu0  ;;  %v14177_v38 = vld [vmem:[%s19181_s6 + $0x1f0] sm:$0xff]  }
 0x540   : > { %13054 = vmatpush3.bf16.msra.mxu1 %v14171_v11  ;;  %13001 = vmatprep.mubr.msk.bf16.mxu1 %vm14437_vm0, %v19364_v47  ;;  %v6698_v11 = vsel %vm2357_vm2, %v6696_v8, %v6697_v17 }
 0x541   : > { %v13312_v34 = vpop.f32.mrf.mxu0  ;;  %13055 = vmatprep.subr.bf16.mxu1 %v19364_v47 }
 0x542   : > { %v6699_v34 = vrot.slane %v14178_v42, 1 }
 0x543   : > { %v17741_v63 = vpop.f32.mrf.mxu0 }
 0x544   : > { %19549 = vst [vmem:[#allocation143_spill] sm:$0xff] %v17741_v63  ;;  %13056 = vmatpush3.bf16.msra.mxu1 %v14173_v19 }
 0x545   : > { %v13315_v27 = vpop.f32.mrf.mxu0  ;;  %13113 = vmatprep.subr.bf16.mxu1 %v19364_v47 }
 0x546   : > { %v14179_v27 = vld [vmem:[%s19181_s6 + $0x1e8] sm:$0xff]  }
 0x547   : > { %13002 = vmatmul.mubr.bf16.gmra.mxu1 %v6344_v6  ;;  %v17746_v62 = vpop.f32.mrf.mxu0  ;;  %v6700_v6 = vsel %vm2357_vm2, %v6697_v17, %v6699_v34  ;;  %v14182_v17 = vld [vmem:[%s19181_s6 + $0x1d8] sm:$0xff]  }
 0x548   : > { %19551 = vst [vmem:[#allocation81_spill] sm:$0xff] %v17746_v62  ;;  %13057 = vmatprep.mubr.msk.bf16.mxu1 %vm14437_vm0, %v19364_v47  ;;  %v19609_v62 = vld [vmem:[#allocation150_spill] sm:$0xff] }
 0x549   : > { %v13316_v55 = vpop.f32.mrf.mxu0 }
 0x54a   : > { %v14180_v55 = vld [vmem:[%s19181_s6 + $0x1e0] sm:$0xff]  }
 0x54b   : > { %v17750_v20 = vpop.f32.mrf.mxu0 }
 0x54c   : > { %19552 = vst [vmem:[#allocation145_spill] sm:$0xff] %v17750_v20 }
 0x54d   : > { %v13319_v7 = vpop.f32.mrf.mxu0 }
 0x54f   : > { %13058 = vmatmul.mubr.bf16.vlgmr.msra.gmra.mxu1 %v6698_v11  ;;  %v17756_v30 = vpop.f32.mrf.mxu0 }
 0x550   : > { %19553 = vst [vmem:[#allocation96_spill] sm:$0xff] %v17756_v30  ;;  %13114 = vmatpush3.bf16.msra.mxu1 %v14176_v18  ;;  %13061 = vmatprep.mubr.msk.bf16.mxu1 %vm14437_vm0, %v19364_v47  ;;  %v6701_v18 = vrot.slane %v14181_v32, 1 }
 0x551   : > { %v13320_v19 = vpop.f32.mrf.mxu0  ;;  %13115 = vmatprep.subr.bf16.mxu1 %v19364_v47 }
 0x552   : > { %v6702_v42 = vsel %vm2357_vm2, %v6699_v34, %v6701_v18  ;;  %v14185_v34 = vld [vmem:[%s19181_s6 + $0x1c8] sm:$0xff]  }
 0x553   : > { %v17764_v33 = vpop.f32.mrf.mxu0 }
 0x554   : > { %19554 = vst [vmem:[#allocation101_spill] sm:$0xff] %v17764_v33  ;;  %13116 = vmatpush3.bf16.msra.mxu1 %v14177_v38  ;;  %v14183_v38 = vld [vmem:[#allocation2 + $0x88] sm:$0xff]  }
 0x555   : > { %v13323_v53 = vpop.f32.mrf.mxu0  ;;  %13117 = vmatprep.subr.bf16.mxu1 %v19364_v47 }
 0x557   : > { %13062 = vmatmul.mubr.bf16.gmra.mxu1 %v6700_v6  ;;  %v17771_v26 = vpop.f32.mrf.mxu0  ;;  %v6703_v6 = vrot.slane %v14183_v38, 1 }
 0x558   : > { %19555 = vst [vmem:[#allocation104_spill] sm:$0xff] %v17771_v26  ;;  %13118 = vmatpush3.bf16.msra.mxu1 %v14179_v27  ;;  %13065 = vmatprep.mubr.msk.bf16.mxu1 %vm14437_vm0, %v19364_v47  ;;  %v14184_v27 = vld [vmem:[%s19181_s6 + $0x1d0] sm:$0xff]  }
 0x559   : > { %v13324_v8 = vpop.f32.mrf.mxu0  ;;  %13119 = vmatprep.subr.bf16.mxu1 %v19364_v47 }
 0x55a   : > { %v6704_v8 = vsel %vm2357_vm2, %v6701_v18, %v6703_v6 }
 0x55b   : > { %v17779_v7 = vpop.f32.mrf.mxu0 }
 0x55c   : > { %19556 = vst [vmem:[#allocation105_spill] sm:$0xff] %v17779_v7  ;;  %13120 = vmatpush3.bf16.msra.mxu1 %v14180_v55 }
 0x55d   : > { %v13327_v11 = vpop.f32.mrf.mxu0  ;;  %13121 = vmatprep.subr.bf16.mxu1 %v19364_v47 }
 0x55f   : > { %13066 = vmatmul.mubr.bf16.gmra.mxu1 %v6702_v42  ;;  %v17786_v19 = vpop.f32.mrf.mxu0  ;;  %v14187_v42 = vld [vmem:[%s19181_s6 + $0x1c0] sm:$0xff]  }
 0x560   : > { %19557 = vst [vmem:[#allocation103_spill] sm:$0xff] %v17786_v19  ;;  %13122 = vmatpush3.bf16.msra.mxu1 %v14182_v17  ;;  %13069 = vmatprep.mubr.msk.bf16.mxu1 %vm14437_vm0, %v19364_v47  ;;  %v14186_v17 = vld [vmem:[#allocation2 + $0x90] ss:$0 sps:$4 sm:$0x11]  }
 0x561   : > { %v13328_v53 = vpop.f32.mrf.mxu0  ;;  %13123 = vmatprep.subr.bf16.mxu1 %v19364_v47 }
 0x563   : > { %v17794_v32 = vpop.f32.mrf.mxu0 }
 0x564   : > { %19558 = vst [vmem:[#allocation110_spill] sm:$0xff] %v17794_v32  ;;  %13124 = vmatpush3.bf16.msra.mxu1 %v14184_v27  ;;  %v6705_v27 = vrot.slane %v14186_v17, 1  ;;  %v19564_v17 = vld [vmem:[#allocation100_spill] sm:$0xff] }
 0x565   : > { %v13383_v55 = vpop.f32.mrf.mxu0  ;;  %13125 = vmatprep.subr.bf16.mxu1 %v19364_v47 }
 0x566   : > { %v6706_v55 = vsel %vm2357_vm2, %v6703_v6, %v6705_v27 }
 0x567   : > { %13070 = vmatmul.mubr.bf16.gmra.mxu1 %v6704_v8  ;;  %v17801_v11 = vpop.f32.mrf.mxu0 }
 0x568   : > { %19559 = vst [vmem:[#allocation112_spill] sm:$0xff] %v17801_v11  ;;  %13126 = vmatpush3.bf16.msra.mxu1 %v14185_v34  ;;  %13073 = vmatprep.mubr.msk.bf16.mxu1 %vm14437_vm0, %v19364_v47  ;;  %v19563_v11 = vld [vmem:[#allocation99_spill] sm:$0xff] }
 0x569   : > { %v13384_v38 = vpop.f32.mrf.mxu0  ;;  %13127 = vmatprep.subr.bf16.mxu1 %v19364_v47  ;;  %v19565_v32 = vcombine.low %v19563_v11, %v19564_v17  ;;  %v19573_v17 = vld [vmem:[#allocation114_spill] sm:$0xff] }
 0x56b   : > { %v17809_v53 = vpop.f32.mrf.mxu0 }
 0x56c   : > { %19560 = vst [vmem:[#allocation116_spill] sm:$0xff] %v17809_v53  ;;  %13128 = vmatpush3.bf16.msra.mxu1 %v14187_v42 }
 0x56d   : > { %v13387_v18 = vpop.f32.mrf.mxu0  ;;  %13185 = vmatprep.subr.bf16.mxu1 %v19364_v47 }
 0x56f   : > { %13074 = vmatmul.mubr.bf16.gmra.mxu1 %v6706_v55  ;;  %v17813_v34 = vpop.f32.mrf.mxu0  ;;  %v19568_v55 = vld [vmem:[#allocation107_spill] sm:$0xff] }
 0x570   : > { %19561 = vst [vmem:[#allocation117_spill] sm:$0xff] %v17813_v34  ;;  %13129 = vmatprep.mubr.msk.bf16.mxu1 %vm14437_vm0, %v19364_v47  ;;  %v19569_v34 = vld [vmem:[#allocation108_spill] sm:$0xff] }
 0x571   : > { %v13388_v8 = vpop.f32.mrf.mxu0  ;;  %v19570_v53 = vcombine.low %v19568_v55, %v19569_v34  ;;  %v19578_v55 = vld [vmem:[#allocation120_spill] sm:$0xff] }
 0x573   : > { %v17817_v44 = vpop.f32.mrf.mxu0 }
 0x574   : > { %19562 = vst [vmem:[#allocation113_spill] sm:$0xff] %v17817_v44 }
 0x575   : > { %v13391_v38 = vpop.f32.mrf.mxu0 }
 0x577   : > { %13130 = vmatmul.mubr.bf16.vlgmr.msra.gmra.mxu1 %v19565_v32  ;;  %v17822_v42 = vpop.f32.mrf.mxu0 }
 0x578   : > { %19566 = vst [vmem:[#allocation99_spill] sm:$0xff] %v17822_v42  ;;  %13133 = vmatprep.mubr.msk.bf16.mxu1 %vm14437_vm0, %v19364_v47  ;;  %v19574_v42 = vld [vmem:[#allocation115_spill] sm:$0xff] }
 0x579   : > { %v13392_v6 = vpop.f32.mrf.mxu0  ;;  %v19575_v44 = vcombine.low %v19573_v17, %v19574_v42 }
 0x57b   : > { %v17826_v27 = vpop.f32.mrf.mxu0 }
 0x57c   : > { %19567 = vst [vmem:[#allocation100_spill] sm:$0xff] %v17826_v27 }
 0x57d   : > { %v13395_v18 = vpop.f32.mrf.mxu0 }
 0x57f   : > { %13134 = vmatmul.mubr.bf16.gmra.mxu1 %v19570_v53  ;;  %v17831_v8 = vpop.f32.mrf.mxu0 }
 0x580   : > { %19571 = vst [vmem:[#allocation107_spill] sm:$0xff] %v17831_v8  ;;  %13137 = vmatprep.mubr.msk.bf16.mxu1 %vm14437_vm0, %v19364_v47  ;;  %v19579_v8 = vld [vmem:[#allocation121_spill] sm:$0xff] }
 0x581   : > { %v13396_v11 = vpop.f32.mrf.mxu0  ;;  %v19580_v27 = vcombine.low %v19578_v55, %v19579_v8 }
 0x583   : > { %v17835_v32 = vpop.f32.mrf.mxu0 }
 0x584   : > { %19572 = vst [vmem:[#allocation108_spill] sm:$0xff] %v17835_v32 }
 0x585   : > { %v13399_v38 = vpop.f32.mrf.mxu0 }
 0x587   : > { %13138 = vmatmul.mubr.bf16.gmra.mxu1 %v19575_v44  ;;  %v17840_v6 = vpop.f32.mrf.mxu0  ;;  %v7045_v44 = vld [vmem:[#allocation2 + $0xa0] sm:$0xf] }
 0x588   : > { %19576 = vst [vmem:[#allocation114_spill] sm:$0xff] %v17840_v6  ;;  %13141 = vmatprep.mubr.msk.bf16.mxu1 %vm14437_vm0, %v19364_v47  ;;  %v14367_v6 = vld [vmem:[#allocation2 + $0x9c] sm:$0xf] }
 0x589   : > { %v13400_v34 = vpop.f32.mrf.mxu0  ;;  %v11012_v32 = vcombine.low %v14367_v6, %v7045_v44  ;;  %v14192_v6 = vld [vmem:[%s19183_s8 + $0x38] sm:$0xff]  }
 0x58a   : > { %13186 = vmatpush3.bf16.msra.mxu1 %v14192_v6  ;;  %v14194_v6 = vld [vmem:[%s19183_s8 + $0x28] sm:$0xff]  }
 0x58b   : > { %v17844_v53 = vpop.f32.mrf.mxu0  ;;  %13187 = vmatprep.subr.bf16.mxu1 %v19364_v47 }
 0x58c   : > { %19577 = vst [vmem:[#allocation115_spill] sm:$0xff] %v17844_v53 }
 0x58d   : > { %v13455_v18 = vpop.f32.mrf.mxu0 }
 0x58f   : > { %13142 = vmatmul.mubr.bf16.gmra.mxu1 %v19580_v27  ;;  %v17849_v11 = vpop.f32.mrf.mxu0 }
 0x590   : > { %19581 = vst [vmem:[#allocation120_spill] sm:$0xff] %v17849_v11  ;;  %13145 = vmatprep.mubr.msk.bf16.mxu1 %vm14437_vm0, %v19364_v47 }
 0x591   : > { %v13456_v42 = vpop.f32.mrf.mxu0 }
 0x593   : > { %v17853_v38 = vpop.f32.mrf.mxu0 }
 0x594   : > { %19582 = vst [vmem:[#allocation121_spill] sm:$0xff] %v17853_v38 }
 0x595   : > { %v13459_v17 = vpop.f32.mrf.mxu0 }
 0x597   : > { %v17855_v34 = vpop.f32.mrf.mxu1  ;;  %13146 = vmatmul.mubr.bf16.gmra.mxu1 %v11012_v32  ;;  %v17857_v18 = vpop.f32.mrf.mxu0 }
 0x598   : > { %19583 = vst [vmem:[#allocation169_spill] sm:$0xff] %v17855_v34  ;;  %19584 = vst [vmem:[#allocation170_spill] sm:$0xff] %v17857_v18  ;;  %13201 = vmatprep.mubr.msk.bf16.mxu1 %vm14437_vm0, %v19364_v47 }
 0x599   : > { %v12843_v27 = vpop.f32.mrf.mxu1  ;;  %v13460_v8 = vpop.f32.mrf.mxu0 }
 0x59b   : > { %v17861_v55 = vpop.f32.mrf.mxu1  ;;  %v17863_v11 = vpop.f32.mrf.mxu0 }
 0x59c   : > { %19585 = vst [vmem:[#allocation171_spill] sm:$0xff] %v17861_v55  ;;  %19586 = vst [vmem:[#allocation172_spill] sm:$0xff] %v17863_v11 }
 0x59d   : > { %v12844_v42 = vpop.f32.mrf.mxu1  ;;  %v13463_v53 = vpop.f32.mrf.mxu0 }
 0x59e   : > { %v14193_v53 = vld [vmem:[%s19183_s8 + $0x30] sm:$0xff]  }
 0x59f   : > { %v17868_v44 = vpop.f32.mrf.mxu1  ;;  %v17870_v32 = vpop.f32.mrf.mxu0  ;;  %13188 = vmatpush3.bf16.msra.mxu1 %v14193_v53 }
 0x5a0   : > { %19587 = vst [vmem:[#allocation173_spill] sm:$0xff] %v17868_v44  ;;  %19588 = vst [vmem:[#allocation174_spill] sm:$0xff] %v17870_v32  ;;  %13189 = vmatprep.subr.bf16.mxu1 %v19364_v47 }
 0x5a1   : > { %v12847_v17 = vpop.f32.mrf.mxu1  ;;  %v13464_v27 = vpop.f32.mrf.mxu0 }
 0x5a3   : > { %v17873_v8 = vpop.f32.mrf.mxu1  ;;  %v17875_v34 = vpop.f32.mrf.mxu0  ;;  %13190 = vmatpush3.bf16.msra.mxu1 %v14194_v6 }
 0x5a4   : > { %19589 = vst [vmem:[#allocation175_spill] sm:$0xff] %v17873_v8  ;;  %19590 = vst [vmem:[#allocation176_spill] sm:$0xff] %v17875_v34  ;;  %13191 = vmatprep.subr.bf16.mxu1 %v19364_v47 }
 0x5a5   : > { %v12848_v42 = vpop.f32.mrf.mxu1  ;;  %v13467_v55 = vpop.f32.mrf.mxu0 }
 0x5a6   : > { %v14195_v42 = vld [vmem:[%s19183_s8 + $0x20] sm:$0xff]  }
 0x5a7   : > { %v17880_v11 = vpop.f32.mrf.mxu1  ;;  %v17882_v44 = vpop.f32.mrf.mxu0  ;;  %13192 = vmatpush3.bf16.msra.mxu1 %v14195_v42 }
 0x5a8   : > { %19591 = vst [vmem:[#allocation177_spill] sm:$0xff] %v17880_v11  ;;  %19592 = vst [vmem:[#allocation178_spill] sm:$0xff] %v17882_v44  ;;  %13193 = vmatprep.subr.bf16.mxu1 %v19364_v47 }
 0x5a9   : > { %v12851_v17 = vpop.f32.mrf.mxu1  ;;  %v13468_v27 = vpop.f32.mrf.mxu0 }
 0x5aa   : > { %v14196_v27 = vld [vmem:[%s19183_s8 + $0x18] sm:$0xff]  }
 0x5ab   : > { %v17888_v8 = vpop.f32.mrf.mxu1  ;;  %v17890_v34 = vpop.f32.mrf.mxu0  ;;  %13194 = vmatpush3.bf16.msra.mxu1 %v14196_v27  ;;  %v14197_v27 = vld [vmem:[%s19183_s8 + $0x10] sm:$0xff]  }
 0x5ac   : > { %19593 = vst [vmem:[#allocation179_spill] sm:$0xff] %v17888_v8  ;;  %19594 = vst [vmem:[#allocation180_spill] sm:$0xff] %v17890_v34  ;;  %13195 = vmatprep.subr.bf16.mxu1 %v19364_v47 }
 0x5ad   : > { %v12852_v55 = vpop.f32.mrf.mxu1  ;;  %v13471_v53 = vpop.f32.mrf.mxu0 }
 0x5af   : > { %v17896_v11 = vpop.f32.mrf.mxu1  ;;  %v17898_v44 = vpop.f32.mrf.mxu0  ;;  %13196 = vmatpush3.bf16.msra.mxu1 %v14197_v27 }
 0x5b0   : > { %19595 = vst [vmem:[#allocation181_spill] sm:$0xff] %v17896_v11  ;;  %19596 = vst [vmem:[#allocation182_spill] sm:$0xff] %v17898_v44  ;;  %13197 = vmatprep.subr.bf16.mxu1 %v19364_v47 }
 0x5b1   : > { %v12855_v6 = vpop.f32.mrf.mxu1  ;;  %v13472_v17 = vpop.f32.mrf.mxu0 }
 0x5b3   : > { %v17904_v8 = vpop.f32.mrf.mxu1  ;;  %v17906_v55 = vpop.f32.mrf.mxu0 }
 0x5b4   : > { %19597 = vst [vmem:[#allocation183_spill] sm:$0xff] %v17904_v8  ;;  %19598 = vst [vmem:[#allocation184_spill] sm:$0xff] %v17906_v55 }
 0x5b5   : > { %v12856_v53 = vpop.f32.mrf.mxu1  ;;  %v13527_v11 = vpop.f32.mrf.mxu0 }
 0x5b7   : > { %v17909_v34 = vpop.f32.mrf.mxu1  ;;  %v17911_v42 = vpop.f32.mrf.mxu0 }
 0x5b8   : > { %19599 = vst [vmem:[#allocation185_spill] sm:$0xff] %v17909_v34  ;;  %19600 = vst [vmem:[#allocation186_spill] sm:$0xff] %v17911_v42  ;;  %v14199_v34 = vld [vmem:[%s19183_s8] sm:$0xff]  }
 0x5b9   : > { %v12859_v44 = vpop.f32.mrf.mxu1  ;;  %v13528_v6 = vpop.f32.mrf.mxu0 }
 0x5bb   : > { %v17913_v17 = vpop.f32.mrf.mxu1  ;;  %v17915_v32 = vpop.f32.mrf.mxu0 }
 0x5bc   : > { %19601 = vst [vmem:[#allocation187_spill] sm:$0xff] %v17913_v17  ;;  %19602 = vst [vmem:[#allocation188_spill] sm:$0xff] %v17915_v32 }
 0x5bd   : > { %v12860_v18 = vpop.f32.mrf.mxu1  ;;  %v13531_v38 = vpop.f32.mrf.mxu0 }
 0x5be   : > { %v14198_v18 = vld [vmem:[%s19183_s8 + $0x8] sm:$0xff]  }
 0x5bf   : > { %v6038_v8 = vpop.f32.mrf.mxu1  ;;  %v17920_v55 = vpop.f32.mrf.mxu0  ;;  %13198 = vmatpush3.bf16.msra.mxu1 %v14198_v18 }
 0x5c0   : > { %19603 = vst [vmem:[#allocation189_spill] sm:$0xff] %v17920_v55  ;;  %13199 = vmatprep.subr.bf16.mxu1 %v19364_v47 }
 0x5c1   : > { %v12915_v11 = vpop.f32.mrf.mxu1  ;;  %v13532_v53 = vpop.f32.mrf.mxu0 }
 0x5c3   : > { %v6041_v44 = vpop.f32.mrf.mxu1  ;;  %v17923_v6 = vpop.f32.mrf.mxu0  ;;  %13200 = vmatpush3.bf16.msra.mxu1 %v14199_v34 }
 0x5c4   : > { %19604 = vst [vmem:[#allocation190_spill] sm:$0xff] %v17923_v6  ;;  %13257 = vmatprep.subr.bf16.mxu1 %v19364_v47 }
 0x5c5   : > { %v12916_v38 = vpop.f32.mrf.mxu1  ;;  %v13535_v17 = vpop.f32.mrf.mxu0 }
 0x5c7   : > { %v6046_v55 = vpop.f32.mrf.mxu1  ;;  %v17931_v27 = vpop.f32.mrf.mxu0 }
 0x5c8   : > { %19605 = vst [vmem:[#allocation191_spill] sm:$0xff] %v17931_v27  ;;  %v19606_v27 = vld [vmem:[#allocation147_spill] sm:$0xff] }
 0x5c9   : > { %v12919_v11 = vpop.f32.mrf.mxu1  ;;  %v13536_v53 = vpop.f32.mrf.mxu0  ;;  %v6039_v24 = vadd.f32 %v6038_v8, %v19606_v27 }
 0x5ca   : > { %v19607_v53 = vld [vmem:[#allocation149_spill] sm:$0xff] }
 0x5cb   : > { %v6049_v6 = vpop.f32.mrf.mxu1  ;;  %v6042_v34 = vadd.f32 %v6041_v44, %v19607_v53  ;;  %v6269_v20 = vadd.f32 %v19608_v13, %v6039_v24  ;;  %v19611_v53 = vld [vmem:[#allocation152_spill] sm:$0xff] }
 0x5cd   : > { %v12920_v32 = vpop.f32.mrf.mxu1 }
 0x5cf   : > { %v6054_v42 = vpop.f32.mrf.mxu1 }
 0x5d0   : > { %v6055_v13 = vadd.f32 %v6054_v42, %v19611_v53 }
 0x5d1   : > { %v12923_v38 = vpop.f32.mrf.mxu1 }
 0x5d3   : > { %v6057_v17 = vpop.f32.mrf.mxu1 }
 0x5d5   : > { %v12924_v18 = vpop.f32.mrf.mxu1 }
 0x5d6   : > { %v6047_v18 = vadd.f32 %v6046_v55, %v19609_v62  ;;  %v19612_v55 = vld [vmem:[#allocation153_spill] sm:$0xff] }
 0x5d7   : > { %v6062_v19 = vpop.f32.mrf.mxu1 }
 0x5d8   : > { %v6271_v8 = vadd.f32 %v17236_v59, %v6047_v18  ;;  %v19613_v59 = vld [vmem:[#allocation154_spill] sm:$0xff] }
 0x5d9   : > { %v12927_v7 = vpop.f32.mrf.mxu1 }
 0x5da   : > { %v6270_v7 = vadd.f32 %v17225_v56, %v6042_v34  ;;  %v6058_v56 = vadd.f32 %v6057_v17, %v19612_v55 }
 0x5db   : > { %v6065_v15 = vpop.f32.mrf.mxu1 }
 0x5dc   : > { %v6274_v18 = vadd.f32 %v17274_v5, %v6058_v56 }
 0x5dd   : > { %v12928_v26 = vpop.f32.mrf.mxu1 }
 0x5df   : > { %v6070_v31 = vpop.f32.mrf.mxu1 }
 0x5e1   : > { %v12931_v33 = vpop.f32.mrf.mxu1 }
 0x5e2   : > { %v19610_v33 = vld [vmem:[#allocation151_spill] sm:$0xff] }
 0x5e3   : > { %v6073_v30 = vpop.f32.mrf.mxu1  ;;  %v6050_v9 = vadd.f32 %v6049_v6, %v19610_v33 }
 0x5e5   : > { %v12932_v11 = vpop.f32.mrf.mxu1 }
 0x5e7   : > { %v6432_v21 = vpop.f32.mrf.mxu1 }
 0x5e8   : > { %v17938_v32 = vadd.f32 %v6432_v21, %v6269_v20  ;;  %v6272_v21 = vadd.f32 %v17249_v12, %v6050_v9  ;;  %v19614_v9 = vld [vmem:[#allocation155_spill] sm:$0xff] }
 0x5e9   : > { %v12987_v38 = vpop.f32.mrf.mxu1  ;;  %v6066_v33 = vadd.f32 %v6065_v15, %v19614_v9 }
 0x5ea   : > { %v6063_v38 = vadd.f32 %v6062_v19, %v19613_v59 }
 0x5eb   : > { %v6435_v61 = vpop.f32.mrf.mxu1 }
 0x5ec   : > { %v6472_v26 = vadd.f32 %v6435_v61, %v6270_v7  ;;  %v6273_v61 = vadd.f32 %v17261_v58, %v6055_v13  ;;  %v6276_v13 = vadd.f32 %v17299_v45, %v6066_v33 }
 0x5ed   : > { %v12988_v63 = vpop.f32.mrf.mxu1 }
 0x5ef   : > { %v6440_v27 = vpop.f32.mrf.mxu1 }
 0x5f0   : > { %v6473_v11 = vadd.f32 %v6440_v27, %v6271_v8  ;;  %v6275_v8 = vadd.f32 %v17286_v51, %v6063_v38 }
 0x5f1   : > { %v12991_v44 = vpop.f32.mrf.mxu1 }
 0x5f2   : > { %v19615_v44 = vld [vmem:[#allocation156_spill] sm:$0xff] }
 0x5f3   : > { %v6443_v24 = vpop.f32.mrf.mxu1  ;;  %v6071_v53 = vadd.f32 %v6070_v31, %v19615_v44 }
 0x5f4   : > { %v17946_v20 = vadd.f32 %v6443_v24, %v6272_v21  ;;  %v19616_v24 = vld [vmem:[#allocation157_spill] sm:$0xff] }
 0x5f5   : > { %v12992_v62 = vpop.f32.mrf.mxu1  ;;  %v6277_v55 = vadd.f32 %v17311_v48, %v6071_v53 }
 0x5f6   : > { %v6074_v62 = vadd.f32 %v6073_v30, %v19616_v24 }
 0x5f7   : > { %v6448_v63 = vpop.f32.mrf.mxu1 }
 0x5f8   : > { %v17950_v34 = vadd.f32 %v6448_v63, %v6273_v61  ;;  %v6278_v61 = vadd.f32 %v17324_v41, %v6074_v62 }
 0x5f9   : > { %v12995_v6 = vpop.f32.mrf.mxu1 }
 0x5fb   : > { %v6451_v7 = vpop.f32.mrf.mxu1 }
 0x5fc   : > { %v17954_v42 = vadd.f32 %v6451_v7, %v6274_v18 }
 0x5fd   : > { %v12996_v12 = vpop.f32.mrf.mxu1 }
 0x5ff   : > { %v6456_v27 = vpop.f32.mrf.mxu1 }
 0x600   : > { %v17958_v17 = vadd.f32 %v6456_v27, %v6275_v8 }
 0x601   : > { %v12999_v58 = vpop.f32.mrf.mxu1 }
 0x603   : > { %v6459_v21 = vpop.f32.mrf.mxu1 }
 0x604   : > { %v17962_v19 = vadd.f32 %v6459_v21, %v6276_v13  ;;  %v6631_v21 = vadd.f32 %v17331_v16, %v17938_v32  ;;  %v19620_v32 = vld [vmem:[#allocation161_spill] sm:$0xff] }
 0x605   : > { %v13000_v5 = vpop.f32.mrf.mxu1 }
 0x607   : > { %v6464_v56 = vpop.f32.mrf.mxu1 }
 0x608   : > { %v17966_v15 = vadd.f32 %v6464_v56, %v6277_v55  ;;  %v19617_v55 = vld [vmem:[#allocation159_spill] sm:$0xff] }
 0x609   : > { %v13003_v51 = vpop.f32.mrf.mxu1  ;;  %v6632_v56 = vadd.f32 %v19617_v55, %v6472_v26  ;;  %v17989_v26 = vld [vmem:[%s19182_s7] ss:$0 sm:$0xff] }
 0x60b   : > { %v6467_v63 = vpop.f32.mrf.mxu1 }
 0x60c   : > { %v17969_v6 = vadd.f32 %v6467_v63, %v6278_v61  ;;  %v19618_v63 = vld [vmem:[#allocation168_spill] sm:$0xff] }
 0x60d   : > { %v13004_v31 = vpop.f32.mrf.mxu1 }
 0x60f   : > { %v6794_v59 = vpop.f32.mrf.mxu1 }
 0x610   : > { %v6833_v24 = vadd.f32 %v6794_v59, %v6631_v21  ;;  %v6634_v59 = vadd.f32 %v19620_v32, %v17946_v20 }
 0x611   : > { %v13059_v45 = vpop.f32.mrf.mxu1 }
 0x612   : > { %v7035_v31 = vadd.f32 %v19618_v63, %v6833_v24 }
 0x613   : > { %v6797_v38 = vpop.f32.mrf.mxu1 }
 0x614   : > { %v6834_v61 = vadd.f32 %v6797_v38, %v6632_v56 }
 0x615   : > { %v13060_v18 = vpop.f32.mrf.mxu1 }
 0x616   : > { %v19619_v18 = vld [vmem:[#allocation160_spill] sm:$0xff]  ;;  %v7036_v16 = vadd.f32 %v17426_v35, %v6834_v61  ;;  %v19621_v35 = vld [vmem:[#allocation162_spill] sm:$0xff] }
 0x617   : > { %v6802_v7 = vpop.f32.mrf.mxu1  ;;  %v6635_v55 = vadd.f32 %v19621_v35, %v17950_v34 }
 0x619   : > { %v13063_v12 = vpop.f32.mrf.mxu1 }
 0x61a   : > { %v6633_v12 = vadd.f32 %v19619_v18, %v6473_v11  ;;  %v19622_v18 = vld [vmem:[#allocation163_spill] sm:$0xff] }
 0x61b   : > { %v6805_v9 = vpop.f32.mrf.mxu1 }
 0x61c   : > { %v6836_v21 = vadd.f32 %v6805_v9, %v6634_v59 }
 0x61d   : > { %v13064_v30 = vpop.f32.mrf.mxu1 }
 0x61e   : > { %v7038_v61 = vadd.f32 %v17456_v60, %v6836_v21 }
 0x61f   : > { %v6810_v33 = vpop.f32.mrf.mxu1 }
 0x620   : > { %v6837_v63 = vadd.f32 %v6810_v33, %v6635_v55 }
 0x621   : > { %v13067_v48 = vpop.f32.mrf.mxu1 }
 0x622   : > { %v7039_v33 = vadd.f32 %v17470_v10, %v6837_v63 }
 0x623   : > { %v6813_v8 = vpop.f32.mrf.mxu1 }
 0x625   : > { %v13068_v27 = vpop.f32.mrf.mxu1 }
 0x626   : > { %v6835_v27 = vadd.f32 %v6802_v7, %v6633_v12 }
 0x627   : > { %v6818_v58 = vpop.f32.mrf.mxu1 }
 0x629   : > { %v13071_v44 = vpop.f32.mrf.mxu1 }
 0x62b   : > { %v17971_v53 = vpop.f32.mrf.mxu1 }
 0x62d   : > { %v13072_v41 = vpop.f32.mrf.mxu1 }
 0x62f   : > { %v17973_v13 = vpop.f32.mrf.mxu1 }
 0x631   : > { %v13075_v5 = vpop.f32.mrf.mxu1 }
 0x633   : > { %v17977_v62 = vpop.f32.mrf.mxu1 }
 0x635   : > { %v13076_v51 = vpop.f32.mrf.mxu1 }
 0x637   : > { %v7156_v45 = vpop.f32.mrf.mxu1 }
 0x638   : > { %v7195_v30 = vadd.f32 %v7156_v45, %v7035_v31 }
 0x639   : > { %v13131_v48 = vpop.f32.mrf.mxu1 }
 0x63a   : > { %v7397_v44 = vadd.f32 %v17573_v52, %v7195_v30  ;;  %v7037_v52 = vadd.f32 %v17437_v23, %v6835_v27  ;;  %v14200_v23 = vld [vmem:[%s19181_s6 + $0x38] sm:$0xff]  }
 0x63b   : > { %v7159_v38 = vpop.f32.mrf.mxu1 }
 0x63c   : > { %v7196_v41 = vadd.f32 %v7159_v38, %v7036_v16  ;;  %v7414_v11 = vadd.f32 %v17989_v26, %v7397_v44  ;;  %v19623_v16 = vld [vmem:[#allocation164_spill] sm:$0xff] }
 0x63d   : > { %v13132_v5 = vpop.f32.mrf.mxu1 }
 0x63e   : > { %v7398_v7 = vadd.f32 %v17584_v39, %v7196_v41  ;;  %v7424_v31 = vmax.f32 %v7414_v11, 0.0  ;;  %v6636_v39 = vadd.f32 %v19622_v18, %v17954_v42  ;;  %v14201_v42 = vld [vmem:[%s19181_s6 + $0x30] sm:$0xff]  }
 0x63f   : > { %v7164_v24 = vpop.f32.mrf.mxu1  ;;  %v19624_v11 = vld [vmem:[#allocation165_spill] sm:$0xff] }
 0x640   : > { %v7415_v20 = vadd.f32 %v17989_v26, %v7398_v7  ;;  %v7197_v56 = vadd.f32 %v7164_v24, %v7037_v52  ;;  %v6838_v48 = vadd.f32 %v6813_v8, %v6636_v39  ;;  %v6637_v8 = vadd.f32 %v19623_v16, %v17958_v17  ;;  %v14202_v17 = vld [vmem:[%s19181_s6 + $0x28] sm:$0xff]  }
 0x641   : > { %v13135_v51 = vpop.f32.mrf.mxu1  ;;  %v6638_v7 = vadd.f32 %v19624_v11, %v17962_v19  ;;  %v19627_v11 = vld [vmem:[#allocation124_spill] sm:$0xff] }
 0x642   : > { %v7425_v9 = vmax.f32 %v7415_v20, 0.0  ;;  %v7399_v45 = vadd.f32 %v17594_v2, %v7197_v56  ;;  %v7040_v10 = vadd.f32 %v17486_v57, %v6838_v48  ;;  %v6839_v38 = vadd.f32 %v6818_v58, %v6637_v8  ;;  %v14203_v56 = vld [vmem:[%s19181_s6 + $0x20] sm:$0xff]   ;;  %v19625_v51 = vld [vmem:[#allocation166_spill] sm:$0xff]  ;;  %v14206_v8 = vld [vmem:[%s19181_s6 + $0x8] sm:$0xff]  }
 0x643   : > { %v7167_v12 = vpop.f32.mrf.mxu1  ;;  %v6840_v57 = vadd.f32 %v17971_v53, %v6638_v7  ;;  %v6639_v53 = vadd.f32 %v19625_v51, %v17966_v15  ;;  %v14204_v15 = vld [vmem:[%s19181_s6 + $0x18] sm:$0xff]   ;;  %v14212_v7 = vld [vmem:[%s19181_s6 + $0xe8] sm:$0xff]  }
 0x644   : > { %v7434_v34 = vpack.c.bf16 %v7425_v9, %v7424_v31  ;;  %v7198_v30 = vadd.f32 %v7167_v12, %v7038_v61  ;;  %v7416_v44 = vadd.f32 %v17989_v26, %v7399_v45  ;;  %v7041_v19 = vadd.f32 %v17506_v43, %v6839_v38  ;;  %v19626_v12 = vld [vmem:[#allocation167_spill] sm:$0xff]  ;;  %v14218_v51 = vld [vmem:[%s19181_s6 + $0xc8] sm:$0xff]  }
 0x645   : > { %v13136_v27 = vpop.f32.mrf.mxu1  ;;  %v7042_v43 = vadd.f32 %v17523_v28, %v6840_v57  ;;  %v6841_v31 = vadd.f32 %v17973_v13, %v6639_v53  ;;  %v19629_v57 = vrot.slane %v17604_v50, 1  ;;  %v14217_v50 = vld [vmem:[%s19181_s6 + $0xd0] sm:$0xff]   ;;  %v14219_v53 = vld [vmem:[#allocation2 + $0xa0] ss:$0 sps:$4 sm:$0x77]  }
 0x646   : > { %v7400_v60 = vadd.f32 %v17599_v46, %v7198_v30  ;;  %13202 = vmatmul.mubr.bf16.vlgmr.msra.gmra.mxu1 %v7434_v34  ;;  %v7426_v41 = vmax.f32 %v7416_v44, 0.0 }
 0x647   : > { %13258 = vmatpush3.bf16.msra.mxu1 %v14200_v23  ;;  %v7172_v2 = vpop.f32.mrf.mxu1  ;;  %13205 = vmatprep.mubr.msk.bf16.mxu1 %vm14437_vm0, %v19364_v47  ;;  %v6640_v23 = vadd.f32 %v19626_v12, %v17969_v6  ;;  %v7043_v27 = vadd.f32 %v17543_v29, %v6841_v31  ;;  %v14205_v6 = vld [vmem:[%s19181_s6 + $0x10] sm:$0xff]   ;;  %v14226_v12 = vld [vmem:[%s19181_s6 + $0x160] sm:$0xff]  }
 0x648   : > { %v7417_v32 = vadd.f32 %v17989_v26, %v7400_v60  ;;  %v7199_v59 = vadd.f32 %v7172_v2, %v7039_v33  ;;  %13259 = vmatprep.subr.bf16.mxu1 %v19364_v47 }
 0x649   : > { %v13139_v46 = vpop.f32.mrf.mxu1  ;;  %v6842_v13 = vadd.f32 %v17977_v62, %v6640_v23  ;;  %v14228_v23 = vld [vmem:[%s19181_s6 + $0x158] sm:$0xff]  }
 0x64a   : > { %v7427_v21 = vmax.f32 %v7417_v32, 0.0  ;;  %v7401_v5 = vadd.f32 %v17606_v22, %v7199_v59 }
 0x64b   : > { %v7175_v52 = vpop.f32.mrf.mxu1  ;;  %13260 = vmatpush3.bf16.msra.mxu1 %v14201_v42  ;;  %v7044_v29 = vadd.f32 %v17560_v3, %v6842_v13  ;;  %v14207_v3 = vld [vmem:[%s19181_s6] sm:$0xff]   ;;  %v14232_v13 = vld [vmem:[#allocation2 + $0xb4] ss:$0 sps:$4 sm:$0x77]  }
 0x64c   : > { %v7435_v24 = vpack.c.bf16 %v7427_v21, %v7426_v41  ;;  %v7200_v35 = vadd.f32 %v7175_v52, %v7040_v10  ;;  %13261 = vmatprep.subr.bf16.mxu1 %v19364_v47  ;;  %v7418_v55 = vadd.f32 %v17989_v26, %v7401_v5  ;;  %v19628_v52 = vld [vmem:[#allocation125_spill] sm:$0xff] }
 0x64d   : > { %v13140_v58 = vpop.f32.mrf.mxu1 }
 0x64e   : > { %v7402_v22 = vadd.f32 %v17615_v1, %v7200_v35  ;;  %13206 = vmatmul.mubr.bf16.gmra.mxu1 %v7435_v24  ;;  %v7428_v9 = vmax.f32 %v7418_v55, 0.0  ;;  %v14213_v24 = vld [vmem:[%s19181_s6 + $0xe0] sm:$0xff]   ;;  %v14215_v55 = vld [vmem:[%s19181_s6 + $0xd8] sm:$0xff]  }
 0x64f   : > { %v7180_v20 = vpop.f32.mrf.mxu1  ;;  %13262 = vmatpush3.bf16.msra.mxu1 %v14202_v17  ;;  %13209 = vmatprep.mubr.msk.bf16.mxu1 %vm14437_vm0, %v19364_v47  ;;  %v14250_v17 = vld [vmem:[#allocation2 + $0xc4] sm:$0xff]  }
 0x650   : > { %v7419_v61 = vadd.f32 %v17989_v26, %v7402_v22  ;;  %v7201_v63 = vadd.f32 %v7180_v20, %v7041_v19  ;;  %13263 = vmatprep.subr.bf16.mxu1 %v19364_v47  ;;  %v9151_v35 = vrot.slane %v14250_v17, 1  ;;  %v19630_v22 = vld [vmem:[#allocation129_spill] sm:$0xff] }
 0x651   : > { %v13143_v1 = vpop.f32.mrf.mxu1  ;;  %v14252_v19 = vld [vmem:[#allocation2 + $0xcc] ss:$0 sps:$4 sm:$0x11]  }
 0x652   : > { %v7429_v45 = vmax.f32 %v7419_v61, 0.0  ;;  %v7403_v18 = vadd.f32 %v17626_v49, %v7201_v63  ;;  %v9152_v58 = vsel %vm2357_vm2, %v19629_v57, %v9151_v35  ;;  %v9153_v20 = vrot.slane %v14252_v19, 1  ;;  %v19631_v61 = vld [vmem:[#allocation130_spill] sm:$0xff]  ;;  %v14220_v63 = vld [vmem:[%s19181_s6 + $0xc0] sm:$0xff]  }
 0x653   : > { %v7183_v39 = vpop.f32.mrf.mxu1  ;;  %13264 = vmatpush3.bf16.msra.mxu1 %v14203_v56  ;;  %13538 = vmatmul.mubr.bf16.gmra.mxu0 %v9152_v58  ;;  %v7833_v1 = vrot.slane %v14219_v53, 3  ;;  %v19641_v58 = vld [vmem:[#allocation134_spill] sm:$0xff] }
 0x654   : > { %v7436_v34 = vpack.c.bf16 %v7429_v45, %v7428_v9  ;;  %v7202_v30 = vadd.f32 %v7183_v39, %v7042_v43  ;;  %13265 = vmatprep.subr.bf16.mxu1 %v19364_v47  ;;  %v7420_v48 = vadd.f32 %v17989_v26, %v7403_v18  ;;  %13541 = vmatprep.mubr.msk.bf16.mxu0 %vm14437_vm0, %v19364_v47  ;;  %v19632_v43 = vld [vmem:[#allocation126_spill] sm:$0xff]  ;;  %v19633_v45 = vld [vmem:[#allocation131_spill] sm:$0xff]  ;;  %v14225_v39 = vld [vmem:[%s19181_s6 + $0x168] sm:$0xff]  }
 0x655   : > { %v13144_v28 = vpop.f32.mrf.mxu1  ;;  %v9154_v56 = vsel %vm2357_vm2, %v9151_v35, %v9153_v20  ;;  %v7834_v31 = vsel %vm2163_vm1, %v19632_v43, %v7833_v1  ;;  %v14222_v9 = vld [vmem:[%s19181_s6 + $0x178] sm:$0xff]   ;;  %v14223_v18 = vld [vmem:[%s19181_s6 + $0x170] sm:$0xff]   ;;  %v19639_v35 = vld [vmem:[#allocation128_spill] sm:$0xff] }
 0x656   : > { %v7404_v49 = vadd.f32 %v17635_v0, %v7202_v30  ;;  %13210 = vmatmul.mubr.bf16.gmra.mxu1 %v7436_v34  ;;  %v7430_v2 = vmax.f32 %v7420_v48, 0.0  ;;  %v19635_v34 = vld [vmem:[#allocation133_spill] sm:$0xff]  ;;  %v14368_v19 = vld [vmem:[#allocation2 + $0xb4] sm:$0xf] }
 0x657   : > { %v7188_v44 = vpop.f32.mrf.mxu1  ;;  %13266 = vmatpush3.bf16.msra.mxu1 %v14204_v15  ;;  %13213 = vmatprep.mubr.msk.bf16.mxu1 %vm14437_vm0, %v19364_v47  ;;  %v19634_v15 = vld [vmem:[#allocation132_spill] sm:$0xff]  ;;  %v14230_v30 = vld [vmem:[%s19181_s6 + $0x150] sm:$0xff]  }
 0x658   : > { %v7421_v60 = vadd.f32 %v17989_v26, %v7404_v49  ;;  %v7203_v33 = vadd.f32 %v7188_v44, %v7043_v27  ;;  %13267 = vmatprep.subr.bf16.mxu1 %v19364_v47  ;;  %v14231_v28 = vld [vmem:[%s19181_s6 + $0x148] sm:$0xff]   ;;  %v14233_v49 = vld [vmem:[%s19181_s6 + $0x140] sm:$0xff]   ;;  %v8227_v27 = vrot.slane %v14232_v13, 3 }
 0x659   : > { %v13147_v62 = vpop.f32.mrf.mxu1  ;;  %v19636_v48 = vld [vmem:[#allocation137_spill] sm:$0xff]  ;;  %v19637_v44 = vld [vmem:[#allocation136_spill] sm:$0xff] }
 0x65a   : > { %v7431_v0 = vmax.f32 %v7421_v60, 0.0  ;;  %v7405_v42 = vadd.f32 %v17643_v25, %v7203_v33  ;;  %v14235_v60 = vld [vmem:[#allocation2 + $0x98] sm:$0xff]   ;;  %v14234_v33 = vld [vmem:[#allocation2 + $0x90] sm:$0xfe]  }
 0x65b   : > { %v7191_v16 = vpop.f32.mrf.mxu1  ;;  %13268 = vmatpush3.bf16.msra.mxu1 %v14205_v6  ;;  %13542 = vmatmul.mubr.bf16.gmra.mxu0 %v9154_v56  ;;  %v8228_v6 = vsel %vm2163_vm1, %v19637_v44, %v8227_v27  ;;  %v8581_v62 = vrot.slane %v14235_v60, 1  ;;  %v14370_v56 = vld [vmem:[#allocation2 + $0xbc] sm:$0xf]  ;;  %v14257_v27 = vld [vmem:[%s19183_s8 + $0x20] sm:$0xff]  }
 0x65c   : > { %v7437_v32 = vpack.c.bf16 %v7431_v0, %v7430_v2  ;;  %v7204_v59 = vadd.f32 %v7191_v16, %v7044_v29  ;;  %13269 = vmatprep.subr.bf16.mxu1 %v19364_v47  ;;  %v7422_v10 = vadd.f32 %v17989_v26, %v7405_v42  ;;  %13597 = vmatprep.mubr.msk.bf16.mxu0 %vm14437_vm0, %v19364_v47  ;;  %v8580_v2 = vrot.slane %v14234_v33, 1  ;;  %v14236_v0 = vld [vmem:[%s19181_s6 + $0x1f8] sm:$0xff]   ;;  %v14238_v29 = vld [vmem:[#allocation2 + $0xa0] sm:$0xff]   ;;  %v14237_v16 = vld [vmem:[%s19181_s6 + $0x1f0] sm:$0xff]  }
 0x65d   : > { %v13148_v46 = vpop.f32.mrf.mxu1  ;;  %v14258_v60 = vld [vmem:[%s19183_s8 + $0x18] sm:$0xff]  }
 0x65e   : > { %v7406_v38 = vadd.f32 %v17650_v36, %v7204_v59  ;;  %13214 = vmatmul.mubr.bf16.gmra.mxu1 %v7437_v32  ;;  %v7432_v41 = vmax.f32 %v7422_v10, 0.0  ;;  %v14209_v36 = vld [vmem:[%s19181_s6 + $0xf8] sm:$0xff]   ;;  %v8582_v42 = vsel %vm2357_vm2, %v8580_v2, %v8581_v62  ;;  %v14239_v32 = vld [vmem:[%s19181_s6 + $0x1e8] sm:$0xff]   ;;  %v14240_v10 = vld [vmem:[%s19181_s6 + $0x1e0] sm:$0xff]  }
 0x65f   : > { %13270 = vmatpush3.bf16.msra.mxu1 %v14206_v8  ;;  %13217 = vmatprep.mubr.msk.bf16.mxu1 %vm14437_vm0, %v19364_v47  ;;  %v8583_v8 = vrot.slane %v14238_v29, 1  ;;  %v14241_v46 = vld [vmem:[#allocation2 + $0xa8] sm:$0xff]  }
 0x660   : > { %v7423_v25 = vadd.f32 %v17989_v26, %v7406_v38  ;;  %13271 = vmatprep.subr.bf16.mxu1 %v19364_v47  ;;  %v14210_v26 = vld [vmem:[%s19181_s6 + $0xf0] sm:$0xff]   ;;  %v8585_v38 = vrot.slane %v14241_v46, 1  ;;  %v14260_v46 = vld [vmem:[%s19183_s8 + $0x8] sm:$0xff]  }
 0x661   : > { %v8584_v59 = vsel %vm2357_vm2, %v8581_v62, %v8583_v8 }
 0x662   : > { %v7433_v21 = vmax.f32 %v7423_v25, 0.0  ;;  %v8586_v25 = vsel %vm2357_vm2, %v8583_v8, %v8585_v38 }
 0x663   : > { %13272 = vmatpush3.bf16.msra.mxu1 %v14207_v3  ;;  %v14242_v3 = vld [vmem:[%s19181_s6 + $0x1d8] sm:$0xff]  }
 0x664   : > { %v7438_v5 = vpack.c.bf16 %v7433_v21, %v7432_v41  ;;  %13329 = vmatprep.subr.bf16.mxu1 %v19364_v47  ;;  %v14243_v41 = vld [vmem:[#allocation2 + $0xb0] sm:$0xff]  }
 0x665   : > { %v14244_v21 = vld [vmem:[%s19181_s6 + $0x1d0] sm:$0xff]  }
 0x666   : > { %13218 = vmatmul.mubr.bf16.gmra.mxu1 %v7438_v5  ;;  %v8587_v5 = vrot.slane %v14243_v41, 1 }
 0x667   : > { %13273 = vmatprep.mubr.msk.bf16.mxu1 %vm14437_vm0, %v19364_v47 }
 0x66e   : > { %13274 = vmatmul.mubr.bf16.vlgmr.msra.gmra.mxu1 %v19627_v11  ;;  %v8588_v11 = vsel %vm2357_vm2, %v8585_v38, %v8587_v5  ;;  %v14261_v38 = vld [vmem:[%s19183_s8] sm:$0xff]  }
 0x66f   : > { %13330 = vmatpush3.bf16.msra.mxu1 %v14209_v36  ;;  %13277 = vmatprep.mubr.msk.bf16.mxu1 %vm14437_vm0, %v19364_v47  ;;  %v14245_v36 = vld [vmem:[%s19181_s6 + $0x1c8] sm:$0xff]  }
 0x670   : > { %13331 = vmatprep.subr.bf16.mxu1 %v19364_v47 }
 0x673   : > { %13332 = vmatpush3.bf16.msra.mxu1 %v14210_v26  ;;  %v14246_v26 = vld [vmem:[#allocation2 + $0xb8] ss:$0 sps:$4 sm:$0x11]  }
 0x674   : > { %13333 = vmatprep.subr.bf16.mxu1 %v19364_v47 }
 0x676   : > { %13278 = vmatmul.mubr.bf16.gmra.mxu1 %v19628_v52  ;;  %v8589_v52 = vrot.slane %v14246_v26, 1 }
 0x677   : > { %13334 = vmatpush3.bf16.msra.mxu1 %v14212_v7  ;;  %13281 = vmatprep.mubr.msk.bf16.mxu1 %vm14437_vm0, %v19364_v47  ;;  %v14247_v7 = vld [vmem:[%s19181_s6 + $0x1c0] sm:$0xff]  }
 0x678   : > { %13335 = vmatprep.subr.bf16.mxu1 %v19364_v47  ;;  %v8590_v17 = vsel %vm2357_vm2, %v8587_v5, %v8589_v52 }
 0x67b   : > { %13336 = vmatpush3.bf16.msra.mxu1 %v14213_v24  ;;  %v19638_v24 = vld [vmem:[#allocation127_spill] sm:$0xff] }
 0x67c   : > { %13337 = vmatprep.subr.bf16.mxu1 %v19364_v47  ;;  %v19640_v57 = vcombine.low %v19638_v24, %v19639_v35 }
 0x67e   : > { %13282 = vmatmul.mubr.bf16.gmra.mxu1 %v19630_v22 }
 0x67f   : > { %13338 = vmatpush3.bf16.msra.mxu1 %v14215_v55  ;;  %13285 = vmatprep.mubr.msk.bf16.mxu1 %vm14437_vm0, %v19364_v47  ;;  %v19642_v55 = vld [vmem:[#allocation135_spill] sm:$0xff] }
 0x680   : > { %13339 = vmatprep.subr.bf16.mxu1 %v19364_v47  ;;  %v19643_v22 = vcombine.low %v19641_v58, %v19642_v55 }
 0x683   : > { %13340 = vmatpush3.bf16.msra.mxu1 %v14217_v50  ;;  %v14369_v50 = vld [vmem:[#allocation2 + $0xb8] sm:$0xf] }
 0x684   : > { %13341 = vmatprep.subr.bf16.mxu1 %v19364_v47  ;;  %v11271_v20 = vcombine.low %v14368_v19, %v14369_v50 }
 0x686   : > { %13286 = vmatmul.mubr.bf16.gmra.mxu1 %v19631_v61  ;;  %v8929_v61 = vld [vmem:[#allocation2 + $0xc8] sm:$0xf] }
 0x687   : > { %13342 = vmatpush3.bf16.msra.mxu1 %v14218_v51  ;;  %13289 = vmatprep.mubr.msk.bf16.mxu1 %vm14437_vm0, %v19364_v47  ;;  %v14371_v51 = vld [vmem:[#allocation2 + $0xc0] sm:$0xf] }
 0x688   : > { %13343 = vmatprep.subr.bf16.mxu1 %v19364_v47  ;;  %v11272_v53 = vcombine.low %v14370_v56, %v14371_v51 }
 0x68b   : > { %13344 = vmatpush3.bf16.msra.mxu1 %v14220_v63  ;;  %v14372_v63 = vld [vmem:[#allocation2 + $0xc4] sm:$0xf] }
 0x68c   : > { %13401 = vmatprep.subr.bf16.mxu1 %v19364_v47  ;;  %v11273_v1 = vcombine.low %v14372_v63, %v8929_v61 }
 0x68e   : > { %13290 = vmatmul.mubr.bf16.gmra.mxu1 %v7834_v31 }
 0x68f   : > { %13345 = vmatprep.mubr.msk.bf16.mxu1 %vm14437_vm0, %v19364_v47 }
 0x696   : > { %13346 = vmatmul.mubr.bf16.vlgmr.msra.gmra.mxu1 %v19633_v45 }
 0x697   : > { %13402 = vmatpush3.bf16.msra.mxu1 %v14222_v9  ;;  %13349 = vmatprep.mubr.msk.bf16.mxu1 %vm14437_vm0, %v19364_v47 }
 0x698   : > { %13403 = vmatprep.subr.bf16.mxu1 %v19364_v47 }
 0x69b   : > { %13404 = vmatpush3.bf16.msra.mxu1 %v14223_v18  ;;  %v14254_v18 = vld [vmem:[%s19183_s8 + $0x38] sm:$0xff]  }
 0x69c   : > { %13405 = vmatprep.subr.bf16.mxu1 %v19364_v47 }
 0x69e   : > { %13350 = vmatmul.mubr.bf16.gmra.mxu1 %v19634_v15 }
 0x69f   : > { %13406 = vmatpush3.bf16.msra.mxu1 %v14225_v39  ;;  %13353 = vmatprep.mubr.msk.bf16.mxu1 %vm14437_vm0, %v19364_v47 }
 0x6a0   : > { %13407 = vmatprep.subr.bf16.mxu1 %v19364_v47 }
 0x6a3   : > { %13408 = vmatpush3.bf16.msra.mxu1 %v14226_v12 }
 0x6a4   : > { %13409 = vmatprep.subr.bf16.mxu1 %v19364_v47 }
 0x6a6   : > { %13354 = vmatmul.mubr.bf16.gmra.mxu1 %v19635_v34 }
 0x6a7   : > { %13410 = vmatpush3.bf16.msra.mxu1 %v14228_v23  ;;  %13357 = vmatprep.mubr.msk.bf16.mxu1 %vm14437_vm0, %v19364_v47  ;;  %v14255_v23 = vld [vmem:[%s19183_s8 + $0x30] sm:$0xff]  }
 0x6a8   : > { %13411 = vmatprep.subr.bf16.mxu1 %v19364_v47 }
 0x6ab   : > { %13412 = vmatpush3.bf16.msra.mxu1 %v14230_v30 }
 0x6ac   : > { %13413 = vmatprep.subr.bf16.mxu1 %v19364_v47 }
 0x6ae   : > { %13358 = vmatmul.mubr.bf16.gmra.mxu1 %v19636_v48 }
 0x6af   : > { %13414 = vmatpush3.bf16.msra.mxu1 %v14231_v28  ;;  %13361 = vmatprep.mubr.msk.bf16.mxu1 %vm14437_vm0, %v19364_v47  ;;  %v14256_v28 = vld [vmem:[%s19183_s8 + $0x28] sm:$0xff]  }
 0x6b0   : > { %13415 = vmatprep.subr.bf16.mxu1 %v19364_v47 }
 0x6b3   : > { %13416 = vmatpush3.bf16.msra.mxu1 %v14233_v49 }
 0x6b4   : > { %13473 = vmatprep.subr.bf16.mxu1 %v19364_v47 }
 0x6b6   : > { %13362 = vmatmul.mubr.bf16.gmra.mxu1 %v8228_v6 }
 0x6b7   : > { %13417 = vmatprep.mubr.msk.bf16.mxu1 %vm14437_vm0, %v19364_v47 }
 0x6be   : > { %13418 = vmatmul.mubr.bf16.vlgmr.msra.gmra.mxu1 %v8582_v42 }
 0x6bf   : > { %13474 = vmatpush3.bf16.msra.mxu1 %v14236_v0  ;;  %13421 = vmatprep.mubr.msk.bf16.mxu1 %vm14437_vm0, %v19364_v47 }
 0x6c0   : > { %13475 = vmatprep.subr.bf16.mxu1 %v19364_v47 }
 0x6c3   : > { %13476 = vmatpush3.bf16.msra.mxu1 %v14237_v16  ;;  %v14259_v16 = vld [vmem:[%s19183_s8 + $0x10] sm:$0xff]  }
 0x6c4   : > { %13477 = vmatprep.subr.bf16.mxu1 %v19364_v47 }
 0x6c6   : > { %13422 = vmatmul.mubr.bf16.gmra.mxu1 %v8584_v59 }
 0x6c7   : > { %13478 = vmatpush3.bf16.msra.mxu1 %v14239_v32  ;;  %13425 = vmatprep.mubr.msk.bf16.mxu1 %vm14437_vm0, %v19364_v47 }
 0x6c8   : > { %13479 = vmatprep.subr.bf16.mxu1 %v19364_v47 }
 0x6cb   : > { %13480 = vmatpush3.bf16.msra.mxu1 %v14240_v10 }
 0x6cc   : > { %13481 = vmatprep.subr.bf16.mxu1 %v19364_v47 }
 0x6ce   : > { %13426 = vmatmul.mubr.bf16.gmra.mxu1 %v8586_v25 }
 0x6cf   : > { %13482 = vmatpush3.bf16.msra.mxu1 %v14242_v3  ;;  %13429 = vmatprep.mubr.msk.bf16.mxu1 %vm14437_vm0, %v19364_v47 }
 0x6d0   : > { %13483 = vmatprep.subr.bf16.mxu1 %v19364_v47 }
 0x6d3   : > { %13484 = vmatpush3.bf16.msra.mxu1 %v14244_v21 }
 0x6d4   : > { %13485 = vmatprep.subr.bf16.mxu1 %v19364_v47 }
 0x6d6   : > { %13430 = vmatmul.mubr.bf16.gmra.mxu1 %v8588_v11 }
 0x6d7   : > { %13486 = vmatpush3.bf16.msra.mxu1 %v14245_v36  ;;  %13433 = vmatprep.mubr.msk.bf16.mxu1 %vm14437_vm0, %v19364_v47 }
 0x6d8   : > { %13487 = vmatprep.subr.bf16.mxu1 %v19364_v47 }
 0x6db   : > { %13488 = vmatpush3.bf16.msra.mxu1 %v14247_v7 }
 0x6dc   : > { %13545 = vmatprep.subr.bf16.mxu1 %v19364_v47 }
 0x6de   : > { %13434 = vmatmul.mubr.bf16.gmra.mxu1 %v8590_v17 }
 0x6df   : > { %13489 = vmatprep.mubr.msk.bf16.mxu1 %vm14437_vm0, %v19364_v47 }
 0x6e6   : > { %13490 = vmatmul.mubr.bf16.vlgmr.msra.gmra.mxu1 %v19640_v57 }
 0x6e7   : > { %13493 = vmatprep.mubr.msk.bf16.mxu1 %vm14437_vm0, %v19364_v47  ;;  %13546 = vmatpush3.bf16.msra.mxu1 %v14254_v18 }
 0x6e8   : > { %13547 = vmatprep.subr.bf16.mxu1 %v19364_v47 }
 0x6eb   : > { %13548 = vmatpush3.bf16.msra.mxu1 %v14255_v23 }
 0x6ec   : > { %13549 = vmatprep.subr.bf16.mxu1 %v19364_v47 }
 0x6ee   : > { %13494 = vmatmul.mubr.bf16.gmra.mxu1 %v19643_v22 }
 0x6ef   : > { %13497 = vmatprep.mubr.msk.bf16.mxu1 %vm14437_vm0, %v19364_v47  ;;  %13550 = vmatpush3.bf16.msra.mxu1 %v14256_v28 }
 0x6f0   : > { %13551 = vmatprep.subr.bf16.mxu1 %v19364_v47 }
 0x6f3   : > { %13552 = vmatpush3.bf16.msra.mxu1 %v14257_v27  ;;  %v19644_v27 = vld [vmem:[#allocation83_spill] sm:$0xff] }
 0x6f4   : > { %13553 = vmatprep.subr.bf16.mxu1 %v19364_v47 }
 0x6f6   : > { %13498 = vmatmul.mubr.bf16.gmra.mxu1 %v11271_v20 }
 0x6f7   : > { %13501 = vmatprep.mubr.msk.bf16.mxu1 %vm14437_vm0, %v19364_v47  ;;  %13554 = vmatpush3.bf16.msra.mxu1 %v14258_v60 }
 0x6f8   : > { %13555 = vmatprep.subr.bf16.mxu1 %v19364_v47 }
 0x6fb   : > { %13556 = vmatpush3.bf16.msra.mxu1 %v14259_v16  ;;  %v19647_v16 = vld [vmem:[#allocation81_spill] sm:$0xff] }
 0x6fc   : > { %13557 = vmatprep.subr.bf16.mxu1 %v19364_v47 }
 0x6fe   : > { %13502 = vmatmul.mubr.bf16.gmra.mxu1 %v11272_v53 }
 0x6ff   : > { %13505 = vmatprep.mubr.msk.bf16.mxu1 %vm14437_vm0, %v19364_v47  ;;  %13558 = vmatpush3.bf16.msra.mxu1 %v14260_v46  ;;  %v19648_v46 = vld [vmem:[#allocation85_spill] sm:$0xff] }
 0x700   : > { %13559 = vmatprep.subr.bf16.mxu1 %v19364_v47 }
 0x703   : > { %13560 = vmatpush3.bf16.msra.mxu1 %v14261_v38 }
 0x704   : > { %13601 = vmatprep.subr.bf16.mxu1 %v19364_v47 }
 0x706   : > { %v18240_v43 = vpop.f32.mrf.mxu1  ;;  %13506 = vmatmul.mubr.bf16.gmra.mxu1 %v11273_v1 }
 0x707   : > { %13561 = vmatprep.mubr.msk.bf16.mxu1 %vm14437_vm0, %v19364_v47 }
 0x708   : > { %v13203_v31 = vpop.f32.mrf.mxu1 }
 0x70a   : > { %v18244_v9 = vpop.f32.mrf.mxu1 }
 0x70c   : > { %v13204_v45 = vpop.f32.mrf.mxu1 }
 0x70e   : > { %v18249_v39 = vpop.f32.mrf.mxu1 }
 0x710   : > { %v13207_v15 = vpop.f32.mrf.mxu1 }
 0x712   : > { %v18252_v12 = vpop.f32.mrf.mxu1 }
 0x713   : > { %v18294_v26 = vpop.f32.mrf.mxu0 }
 0x714   : > { %v13208_v34 = vpop.f32.mrf.mxu1 }
 0x715   : > { %v13539_v52 = vpop.f32.mrf.mxu0 }
 0x716   : > { %v18257_v30 = vpop.f32.mrf.mxu1 }
 0x717   : > { %v18296_v24 = vpop.f32.mrf.mxu0 }
 0x718   : > { %v13211_v13 = vpop.f32.mrf.mxu1 }
 0x719   : > { %v13540_v57 = vpop.f32.mrf.mxu0 }
 0x71a   : > { %v18263_v48 = vpop.f32.mrf.mxu1 }
 0x71b   : > { %v18298_v55 = vpop.f32.mrf.mxu0 }
 0x71c   : > { %v13212_v49 = vpop.f32.mrf.mxu1 }
 0x71d   : > { %v13543_v19 = vpop.f32.mrf.mxu0 }
 0x71e   : > { %v18269_v44 = vpop.f32.mrf.mxu1 }
 0x71f   : > { %v18300_v20 = vpop.f32.mrf.mxu0 }
 0x720   : > { %v13215_v6 = vpop.f32.mrf.mxu1 }
 0x721   : > { %v13544_v53 = vpop.f32.mrf.mxu0  ;;  %v19645_v6 = vld [vmem:[#allocation143_spill] sm:$0xff] }
 0x722   : > { %v18275_v33 = vpop.f32.mrf.mxu1 }
 0x724   : > { %v13216_v62 = vpop.f32.mrf.mxu1 }
 0x726   : > { %v18278_v2 = vpop.f32.mrf.mxu1 }
 0x728   : > { %v13219_v0 = vpop.f32.mrf.mxu1 }
 0x72a   : > { %v18280_v42 = vpop.f32.mrf.mxu1 }
 0x72c   : > { %v13220_v29 = vpop.f32.mrf.mxu1 }
 0x72d   : > { %v19646_v29 = vld [vmem:[#allocation77_spill] sm:$0xff] }
 0x72e   : > { %v7922_v8 = vpop.f32.mrf.mxu1 }
 0x72f   : > { %v7923_v51 = vadd.f32 %v7922_v8, %v17658_v4 }
 0x730   : > { %v13275_v32 = vpop.f32.mrf.mxu1 }
 0x731   : > { %v8153_v31 = vadd.f32 %v17726_v40, %v7923_v51 }
 0x732   : > { %v7925_v59 = vpop.f32.mrf.mxu1 }
 0x733   : > { %v7926_v1 = vadd.f32 %v7925_v59, %v17665_v37 }
 0x734   : > { %v13276_v10 = vpop.f32.mrf.mxu1 }
 0x735   : > { %v8154_v34 = vadd.f32 %v17733_v14, %v7926_v1  ;;  %v19649_v10 = vld [vmem:[#allocation145_spill] sm:$0xff] }
 0x736   : > { %v7930_v3 = vpop.f32.mrf.mxu1  ;;  %v19654_v1 = vld [vmem:[#allocation141_spill] sm:$0xff] }
 0x737   : > { %v7931_v23 = vadd.f32 %v7930_v3, %v17673_v54 }
 0x738   : > { %v13279_v25 = vpop.f32.mrf.mxu1 }
 0x739   : > { %v8155_v60 = vadd.f32 %v19645_v6, %v7931_v23 }
 0x73a   : > { %v7933_v41 = vpop.f32.mrf.mxu1 }
 0x73b   : > { %v7934_v4 = vadd.f32 %v7933_v41, %v19644_v27  ;;  %v19657_v27 = vld [vmem:[#allocation105_spill] sm:$0xff] }
 0x73c   : > { %v13280_v21 = vpop.f32.mrf.mxu1 }
 0x73d   : > { %v8156_v8 = vadd.f32 %v19647_v16, %v7934_v4  ;;  %v19650_v21 = vld [vmem:[#allocation139_spill] sm:$0xff] }
 0x73e   : > { %v7938_v5 = vpop.f32.mrf.mxu1 }
 0x73f   : > { %v7939_v40 = vadd.f32 %v7938_v5, %v19646_v29 }
 0x740   : > { %v13283_v36 = vpop.f32.mrf.mxu1 }
 0x741   : > { %v8157_v38 = vadd.f32 %v19649_v10, %v7939_v40 }
 0x742   : > { %v7941_v11 = vpop.f32.mrf.mxu1 }
 0x743   : > { %v7942_v14 = vadd.f32 %v7941_v11, %v19648_v46 }
 0x744   : > { %v13284_v7 = vpop.f32.mrf.mxu1 }
 0x745   : > { %v19651_v7 = vld [vmem:[#allocation96_spill] sm:$0xff] }
 0x746   : > { %v7946_v17 = vpop.f32.mrf.mxu1  ;;  %v8158_v52 = vadd.f32 %v19651_v7, %v7942_v14 }
 0x747   : > { %v7947_v36 = vadd.f32 %v7946_v17, %v19650_v21 }
 0x748   : > { %v13287_v35 = vpop.f32.mrf.mxu1 }
 0x74a   : > { %v7949_v58 = vpop.f32.mrf.mxu1 }
 0x74c   : > { %v13288_v22 = vpop.f32.mrf.mxu1 }
 0x74d   : > { %v19652_v22 = vld [vmem:[#allocation76_spill] sm:$0xff] }
 0x74e   : > { %v7954_v50 = vpop.f32.mrf.mxu1  ;;  %v7950_v19 = vadd.f32 %v7949_v58, %v19652_v22  ;;  %v19659_v22 = vld [vmem:[#allocation110_spill] sm:$0xff] }
 0x750   : > { %v13291_v56 = vpop.f32.mrf.mxu1 }
 0x751   : > { %v19653_v56 = vld [vmem:[#allocation101_spill] sm:$0xff] }
 0x752   : > { %v7957_v61 = vpop.f32.mrf.mxu1  ;;  %v8159_v51 = vadd.f32 %v19653_v56, %v7947_v36 }
 0x754   : > { %v13292_v63 = vpop.f32.mrf.mxu1 }
 0x756   : > { %v8316_v45 = vpop.f32.mrf.mxu1 }
 0x757   : > { %v18305_v18 = vadd.f32 %v8316_v45, %v8153_v31  ;;  %v7955_v31 = vadd.f32 %v7954_v50, %v19654_v1  ;;  %v19655_v45 = vld [vmem:[#allocation104_spill] sm:$0xff] }
 0x758   : > { %v13347_v15 = vpop.f32.mrf.mxu1 }
 0x759   : > { %v8160_v15 = vadd.f32 %v19655_v45, %v7950_v19  ;;  %v8161_v4 = vadd.f32 %v19657_v27, %v7955_v31  ;;  %v8515_v19 = vadd.f32 %v19659_v22, %v18305_v18 }
 0x75a   : > { %v8319_v28 = vpop.f32.mrf.mxu1 }
 0x75b   : > { %v8356_v13 = vadd.f32 %v8319_v28, %v8154_v34  ;;  %v19656_v28 = vld [vmem:[#allocation80_spill] sm:$0xff] }
 0x75c   : > { %v13348_v49 = vpop.f32.mrf.mxu1 }
 0x75d   : > { %v7958_v49 = vadd.f32 %v7957_v61, %v19656_v28  ;;  %v19662_v28 = vld [vmem:[#allocation116_spill] sm:$0xff] }
 0x75e   : > { %v8324_v62 = vpop.f32.mrf.mxu1 }
 0x75f   : > { %v8357_v0 = vadd.f32 %v8324_v62, %v8155_v60  ;;  %v19658_v62 = vld [vmem:[#allocation103_spill] sm:$0xff] }
 0x760   : > { %v13351_v37 = vpop.f32.mrf.mxu1 }
 0x761   : > { %v8162_v37 = vadd.f32 %v19658_v62, %v7958_v49  ;;  %v8517_v49 = vadd.f32 %v19662_v28, %v8357_v0 }
 0x762   : > { %v8327_v32 = vpop.f32.mrf.mxu1 }
 0x763   : > { %v18313_v59 = vadd.f32 %v8327_v32, %v8156_v8 }
 0x764   : > { %v13352_v54 = vpop.f32.mrf.mxu1 }
 0x766   : > { %v8332_v3 = vpop.f32.mrf.mxu1 }
 0x767   : > { %v18317_v25 = vadd.f32 %v8332_v3, %v8157_v38 }
 0x768   : > { %v13355_v41 = vpop.f32.mrf.mxu1 }
 0x76a   : > { %v8335_v35 = vpop.f32.mrf.mxu1 }
 0x76b   : > { %v18321_v5 = vadd.f32 %v8335_v35, %v8158_v52 }
 0x76c   : > { %v13356_v57 = vpop.f32.mrf.mxu1 }
 0x76e   : > { %v8340_v53 = vpop.f32.mrf.mxu1 }
 0x76f   : > { %v18325_v11 = vadd.f32 %v8340_v53, %v8159_v51 }
 0x770   : > { %v13359_v63 = vpop.f32.mrf.mxu1 }
 0x771   : > { %v19660_v63 = vld [vmem:[#allocation112_spill] sm:$0xff] }
 0x772   : > { %v8343_v23 = vpop.f32.mrf.mxu1  ;;  %v8516_v1 = vadd.f32 %v19660_v63, %v8356_v13  ;;  %v18354_v13 = vld [vmem:[%s19182_s7] ss:$0 sm:$0xff] }
 0x773   : > { %v18329_v17 = vadd.f32 %v8343_v23, %v8160_v15  ;;  %v19661_v15 = vld [vmem:[#allocation115_spill] sm:$0xff] }
 0x774   : > { %v13360_v34 = vpop.f32.mrf.mxu1 }
 0x776   : > { %v8348_v6 = vpop.f32.mrf.mxu1 }
 0x777   : > { %v18333_v58 = vadd.f32 %v8348_v6, %v8161_v4 }
 0x778   : > { %v13363_v60 = vpop.f32.mrf.mxu1 }
 0x779   : > { %v19663_v60 = vld [vmem:[#allocation184_spill] sm:$0xff] }
 0x77a   : > { %v8351_v29 = vpop.f32.mrf.mxu1 }
 0x77b   : > { %v18336_v40 = vadd.f32 %v8351_v29, %v8162_v37  ;;  %v19664_v37 = vld [vmem:[#allocation120_spill] sm:$0xff]  ;;  %v19665_v29 = vld [vmem:[#allocation117_spill] sm:$0xff] }
 0x77c   : > { %v13364_v50 = vpop.f32.mrf.mxu1 }
 0x77d   : > { %v8518_v50 = vadd.f32 %v19665_v29, %v18313_v59 }
 0x77e   : > { %v8678_v16 = vpop.f32.mrf.mxu1 }
 0x77f   : > { %v8717_v51 = vadd.f32 %v8678_v16, %v8515_v19 }
 0x780   : > { %v13419_v8 = vpop.f32.mrf.mxu1 }
 0x781   : > { %v8919_v23 = vadd.f32 %v19661_v15, %v8717_v51  ;;  %v19671_v15 = vld [vmem:[#allocation99_spill] sm:$0xff] }
 0x782   : > { %v8681_v32 = vpop.f32.mrf.mxu1 }
 0x783   : > { %v8718_v45 = vadd.f32 %v8681_v32, %v8516_v1 }
 0x784   : > { %v13420_v54 = vpop.f32.mrf.mxu1 }
 0x785   : > { %v8920_v18 = vadd.f32 %v19664_v37, %v8718_v45 }
 0x786   : > { %v8686_v46 = vpop.f32.mrf.mxu1 }
 0x787   : > { %v8719_v6 = vadd.f32 %v8686_v46, %v8517_v49 }
 0x788   : > { %v13423_v14 = vpop.f32.mrf.mxu1 }
 0x789   : > { %v19666_v14 = vld [vmem:[#allocation186_spill] sm:$0xff] }
 0x78a   : > { %v8689_v10 = vpop.f32.mrf.mxu1 }
 0x78b   : > { %v8720_v32 = vadd.f32 %v8689_v10, %v8518_v50 }
 0x78c   : > { %v13424_v61 = vpop.f32.mrf.mxu1 }
 0x78d   : > { %v19667_v61 = vld [vmem:[#allocation121_spill] sm:$0xff] }
 0x78e   : > { %v8694_v38 = vpop.f32.mrf.mxu1 }
 0x790   : > { %v13427_v3 = vpop.f32.mrf.mxu1 }
 0x791   : > { %v8921_v3 = vadd.f32 %v19667_v61, %v8719_v6  ;;  %v19672_v6 = vld [vmem:[#allocation189_spill] sm:$0xff]  ;;  %v19677_v61 = vld [vmem:[#allocation107_spill] sm:$0xff] }
 0x792   : > { %v8697_v41 = vpop.f32.mrf.mxu1 }
 0x794   : > { %v13428_v21 = vpop.f32.mrf.mxu1 }
 0x796   : > { %v8702_v36 = vpop.f32.mrf.mxu1 }
 0x798   : > { %v13431_v7 = vpop.f32.mrf.mxu1 }
 0x799   : > { %v19668_v7 = vld [vmem:[#allocation113_spill] sm:$0xff] }
 0x79a   : > { %v8705_v52 = vpop.f32.mrf.mxu1 }
 0x79c   : > { %v13432_v35 = vpop.f32.mrf.mxu1 }
 0x79d   : > { %v8519_v35 = vadd.f32 %v19668_v7, %v18317_v25 }
 0x79e   : > { %v18338_v57 = vpop.f32.mrf.mxu1 }
 0x79f   : > { %v8721_v63 = vadd.f32 %v8694_v38, %v8519_v35 }
 0x7a0   : > { %v13435_v56 = vpop.f32.mrf.mxu1 }
 0x7a1   : > { %v19669_v56 = vld [vmem:[#allocation170_spill] sm:$0xff] }
 0x7a2   : > { %v18342_v53 = vpop.f32.mrf.mxu1  ;;  %v8922_v51 = vadd.f32 %v19669_v56, %v8720_v32 }
 0x7a4   : > { %v13436_v31 = vpop.f32.mrf.mxu1 }
 0x7a5   : > { %v19670_v31 = vld [vmem:[#allocation188_spill] sm:$0xff] }
 0x7a6   : > { %v9040_v34 = vpop.f32.mrf.mxu1 }
 0x7a7   : > { %v9079_v27 = vadd.f32 %v9040_v34, %v8919_v23  ;;  %v8520_v23 = vadd.f32 %v19671_v15, %v18321_v5 }
 0x7a8   : > { %v13491_v4 = vpop.f32.mrf.mxu1 }
 0x7a9   : > { %v9281_v62 = vadd.f32 %v19663_v60, %v9079_v27  ;;  %v8722_v27 = vadd.f32 %v8697_v41, %v8520_v23  ;;  %v19675_v41 = vld [vmem:[#allocation174_spill] sm:$0xff] }
 0x7aa   : > { %v9043_v16 = vpop.f32.mrf.mxu1 }
 0x7ab   : > { %v9080_v8 = vadd.f32 %v9043_v16, %v8920_v18  ;;  %v9298_v0 = vadd.f32 %v18354_v13, %v9281_v62  ;;  %v19673_v62 = vld [vmem:[#allocation172_spill] sm:$0xff] }
 0x7ac   : > { %v13492_v54 = vpop.f32.mrf.mxu1  ;;  %v8923_v37 = vadd.f32 %v19673_v62, %v8721_v63  ;;  %v19674_v18 = vld [vmem:[#allocation100_spill] sm:$0xff] }
 0x7ad   : > { %v9282_v46 = vadd.f32 %v19666_v14, %v9080_v8  ;;  %v9308_v1 = vmax.f32 %v9298_v0, 0.0  ;;  %v8521_v29 = vadd.f32 %v19674_v18, %v18325_v11  ;;  %v8924_v8 = vadd.f32 %v19675_v41, %v8722_v27  ;;  %v19676_v14 = vld [vmem:[#allocation190_spill] sm:$0xff]  ;;  %v19683_v18 = vld [vmem:[#allocation180_spill] sm:$0xff] }
 0x7ae   : > { %v9048_v21 = vpop.f32.mrf.mxu1 }
 0x7af   : > { %v9299_v59 = vadd.f32 %v18354_v13, %v9282_v46  ;;  %v9081_v22 = vadd.f32 %v9048_v21, %v8921_v3  ;;  %v8723_v32 = vadd.f32 %v8702_v36, %v8521_v29  ;;  %v8522_v3 = vadd.f32 %v19677_v61, %v18329_v17 }
 0x7b0   : > { %v13495_v19 = vpop.f32.mrf.mxu1 }
 0x7b1   : > { %v9309_v10 = vmax.f32 %v9299_v59, 0.0  ;;  %v9283_v45 = vadd.f32 %v19670_v31, %v9081_v22  ;;  %v8724_v59 = vadd.f32 %v8705_v52, %v8522_v3  ;;  %v19678_v19 = vld [vmem:[#allocation191_spill] sm:$0xff]  ;;  %v19681_v52 = vld [vmem:[#allocation178_spill] sm:$0xff] }
 0x7b2   : > { %v9051_v34 = vpop.f32.mrf.mxu1 }
 0x7b3   : > { %v9318_v28 = vpack.c.bf16 %v9309_v10, %v9308_v1  ;;  %v9082_v49 = vadd.f32 %v9051_v34, %v8922_v51  ;;  %v9300_v25 = vadd.f32 %v18354_v13, %v9283_v45  ;;  %v19679_v51 = vld [vmem:[#allocation176_spill] sm:$0xff]  ;;  %v8926_v15 = vadd.f32 %v19681_v52, %v8724_v59  ;;  %v14266_v59 = vld [vmem:[%s19185_s10 + $0x18] sm:$0xff]  }
 0x7b4   : > { %v13496_v4 = vpop.f32.mrf.mxu1  ;;  %v8925_v63 = vadd.f32 %v19679_v51, %v8723_v32  ;;  %v19680_v1 = vld [vmem:[#allocation108_spill] sm:$0xff] }
 0x7b5   : > { %v9284_v60 = vadd.f32 %v19672_v6, %v9082_v49  ;;  %13562 = vmatmul.mubr.bf16.vlgmr.msra.gmra.mxu1 %v9318_v28  ;;  %v9310_v54 = vmax.f32 %v9300_v25, 0.0  ;;  %v8523_v10 = vadd.f32 %v19680_v1, %v18333_v58  ;;  %v19682_v4 = vld [vmem:[#allocation114_spill] sm:$0xff]  ;;  %v14268_v51 = vld [vmem:[%s19185_s10 + $0x8] sm:$0xff]  }
 0x7b6   : > { %v9056_v38 = vpop.f32.mrf.mxu1  ;;  %13565 = vmatprep.mubr.msk.bf16.mxu1 %vm14437_vm0, %v19364_v47  ;;  %v8524_v25 = vadd.f32 %v19682_v4, %v18336_v40  ;;  %v14274_v1 = vld [vmem:[%s19187_s12 + $0x18] sm:$0xff]  }
 0x7b7   : > { %v9301_v5 = vadd.f32 %v18354_v13, %v9284_v60  ;;  %v9083_v50 = vadd.f32 %v9056_v38, %v8923_v37  ;;  %v8725_v23 = vadd.f32 %v18338_v57, %v8523_v10  ;;  %v14275_v10 = vld [vmem:[%s19187_s12 + $0x10] sm:$0xff]  }
 0x7b8   : > { %v13499_v16 = vpop.f32.mrf.mxu1  ;;  %v8726_v58 = vadd.f32 %v18342_v53, %v8524_v25  ;;  %v19684_v53 = vld [vmem:[#allocation182_spill] sm:$0xff]  ;;  %v19689_v25 = vld [vmem:[#allocation16_spill] sm:$0xff] }
 0x7b9   : > { %v9311_v0 = vmax.f32 %v9301_v5, 0.0  ;;  %v9285_v46 = vadd.f32 %v19676_v14, %v9083_v50  ;;  %v8927_v57 = vadd.f32 %v19683_v18, %v8725_v23 }
 0x7ba   : > { %v9059_v21 = vpop.f32.mrf.mxu1 }
 0x7bb   : > { %v9319_v7 = vpack.c.bf16 %v9311_v0, %v9310_v54  ;;  %v9084_v35 = vadd.f32 %v9059_v21, %v8924_v8  ;;  %v9302_v11 = vadd.f32 %v18354_v13, %v9285_v46  ;;  %v8928_v8 = vadd.f32 %v19684_v53, %v8726_v58  ;;  %v19691_v58 = vld [vmem:[#allocation169_spill] sm:$0xff] }
 0x7bc   : > { %v13500_v22 = vpop.f32.mrf.mxu1 }
 0x7bd   : > { %v9286_v56 = vadd.f32 %v19678_v19, %v9084_v35  ;;  %13566 = vmatmul.mubr.bf16.gmra.mxu1 %v9319_v7  ;;  %v9312_v34 = vmax.f32 %v9302_v11, 0.0  ;;  %v14265_v35 = vld [vmem:[%s19185_s10 + $0x20] sm:$0xff]   ;;  %v14270_v22 = vld [vmem:[%s19187_s12 + $0x38] sm:$0xff]   ;;  %v14271_v11 = vld [vmem:[%s19187_s12 + $0x30] sm:$0xff]  }
 0x7be   : > { %v9064_v36 = vpop.f32.mrf.mxu1  ;;  %13569 = vmatprep.mubr.msk.bf16.mxu1 %vm14437_vm0, %v19364_v47  ;;  %13602 = vmatpush3.bf16.msra.mxu1 %v14270_v22  ;;  %v14267_v19 = vld [vmem:[%s19185_s10 + $0x10] sm:$0xff]   ;;  %v19702_v22 = vld [vmem:[#allocation36_spill] sm:$0xff] }
 0x7bf   : > { %v9303_v17 = vadd.f32 %v18354_v13, %v9286_v56  ;;  %v9085_v31 = vadd.f32 %v9064_v36, %v8925_v63  ;;  %13603 = vmatprep.subr.bf16.mxu1 %v19364_v47  ;;  %v14272_v56 = vld [vmem:[%s19187_s12 + $0x28] sm:$0xff]   ;;  %v14273_v63 = vld [vmem:[%s19187_s12 + $0x20] sm:$0xff]  }
 0x7c0   : > { %v13503_v45 = vpop.f32.mrf.mxu1  ;;  %v14269_v36 = vld [vmem:[%s19185_s10] sm:$0xff]  }
 0x7c1   : > { %v9313_v28 = vmax.f32 %v9303_v17, 0.0  ;;  %v9287_v49 = vadd.f32 %v18294_v26, %v9085_v31  ;;  %v14276_v17 = vld [vmem:[%s19187_s12 + $0x8] sm:$0xff]   ;;  %v18470_v31 = vld [vmem:[%s19184_s9] ss:$0 sm:$0xff] }
 0x7c2   : > { %v9067_v27 = vpop.f32.mrf.mxu1  ;;  %13604 = vmatpush3.bf16.msra.mxu1 %v14271_v11  ;;  %v19685_v45 = vld [vmem:[#allocation89_spill] sm:$0xff] }
 0x7c3   : > { %v9320_v6 = vpack.c.bf16 %v9313_v28, %v9312_v34  ;;  %v9086_v60 = vadd.f32 %v9067_v27, %v8926_v15  ;;  %v9304_v37 = vadd.f32 %v18354_v13, %v9287_v49  ;;  %13605 = vmatprep.subr.bf16.mxu1 %v19364_v47  ;;  %v18474_v52 = vadd.f32 %v18470_v31, %v19685_v45  ;;  %v19686_v15 = vld [vmem:[#allocation88_spill] sm:$0xff]  ;;  %v18487_v49 = vld [vmem:[%s19184_s9] ss:$0 sm:$0xff] }
 0x7c4   : > { %v13504_v62 = vpop.f32.mrf.mxu1  ;;  %v18478_v23 = vadd.f32 %v18470_v31, %v19686_v15  ;;  %v19687_v34 = vld [vmem:[#allocation92_spill] sm:$0xff]  ;;  %v19688_v27 = vld [vmem:[#allocation171_spill] sm:$0xff] }
 0x7c5   : > { %v9288_v38 = vadd.f32 %v18296_v24, %v9086_v60  ;;  %13570 = vmatmul.mubr.bf16.gmra.mxu1 %v9320_v6  ;;  %v9314_v50 = vmax.f32 %v9304_v37, 0.0  ;;  %v18482_v28 = vadd.f32 %v18470_v31, %v19687_v34  ;;  %v18491_v4 = vadd.f32 %v18487_v49, %v19688_v27  ;;  %v19690_v60 = vld [vmem:[#allocation93_spill] sm:$0xff]  ;;  %v19706_v45 = vld [vmem:[#allocation140_spill] sm:$0xff]  ;;  %v19708_v27 = vld [vmem:[#allocation39_spill] sm:$0xff] }
 0x7c6   : > { %v9072_v29 = vpop.f32.mrf.mxu1  ;;  %13573 = vmatprep.mubr.msk.bf16.mxu1 %vm14437_vm0, %v19364_v47  ;;  %13606 = vmatpush3.bf16.msra.mxu1 %v14272_v56  ;;  %v3826_v6 = vmul.f32 %v18474_v52, %v19689_v25  ;;  %v18497_v62 = vadd.f32 %v18470_v31, %v19690_v60  ;;  %v18501_v37 = vadd.f32 %v18487_v49, %v19691_v58  ;;  %v19707_v34 = vld [vmem:[#allocation37_spill] sm:$0xff]  ;;  %v19745_v25 = vld [vmem:[#allocation52_spill] sm:$0xff] }
 0x7c7   : > { %v9305_v26 = vadd.f32 %v18354_v13, %v9288_v38  ;;  %v9087_v5 = vadd.f32 %v9072_v29, %v8927_v57  ;;  %13607 = vmatprep.subr.bf16.mxu1 %v19364_v47  ;;  %v19692_v38 = vld [vmem:[#allocation173_spill] sm:$0xff]  ;;  %v18510_v57 = vld [vmem:[%s19184_s9] ss:$0 sm:$0xff]  ;;  %v18566_v15 = vadd.f32 %v18470_v31, %v19706_v45 }
 0x7c8   : > { %v13507_v40 = vpop.f32.mrf.mxu1  ;;  %v18505_v18 = vadd.f32 %v18487_v49, %v19692_v38  ;;  %v18574_v60 = vadd.f32 %v18510_v57, %v18257_v30  ;;  %v18590_v30 = vadd.f32 %v18510_v57, %v18263_v48  ;;  %v18604_v48 = vadd.f32 %v18510_v57, %v18269_v44 }
 0x7c9   : > { %v9315_v16 = vmax.f32 %v9305_v26, 0.0  ;;  %v9289_v41 = vadd.f32 %v18298_v55, %v9087_v5  ;;  %v14262_v55 = vld [vmem:[%s19185_s10 + $0x38] sm:$0xff]  }
 0x7ca   : > { %v9075_v32 = vpop.f32.mrf.mxu1  ;;  %13582 = vmatpush3.bf16.msra.mxu0 %v14262_v55  ;;  %13608 = vmatpush3.bf16.msra.mxu1 %v14273_v63  ;;  %v19693_v26 = vld [vmem:[#allocation14_spill] sm:$0xff]  ;;  %v19694_v40 = vld [vmem:[#allocation15_spill] sm:$0xff]  ;;  %v19700_v55 = vld [vmem:[#allocation29_spill] sm:$0xff] }
 0x7cb   : > { %v9321_v54 = vpack.c.bf16 %v9315_v16, %v9314_v50  ;;  %v9088_v24 = vadd.f32 %v9075_v32, %v8928_v8  ;;  %v9306_v14 = vadd.f32 %v18354_v13, %v9289_v41  ;;  %13583 = vmatprep.subr.bf16.mxu0 %v19364_v47  ;;  %13609 = vmatprep.subr.bf16.mxu1 %v19364_v47  ;;  %v19695_v41 = vld [vmem:[#allocation138_spill] sm:$0xff]  ;;  %v19704_v63 = vld [vmem:[#allocation28_spill] sm:$0xff] }
 0x7cc   : > { %v13508_v0 = vpop.f32.mrf.mxu1  ;;  %v3825_v5 = vmul.f32 %v18478_v23, %v19693_v26  ;;  %v3827_v50 = vmul.f32 %v18482_v28, %v19694_v40  ;;  %v18520_v16 = vadd.f32 %v18510_v57, %v18244_v9  ;;  %v18524_v53 = vadd.f32 %v18470_v31, %v19695_v41  ;;  %v19696_v8 = vld [vmem:[#allocation26_spill] sm:$0xff]  ;;  %v19710_v41 = vld [vmem:[#allocation181_spill] sm:$0xff]  ;;  %v19738_v40 = vld [vmem:[#allocation48_spill] sm:$0xff] }
 0x7cd   : > { %v9290_v46 = vadd.f32 %v18300_v20, %v9088_v24  ;;  %13574 = vmatmul.mubr.bf16.gmra.mxu1 %v9321_v54  ;;  %v9316_v3 = vmax.f32 %v9306_v14, 0.0  ;;  %v14263_v20 = vld [vmem:[%s19185_s10 + $0x30] sm:$0xff]   ;;  %v5710_v32 = vmul.f32 %v18491_v4, %v19696_v8  ;;  %v19697_v54 = vld [vmem:[#allocation175_spill] sm:$0xff]  ;;  %v18538_v9 = vadd.f32 %v18510_v57, %v18249_v39 }
 0x7ce   : > { %13577 = vmatprep.mubr.msk.bf16.mxu1 %vm14437_vm0, %v19364_v47  ;;  %13584 = vmatpush3.bf16.msra.mxu0 %v14263_v20  ;;  %v18530_v24 = vadd.f32 %v18487_v49, %v19697_v54  ;;  %v3835_v14 = vadd.f32 %v3826_v6, %v3825_v5  ;;  %v5711_v20 = vmul.f32 %v18505_v18, %v19700_v55  ;;  %v19709_v5 = vld [vmem:[#allocation31_spill] sm:$0xff] }
 0x7cf   : > { %v9307_v61 = vadd.f32 %v18354_v13, %v9290_v46  ;;  %13585 = vmatprep.subr.bf16.mxu0 %v19364_v47  ;;  %v14264_v13 = vld [vmem:[%s19185_s10 + $0x28] sm:$0xff]   ;;  %13610 = vmatpush3.bf16.msra.mxu1 %v14274_v1  ;;  %v18534_v46 = vadd.f32 %v18510_v57, %v18240_v43  ;;  %v7594_v11 = vmul.f32 %v18520_v16, %v19702_v22  ;;  %v19705_v1 = vld [vmem:[#allocation179_spill] sm:$0xff] }
 0x7d0   : > { %13611 = vmatprep.subr.bf16.mxu1 %v19364_v47  ;;  %v3836_v43 = vadd.f32 %v3835_v14, %v3827_v50  ;;  %v18554_v39 = vadd.f32 %v18510_v57, %v18252_v12  ;;  %v7595_v6 = vmul.f32 %v18538_v9, %v19708_v27  ;;  %v19716_v27 = vld [vmem:[#allocation41_spill] sm:$0xff] }
 0x7d1   : > { %v9317_v21 = vmax.f32 %v9307_v61, 0.0  ;;  %v19698_v61 = vld [vmem:[#allocation17_spill] sm:$0xff]  ;;  %v7593_v12 = vmul.f32 %v18534_v46, %v19707_v34 }
 0x7d2   : > { %13586 = vmatpush3.bf16.msra.mxu0 %v14264_v13  ;;  %v19701_v13 = vld [vmem:[#allocation177_spill] sm:$0xff] }
 0x7d3   : > { %v9322_v7 = vpack.c.bf16 %v9317_v21, %v9316_v3  ;;  %13587 = vmatprep.subr.bf16.mxu0 %v19364_v47  ;;  %13612 = vmatpush3.bf16.msra.mxu1 %v14275_v10  ;;  %v3828_v3 = vmul.f32 %v18497_v62, %v19698_v61  ;;  %v19699_v21 = vld [vmem:[#allocation27_spill] sm:$0xff]  ;;  %v18562_v10 = vadd.f32 %v18487_v49, %v19705_v1 }
 0x7d4   : > { %13613 = vmatprep.subr.bf16.mxu1 %v19364_v47 }
 0x7d5   : > { %13578 = vmatmul.mubr.bf16.gmra.mxu1 %v9322_v7  ;;  %v5709_v7 = vmul.f32 %v18501_v37, %v19699_v21  ;;  %v3837_v58 = vadd.f32 %v3836_v43, %v3828_v3  ;;  %v19713_v43 = vld [vmem:[#allocation30_spill] sm:$0xff] }
 0x7d6   : > { %13617 = vmatprep.mubr.msk.bf16.mxu1 %vm14437_vm0, %v19364_v47  ;;  %13588 = vmatpush3.bf16.msra.mxu0 %v14265_v35  ;;  %v18548_v35 = vadd.f32 %v18487_v49, %v19701_v13  ;;  %v19712_v13 = vld [vmem:[#allocation38_spill] sm:$0xff] }
 0x7d7   : > { %13589 = vmatprep.subr.bf16.mxu0 %v19364_v47  ;;  %13614 = vmatpush3.bf16.msra.mxu1 %v14276_v17  ;;  %v7596_v1 = vmul.f32 %v18554_v39, %v19712_v13  ;;  %v7597_v13 = vmul.f32 %v18574_v60, %v19716_v27 }
 0x7d8   : > { %13615 = vmatprep.subr.bf16.mxu1 %v19364_v47  ;;  %v5713_v50 = vmul.f32 %v18548_v35, %v19709_v5  ;;  %v19723_v5 = vld [vmem:[#allocation32_spill] sm:$0xff] }
 0x7da   : > { %13590 = vmatpush3.bf16.msra.mxu0 %v14266_v59 }
 0x7db   : > { %13591 = vmatprep.subr.bf16.mxu0 %v19364_v47 }
 0x7de   : > { %13592 = vmatpush3.bf16.msra.mxu0 %v14267_v19  ;;  %v19703_v19 = vld [vmem:[#allocation19_spill] sm:$0xff] }
 0x7df   : > { %13593 = vmatprep.subr.bf16.mxu0 %v19364_v47  ;;  %v3829_v56 = vmul.f32 %v18524_v53, %v19703_v19 }
 0x7e1   : > { %v3838_v3 = vadd.f32 %v3837_v58, %v3829_v56  ;;  %v19717_v56 = vld [vmem:[#allocation144_spill] sm:$0xff] }
 0x7e2   : > { %13594 = vmatpush3.bf16.msra.mxu0 %v14268_v51  ;;  %v5719_v51 = vadd.f32 %v5710_v32, %v5709_v7  ;;  %v18580_v32 = vadd.f32 %v18487_v49, %v19710_v41  ;;  %v7603_v7 = vadd.f32 %v7594_v11, %v7593_v12 }
 0x7e3   : > { %13595 = vmatprep.subr.bf16.mxu0 %v19364_v47 }
 0x7e4   : > { %v5720_v38 = vadd.f32 %v5719_v51, %v5711_v20  ;;  %v5714_v51 = vmul.f32 %v18562_v10, %v19713_v43  ;;  %v7604_v12 = vadd.f32 %v7603_v7, %v7595_v6  ;;  %v19720_v7 = vld [vmem:[#allocation21_spill] sm:$0xff]  ;;  %v19721_v43 = vld [vmem:[#allocation40_spill] sm:$0xff] }
 0x7e5   : > { %v7598_v44 = vmul.f32 %v18590_v30, %v19721_v43  ;;  %v19725_v43 = vld [vmem:[#allocation43_spill] sm:$0xff] }
 0x7e6   : > { %13596 = vmatpush3.bf16.msra.mxu0 %v14269_v36  ;;  %v5712_v36 = vmul.f32 %v18530_v24, %v19704_v63  ;;  %v7605_v34 = vadd.f32 %v7604_v12, %v7596_v1  ;;  %v19724_v63 = vld [vmem:[#allocation187_spill] sm:$0xff]  ;;  %v7599_v21 = vmul.f32 %v18604_v48, %v19725_v43 }
 0x7e7   : > { %13621 = vmatprep.subr.bf16.mxu0 %v19364_v47  ;;  %v18632_v55 = vadd.f32 %v18487_v49, %v19724_v63 }
 0x7e8   : > { %v5721_v20 = vadd.f32 %v5720_v38, %v5712_v36  ;;  %v18608_v36 = vadd.f32 %v18470_v31, %v19717_v56  ;;  %v19718_v38 = vld [vmem:[#allocation33_spill] sm:$0xff]  ;;  %v18622_v56 = vadd.f32 %v18510_v57, %v18275_v33  ;;  %v7606_v8 = vadd.f32 %v7605_v34, %v7597_v13  ;;  %v19729_v13 = vld [vmem:[#allocation42_spill] sm:$0xff] }
 0x7e9   : > { %v18638_v33 = vadd.f32 %v18510_v57, %v18278_v2  ;;  %v18652_v2 = vadd.f32 %v18510_v57, %v18280_v42 }
 0x7ea   : > { %v5722_v58 = vadd.f32 %v5721_v20, %v5713_v50  ;;  %v19722_v50 = vld [vmem:[#allocation146_spill] sm:$0xff]  ;;  %v7607_v34 = vadd.f32 %v7606_v8, %v7598_v44  ;;  %v19732_v44 = vld [vmem:[#allocation45_spill] sm:$0xff] }
 0x7eb   : > { %v18626_v20 = vadd.f32 %v18470_v31, %v19722_v50  ;;  %v19726_v50 = vld [vmem:[#allocation20_spill] sm:$0xff] }
 0x7ec   : > { %v7608_v8 = vadd.f32 %v7607_v34, %v7599_v21 }
 0x875   : > { %v18512_v29 = vpop.f32.mrf.mxu1 }
 0x876   : > { %v18665_v42 = vadd.f32 %v18510_v57, %v18512_v29 }
 0x877   : > { %v13563_v0 = vpop.f32.mrf.mxu1 }
 0x878   : > { %v19711_v0 = vld [vmem:[#allocation142_spill] sm:$0xff] }
 0x879   : > { %v9431_v59 = vpop.f32.mrf.mxu1  ;;  %v18584_v14 = vadd.f32 %v18470_v31, %v19711_v0  ;;  %v19715_v0 = vld [vmem:[#allocation18_spill] sm:$0xff] }
 0x87a   : > { %v3830_v11 = vmul.f32 %v18566_v15, %v19715_v0 }
 0x87b   : > { %v13564_v17 = vpop.f32.mrf.mxu1  ;;  %v3831_v27 = vmul.f32 %v18584_v14, %v19720_v7 }
 0x87c   : > { %v19714_v17 = vld [vmem:[#allocation183_spill] sm:$0xff]  ;;  %v3839_v12 = vadd.f32 %v3838_v3, %v3830_v11  ;;  %v7600_v11 = vmul.f32 %v18622_v56, %v19729_v13  ;;  %v7601_v13 = vmul.f32 %v18638_v33, %v19732_v44 }
 0x87d   : > { %v9436_v54 = vpop.f32.mrf.mxu1  ;;  %v18596_v45 = vadd.f32 %v18487_v49, %v19714_v17  ;;  %v5715_v17 = vmul.f32 %v18580_v32, %v19718_v38  ;;  %v5723_v38 = vadd.f32 %v5722_v58, %v5714_v51  ;;  %v3832_v51 = vmul.f32 %v18608_v36, %v19726_v50  ;;  %v19727_v58 = vld [vmem:[#allocation148_spill] sm:$0xff] }
 0x87e   : > { %v3840_v43 = vadd.f32 %v3839_v12, %v3831_v27  ;;  %v19730_v50 = vld [vmem:[#allocation24_spill] sm:$0xff]  ;;  %v19733_v12 = vld [vmem:[#allocation22_spill] sm:$0xff]  ;;  %v7609_v0 = vadd.f32 %v7608_v8, %v7600_v11 }
 0x87f   : > { %v13567_v41 = vpop.f32.mrf.mxu1  ;;  %v5724_v7 = vadd.f32 %v5723_v38, %v5715_v17  ;;  %v19731_v17 = vld [vmem:[#allocation34_spill] sm:$0xff] }
 0x880   : > { %v19719_v41 = vld [vmem:[#allocation185_spill] sm:$0xff]  ;;  %v3841_v27 = vadd.f32 %v3840_v43, %v3832_v51  ;;  %v7610_v61 = vadd.f32 %v7609_v0, %v7601_v13  ;;  %v19736_v43 = vld [vmem:[#allocation47_spill] sm:$0xff] }
 0x881   : > { %v18614_v22 = vadd.f32 %v18487_v49, %v19719_v41  ;;  %v9439_v6 = vpop.f32.mrf.mxu1  ;;  %v5716_v41 = vmul.f32 %v18596_v45, %v19723_v5  ;;  %v18644_v5 = vadd.f32 %v18470_v31, %v19727_v58  ;;  %v19728_v49 = vld [vmem:[#allocation35_spill] sm:$0xff]  ;;  %v3833_v31 = vmul.f32 %v18626_v20, %v19730_v50 }
 0x882   : > { %v5718_v58 = vmul.f32 %v18632_v55, %v19731_v17  ;;  %v19734_v17 = vld [vmem:[#allocation44_spill] sm:$0xff]  ;;  %v18677_v44 = vadd.f32 %v18510_v57, %v9439_v6  ;;  %v9477_v51 = vmul.f32 %v18665_v42, %v19736_v43 }
 0x883   : > { %v13568_v1 = vpop.f32.mrf.mxu1  ;;  %v5717_v63 = vmul.f32 %v18614_v22, %v19728_v49  ;;  %v5725_v38 = vadd.f32 %v5724_v7, %v5716_v41  ;;  %v3834_v50 = vmul.f32 %v18644_v5, %v19733_v12  ;;  %v7602_v21 = vmul.f32 %v18652_v2, %v19734_v17  ;;  %v19737_v12 = vld [vmem:[#allocation49_spill] sm:$0xff] }
 0x884   : > { %v18655_v1 = vadd.f32 %v18510_v57, %v9431_v59  ;;  %v18668_v59 = vadd.f32 %v18510_v57, %v9436_v54  ;;  %v3842_v29 = vadd.f32 %v3841_v27, %v3833_v31  ;;  %v9480_v6 = vmul.f32 %v18677_v44, %v19738_v40  ;;  %v19740_v27 = vld [vmem:[#allocation51_spill] sm:$0xff] }
 0x885   : > { %v9444_v3 = vpop.f32.mrf.mxu1  ;;  %v5726_v7 = vadd.f32 %v5725_v38, %v5717_v63  ;;  %v7611_v17 = vadd.f32 %v7610_v61, %v7602_v21  ;;  %v19742_v21 = vld [vmem:[#allocation50_spill] sm:$0xff] }
 0x886   : > { %v9479_v63 = vmul.f32 %v18668_v59, %v19737_v12  ;;  %v18684_v11 = vadd.f32 %v18510_v57, %v9444_v3  ;;  %v3843_v38 = vadd.f32 %v3842_v29, %v3834_v50 }
 0x887   : > { %v13571_v49 = vpop.f32.mrf.mxu1  ;;  %v5727_v19 = vadd.f32 %v5726_v7, %v5718_v58  ;;  %v7612_v29 = vrot.slane %v7611_v17, 4 }
 0x888   : > { %v19735_v49 = vld [vmem:[#allocation46_spill] sm:$0xff]  ;;  %v9481_v7 = vmul.f32 %v18684_v11, %v19740_v27  ;;  %v3844_v3 = vrot.slane %v3843_v38, 4 }
 0x889   : > { %v9447_v41 = vpop.f32.mrf.mxu1  ;;  %v9478_v34 = vmul.f32 %v18655_v1, %v19735_v49  ;;  %v5728_v13 = vrot.slane %v5727_v19, 4 }
 0x88a   : > { %v18689_v31 = vadd.f32 %v18510_v57, %v9447_v41  ;;  %v3845_v27 = vadd.f32 %v3844_v3, %v3843_v38 }
 0x88b   : > { %v13572_v54 = vpop.f32.mrf.mxu1  ;;  %v9487_v49 = vadd.f32 %v9478_v34, %v9477_v51 }
 0x88c   : > { %19739 = vst [vmem:[#allocation147_spill] sm:$0xff] %v18689_v31  ;;  %v9482_v34 = vmul.f32 %v18689_v31, %v19742_v21  ;;  %v19747_v31 = vld [vmem:[#allocation55_spill] sm:$0xff] }
 0x88d   : > { %v9452_v8 = vpop.f32.mrf.mxu1  ;;  %v9488_v58 = vadd.f32 %v9487_v49, %v9479_v63  ;;  %v19744_v49 = vld [vmem:[#allocation53_spill] sm:$0xff] }
 0x88e   : > { %v18694_v54 = vadd.f32 %v18510_v57, %v9452_v8  ;;  %v7613_v8 = vadd.f32 %v7612_v29, %v7611_v17  ;;  %v19748_v29 = vld [vmem:[#allocation54_spill] sm:$0xff] }
 0x88f   : > { %v13575_v0 = vpop.f32.mrf.mxu1  ;;  %v9489_v61 = vadd.f32 %v9488_v58, %v9480_v6 }
 0x890   : > { %19741 = vst [vmem:[#allocation149_spill] sm:$0xff] %v18694_v54  ;;  %v5729_v0 = vadd.f32 %v5728_v13, %v5727_v19  ;;  %v9483_v63 = vmul.f32 %v18694_v54, %v19744_v49 }
 0x891   : > { %v9455_v50 = vpop.f32.mrf.mxu1  ;;  %v9490_v40 = vadd.f32 %v9489_v61, %v9481_v7  ;;  %v3846_v7 = vrot.slane %v3845_v27, 2  ;;  %v7614_v61 = vrot.slane %v7613_v8, 2 }
 0x892   : > { %v18699_v51 = vadd.f32 %v18510_v57, %v9455_v50  ;;  %v5730_v21 = vrot.slane %v5729_v0, 2 }
 0x893   : > { %v13576_v41 = vpop.f32.mrf.mxu1  ;;  %v9491_v43 = vadd.f32 %v9490_v40, %v9482_v34  ;;  %v3847_v34 = vadd.f32 %v3846_v7, %v3845_v27 }
 0x894   : > { %19743 = vst [vmem:[#allocation158_spill] sm:$0xff] %v18699_v51  ;;  %v9484_v26 = vmul.f32 %v18699_v51, %v19745_v25  ;;  %v5731_v17 = vadd.f32 %v5730_v21, %v5729_v0 }
 0x895   : > { %v9460_v12 = vpop.f32.mrf.mxu1  ;;  %v9492_v50 = vadd.f32 %v9491_v43, %v9483_v63  ;;  %v3848_v49 = vrot.slane %v3847_v34, 1 }
 0x896   : > { %v18706_v6 = vadd.f32 %v18510_v57, %v9460_v12  ;;  %v5732_v43 = vrot.slane %v5731_v17, 1 }
 0x897   : > { %v13579_v58 = vpop.f32.mrf.mxu1  ;;  %v9493_v41 = vadd.f32 %v9492_v50, %v9484_v26  ;;  %v3849_v26 = vadd.f32 %v3848_v49, %v3847_v34 }
 0x898   : > { %19746 = vst [vmem:[#allocation150_spill] sm:$0xff] %v18706_v6  ;;  %v9485_v19 = vmul.f32 %v18706_v6, %v19747_v31  ;;  %v7615_v58 = vadd.f32 %v7614_v61, %v7613_v8  ;;  %v5733_v51 = vadd.f32 %v5732_v43, %v5731_v17  ;;  %v9628_v61 = vld [vmem:[%s19188_s13] sm:$0x1]  ;;  %v14278_v43 = vld [vmem:[%s19189_s14 + $0x38] sm:$0xff]  }
 0x899   : > { %v9463_v13 = vpop.f32.mrf.mxu1 }
 0x89a   : > { %v18711_v38 = vadd.f32 %v18510_v57, %v9463_v13  ;;  %v9494_v3 = vadd.f32 %v9493_v41, %v9485_v19  ;;  %v7616_v31 = vrot.slane %v7615_v58, 1  ;;  %v5734_v13 = vadd.f32 %v5733_v51, %v3849_v26 }
 0x89b   : > { %v13580_v40 = vpop.f32.mrf.mxu1 }
 0x89c   : > { %v9486_v12 = vmul.f32 %v18711_v38, %v19748_v29  ;;  %v7617_v50 = vadd.f32 %v7616_v31, %v7615_v58  ;;  %v9521_v31 = vld [vmem:[%s19186_s11] sm:$0x1] }
 0x89e   : > { %v9495_v25 = vadd.f32 %v9494_v3, %v9486_v12  ;;  %v7618_v21 = vadd.f32 %v7617_v50, %v5734_v13  ;;  %v14279_v50 = vld [vmem:[%s19189_s14 + $0x30] sm:$0xff]  }
 0x89f   : > { %v19749_v13 = vld [vmem:[#allocation25_spill] sm:$0xff] }
 0x8a0   : > { %v9496_v63 = vrot.slane %v9495_v25, 4 }
 0x8a2   : > { %v9497_v6 = vadd.f32 %v9496_v63, %v9495_v25  ;;  %v14277_v25 = vld [vmem:[%s19187_s12] sm:$0xff]  }
 0x8a3   : > { %13616 = vmatpush3.bf16.msra.mxu1 %v14277_v25 }
 0x8a4   : > { %v9498_v54 = vrot.slane %v9497_v6, 2 }
 0x8a6   : > { %v9499_v57 = vadd.f32 %v9498_v54, %v9497_v6 }
 0x8a8   : > { %v9500_v40 = vrot.slane %v9499_v57, 1 }
 0x8aa   : > { %v9501_v0 = vadd.f32 %v9500_v40, %v9499_v57  ;;  %v14280_v57 = vld [vmem:[%s19189_s14 + $0x28] sm:$0xff]  }
 0x8ab   : > { %v19750_v40 = vld [vmem:[#allocation56_spill] sm:$0xff] }
 0x8ac   : > { %v9502_v19 = vadd.f32 %v9501_v0, %v7618_v21  ;;  %v18739_v21 = vadd.f32 %v19750_v40, %v19749_v13  ;;  %v19751_v0 = vld [vmem:[#allocation57_spill] sm:$0xff]  ;;  %v14281_v40 = vld [vmem:[%s19189_s14 + $0x20] sm:$0xff]  }
 0x8ae   : > { %v9503_v41 = vmul.f32 0.00390625, %v9502_v19  ;;  %v18743_v19 = vadd.f32 %v19751_v0, %v19749_v13  ;;  %v19764_v0 = vld [vmem:[#allocation69_spill] sm:$0xff] }
 0x8b0   : > { %v9504_v29 = vpack.c.bf16 %v9503_v41, %v9503_v41  ;;  %v19752_v41 = vld [vmem:[#allocation58_spill] sm:$0xff] }
 0x8b1   : > { %v18747_v25 = vadd.f32 %v19752_v41, %v19749_v13  ;;  %v18795_v41 = vadd.f32 %v19764_v0, %v19749_v13  ;;  %v19776_v0 = vld [vmem:[#allocation75_spill] sm:$0xff] }
 0x8b2   : > { %13598 = vmatmul.mubr.bf16.vlgmr.msra.gmra.mxu0 %v9504_v29 }
 0x8b3   : > { %13637 = vmatprep.mubr.msk.bf16.mxu0 %vm14437_vm0, %v19364_v47  ;;  %13622 = vmatpush3.bf16.msra.mxu0 %v14278_v43  ;;  %19765 = vst [vmem:[#allocation152_spill] sm:$0xff] %v18795_v41  ;;  %v19806_v41 = vld [vmem:[#allocation109_spill] sm:$0xff] }
 0x8b4   : > { %13623 = vmatprep.subr.bf16.mxu0 %v19364_v47 }
 0x8b7   : > { %13624 = vmatpush3.bf16.msra.mxu0 %v14279_v50  ;;  %v19762_v50 = vld [vmem:[#allocation68_spill] sm:$0xff] }
 0x8b8   : > { %13625 = vmatprep.subr.bf16.mxu0 %v19364_v47 }
 0x8bb   : > { %13626 = vmatpush3.bf16.msra.mxu0 %v14280_v57  ;;  %v18788_v57 = vadd.f32 %v19762_v50, %v19749_v13 }
 0x8bc   : > { %13627 = vmatprep.subr.bf16.mxu0 %v19364_v47 }
 0x8bd   : > { %19763 = vst [vmem:[#allocation151_spill] sm:$0xff] %v18788_v57 }
 0x8bf   : > { %13628 = vmatpush3.bf16.msra.mxu0 %v14281_v40  ;;  %v19788_v40 = vld [vmem:[#allocation87_spill] sm:$0xff] }
 0x8c0   : > { %13629 = vmatprep.subr.bf16.mxu0 %v19364_v47 }
 0x972   : > { %v9604_v27 = vpop.f32.mrf.mxu0 }
 0x973   : > { %v9605_v54 = vadd.f32 %v9604_v27, %v9521_v31  ;;  %v19753_v31 = vld [vmem:[#allocation59_spill] sm:$0xff] }
 0x974   : > { %v13599_v51 = vpop.f32.mrf.mxu0  ;;  %v18751_v27 = vadd.f32 %v19753_v31, %v19749_v13  ;;  %v19766_v31 = vld [vmem:[#allocation70_spill] sm:$0xff] }
 0x975   : > { %v9610_v49 = vmax.f32 %v9605_v54, 0.0  ;;  %v19754_v54 = vld [vmem:[#allocation60_spill] sm:$0xff] }
 0x976   : > { %v9607_v8 = vpop.f32.mrf.mxu0  ;;  %v18755_v51 = vadd.f32 %v19754_v54, %v19749_v13  ;;  %v18799_v54 = vadd.f32 %v19766_v31, %v19749_v13  ;;  %v18819_v31 = vadd.f32 %v19776_v0, %v19749_v13  ;;  %v19786_v0 = vld [vmem:[#allocation86_spill] sm:$0xff] }
 0x977   : > { %v9611_v6 = vpack.c.bf16 %v9610_v49, %v9610_v49  ;;  %v19755_v49 = vld [vmem:[#allocation61_spill] sm:$0xff] }
 0x978   : > { %v13600_v7 = vpop.f32.mrf.mxu0  ;;  %v18759_v8 = vadd.f32 %v19755_v49, %v19749_v13  ;;  %19767 = vst [vmem:[#allocation153_spill] sm:$0xff] %v18799_v54  ;;  %v19768_v49 = vld [vmem:[#allocation71_spill] sm:$0xff]  ;;  %19777 = vst [vmem:[#allocation159_spill] sm:$0xff] %v18819_v31  ;;  %v19778_v54 = vld [vmem:[#allocation78_spill] sm:$0xff]  ;;  %v18839_v31 = vadd.f32 %v19786_v0, %v19749_v13 }
 0x979   : > { %13618 = vmatmul.mubr.bf16.vlgmr.msra.gmra.mxu1 %v9611_v6  ;;  %v19756_v6 = vld [vmem:[#allocation62_spill] sm:$0xff] }
 0x97a   : > { %v18763_v7 = vadd.f32 %v19756_v6, %v19749_v13  ;;  %v18803_v6 = vadd.f32 %v19768_v49, %v19749_v13  ;;  %v18823_v49 = vadd.f32 %v19778_v54, %v19749_v13  ;;  %19787 = vst [vmem:[#allocation163_spill] sm:$0xff] %v18839_v31  ;;  %v18844_v54 = vadd.f32 %v19788_v40, %v19749_v13  ;;  %v14282_v0 = vld [vmem:[%s19189_s14 + $0x18] sm:$0xff]  }
 0x97b   : > { %v19796_v40 = vld [vmem:[#allocation95_spill] sm:$0xff]  ;;  %13630 = vmatpush3.bf16.msra.mxu0 %v14282_v0 }
 0x97c   : > { %19769 = vst [vmem:[#allocation154_spill] sm:$0xff] %v18803_v6  ;;  %19779 = vst [vmem:[#allocation168_spill] sm:$0xff] %v18823_v49  ;;  %v19804_v49 = vld [vmem:[#allocation106_spill] sm:$0xff]  ;;  %13631 = vmatprep.subr.bf16.mxu0 %v19364_v47 }
 0x97d   : > { %19789 = vst [vmem:[#allocation164_spill] sm:$0xff] %v18844_v54  ;;  %v18863_v54 = vadd.f32 %v19796_v40, %v19749_v13  ;;  %v18879_v6 = vadd.f32 %v19804_v49, %v19749_v13  ;;  %v18883_v40 = vadd.f32 %v19806_v41, %v19749_v13 }
 0x97f   : > { %19797 = vst [vmem:[#allocation124_spill] sm:$0xff] %v18863_v54  ;;  %19805 = vst [vmem:[#allocation126_spill] sm:$0xff] %v18879_v6  ;;  %v19808_v54 = vld [vmem:[#allocation111_spill] sm:$0xff] }
 0x980   : > { %19807 = vst [vmem:[#allocation131_spill] sm:$0xff] %v18883_v40  ;;  %v19814_v6 = vld [vmem:[#allocation119_spill] sm:$0xff]  ;;  %v19816_v40 = vld [vmem:[#allocation122_spill] sm:$0xff] }
 0x981   : > { %v18900_v41 = vadd.f32 %v19814_v6, %v19749_v13 }
 0x983   : > { %19815 = vst [vmem:[#allocation137_spill] sm:$0xff] %v18900_v41 }
 0xa39   : > { %v9711_v17 = vpop.f32.mrf.mxu1 }
 0xa3a   : > { %v9712_v3 = vadd.f32 %v9711_v17, %v9628_v61  ;;  %v19757_v61 = vld [vmem:[#allocation63_spill] sm:$0xff] }
 0xa3b   : > { %v13619_v29 = vpop.f32.mrf.mxu1  ;;  %v18767_v17 = vadd.f32 %v19757_v61, %v19749_v13  ;;  %v19770_v61 = vld [vmem:[#allocation72_spill] sm:$0xff] }
 0xa3c   : > { %v11338_v12 = vmul.f32 -1.442695, %v9712_v3  ;;  %v19758_v3 = vld [vmem:[#allocation64_spill] sm:$0xff] }
 0xa3d   : > { %v9714_v34 = vpop.f32.mrf.mxu1  ;;  %v18771_v29 = vadd.f32 %v19758_v3, %v19749_v13  ;;  %v18807_v3 = vadd.f32 %v19770_v61, %v19749_v13  ;;  %v19780_v61 = vld [vmem:[#allocation79_spill] sm:$0xff] }
 0xa3e   : > { %14286 = vpow2.f32 %v11338_v12  ;;  %v19759_v12 = vld [vmem:[#allocation65_spill] sm:$0xff] }
 0xa3f   : > { %v13620_v58 = vpop.f32.mrf.mxu1  ;;  %v18776_v34 = vadd.f32 %v19759_v12, %v19749_v13  ;;  %19771 = vst [vmem:[#allocation155_spill] sm:$0xff] %v18807_v3  ;;  %v19772_v12 = vld [vmem:[#allocation73_spill] sm:$0xff]  ;;  %v18827_v3 = vadd.f32 %v19780_v61, %v19749_v13  ;;  %v19790_v61 = vld [vmem:[#allocation90_spill] sm:$0xff] }
 0xa40   : > { %v19760_v58 = vld [vmem:[#allocation66_spill] sm:$0xff] }
 0xa41   : > { %v18780_v43 = vadd.f32 %v19760_v58, %v19749_v13  ;;  %v18811_v58 = vadd.f32 %v19772_v12, %v19749_v13  ;;  %19781 = vst [vmem:[#allocation160_spill] sm:$0xff] %v18827_v3  ;;  %v19782_v12 = vld [vmem:[#allocation82_spill] sm:$0xff]  ;;  %v18848_v3 = vadd.f32 %v19790_v61, %v19749_v13  ;;  %v19798_v61 = vld [vmem:[#allocation97_spill] sm:$0xff] }
 0xa43   : > { %19773 = vst [vmem:[#allocation156_spill] sm:$0xff] %v18811_v58  ;;  %v18831_v58 = vadd.f32 %v19782_v12, %v19749_v13  ;;  %19791 = vst [vmem:[#allocation165_spill] sm:$0xff] %v18848_v3  ;;  %v19792_v12 = vld [vmem:[#allocation91_spill] sm:$0xff]  ;;  %v18867_v3 = vadd.f32 %v19798_v61, %v19749_v13  ;;  %v18887_v61 = vadd.f32 %v19808_v54, %v19749_v13 }
 0xa44   : > { %v18904_v54 = vadd.f32 %v19816_v40, %v19749_v13 }
 0xa45   : > { %19783 = vst [vmem:[#allocation161_spill] sm:$0xff] %v18831_v58  ;;  %v18852_v58 = vadd.f32 %v19792_v12, %v19749_v13  ;;  %19799 = vst [vmem:[#allocation125_spill] sm:$0xff] %v18867_v3  ;;  %v19800_v12 = vld [vmem:[#allocation98_spill] sm:$0xff]  ;;  %v19810_v3 = vld [vmem:[#allocation23_spill] sm:$0xff] }
 0xa46   : > { %19809 = vst [vmem:[#allocation132_spill] sm:$0xff] %v18887_v61  ;;  %v19811_v57 = vsub.s32 0, %v19810_v3  ;;  %19817 = vst [vmem:[#allocation136_spill] sm:$0xff] %v18904_v54  ;;  %v19818_v3 = vld [vmem:[#allocation123_spill] sm:$0xff]  ;;  %v19822_v61 = vld [vmem:[#allocation158_spill] sm:$0xff] }
 0xa47   : > { %19793 = vst [vmem:[#allocation166_spill] sm:$0xff] %v18852_v58  ;;  %v18871_v58 = vadd.f32 %v19800_v12, %v19749_v13 }
 0xa49   : > { %19801 = vst [vmem:[#allocation129_spill] sm:$0xff] %v18871_v58  ;;  %v19823_v58 = vld [vmem:[#allocation150_spill] sm:$0xff] }
 0xa4b   : > { %v14287_v63 = vpop.eup %14286 }
 0xa4c   : > { %v9720_v26 = vadd.f32 1.0, %v14287_v63  ;;  %v19761_v63 = vld [vmem:[#allocation67_spill] sm:$0xff] }
 0xa4e   : > { %14288 = vrcp.f32 %v9720_v26  ;;  %v18784_v26 = vadd.f32 %v19761_v63, %v19749_v13  ;;  %v19774_v63 = vld [vmem:[#allocation74_spill] sm:$0xff] }
 0xa4f   : > { %v18815_v50 = vadd.f32 %v19774_v63, %v19749_v13  ;;  %v19784_v63 = vld [vmem:[#allocation84_spill] sm:$0xff] }
 0xa51   : > { %19775 = vst [vmem:[#allocation157_spill] sm:$0xff] %v18815_v50  ;;  %v18835_v50 = vadd.f32 %v19784_v63, %v19749_v13  ;;  %v19794_v63 = vld [vmem:[#allocation94_spill] sm:$0xff] }
 0xa53   : > { %19785 = vst [vmem:[#allocation162_spill] sm:$0xff] %v18835_v50  ;;  %v18856_v50 = vadd.f32 %v19794_v63, %v19749_v13  ;;  %v19802_v63 = vld [vmem:[#allocation102_spill] sm:$0xff] }
 0xa55   : > { %19795 = vst [vmem:[#allocation167_spill] sm:$0xff] %v18856_v50  ;;  %v18875_v50 = vadd.f32 %v19802_v63, %v19749_v13  ;;  %v14283_v63 = vld [vmem:[%s19189_s14 + $0x10] sm:$0xff]  }
 0xa56   : > { %13632 = vmatpush3.bf16.msra.mxu0 %v14283_v63 }
 0xa57   : > { %19803 = vst [vmem:[#allocation130_spill] sm:$0xff] %v18875_v50  ;;  %v19812_v50 = vld [vmem:[#allocation118_spill] sm:$0xff]  ;;  %13633 = vmatprep.subr.bf16.mxu0 %v19364_v47 }
 0xa58   : > { %v18896_v49 = vadd.f32 %v19812_v50, %v19749_v13 }
 0xa5a   : > { %19813 = vst [vmem:[#allocation133_spill] sm:$0xff] %v18896_v49 }
 0xa5b   : > { %v14289_v31 = vpop.eup %14288 }
 0xa5c   : > { %v9766_v12 = vrot.slane %v14289_v31, %v19811_v57  ;;  %v18908_v57 = vadd.f32 %v19818_v3, %v19749_v13 }
 0xa5e   : > { %19819 = vst [vmem:[#allocation127_spill] sm:$0xff] %v18908_v57  ;;  %v9767_v31 = vmul.f32 %v9766_v12, %v18478_v23  ;;  %v9768_v0 = vmul.f32 %v9766_v12, %v18474_v52  ;;  %v9769_v50 = vmul.f32 %v9766_v12, %v18482_v28  ;;  %v9770_v49 = vmul.f32 %v9766_v12, %v18497_v62  ;;  %v14284_v28 = vld [vmem:[%s19189_s14 + $0x8] sm:$0xff]  }
 0xa5f   : > { %v9771_v6 = vmul.f32 %v9766_v12, %v18524_v53  ;;  %v9772_v41 = vmul.f32 %v9766_v12, %v18566_v15  ;;  %v9773_v40 = vmul.f32 %v9766_v12, %v18584_v14  ;;  %v9774_v54 = vmul.f32 %v9766_v12, %v18608_v36  ;;  %13634 = vmatpush3.bf16.msra.mxu0 %v14284_v28  ;;  %v19821_v28 = vld [vmem:[#allocation149_spill] sm:$0xff] }
 0xa60   : > { %v9775_v13 = vmul.f32 %v9766_v12, %v18626_v20  ;;  %v9776_v3 = vmul.f32 %v9766_v12, %v18644_v5  ;;  %v9777_v23 = vmul.f32 %v9766_v12, %v18501_v37  ;;  %v9778_v52 = vmul.f32 %v9766_v12, %v18491_v4  ;;  %13635 = vmatprep.subr.bf16.mxu0 %v19364_v47 }
 0xa61   : > { %v9779_v62 = vmul.f32 %v9766_v12, %v18505_v18  ;;  %v9780_v53 = vmul.f32 %v9766_v12, %v18530_v24  ;;  %v9781_v15 = vmul.f32 %v9766_v12, %v18548_v35  ;;  %v9782_v14 = vmul.f32 %v9766_v12, %v18562_v10 }
 0xa62   : > { %v9783_v5 = vmul.f32 %v9766_v12, %v18580_v32  ;;  %v9784_v37 = vmul.f32 %v9766_v12, %v18596_v45  ;;  %v9785_v4 = vmul.f32 %v9766_v12, %v18614_v22  ;;  %v9786_v36 = vmul.f32 %v9766_v12, %v18632_v55  ;;  %v14285_v55 = vld [vmem:[%s19189_s14] sm:$0xff]  }
 0xa63   : > { %v9787_v20 = vmul.f32 %v9766_v12, %v18534_v46  ;;  %v9788_v18 = vmul.f32 %v9766_v12, %v18520_v16  ;;  %v9789_v24 = vmul.f32 %v9766_v12, %v18538_v9  ;;  %v9790_v35 = vmul.f32 %v9766_v12, %v18554_v39  ;;  %13636 = vmatpush3.bf16.msra.mxu0 %v14285_v55 }
 0xa64   : > { %v9791_v10 = vmul.f32 %v9766_v12, %v18574_v60  ;;  %v9792_v63 = vmul.f32 %v9766_v12, %v18590_v30  ;;  %v9793_v32 = vmul.f32 %v9766_v12, %v18604_v48  ;;  %v9794_v45 = vmul.f32 %v9766_v12, %v18622_v56  ;;  %v19820_v48 = vld [vmem:[#allocation147_spill] sm:$0xff] }
 0xa65   : > { %v9795_v46 = vmul.f32 %v9766_v12, %v18638_v33  ;;  %v9796_v16 = vmul.f32 %v9766_v12, %v18652_v2  ;;  %v9797_v9 = vmul.f32 %v9766_v12, %v18665_v42  ;;  %v9798_v22 = vmul.f32 %v9766_v12, %v18655_v1 }
 0xa66   : > { %v9799_v39 = vmul.f32 %v9766_v12, %v18668_v59  ;;  %v9800_v60 = vmul.f32 %v9766_v12, %v18677_v44  ;;  %v9801_v30 = vmul.f32 %v9766_v12, %v18684_v11  ;;  %v9802_v56 = vmul.f32 %v9766_v12, %v19820_v48 }
 0xa67   : > { %v9803_v57 = vmul.f32 %v9766_v12, %v19821_v28  ;;  %v9804_v33 = vmul.f32 %v9766_v12, %v19822_v61  ;;  %v9805_v2 = vmul.f32 %v9766_v12, %v19823_v58  ;;  %v9806_v42 = vmul.f32 %v9766_v12, %v18711_v38  ;;  %v19825_v12 = vld [vmem:[#allocation152_spill] sm:$0xff] }
 0xa68   : > { %v9847_v1 = vadd.f32 %v9767_v31, %v18739_v21  ;;  %v9848_v47 = vadd.f32 %v9768_v0, %v18743_v19  ;;  %v9849_v59 = vadd.f32 %v9769_v50, %v18747_v25  ;;  %v9850_v44 = vadd.f32 %v9770_v49, %v18751_v27  ;;  %v19824_v25 = vld [vmem:[#allocation151_spill] sm:$0xff]  ;;  %v19832_v50 = vld [vmem:[#allocation168_spill] sm:$0xff] }
 0xa69   : > { %v9851_v11 = vadd.f32 %v9771_v6, %v18755_v51  ;;  %v9852_v48 = vadd.f32 %v9772_v41, %v18759_v8  ;;  %v9853_v28 = vadd.f32 %v9773_v40, %v18763_v7  ;;  %v9854_v61 = vadd.f32 %v9774_v54, %v18767_v17  ;;  %v19826_v8 = vld [vmem:[#allocation153_spill] sm:$0xff]  ;;  %v19827_v7 = vld [vmem:[#allocation154_spill] sm:$0xff]  ;;  %v19831_v31 = vld [vmem:[#allocation159_spill] sm:$0xff] }
 0xa6a   : > { %v9855_v58 = vadd.f32 %v9775_v13, %v18771_v29  ;;  %v9856_v38 = vadd.f32 %v9776_v3, %v18776_v34  ;;  %v9857_v21 = vadd.f32 %v9777_v23, %v18780_v43  ;;  %v18971_v19 = vadd.f32 %v9778_v52, %v18784_v26  ;;  %v19828_v29 = vld [vmem:[#allocation155_spill] sm:$0xff]  ;;  %v19829_v34 = vld [vmem:[#allocation156_spill] sm:$0xff]  ;;  %v19830_v26 = vld [vmem:[#allocation157_spill] sm:$0xff] }
 0xa6b   : > { %v18974_v27 = vadd.f32 %v9779_v62, %v19824_v25  ;;  %v18977_v51 = vadd.f32 %v9780_v53, %v19825_v12  ;;  %v18980_v49 = vadd.f32 %v9781_v15, %v19826_v8  ;;  %v18983_v17 = vadd.f32 %v9782_v14, %v19827_v7  ;;  %v19833_v40 = vld [vmem:[#allocation160_spill] sm:$0xff]  ;;  %v19834_v3 = vld [vmem:[#allocation161_spill] sm:$0xff]  ;;  %v19835_v52 = vld [vmem:[#allocation162_spill] sm:$0xff] }
 0xa6c   : > { %v18986_v41 = vadd.f32 %v9783_v5, %v19828_v29  ;;  %v18989_v43 = vadd.f32 %v9784_v37, %v19829_v34  ;;  %v18992_v54 = vadd.f32 %v9785_v4, %v19830_v26  ;;  %v18995_v0 = vadd.f32 %v9786_v36, %v19831_v31  ;;  %v19836_v53 = vld [vmem:[#allocation163_spill] sm:$0xff]  ;;  %v19837_v14 = vld [vmem:[#allocation164_spill] sm:$0xff]  ;;  %v19838_v37 = vld [vmem:[#allocation165_spill] sm:$0xff] }
 0xa6d   : > { %v18998_v6 = vadd.f32 %v9787_v20, %v19832_v50  ;;  %v19001_v13 = vadd.f32 %v9788_v18, %v19833_v40  ;;  %v19004_v23 = vadd.f32 %v9789_v24, %v19834_v3  ;;  %v19007_v62 = vadd.f32 %v9790_v35, %v19835_v52  ;;  %v19839_v36 = vld [vmem:[#allocation166_spill] sm:$0xff]  ;;  %v19840_v18 = vld [vmem:[#allocation167_spill] sm:$0xff]  ;;  %v19841_v24 = vld [vmem:[#allocation124_spill] sm:$0xff] }
 0xa6e   : > { %v19010_v15 = vadd.f32 %v9791_v10, %v19836_v53  ;;  %v19013_v5 = vadd.f32 %v9792_v63, %v19837_v14  ;;  %v19016_v4 = vadd.f32 %v9793_v32, %v19838_v37  ;;  %v19019_v20 = vadd.f32 %v9794_v45, %v19839_v36  ;;  %v19842_v35 = vld [vmem:[#allocation125_spill] sm:$0xff]  ;;  %v19844_v63 = vld [vmem:[#allocation130_spill] sm:$0xff]  ;;  %v19846_v45 = vld [vmem:[#allocation131_spill] sm:$0xff] }
 0xa6f   : > { %v19022_v55 = vadd.f32 %v9795_v46, %v19840_v18  ;;  %v19025_v25 = vadd.f32 %v9796_v16, %v19841_v24  ;;  %v19028_v12 = vadd.f32 %v9797_v9, %v19842_v35  ;;  %v19843_v10 = vld [vmem:[#allocation129_spill] sm:$0xff]  ;;  %v19034_v7 = vadd.f32 %v9799_v39, %v19844_v63  ;;  %v19845_v32 = vld [vmem:[#allocation126_spill] sm:$0xff]  ;;  %v19847_v46 = vld [vmem:[#allocation132_spill] sm:$0xff] }
 0xa70   : > { %v19031_v8 = vadd.f32 %v9798_v22, %v19843_v10  ;;  %v19037_v29 = vadd.f32 %v9800_v60, %v19845_v32  ;;  %v19040_v34 = vadd.f32 %v9801_v30, %v19846_v45  ;;  %v19043_v26 = vadd.f32 %v9802_v56, %v19847_v46  ;;  %v19848_v16 = vld [vmem:[#allocation133_spill] sm:$0xff]  ;;  %v19850_v22 = vld [vmem:[#allocation136_spill] sm:$0xff]  ;;  %v19851_v39 = vld [vmem:[#allocation127_spill] sm:$0xff] }
 0xa71   : > { %v19046_v31 = vadd.f32 %v9803_v57, %v19848_v16  ;;  %v19849_v9 = vld [vmem:[#allocation137_spill] sm:$0xff]  ;;  %v19052_v40 = vadd.f32 %v9805_v2, %v19850_v22  ;;  %v19055_v3 = vadd.f32 %v9806_v42, %v19851_v39  ;;  %v9887_v60 = vmax.f32 %v9847_v1, 0.0  ;;  %v19852_v30 = vld [vmem:[#allocation14_spill] sm:$0xff]  ;;  %v19853_v37 = vld [vmem:[#allocation16_spill] sm:$0xff] }
 0xa72   : > { %v19049_v50 = vadd.f32 %v9804_v33, %v19849_v9  ;;  %v9888_v52 = vmax.f32 %v9848_v47, 0.0  ;;  %v9889_v53 = vmax.f32 %v9849_v59, 0.0  ;;  %v9890_v36 = vmax.f32 %v9850_v44, 0.0  ;;  %v19854_v57 = vld [vmem:[#allocation15_spill] sm:$0xff]  ;;  %v19855_v10 = vld [vmem:[#allocation17_spill] sm:$0xff]  ;;  %v19857_v47 = vld [vmem:[#allocation18_spill] sm:$0xff] }
 0xa73   : > { %v9927_v14 = vmul.f32 %v9887_v60, %v19852_v30  ;;  %v9891_v18 = vmax.f32 %v9851_v11, 0.0  ;;  %v9892_v33 = vmax.f32 %v9852_v48, 0.0  ;;  %v9893_v32 = vmax.f32 %v9853_v28, 0.0  ;;  %v19856_v45 = vld [vmem:[#allocation19_spill] sm:$0xff]  ;;  %v19858_v22 = vld [vmem:[#allocation21_spill] sm:$0xff]  ;;  %v19859_v60 = vld [vmem:[#allocation20_spill] sm:$0xff] }
 0xa74   : > { %v9928_v56 = vmul.f32 %v9888_v52, %v19853_v37  ;;  %v9929_v24 = vmul.f32 %v9889_v53, %v19854_v57  ;;  %v9930_v63 = vmul.f32 %v9890_v36, %v19855_v10  ;;  %v9894_v1 = vmax.f32 %v9854_v61, 0.0  ;;  %v19860_v30 = vld [vmem:[#allocation24_spill] sm:$0xff]  ;;  %v19862_v57 = vld [vmem:[#allocation27_spill] sm:$0xff] }
 0xa75   : > { %v9931_v42 = vmul.f32 %v9891_v18, %v19856_v45  ;;  %v9932_v59 = vmul.f32 %v9892_v33, %v19857_v47  ;;  %v9895_v9 = vmax.f32 %v9855_v58, 0.0  ;;  %v9933_v39 = vmul.f32 %v9893_v32, %v19858_v22  ;;  %v19865_v45 = vld [vmem:[#allocation28_spill] sm:$0xff] }
 0xa76   : > { %v9967_v35 = vadd.f32 %v9928_v56, %v9927_v14  ;;  %v9896_v11 = vmax.f32 %v9856_v38, 0.0  ;;  %v9934_v52 = vmul.f32 %v9894_v1, %v19859_v60  ;;  %v9897_v48 = vmax.f32 %v9857_v21, 0.0  ;;  %v19861_v56 = vld [vmem:[#allocation22_spill] sm:$0xff]  ;;  %v19866_v1 = vld [vmem:[#allocation31_spill] sm:$0xff]  ;;  %v19869_v60 = vld [vmem:[#allocation32_spill] sm:$0xff] }
 0xa77   : > { %v9935_v14 = vmul.f32 %v9895_v9, %v19860_v30  ;;  %v9898_v28 = vmax.f32 %v18971_v19, 0.0  ;;  %v9899_v18 = vmax.f32 %v18974_v27, 0.0  ;;  %v19863_v38 = vld [vmem:[#allocation26_spill] sm:$0xff]  ;;  %v9901_v21 = vmax.f32 %v18980_v49, 0.0 }
 0xa78   : > { %v9968_v2 = vadd.f32 %v9967_v35, %v9929_v24  ;;  %v9936_v36 = vmul.f32 %v9896_v11, %v19861_v56  ;;  %v9937_v58 = vmul.f32 %v9897_v48, %v19862_v57  ;;  %v9900_v35 = vmax.f32 %v18977_v51, 0.0  ;;  %v19870_v48 = vld [vmem:[#allocation35_spill] sm:$0xff]  ;;  %v19873_v57 = vld [vmem:[#allocation36_spill] sm:$0xff] }
 0xa79   : > { %v9938_v33 = vmul.f32 %v9898_v28, %v19863_v38  ;;  %v9902_v19 = vmax.f32 %v18983_v17, 0.0  ;;  %v9903_v27 = vmax.f32 %v18986_v41, 0.0  ;;  %v9941_v47 = vmul.f32 %v9901_v21, %v19866_v1 }
 0xa7a   : > { %v9969_v46 = vadd.f32 %v9968_v2, %v9930_v63  ;;  %v19864_v63 = vld [vmem:[#allocation29_spill] sm:$0xff]  ;;  %v9904_v51 = vmax.f32 %v18989_v43, 0.0  ;;  %v9905_v49 = vmax.f32 %v18992_v54, 0.0  ;;  %v9906_v17 = vmax.f32 %v18995_v0, 0.0 }
 0xa7b   : > { %v9939_v2 = vmul.f32 %v9899_v18, %v19864_v63  ;;  %v9907_v41 = vmax.f32 %v18998_v6, 0.0  ;;  %v9908_v43 = vmax.f32 %v19001_v13, 0.0  ;;  %v9909_v54 = vmax.f32 %v19004_v23, 0.0 }
 0xa7c   : > { %v9970_v16 = vadd.f32 %v9969_v46, %v9931_v42  ;;  %v9940_v42 = vmul.f32 %v9900_v35, %v19865_v45  ;;  %v9945_v30 = vmul.f32 %v9905_v49, %v19870_v48  ;;  %v9910_v0 = vmax.f32 %v19007_v62, 0.0  ;;  %v19874_v35 = vld [vmem:[#allocation39_spill] sm:$0xff]  ;;  %v19877_v45 = vld [vmem:[#allocation40_spill] sm:$0xff] }
 0xa7d   : > { %v9911_v6 = vmax.f32 %v19010_v15, 0.0  ;;  %v9949_v38 = vmul.f32 %v9909_v54, %v19874_v35  ;;  %v9912_v13 = vmax.f32 %v19013_v5, 0.0  ;;  %v9913_v23 = vmax.f32 %v19016_v4, 0.0  ;;  %v19886_v54 = vld [vmem:[#allocation51_spill] sm:$0xff]  ;;  %v19889_v35 = vld [vmem:[#allocation52_spill] sm:$0xff] }
 0xa7e   : > { %v9971_v44 = vadd.f32 %v9970_v16, %v9932_v59  ;;  %v19867_v16 = vld [vmem:[#allocation30_spill] sm:$0xff]  ;;  %v9914_v62 = vmax.f32 %v19019_v20, 0.0  ;;  %v9915_v15 = vmax.f32 %v19022_v55, 0.0  ;;  %v9916_v5 = vmax.f32 %v19025_v25, 0.0 }
 0xa7f   : > { %v9942_v9 = vmul.f32 %v9902_v19, %v19867_v16  ;;  %v9917_v4 = vmax.f32 %v19028_v12, 0.0  ;;  %v9918_v20 = vmax.f32 %v19031_v8, 0.0  ;;  %v9919_v55 = vmax.f32 %v19034_v7, 0.0 }
 0xa80   : > { %v9972_v53 = vadd.f32 %v9971_v44, %v9933_v39  ;;  %v19868_v39 = vld [vmem:[#allocation33_spill] sm:$0xff]  ;;  %v9920_v25 = vmax.f32 %v19037_v29, 0.0  ;;  %v9921_v12 = vmax.f32 %v19040_v34, 0.0  ;;  %v9922_v8 = vmax.f32 %v19043_v26, 0.0 }
 0xa81   : > { %v9943_v44 = vmul.f32 %v9903_v27, %v19868_v39  ;;  %v19878_v27 = vld [vmem:[#allocation43_spill] sm:$0xff]  ;;  %v19881_v39 = vld [vmem:[#allocation44_spill] sm:$0xff]  ;;  %v9923_v7 = vmax.f32 %v19046_v31, 0.0  ;;  %v9924_v29 = vmax.f32 %v19049_v50, 0.0  ;;  %v9925_v34 = vmax.f32 %v19052_v40, 0.0 }
 0xa82   : > { %v9973_v37 = vadd.f32 %v9972_v53, %v9934_v52  ;;  %v9944_v52 = vmul.f32 %v9904_v51, %v19869_v60  ;;  %v9953_v1 = vmul.f32 %v9913_v23, %v19878_v27  ;;  %v9926_v26 = vmax.f32 %v19055_v3, 0.0  ;;  %v19890_v31 = vld [vmem:[#allocation55_spill] sm:$0xff] }
 0xa84   : > { %v9974_v61 = vadd.f32 %v9973_v37, %v9935_v14  ;;  %v19871_v37 = vld [vmem:[#allocation34_spill] sm:$0xff] }
 0xa85   : > { %v9946_v28 = vmul.f32 %v9906_v17, %v19871_v37  ;;  %v19882_v17 = vld [vmem:[#allocation47_spill] sm:$0xff]  ;;  %v19885_v37 = vld [vmem:[#allocation48_spill] sm:$0xff] }
 0xa86   : > { %v9975_v24 = vadd.f32 %v9974_v61, %v9936_v36  ;;  %v19872_v36 = vld [vmem:[#allocation37_spill] sm:$0xff]  ;;  %v9957_v60 = vmul.f32 %v9917_v4, %v19882_v17 }
 0xa87   : > { %v9947_v61 = vmul.f32 %v9907_v41, %v19872_v36  ;;  %v9961_v36 = vmul.f32 %v9921_v12, %v19886_v54 }
 0xa88   : > { %v9976_v10 = vadd.f32 %v9975_v24, %v9937_v58  ;;  %v9948_v58 = vmul.f32 %v9908_v43, %v19873_v57 }
 0xa8a   : > { %v9977_v32 = vadd.f32 %v9976_v10, %v9938_v33  ;;  %v19875_v10 = vld [vmem:[#allocation38_spill] sm:$0xff] }
 0xa8b   : > { %v9950_v21 = vmul.f32 %v9910_v0, %v19875_v10 }
 0xa8c   : > { %v9978_v46 = vadd.f32 %v9977_v32, %v9939_v2  ;;  %v19876_v2 = vld [vmem:[#allocation41_spill] sm:$0xff] }
 0xa8d   : > { %v9951_v32 = vmul.f32 %v9911_v6, %v19876_v2 }
 0xa8e   : > { %v9979_v59 = vadd.f32 %v9978_v46, %v9940_v42  ;;  %v9952_v42 = vmul.f32 %v9912_v13, %v19877_v45  ;;  %v9965_v13 = vmul.f32 %v9925_v34, %v19890_v31 }
 0xa90   : > { %v9980_v22 = vadd.f32 %v9979_v59, %v9941_v47  ;;  %v19879_v59 = vld [vmem:[#allocation42_spill] sm:$0xff] }
 0xa91   : > { %v9954_v51 = vmul.f32 %v9914_v62, %v19879_v59 }
 0xa92   : > { %v9981_v11 = vadd.f32 %v9980_v22, %v9942_v9  ;;  %v19880_v9 = vld [vmem:[#allocation45_spill] sm:$0xff] }
 0xa93   : > { %v9955_v22 = vmul.f32 %v9915_v15, %v19880_v9 }
 0xa94   : > { %v9982_v53 = vadd.f32 %v9981_v11, %v9943_v44  ;;  %v9956_v44 = vmul.f32 %v9916_v5, %v19881_v39 }
 0xa96   : > { %v9983_v14 = vadd.f32 %v9982_v53, %v9944_v52  ;;  %v19883_v53 = vld [vmem:[#allocation46_spill] sm:$0xff] }
 0xa97   : > { %v9958_v41 = vmul.f32 %v9918_v20, %v19883_v53 }
 0xa98   : > { %v9984_v56 = vadd.f32 %v9983_v14, %v9945_v30  ;;  %v19884_v30 = vld [vmem:[#allocation49_spill] sm:$0xff] }
 0xa99   : > { %v9959_v14 = vmul.f32 %v9919_v55, %v19884_v30 }
 0xa9a   : > { %v9985_v18 = vadd.f32 %v9984_v56, %v9946_v28  ;;  %v9960_v28 = vmul.f32 %v9920_v25, %v19885_v37 }
 0xa9c   : > { %v9986_v24 = vadd.f32 %v9985_v18, %v9947_v61  ;;  %v19887_v18 = vld [vmem:[#allocation50_spill] sm:$0xff] }
 0xa9d   : > { %v9962_v0 = vmul.f32 %v9922_v8, %v19887_v18 }
 0xa9e   : > { %v9987_v33 = vadd.f32 %v9986_v24, %v9948_v58  ;;  %v19888_v58 = vld [vmem:[#allocation53_spill] sm:$0xff] }
 0xa9f   : > { %v9963_v24 = vmul.f32 %v9923_v7, %v19888_v58 }
 0xaa0   : > { %v9988_v63 = vadd.f32 %v9987_v33, %v9949_v38  ;;  %v9964_v38 = vmul.f32 %v9924_v29, %v19889_v35 }
 0xaa2   : > { %v9989_v19 = vadd.f32 %v9988_v63, %v9950_v21  ;;  %v19891_v21 = vld [vmem:[#allocation54_spill] sm:$0xff] }
 0xaa3   : > { %v9966_v50 = vmul.f32 %v9926_v26, %v19891_v21 }
 0xaa4   : > { %v9990_v46 = vadd.f32 %v9989_v19, %v9951_v32 }
 0xaa6   : > { %v9991_v47 = vadd.f32 %v9990_v46, %v9952_v42  ;;  %v10030_v46 = vld [vmem:[%s19190_s15] sm:$0x1] }
 0xaa8   : > { %v9992_v16 = vadd.f32 %v9991_v47, %v9953_v1 }
 0xaaa   : > { %v9993_v49 = vadd.f32 %v9992_v16, %v9954_v51 }
 0xaac   : > { %v9994_v11 = vadd.f32 %v9993_v49, %v9955_v22 }
 0xaae   : > { %v9995_v52 = vadd.f32 %v9994_v11, %v9956_v44 }
 0xab0   : > { %v9996_v48 = vadd.f32 %v9995_v52, %v9957_v60 }
 0xab2   : > { %v9997_v43 = vadd.f32 %v9996_v48, %v9958_v41 }
 0xab4   : > { %v9998_v56 = vadd.f32 %v9997_v43, %v9959_v14 }
 0xab6   : > { %v9999_v61 = vadd.f32 %v9998_v56, %v9960_v28 }
 0xab8   : > { %v10000_v57 = vadd.f32 %v9999_v61, %v9961_v36 }
 0xaba   : > { %v10001_v6 = vadd.f32 %v10000_v57, %v9962_v0 }
 0xabc   : > { %v10002_v33 = vadd.f32 %v10001_v6, %v9963_v24 }
 0xabe   : > { %v10003_v10 = vadd.f32 %v10002_v33, %v9964_v38 }
 0xac0   : > { %v10004_v63 = vadd.f32 %v10003_v10, %v9965_v13 }
 0xac2   : > { %v10005_v23 = vadd.f32 %v10004_v63, %v9966_v50 }
 0xac4   : > { %v10006_v2 = vrot.slane %v10005_v23, 4 }
 0xac6   : > { %v10007_v32 = vadd.f32 %v10006_v2, %v10005_v23 }
 0xac8   : > { %v10008_v40 = vrot.slane %v10007_v32, 2 }
 0xaca   : > { %v10009_v19 = vadd.f32 %v10008_v40, %v10007_v32 }
 0xacc   : > { %v10010_v62 = vrot.slane %v10009_v19, 1 }
 0xace   : > { %v10011_v45 = vadd.f32 %v10010_v62, %v10009_v19 }
 0xad0   : > { %v10012_v42 = vmul.f32 0.00390625, %v10011_v45 }
 0xad2   : > { %v10013_v3 = vpack.c.bf16 %v10012_v42, %v10012_v42 }
 0xad4   : > { %13638 = vmatmul.mubr.bf16.vlgmr.msra.gmra.mxu0 %v10013_v3 }
 0xb94   : > { %v10113_v15 = vpop.f32.mrf.mxu0 }
 0xb95   : > { %v10114_v27 = vadd.f32 %v10113_v15, %v10030_v46 }
 0xb96   : > { %v13639_v1 = vpop.f32.mrf.mxu0 }
 0xb97   : > { %10119 = vst [vmem:[%s513_s23] sm:$0x1] %v10114_v27 }
 0xb98   : > { %v10116_v47 = vpop.f32.mrf.mxu0 }
 0xb99   : > { %14386 = shalt.err (!%p14383_p3)
}
 0xb9a   : > { %s14387_s18 = scalar_lea.hbm %s19134_s24, 16  ;;  %s14391_s23 = scalar_lea.hbm %s19191_s16, 32 }
 0xb9b   : > { %p14388_p4 = scmp.ne.s32.totalorder %s19134_s24, %s14387_s18  ;;  %p14392_p9 = scmp.lt.s32.totalorder %s19134_s24, %s19191_s16 }
 0xb9c   : > { %p14393_p10 = scmp.lt.s32.totalorder %s14391_s23, %s14387_s18 }
 0xb9d   : > { %p14389_p7 = pnand %p14388_p4, %p14562_p5 }
 0xb9e   : > { %p14394_p11 = por %p14393_p10, %p14392_p9 }
 0xb9f   : > { %p14390_p8 = pneg %p14389_p7 }
 0xba1   : > { %p14395_p12 = pnand %p14394_p11, %p14390_p8 }
 0xba3   : > { %14398 = shalt.err (!%p14395_p12)
}
 0xba4   : > { %13642 = dma.vmem_to_hbm [thread:$0]  (%p14562_p5), %s19136_s27, 16, %s19134_s24, %s10121_s30   ;;  %v13640_v5 = vpop.f32.mrf.mxu0 }
 0xba5 PF: > { %s19892_s19 = sld [smem:[#allocation10_spill]] }
 0xba6   : > { %s19893_s25 = sld [smem:[#allocation8_spill]] }
 0xbab   : > { %p13648_p13 = scmp.ge.s32.totalorder %s19892_s19, 2 }
 0xbac   : > { %s10145_s28 = sand.u32 1, %s19893_s25  }
 0xbad   : > { %p13645_p0 = pnand %p13648_p13, %p14566_p6  ;;  %s10146_s29 = scalar_lea.sflag [#allocation6], %s10145_s28 }
 0xbaf   : > { %p13646_p1 = pneg %p13645_p0 }
 0xbb1   : > { %14416 = dma.done.wait (%p13646_p1), %s10146_s29, 16  }
 0xbb2   : > { %14418 = vsyncadd (%p13646_p1), %s10146_s29, 4294967280  ;;  %s19895_s24 = sld [smem:[#allocation11_spill]]  ;;  %s19898_s21 = smov %s14425_s22 }
 0xbb3   : > { %s19896_s18 = sld [smem:[#allocation9_spill]] }
 0xbb4   : > { %s19897_s23 = sld [smem:[#allocation12_spill]] }
 0xbb8   : > { %p26_p2 = scmp.ge.s32.totalorder %s19895_s24, 4  }
 0xbb9   : > { %s19899_s22 = smov %s19896_s18 }
 0xbba   :  { %28 = sbr.rel (!%p26_p2) target bundleno = 5 (0x5), region = 127 }
 0xbbf   :  { %10150 = vsyncpa [#allocation6], 1 }
 0xbc0   :  { %10152 = vsyncpa [#allocation6 + $0x1], 1 }

</bundles_post_ra>
